<compile_context>
chip_gen: v7x
topology: tpu7x:2x2x1
jax: 0.10.0
libtpu: 0.0.40
codegen_flags: <defaults>
</compile_context>

<pallas_src>
import math
from functools import partial

import jax
import jax.numpy as jnp
from jax.experimental import pallas as pl


NEG_INF = -1e30


# ----------------------------------------------------------------------------
# Fused forward kernel (single invocation, everything resident in VMEM)
# ----------------------------------------------------------------------------
def _fused_forward_kernel(
    x_ref, maskbig_ref, ewbig_ref, p_ref, pt_ref, bdiag_ref,
    src_ref, tgt_ref, encw_ref, encb_ref,
    wq_ref, wk_ref, wv_ref, bo_ref, alpha_ref,
    skw_ref, skb_ref, dgw1_ref, dgw2_ref, dgb_ref,
    dw1_ref, db1_ref, dw2_ref, db2_ref,
    y_ref,
    *, nblocks, heads, B, T, N):
    f32 = jnp.float32
    bf16 = jnp.bfloat16

    def mm(a, b):
        # 2-D matmul: bf16 MXU operands, f32 accumulation.
        return jnp.dot(a.astype(bf16), b.astype(bf16),
                       preferred_element_type=f32)

    BTN = B * T * N
    H = encw_ref.shape[1]
    FF = skw_ref.shape[2]
    dh = H // heads
    scale = 1.0 / math.sqrt(dh)

    # ---- learned adjacency: softmax(relu(src @ tgt^T), axis=1) -------------
    logits = jnp.einsum('ah,bh->ab', src_ref[...].astype(bf16),
                        tgt_ref[...].astype(bf16), preferred_element_type=f32)
    logits = jnp.maximum(logits, 0.0)
    logits = logits - jnp.max(logits, axis=1, keepdims=True)
    e = jnp.exp(logits)
    adj = e / jnp.sum(e, axis=1, keepdims=True)                     # [N, N]
    # expand to block-diagonal kron(I_BT, adj) with two small matmuls + mask
    adj_big = mm(mm(p_ref[...], adj), pt_ref[...]) * bdiag_ref[...]  # [BTN,BTN]

    # ---- encoder ------------------------------------------------------------
    h = mm(x_ref[...], encw_ref[...]) + encb_ref[...]               # [BTN, H]

    maskbig = maskbig_ref[...]          # additive 0 / -1e30 (graph + block-diag)
    ewbig = ewbig_ref[...]              # block-diagonal dense edge weights

    out = jnp.zeros((BTN, FF), f32)     # skip accumulator

    for b in range(nblocks):            # static unroll (nblocks is small)
        res = h

        # --- graph attention (GSATConv approx.), all heads batched ----------
        hb = jnp.broadcast_to(h.astype(bf16)[None], (heads, BTN, H))
        q = jnp.einsum('hnf,hfd->hnd', hb, wq_ref[b].astype(bf16),
                       preferred_element_type=f32)                  # [h,BTN,dh]
        k = jnp.einsum('hnf,hfd->hnd', hb, wk_ref[b].astype(bf16),
                       preferred_element_type=f32)
        v = jnp.einsum('hnf,hfd->hnd', hb, wv_ref[b].astype(bf16),
                       preferred_element_type=f32)

        s = jnp.einsum('hnd,hmd->hnm', q.astype(bf16), k.astype(bf16),
                       preferred_element_type=f32) * scale          # [h,BTN,BTN]
        # per-head edge-weight bias + additive graph/block mask
        s = s + alpha_ref[b] * ewbig[None] + maskbig[None]
        s = s - jnp.max(s, axis=-1, keepdims=True)
        p = jnp.exp(s)
        p = p * pl.reciprocal(jnp.sum(p, axis=-1, keepdims=True), approx=True)
        o_heads = jnp.einsum('hnm,hmd->hnd', p.astype(bf16), v.astype(bf16),
                             preferred_element_type=f32)            # [h,BTN,dh]
        processed = jnp.concatenate([o_heads[hh] for hh in range(heads)],
                                    axis=-1) + bo_ref[b]            # [BTN, H]

        # --- skip connection accumulation ------------------------------------
        out = out + mm(processed, skw_ref[b]) + skb_ref[b]

        # --- DenseGraphConvOrderK (order=2), concat -> split weights ----------
        z1 = mm(adj_big, h)
        z2 = mm(adj_big, z1)
        conv = mm(z1, dgw1_ref[b]) + mm(z2, dgw2_ref[b]) + dgb_ref[b]

        # --- residuals --------------------------------------------------------
        h = processed + conv + res

    # ---- readout: ReLU -> last time step -> MLP decoder ----------------------
    r = jnp.maximum(out, 0.0)
    r_last = r[(T - 1) * B * N:, :]                                  # [B*N, FF]
    hdec = jnp.maximum(mm(r_last, dw1_ref[...]) + db1_ref[...], 0.0)
    y = mm(hdec, dw2_ref[...]) + db2_ref[...]
    y_ref[...] = y.astype(y_ref.dtype)


# ----------------------------------------------------------------------------
# Wrapper: layout plumbing + constant graph structures, then one pallas_call
# ----------------------------------------------------------------------------
@partial(jax.jit, static_argnames=("heads", "horizon"))
def synaptic_attention_forward(x, edge_index, edge_weight, params,
                               heads=8, horizon=3):
    B, T, Nn, F = x.shape
    H = params["enc_w"].shape[1]
    FF = params["blocks"][0]["skip_w"].shape[1]
    nblocks = len(params["blocks"])
    assert H % heads == 0
    dh = H // heads
    BT = B * T
    BTN = BT * Nn

    # ---- static graph structures (plain XLA glue, computed once) -----------
    src, dst = edge_index[0], edge_index[1]
    mask01 = jnp.zeros((Nn, Nn), jnp.float32).at[dst, src].set(1.0)
    mask01 = jnp.maximum(mask01, jnp.eye(Nn, dtype=jnp.float32))   # self loops
    ew = jnp.zeros((Nn, Nn), jnp.float32).at[dst, src].set(edge_weight)

    eye_bt = jnp.eye(BT, dtype=jnp.float32)
    maskbig = jnp.where(jnp.kron(eye_bt, mask01) > 0,
                        0.0, NEG_INF).astype(jnp.float32)
    ewbig = jnp.kron(eye_bt, ew)
    blockdiag = jnp.kron(eye_bt, jnp.ones((Nn, Nn), jnp.float32))
    P = jnp.tile(jnp.eye(Nn, dtype=jnp.float32), (BT, 1))          # [BTN, Nn]
    PT = P.T                                                        # [Nn, BTN]

    # time-major flat layout: rows ordered (t, b, n) so the last time step is
    # the final B*N rows (clean static slice inside the kernel)
    x_flat = x.transpose(1, 0, 2, 3).reshape(BTN, F)

    # ---- stack per-block parameters along a leading block axis --------------
    def stack(name):
        return jnp.stack([blk[name] for blk in params["blocks"]])

    wq = stack("wq").reshape(nblocks, H, heads, dh).transpose(0, 2, 1, 3)
    wk = stack("wk").reshape(nblocks, H, heads, dh).transpose(0, 2, 1, 3)
    wv = stack("wv").reshape(nblocks, H, heads, dh).transpose(0, 2, 1, 3)
    bo = stack("bo").reshape(nblocks, 1, H)
    alpha = stack("alpha").reshape(nblocks, heads, 1, 1)
    skip_w = stack("skip_w")                                        # [nb, H, FF]
    skip_b = stack("skip_b").reshape(nblocks, 1, FF)
    dg_w = stack("dg_w")                                            # [nb, 2H, H]
    dg_w1, dg_w2 = dg_w[:, :H, :], dg_w[:, H:, :]
    dg_b = stack("dg_b").reshape(nblocks, 1, H)

    y_flat = pl.pallas_call(
        partial(_fused_forward_kernel, nblocks=nblocks, heads=heads,
                B=B, T=T, N=Nn),
        out_shape=jax.ShapeDtypeStruct((B * Nn, horizon * F), jnp.float32),
    )(x_flat, maskbig, ewbig, P, PT, blockdiag,
      params["src_emb"], params["tgt_emb"],
      params["enc_w"], params["enc_b"].reshape(1, H),
      wq, wk, wv, bo, alpha, skip_w, skip_b, dg_w1, dg_w2, dg_b,
      params["dec_w1"], params["dec_b1"].reshape(1, -1),
      params["dec_w2"], params["dec_b2"].reshape(1, -1))

    # [B*N, horizon*F] -> [B, horizon, N, F]
    return y_flat.reshape(B, Nn, horizon, F).transpose(0, 2, 1, 3)


# ----------------------------------------------------------------------------
# Deterministic parameter initialization
# ----------------------------------------------------------------------------
def init_params(key, F, Nn, H, FF, horizon, heads, nblocks):
    def nrm(k, shape, scale=0.1):
        return jax.random.normal(k, shape, jnp.float32) * scale

    keys = jax.random.split(key, 8 + nblocks)
    params = {
        "src_emb": nrm(keys[0], (Nn, H)),
        "tgt_emb": nrm(keys[1], (Nn, H)),
        "enc_w": nrm(keys[2], (F, H)),
        "enc_b": jnp.zeros((H,), jnp.float32),
        "dec_w1": nrm(keys[3], (FF, 2 * FF)),
        "dec_b1": jnp.zeros((2 * FF,), jnp.float32),
        "dec_w2": nrm(keys[4], (2 * FF, horizon * F)),
        "dec_b2": jnp.zeros((horizon * F,), jnp.float32),
        "blocks": [],
    }
    for i in range(nblocks):
        bk = jax.random.split(keys[8 + i], 6)
        params["blocks"].append({
            "wq": nrm(bk[0], (H, H)),
            "wk": nrm(bk[1], (H, H)),
            "wv": nrm(bk[2], (H, H)),
            "bo": jnp.zeros((H,), jnp.float32),
            "alpha": nrm(bk[3], (heads,), 1.0),
            "skip_w": nrm(bk[4], (H, FF)),
            "skip_b": jnp.zeros((FF,), jnp.float32),
            "dg_w": nrm(bk[5], (2 * H, H)),
            "dg_b": jnp.zeros((H,), jnp.float32),
        })
    return params


if __name__ == "__main__":
    B, T, Nn, F = 2, 4, 8, 4           # batch, time, nodes, input_size
    H, FF, horizon = 32, 32, 3         # hidden_size, ff_size, horizon
    heads, nblocks = 8, 2

    key = jax.random.PRNGKey(0)
    kp, kx = jax.random.split(key)
    params = init_params(kp, F, Nn, H, FF, horizon, heads, nblocks)

    x = jax.random.normal(kx, (B, T, Nn, F), jnp.float32)
    # bidirectional ring graph over the nodes
    s = jnp.arange(Nn)
    d = (s + 1) % Nn
    edge_index = jnp.stack([jnp.concatenate([s, d]), jnp.concatenate([d, s])])
    edge_weight = jnp.full((edge_index.shape[1],), 0.5, jnp.float32)

    y = synaptic_attention_forward(x, edge_index, edge_weight, params,
                                   heads=heads, horizon=horizon)
    jax.block_until_ready(y)
    assert y.shape == (B, horizon, Nn, F)
    assert not bool(jnp.isnan(y).any())
    print("KERNEL_OK")
</pallas_src>

<mosaic_0001>
module attributes {stable_mosaic.version = 11 : i64} {
  func.func @_fused_forward_kernel(%arg0: memref<64x4xf32, #tpu.memory_space<vmem>>, %arg1: memref<64x64xf32, #tpu.memory_space<vmem>>, %arg2: memref<64x64xf32, #tpu.memory_space<vmem>>, %arg3: memref<64x8xf32, #tpu.memory_space<vmem>>, %arg4: memref<8x64xf32, #tpu.memory_space<vmem>>, %arg5: memref<64x64xf32, #tpu.memory_space<vmem>>, %arg6: memref<8x32xf32, #tpu.memory_space<vmem>>, %arg7: memref<8x32xf32, #tpu.memory_space<vmem>>, %arg8: memref<4x32xf32, #tpu.memory_space<vmem>>, %arg9: memref<1x32xf32, #tpu.memory_space<vmem>>, %arg10: memref<2x8x32x4xf32, #tpu.memory_space<vmem>>, %arg11: memref<2x8x32x4xf32, #tpu.memory_space<vmem>>, %arg12: memref<2x8x32x4xf32, #tpu.memory_space<vmem>>, %arg13: memref<2x1x32xf32, #tpu.memory_space<vmem>>, %arg14: memref<2x8x1x1xf32, #tpu.memory_space<vmem>>, %arg15: memref<2x32x32xf32, #tpu.memory_space<vmem>>, %arg16: memref<2x1x32xf32, #tpu.memory_space<vmem>>, %arg17: memref<2x32x32xf32, #tpu.memory_space<vmem>>, %arg18: memref<2x32x32xf32, #tpu.memory_space<vmem>>, %arg19: memref<2x1x32xf32, #tpu.memory_space<vmem>>, %arg20: memref<32x64xf32, #tpu.memory_space<vmem>>, %arg21: memref<1x64xf32, #tpu.memory_space<vmem>>, %arg22: memref<64x12xf32, #tpu.memory_space<vmem>>, %arg23: memref<1x12xf32, #tpu.memory_space<vmem>>, %arg24: memref<16x12xf32, #tpu.memory_space<vmem>>) attributes {dimension_semantics = [], scalar_prefetch = 0 : i64, scratch_operands = 0 : i64, tpu.core_type = #tpu.core_type<tc>} {
    %c0 = arith.constant 0 : index
    %c0_0 = arith.constant 0 : index
    %0 = vector.load %arg6[%c0, %c0_0] : memref<8x32xf32, #tpu.memory_space<vmem>>, vector<8x32xf32>
    %1 = arith.truncf %0 : vector<8x32xf32> to vector<8x32xbf16>
    %c0_1 = arith.constant 0 : index
    %c0_2 = arith.constant 0 : index
    %2 = vector.load %arg7[%c0_1, %c0_2] : memref<8x32xf32, #tpu.memory_space<vmem>>, vector<8x32xf32>
    %3 = arith.truncf %2 : vector<8x32xf32> to vector<8x32xbf16>
    "tpu.trace_start"() <{level = 10 : i32, message = "ah,bh->ab"}> : () -> ()
    %cst = arith.constant dense<0.000000e+00> : vector<8x8xf32>
    %4 = tpu.matmul %1, %3, %cst {dimension_numbers = #tpu.dot_dimension_numbers<[1], [1], [0], [0], [0, 0, 1, 0], [], []>} : vector<8x32xbf16>, vector<8x32xbf16>, vector<8x8xf32> -> vector<8x8xf32>
    "tpu.trace_stop"() : () -> ()
    %cst_3 = arith.constant 0.000000e+00 : f32
    %5 = vector.broadcast %cst_3 : f32 to vector<8x8xf32>
    %6 = arith.maximumf %4, %5 : vector<8x8xf32>
    %cst_4 = arith.constant dense<0xFF800000> : vector<8xf32>
    %7 = vector.multi_reduction <maximumf>, %6, %cst_4 [1] : vector<8x8xf32> to vector<8xf32>
    %8 = vector.shape_cast %7 : vector<8xf32> to vector<8x1xf32>
    %9 = vector.broadcast %8 : vector<8x1xf32> to vector<8x8xf32>
    %10 = arith.subf %6, %9 : vector<8x8xf32>
    %11 = math.exp %10 : vector<8x8xf32>
    %cst_5 = arith.constant dense<0.000000e+00> : vector<8xf32>
    %12 = vector.multi_reduction <add>, %11, %cst_5 [1] : vector<8x8xf32> to vector<8xf32>
    %13 = vector.shape_cast %12 : vector<8xf32> to vector<8x1xf32>
    %14 = vector.broadcast %13 : vector<8x1xf32> to vector<8x8xf32>
    %15 = arith.divf %11, %14 : vector<8x8xf32>
    %c0_6 = arith.constant 0 : index
    %c0_7 = arith.constant 0 : index
    %16 = vector.load %arg3[%c0_6, %c0_7] : memref<64x8xf32, #tpu.memory_space<vmem>>, vector<64x8xf32>
    %17 = arith.truncf %16 : vector<64x8xf32> to vector<64x8xbf16>
    %18 = arith.truncf %15 : vector<8x8xf32> to vector<8x8xbf16>
    %cst_8 = arith.constant dense<0.000000e+00> : vector<64x8xf32>
    %19 = tpu.matmul %17, %18, %cst_8 {dimension_numbers = #tpu.dot_dimension_numbers<[1], [0], [0], [1], [0, 0, 1, 1], [], []>} : vector<64x8xbf16>, vector<8x8xbf16>, vector<64x8xf32> -> vector<64x8xf32>
    %c0_9 = arith.constant 0 : index
    %c0_10 = arith.constant 0 : index
    %20 = vector.load %arg4[%c0_9, %c0_10] : memref<8x64xf32, #tpu.memory_space<vmem>>, vector<8x64xf32>
    %21 = arith.truncf %19 : vector<64x8xf32> to vector<64x8xbf16>
    %22 = arith.truncf %20 : vector<8x64xf32> to vector<8x64xbf16>
    %cst_11 = arith.constant dense<0.000000e+00> : vector<64x64xf32>
    %23 = tpu.matmul %21, %22, %cst_11 {dimension_numbers = #tpu.dot_dimension_numbers<[1], [0], [0], [1], [0, 0, 1, 1], [], []>} : vector<64x8xbf16>, vector<8x64xbf16>, vector<64x64xf32> -> vector<64x64xf32>
    %c0_12 = arith.constant 0 : index
    %c0_13 = arith.constant 0 : index
    %24 = vector.load %arg5[%c0_12, %c0_13] : memref<64x64xf32, #tpu.memory_space<vmem>>, vector<64x64xf32>
    %25 = arith.mulf %23, %24 : vector<64x64xf32>
    %c0_14 = arith.constant 0 : index
    %c0_15 = arith.constant 0 : index
    %26 = vector.load %arg0[%c0_14, %c0_15] : memref<64x4xf32, #tpu.memory_space<vmem>>, vector<64x4xf32>
    %c0_16 = arith.constant 0 : index
    %c0_17 = arith.constant 0 : index
    %27 = vector.load %arg8[%c0_16, %c0_17] : memref<4x32xf32, #tpu.memory_space<vmem>>, vector<4x32xf32>
    %28 = arith.truncf %26 : vector<64x4xf32> to vector<64x4xbf16>
    %29 = arith.truncf %27 : vector<4x32xf32> to vector<4x32xbf16>
    %cst_18 = arith.constant dense<0.000000e+00> : vector<64x32xf32>
    %30 = tpu.matmul %28, %29, %cst_18 {dimension_numbers = #tpu.dot_dimension_numbers<[1], [0], [0], [1], [0, 0, 1, 1], [], []>} : vector<64x4xbf16>, vector<4x32xbf16>, vector<64x32xf32> -> vector<64x32xf32>
    %c0_19 = arith.constant 0 : index
    %c0_20 = arith.constant 0 : index
    %31 = vector.load %arg9[%c0_19, %c0_20] : memref<1x32xf32, #tpu.memory_space<vmem>>, vector<1x32xf32>
    %32 = vector.broadcast %31 : vector<1x32xf32> to vector<64x32xf32>
    %33 = arith.addf %30, %32 : vector<64x32xf32>
    %c0_21 = arith.constant 0 : index
    %c0_22 = arith.constant 0 : index
    %34 = vector.load %arg1[%c0_21, %c0_22] : memref<64x64xf32, #tpu.memory_space<vmem>>, vector<64x64xf32>
    %c0_23 = arith.constant 0 : index
    %c0_24 = arith.constant 0 : index
    %35 = vector.load %arg2[%c0_23, %c0_24] : memref<64x64xf32, #tpu.memory_space<vmem>>, vector<64x64xf32>
    %cst_25 = arith.constant 0.000000e+00 : f32
    %36 = vector.broadcast %cst_25 : f32 to vector<64x32xf32>
    %37 = arith.truncf %33 : vector<64x32xf32> to vector<64x32xbf16>
    %38 = vector.shape_cast %37 : vector<64x32xbf16> to vector<1x64x32xbf16>
    %39 = vector.shape_cast %38 : vector<1x64x32xbf16> to vector<1x64x32xbf16>
    %40 = vector.broadcast %39 : vector<1x64x32xbf16> to vector<8x64x32xbf16>
    %c0_26 = arith.constant 0 : index
    %c0_27 = arith.constant 0 : index
    %c0_28 = arith.constant 0 : index
    %c0_29 = arith.constant 0 : index
    %41 = vector.load %arg10[%c0_26, %c0_27, %c0_28, %c0_29] : memref<2x8x32x4xf32, #tpu.memory_space<vmem>>, vector<1x8x32x4xf32>
    %42 = vector.shape_cast %41 : vector<1x8x32x4xf32> to vector<8x32x4xf32>
    %43 = arith.truncf %42 : vector<8x32x4xf32> to vector<8x32x4xbf16>
    "tpu.trace_start"() <{level = 10 : i32, message = "hnf,hfd->hnd"}> : () -> ()
    %cst_30 = arith.constant dense<0.000000e+00> : vector<8x64x4xf32>
    %44 = tpu.matmul %40, %43, %cst_30 {dimension_numbers = #tpu.dot_dimension_numbers<[2], [1], [1], [2], [0, 0, 0, 1, 1, 2], [0], [0]>} : vector<8x64x32xbf16>, vector<8x32x4xbf16>, vector<8x64x4xf32> -> vector<8x64x4xf32>
    "tpu.trace_stop"() : () -> ()
    %c0_31 = arith.constant 0 : index
    %c0_32 = arith.constant 0 : index
    %c0_33 = arith.constant 0 : index
    %c0_34 = arith.constant 0 : index
    %45 = vector.load %arg11[%c0_31, %c0_32, %c0_33, %c0_34] : memref<2x8x32x4xf32, #tpu.memory_space<vmem>>, vector<1x8x32x4xf32>
    %46 = vector.shape_cast %45 : vector<1x8x32x4xf32> to vector<8x32x4xf32>
    %47 = arith.truncf %46 : vector<8x32x4xf32> to vector<8x32x4xbf16>
    "tpu.trace_start"() <{level = 10 : i32, message = "hnf,hfd->hnd"}> : () -> ()
    %cst_35 = arith.constant dense<0.000000e+00> : vector<8x64x4xf32>
    %48 = tpu.matmul %40, %47, %cst_35 {dimension_numbers = #tpu.dot_dimension_numbers<[2], [1], [1], [2], [0, 0, 0, 1, 1, 2], [0], [0]>} : vector<8x64x32xbf16>, vector<8x32x4xbf16>, vector<8x64x4xf32> -> vector<8x64x4xf32>
    "tpu.trace_stop"() : () -> ()
    %c0_36 = arith.constant 0 : index
    %c0_37 = arith.constant 0 : index
    %c0_38 = arith.constant 0 : index
    %c0_39 = arith.constant 0 : index
    %49 = vector.load %arg12[%c0_36, %c0_37, %c0_38, %c0_39] : memref<2x8x32x4xf32, #tpu.memory_space<vmem>>, vector<1x8x32x4xf32>
    %50 = vector.shape_cast %49 : vector<1x8x32x4xf32> to vector<8x32x4xf32>
    %51 = arith.truncf %50 : vector<8x32x4xf32> to vector<8x32x4xbf16>
    "tpu.trace_start"() <{level = 10 : i32, message = "hnf,hfd->hnd"}> : () -> ()
    %cst_40 = arith.constant dense<0.000000e+00> : vector<8x64x4xf32>
    %52 = tpu.matmul %40, %51, %cst_40 {dimension_numbers = #tpu.dot_dimension_numbers<[2], [1], [1], [2], [0, 0, 0, 1, 1, 2], [0], [0]>} : vector<8x64x32xbf16>, vector<8x32x4xbf16>, vector<8x64x4xf32> -> vector<8x64x4xf32>
    "tpu.trace_stop"() : () -> ()
    %53 = arith.truncf %44 : vector<8x64x4xf32> to vector<8x64x4xbf16>
    %54 = arith.truncf %48 : vector<8x64x4xf32> to vector<8x64x4xbf16>
    "tpu.trace_start"() <{level = 10 : i32, message = "hnd,hmd->hnm"}> : () -> ()
    %cst_41 = arith.constant dense<0.000000e+00> : vector<8x64x64xf32>
    %55 = tpu.matmul %53, %54, %cst_41 {dimension_numbers = #tpu.dot_dimension_numbers<[2], [2], [1], [1], [0, 0, 0, 1, 1, 1], [0], [0]>} : vector<8x64x4xbf16>, vector<8x64x4xbf16>, vector<8x64x64xf32> -> vector<8x64x64xf32>
    "tpu.trace_stop"() : () -> ()
    %cst_42 = arith.constant 5.000000e-01 : f32
    %56 = vector.broadcast %cst_42 : f32 to vector<8x64x64xf32>
    %57 = arith.mulf %55, %56 : vector<8x64x64xf32>
    %c0_43 = arith.constant 0 : index
    %c0_44 = arith.constant 0 : index
    %c0_45 = arith.constant 0 : index
    %c0_46 = arith.constant 0 : index
    %58 = vector.load %arg14[%c0_43, %c0_44, %c0_45, %c0_46] : memref<2x8x1x1xf32, #tpu.memory_space<vmem>>, vector<1x8x1x1xf32>
    %59 = vector.shape_cast %58 : vector<1x8x1x1xf32> to vector<8x1x1xf32>
    %60 = vector.shape_cast %35 : vector<64x64xf32> to vector<1x64x64xf32>
    %61 = vector.broadcast %59 : vector<8x1x1xf32> to vector<8x64x64xf32>
    %62 = vector.broadcast %60 : vector<1x64x64xf32> to vector<8x64x64xf32>
    %63 = arith.mulf %61, %62 : vector<8x64x64xf32>
    %64 = arith.addf %57, %63 : vector<8x64x64xf32>
    %65 = vector.shape_cast %34 : vector<64x64xf32> to vector<1x64x64xf32>
    %66 = vector.broadcast %65 : vector<1x64x64xf32> to vector<8x64x64xf32>
    %67 = arith.addf %64, %66 : vector<8x64x64xf32>
    %cst_47 = arith.constant dense<0xFF800000> : vector<8x64xf32>
    %68 = vector.multi_reduction <maximumf>, %67, %cst_47 [2] : vector<8x64x64xf32> to vector<8x64xf32>
    %69 = vector.shape_cast %68 : vector<8x64xf32> to vector<8x64x1xf32>
    %70 = vector.broadcast %69 : vector<8x64x1xf32> to vector<8x64x64xf32>
    %71 = arith.subf %67, %70 : vector<8x64x64xf32>
    %72 = math.exp %71 : vector<8x64x64xf32>
    %cst_48 = arith.constant dense<0.000000e+00> : vector<8x64xf32>
    %73 = vector.multi_reduction <add>, %72, %cst_48 [2] : vector<8x64x64xf32> to vector<8x64xf32>
    %74 = vector.shape_cast %73 : vector<8x64xf32> to vector<8x64x1xf32>
    %75 = tpu.reciprocal %74 {approx = true} : vector<8x64x1xf32> -> vector<8x64x1xf32>
    %76 = vector.broadcast %75 : vector<8x64x1xf32> to vector<8x64x64xf32>
    %77 = arith.mulf %72, %76 : vector<8x64x64xf32>
    %78 = arith.truncf %77 : vector<8x64x64xf32> to vector<8x64x64xbf16>
    %79 = arith.truncf %52 : vector<8x64x4xf32> to vector<8x64x4xbf16>
    "tpu.trace_start"() <{level = 10 : i32, message = "hnm,hmd->hnd"}> : () -> ()
    %cst_49 = arith.constant dense<0.000000e+00> : vector<8x64x4xf32>
    %80 = tpu.matmul %78, %79, %cst_49 {dimension_numbers = #tpu.dot_dimension_numbers<[2], [1], [1], [2], [0, 0, 0, 1, 1, 2], [0], [0]>} : vector<8x64x64xbf16>, vector<8x64x4xbf16>, vector<8x64x4xf32> -> vector<8x64x4xf32>
    "tpu.trace_stop"() : () -> ()
    %81 = vector.extract_strided_slice %80 {offsets = [0, 0, 0], sizes = [1, 64, 4], strides = [1, 1, 1]} : vector<8x64x4xf32> to vector<1x64x4xf32>
    %82 = vector.shape_cast %81 : vector<1x64x4xf32> to vector<64x4xf32>
    %83 = vector.extract_strided_slice %80 {offsets = [1, 0, 0], sizes = [1, 64, 4], strides = [1, 1, 1]} : vector<8x64x4xf32> to vector<1x64x4xf32>
    %84 = vector.shape_cast %83 : vector<1x64x4xf32> to vector<64x4xf32>
    %85 = vector.extract_strided_slice %80 {offsets = [2, 0, 0], sizes = [1, 64, 4], strides = [1, 1, 1]} : vector<8x64x4xf32> to vector<1x64x4xf32>
    %86 = vector.shape_cast %85 : vector<1x64x4xf32> to vector<64x4xf32>
    %87 = vector.extract_strided_slice %80 {offsets = [3, 0, 0], sizes = [1, 64, 4], strides = [1, 1, 1]} : vector<8x64x4xf32> to vector<1x64x4xf32>
    %88 = vector.shape_cast %87 : vector<1x64x4xf32> to vector<64x4xf32>
    %89 = vector.extract_strided_slice %80 {offsets = [4, 0, 0], sizes = [1, 64, 4], strides = [1, 1, 1]} : vector<8x64x4xf32> to vector<1x64x4xf32>
    %90 = vector.shape_cast %89 : vector<1x64x4xf32> to vector<64x4xf32>
    %91 = vector.extract_strided_slice %80 {offsets = [5, 0, 0], sizes = [1, 64, 4], strides = [1, 1, 1]} : vector<8x64x4xf32> to vector<1x64x4xf32>
    %92 = vector.shape_cast %91 : vector<1x64x4xf32> to vector<64x4xf32>
    %93 = vector.extract_strided_slice %80 {offsets = [6, 0, 0], sizes = [1, 64, 4], strides = [1, 1, 1]} : vector<8x64x4xf32> to vector<1x64x4xf32>
    %94 = vector.shape_cast %93 : vector<1x64x4xf32> to vector<64x4xf32>
    %95 = vector.extract_strided_slice %80 {offsets = [7, 0, 0], sizes = [1, 64, 4], strides = [1, 1, 1]} : vector<8x64x4xf32> to vector<1x64x4xf32>
    %96 = vector.shape_cast %95 : vector<1x64x4xf32> to vector<64x4xf32>
    %97 = tpu.concatenate %82, %84, %86, %88, %90, %92, %94, %96 in 1 : vector<64x4xf32>, vector<64x4xf32>, vector<64x4xf32>, vector<64x4xf32>, vector<64x4xf32>, vector<64x4xf32>, vector<64x4xf32>, vector<64x4xf32> -> vector<64x32xf32>
    %c0_50 = arith.constant 0 : index
    %c0_51 = arith.constant 0 : index
    %c0_52 = arith.constant 0 : index
    %98 = vector.load %arg13[%c0_50, %c0_51, %c0_52] : memref<2x1x32xf32, #tpu.memory_space<vmem>>, vector<1x1x32xf32>
    %99 = vector.shape_cast %98 : vector<1x1x32xf32> to vector<1x32xf32>
    %100 = vector.broadcast %99 : vector<1x32xf32> to vector<64x32xf32>
    %101 = arith.addf %97, %100 : vector<64x32xf32>
    %c0_53 = arith.constant 0 : index
    %c0_54 = arith.constant 0 : index
    %c0_55 = arith.constant 0 : index
    %102 = vector.load %arg15[%c0_53, %c0_54, %c0_55] : memref<2x32x32xf32, #tpu.memory_space<vmem>>, vector<1x32x32xf32>
    %103 = vector.shape_cast %102 : vector<1x32x32xf32> to vector<32x32xf32>
    %104 = arith.truncf %101 : vector<64x32xf32> to vector<64x32xbf16>
    %105 = arith.truncf %103 : vector<32x32xf32> to vector<32x32xbf16>
    %cst_56 = arith.constant dense<0.000000e+00> : vector<64x32xf32>
    %106 = tpu.matmul %104, %105, %cst_56 {dimension_numbers = #tpu.dot_dimension_numbers<[1], [0], [0], [1], [0, 0, 1, 1], [], []>} : vector<64x32xbf16>, vector<32x32xbf16>, vector<64x32xf32> -> vector<64x32xf32>
    %107 = arith.addf %36, %106 : vector<64x32xf32>
    %c0_57 = arith.constant 0 : index
    %c0_58 = arith.constant 0 : index
    %c0_59 = arith.constant 0 : index
    %108 = vector.load %arg16[%c0_57, %c0_58, %c0_59] : memref<2x1x32xf32, #tpu.memory_space<vmem>>, vector<1x1x32xf32>
    %109 = vector.shape_cast %108 : vector<1x1x32xf32> to vector<1x32xf32>
    %110 = vector.broadcast %109 : vector<1x32xf32> to vector<64x32xf32>
    %111 = arith.addf %107, %110 : vector<64x32xf32>
    %112 = arith.truncf %25 : vector<64x64xf32> to vector<64x64xbf16>
    %113 = arith.truncf %33 : vector<64x32xf32> to vector<64x32xbf16>
    %cst_60 = arith.constant dense<0.000000e+00> : vector<64x32xf32>
    %114 = tpu.matmul %112, %113, %cst_60 {dimension_numbers = #tpu.dot_dimension_numbers<[1], [0], [0], [1], [0, 0, 1, 1], [], []>} : vector<64x64xbf16>, vector<64x32xbf16>, vector<64x32xf32> -> vector<64x32xf32>
    %115 = arith.truncf %25 : vector<64x64xf32> to vector<64x64xbf16>
    %116 = arith.truncf %114 : vector<64x32xf32> to vector<64x32xbf16>
    %cst_61 = arith.constant dense<0.000000e+00> : vector<64x32xf32>
    %117 = tpu.matmul %115, %116, %cst_61 {dimension_numbers = #tpu.dot_dimension_numbers<[1], [0], [0], [1], [0, 0, 1, 1], [], []>} : vector<64x64xbf16>, vector<64x32xbf16>, vector<64x32xf32> -> vector<64x32xf32>
    %c0_62 = arith.constant 0 : index
    %c0_63 = arith.constant 0 : index
    %c0_64 = arith.constant 0 : index
    %118 = vector.load %arg17[%c0_62, %c0_63, %c0_64] : memref<2x32x32xf32, #tpu.memory_space<vmem>>, vector<1x32x32xf32>
    %119 = vector.shape_cast %118 : vector<1x32x32xf32> to vector<32x32xf32>
    %120 = arith.truncf %114 : vector<64x32xf32> to vector<64x32xbf16>
    %121 = arith.truncf %119 : vector<32x32xf32> to vector<32x32xbf16>
    %cst_65 = arith.constant dense<0.000000e+00> : vector<64x32xf32>
    %122 = tpu.matmul %120, %121, %cst_65 {dimension_numbers = #tpu.dot_dimension_numbers<[1], [0], [0], [1], [0, 0, 1, 1], [], []>} : vector<64x32xbf16>, vector<32x32xbf16>, vector<64x32xf32> -> vector<64x32xf32>
    %c0_66 = arith.constant 0 : index
    %c0_67 = arith.constant 0 : index
    %c0_68 = arith.constant 0 : index
    %123 = vector.load %arg18[%c0_66, %c0_67, %c0_68] : memref<2x32x32xf32, #tpu.memory_space<vmem>>, vector<1x32x32xf32>
    %124 = vector.shape_cast %123 : vector<1x32x32xf32> to vector<32x32xf32>
    %125 = arith.truncf %117 : vector<64x32xf32> to vector<64x32xbf16>
    %126 = arith.truncf %124 : vector<32x32xf32> to vector<32x32xbf16>
    %cst_69 = arith.constant dense<0.000000e+00> : vector<64x32xf32>
    %127 = tpu.matmul %125, %126, %cst_69 {dimension_numbers = #tpu.dot_dimension_numbers<[1], [0], [0], [1], [0, 0, 1, 1], [], []>} : vector<64x32xbf16>, vector<32x32xbf16>, vector<64x32xf32> -> vector<64x32xf32>
    %128 = arith.addf %122, %127 : vector<64x32xf32>
    %c0_70 = arith.constant 0 : index
    %c0_71 = arith.constant 0 : index
    %c0_72 = arith.constant 0 : index
    %129 = vector.load %arg19[%c0_70, %c0_71, %c0_72] : memref<2x1x32xf32, #tpu.memory_space<vmem>>, vector<1x1x32xf32>
    %130 = vector.shape_cast %129 : vector<1x1x32xf32> to vector<1x32xf32>
    %131 = vector.broadcast %130 : vector<1x32xf32> to vector<64x32xf32>
    %132 = arith.addf %128, %131 : vector<64x32xf32>
    %133 = arith.addf %101, %132 : vector<64x32xf32>
    %134 = arith.addf %133, %33 : vector<64x32xf32>
    %135 = arith.truncf %134 : vector<64x32xf32> to vector<64x32xbf16>
    %136 = vector.shape_cast %135 : vector<64x32xbf16> to vector<1x64x32xbf16>
    %137 = vector.shape_cast %136 : vector<1x64x32xbf16> to vector<1x64x32xbf16>
    %138 = vector.broadcast %137 : vector<1x64x32xbf16> to vector<8x64x32xbf16>
    %c1 = arith.constant 1 : index
    %c0_73 = arith.constant 0 : index
    %c0_74 = arith.constant 0 : index
    %c0_75 = arith.constant 0 : index
    %139 = vector.load %arg10[%c1, %c0_73, %c0_74, %c0_75] : memref<2x8x32x4xf32, #tpu.memory_space<vmem>>, vector<1x8x32x4xf32>
    %140 = vector.shape_cast %139 : vector<1x8x32x4xf32> to vector<8x32x4xf32>
    %141 = arith.truncf %140 : vector<8x32x4xf32> to vector<8x32x4xbf16>
    "tpu.trace_start"() <{level = 10 : i32, message = "hnf,hfd->hnd"}> : () -> ()
    %cst_76 = arith.constant dense<0.000000e+00> : vector<8x64x4xf32>
    %142 = tpu.matmul %138, %141, %cst_76 {dimension_numbers = #tpu.dot_dimension_numbers<[2], [1], [1], [2], [0, 0, 0, 1, 1, 2], [0], [0]>} : vector<8x64x32xbf16>, vector<8x32x4xbf16>, vector<8x64x4xf32> -> vector<8x64x4xf32>
    "tpu.trace_stop"() : () -> ()
    %c1_77 = arith.constant 1 : index
    %c0_78 = arith.constant 0 : index
    %c0_79 = arith.constant 0 : index
    %c0_80 = arith.constant 0 : index
    %143 = vector.load %arg11[%c1_77, %c0_78, %c0_79, %c0_80] : memref<2x8x32x4xf32, #tpu.memory_space<vmem>>, vector<1x8x32x4xf32>
    %144 = vector.shape_cast %143 : vector<1x8x32x4xf32> to vector<8x32x4xf32>
    %145 = arith.truncf %144 : vector<8x32x4xf32> to vector<8x32x4xbf16>
    "tpu.trace_start"() <{level = 10 : i32, message = "hnf,hfd->hnd"}> : () -> ()
    %cst_81 = arith.constant dense<0.000000e+00> : vector<8x64x4xf32>
    %146 = tpu.matmul %138, %145, %cst_81 {dimension_numbers = #tpu.dot_dimension_numbers<[2], [1], [1], [2], [0, 0, 0, 1, 1, 2], [0], [0]>} : vector<8x64x32xbf16>, vector<8x32x4xbf16>, vector<8x64x4xf32> -> vector<8x64x4xf32>
    "tpu.trace_stop"() : () -> ()
    %c1_82 = arith.constant 1 : index
    %c0_83 = arith.constant 0 : index
    %c0_84 = arith.constant 0 : index
    %c0_85 = arith.constant 0 : index
    %147 = vector.load %arg12[%c1_82, %c0_83, %c0_84, %c0_85] : memref<2x8x32x4xf32, #tpu.memory_space<vmem>>, vector<1x8x32x4xf32>
    %148 = vector.shape_cast %147 : vector<1x8x32x4xf32> to vector<8x32x4xf32>
    %149 = arith.truncf %148 : vector<8x32x4xf32> to vector<8x32x4xbf16>
    "tpu.trace_start"() <{level = 10 : i32, message = "hnf,hfd->hnd"}> : () -> ()
    %cst_86 = arith.constant dense<0.000000e+00> : vector<8x64x4xf32>
    %150 = tpu.matmul %138, %149, %cst_86 {dimension_numbers = #tpu.dot_dimension_numbers<[2], [1], [1], [2], [0, 0, 0, 1, 1, 2], [0], [0]>} : vector<8x64x32xbf16>, vector<8x32x4xbf16>, vector<8x64x4xf32> -> vector<8x64x4xf32>
    "tpu.trace_stop"() : () -> ()
    %151 = arith.truncf %142 : vector<8x64x4xf32> to vector<8x64x4xbf16>
    %152 = arith.truncf %146 : vector<8x64x4xf32> to vector<8x64x4xbf16>
    "tpu.trace_start"() <{level = 10 : i32, message = "hnd,hmd->hnm"}> : () -> ()
    %cst_87 = arith.constant dense<0.000000e+00> : vector<8x64x64xf32>
    %153 = tpu.matmul %151, %152, %cst_87 {dimension_numbers = #tpu.dot_dimension_numbers<[2], [2], [1], [1], [0, 0, 0, 1, 1, 1], [0], [0]>} : vector<8x64x4xbf16>, vector<8x64x4xbf16>, vector<8x64x64xf32> -> vector<8x64x64xf32>
    "tpu.trace_stop"() : () -> ()
    %cst_88 = arith.constant 5.000000e-01 : f32
    %154 = vector.broadcast %cst_88 : f32 to vector<8x64x64xf32>
    %155 = arith.mulf %153, %154 : vector<8x64x64xf32>
    %c1_89 = arith.constant 1 : index
    %c0_90 = arith.constant 0 : index
    %c0_91 = arith.constant 0 : index
    %c0_92 = arith.constant 0 : index
    %156 = vector.load %arg14[%c1_89, %c0_90, %c0_91, %c0_92] : memref<2x8x1x1xf32, #tpu.memory_space<vmem>>, vector<1x8x1x1xf32>
    %157 = vector.shape_cast %156 : vector<1x8x1x1xf32> to vector<8x1x1xf32>
    %158 = vector.shape_cast %35 : vector<64x64xf32> to vector<1x64x64xf32>
    %159 = vector.broadcast %157 : vector<8x1x1xf32> to vector<8x64x64xf32>
    %160 = vector.broadcast %158 : vector<1x64x64xf32> to vector<8x64x64xf32>
    %161 = arith.mulf %159, %160 : vector<8x64x64xf32>
    %162 = arith.addf %155, %161 : vector<8x64x64xf32>
    %163 = vector.shape_cast %34 : vector<64x64xf32> to vector<1x64x64xf32>
    %164 = vector.broadcast %163 : vector<1x64x64xf32> to vector<8x64x64xf32>
    %165 = arith.addf %162, %164 : vector<8x64x64xf32>
    %cst_93 = arith.constant dense<0xFF800000> : vector<8x64xf32>
    %166 = vector.multi_reduction <maximumf>, %165, %cst_93 [2] : vector<8x64x64xf32> to vector<8x64xf32>
    %167 = vector.shape_cast %166 : vector<8x64xf32> to vector<8x64x1xf32>
    %168 = vector.broadcast %167 : vector<8x64x1xf32> to vector<8x64x64xf32>
    %169 = arith.subf %165, %168 : vector<8x64x64xf32>
    %170 = math.exp %169 : vector<8x64x64xf32>
    %cst_94 = arith.constant dense<0.000000e+00> : vector<8x64xf32>
    %171 = vector.multi_reduction <add>, %170, %cst_94 [2] : vector<8x64x64xf32> to vector<8x64xf32>
    %172 = vector.shape_cast %171 : vector<8x64xf32> to vector<8x64x1xf32>
    %173 = tpu.reciprocal %172 {approx = true} : vector<8x64x1xf32> -> vector<8x64x1xf32>
    %174 = vector.broadcast %173 : vector<8x64x1xf32> to vector<8x64x64xf32>
    %175 = arith.mulf %170, %174 : vector<8x64x64xf32>
    %176 = arith.truncf %175 : vector<8x64x64xf32> to vector<8x64x64xbf16>
    %177 = arith.truncf %150 : vector<8x64x4xf32> to vector<8x64x4xbf16>
    "tpu.trace_start"() <{level = 10 : i32, message = "hnm,hmd->hnd"}> : () -> ()
    %cst_95 = arith.constant dense<0.000000e+00> : vector<8x64x4xf32>
    %178 = tpu.matmul %176, %177, %cst_95 {dimension_numbers = #tpu.dot_dimension_numbers<[2], [1], [1], [2], [0, 0, 0, 1, 1, 2], [0], [0]>} : vector<8x64x64xbf16>, vector<8x64x4xbf16>, vector<8x64x4xf32> -> vector<8x64x4xf32>
    "tpu.trace_stop"() : () -> ()
    %179 = vector.extract_strided_slice %178 {offsets = [0, 0, 0], sizes = [1, 64, 4], strides = [1, 1, 1]} : vector<8x64x4xf32> to vector<1x64x4xf32>
    %180 = vector.shape_cast %179 : vector<1x64x4xf32> to vector<64x4xf32>
    %181 = vector.extract_strided_slice %178 {offsets = [1, 0, 0], sizes = [1, 64, 4], strides = [1, 1, 1]} : vector<8x64x4xf32> to vector<1x64x4xf32>
    %182 = vector.shape_cast %181 : vector<1x64x4xf32> to vector<64x4xf32>
    %183 = vector.extract_strided_slice %178 {offsets = [2, 0, 0], sizes = [1, 64, 4], strides = [1, 1, 1]} : vector<8x64x4xf32> to vector<1x64x4xf32>
    %184 = vector.shape_cast %183 : vector<1x64x4xf32> to vector<64x4xf32>
    %185 = vector.extract_strided_slice %178 {offsets = [3, 0, 0], sizes = [1, 64, 4], strides = [1, 1, 1]} : vector<8x64x4xf32> to vector<1x64x4xf32>
    %186 = vector.shape_cast %185 : vector<1x64x4xf32> to vector<64x4xf32>
    %187 = vector.extract_strided_slice %178 {offsets = [4, 0, 0], sizes = [1, 64, 4], strides = [1, 1, 1]} : vector<8x64x4xf32> to vector<1x64x4xf32>
    %188 = vector.shape_cast %187 : vector<1x64x4xf32> to vector<64x4xf32>
    %189 = vector.extract_strided_slice %178 {offsets = [5, 0, 0], sizes = [1, 64, 4], strides = [1, 1, 1]} : vector<8x64x4xf32> to vector<1x64x4xf32>
    %190 = vector.shape_cast %189 : vector<1x64x4xf32> to vector<64x4xf32>
    %191 = vector.extract_strided_slice %178 {offsets = [6, 0, 0], sizes = [1, 64, 4], strides = [1, 1, 1]} : vector<8x64x4xf32> to vector<1x64x4xf32>
    %192 = vector.shape_cast %191 : vector<1x64x4xf32> to vector<64x4xf32>
    %193 = vector.extract_strided_slice %178 {offsets = [7, 0, 0], sizes = [1, 64, 4], strides = [1, 1, 1]} : vector<8x64x4xf32> to vector<1x64x4xf32>
    %194 = vector.shape_cast %193 : vector<1x64x4xf32> to vector<64x4xf32>
    %195 = tpu.concatenate %180, %182, %184, %186, %188, %190, %192, %194 in 1 : vector<64x4xf32>, vector<64x4xf32>, vector<64x4xf32>, vector<64x4xf32>, vector<64x4xf32>, vector<64x4xf32>, vector<64x4xf32>, vector<64x4xf32> -> vector<64x32xf32>
    %c1_96 = arith.constant 1 : index
    %c0_97 = arith.constant 0 : index
    %c0_98 = arith.constant 0 : index
    %196 = vector.load %arg13[%c1_96, %c0_97, %c0_98] : memref<2x1x32xf32, #tpu.memory_space<vmem>>, vector<1x1x32xf32>
    %197 = vector.shape_cast %196 : vector<1x1x32xf32> to vector<1x32xf32>
    %198 = vector.broadcast %197 : vector<1x32xf32> to vector<64x32xf32>
    %199 = arith.addf %195, %198 : vector<64x32xf32>
    %c1_99 = arith.constant 1 : index
    %c0_100 = arith.constant 0 : index
    %c0_101 = arith.constant 0 : index
    %200 = vector.load %arg15[%c1_99, %c0_100, %c0_101] : memref<2x32x32xf32, #tpu.memory_space<vmem>>, vector<1x32x32xf32>
    %201 = vector.shape_cast %200 : vector<1x32x32xf32> to vector<32x32xf32>
    %202 = arith.truncf %199 : vector<64x32xf32> to vector<64x32xbf16>
    %203 = arith.truncf %201 : vector<32x32xf32> to vector<32x32xbf16>
    %cst_102 = arith.constant dense<0.000000e+00> : vector<64x32xf32>
    %204 = tpu.matmul %202, %203, %cst_102 {dimension_numbers = #tpu.dot_dimension_numbers<[1], [0], [0], [1], [0, 0, 1, 1], [], []>} : vector<64x32xbf16>, vector<32x32xbf16>, vector<64x32xf32> -> vector<64x32xf32>
    %205 = arith.addf %111, %204 : vector<64x32xf32>
    %c1_103 = arith.constant 1 : index
    %c0_104 = arith.constant 0 : index
    %c0_105 = arith.constant 0 : index
    %206 = vector.load %arg16[%c1_103, %c0_104, %c0_105] : memref<2x1x32xf32, #tpu.memory_space<vmem>>, vector<1x1x32xf32>
    %207 = vector.shape_cast %206 : vector<1x1x32xf32> to vector<1x32xf32>
    %208 = vector.broadcast %207 : vector<1x32xf32> to vector<64x32xf32>
    %209 = arith.addf %205, %208 : vector<64x32xf32>
    %cst_106 = arith.constant 0.000000e+00 : f32
    %210 = vector.broadcast %cst_106 : f32 to vector<64x32xf32>
    %211 = arith.maximumf %209, %210 : vector<64x32xf32>
    %212 = vector.extract_strided_slice %211 {offsets = [48, 0], sizes = [16, 32], strides = [1, 1]} : vector<64x32xf32> to vector<16x32xf32>
    %c0_107 = arith.constant 0 : index
    %c0_108 = arith.constant 0 : index
    %213 = vector.load %arg20[%c0_107, %c0_108] : memref<32x64xf32, #tpu.memory_space<vmem>>, vector<32x64xf32>
    %214 = arith.truncf %212 : vector<16x32xf32> to vector<16x32xbf16>
    %215 = arith.truncf %213 : vector<32x64xf32> to vector<32x64xbf16>
    %cst_109 = arith.constant dense<0.000000e+00> : vector<16x64xf32>
    %216 = tpu.matmul %214, %215, %cst_109 {dimension_numbers = #tpu.dot_dimension_numbers<[1], [0], [0], [1], [0, 0, 1, 1], [], []>} : vector<16x32xbf16>, vector<32x64xbf16>, vector<16x64xf32> -> vector<16x64xf32>
    %c0_110 = arith.constant 0 : index
    %c0_111 = arith.constant 0 : index
    %217 = vector.load %arg21[%c0_110, %c0_111] : memref<1x64xf32, #tpu.memory_space<vmem>>, vector<1x64xf32>
    %218 = vector.broadcast %217 : vector<1x64xf32> to vector<16x64xf32>
    %219 = arith.addf %216, %218 : vector<16x64xf32>
    %cst_112 = arith.constant 0.000000e+00 : f32
    %220 = vector.broadcast %cst_112 : f32 to vector<16x64xf32>
    %221 = arith.maximumf %219, %220 : vector<16x64xf32>
    %c0_113 = arith.constant 0 : index
    %c0_114 = arith.constant 0 : index
    %222 = vector.load %arg22[%c0_113, %c0_114] : memref<64x12xf32, #tpu.memory_space<vmem>>, vector<64x12xf32>
    %223 = arith.truncf %221 : vector<16x64xf32> to vector<16x64xbf16>
    %224 = arith.truncf %222 : vector<64x12xf32> to vector<64x12xbf16>
    %cst_115 = arith.constant dense<0.000000e+00> : vector<16x12xf32>
    %225 = tpu.matmul %223, %224, %cst_115 {dimension_numbers = #tpu.dot_dimension_numbers<[1], [0], [0], [1], [0, 0, 1, 1], [], []>} : vector<16x64xbf16>, vector<64x12xbf16>, vector<16x12xf32> -> vector<16x12xf32>
    %c0_116 = arith.constant 0 : index
    %c0_117 = arith.constant 0 : index
    %226 = vector.load %arg23[%c0_116, %c0_117] : memref<1x12xf32, #tpu.memory_space<vmem>>, vector<1x12xf32>
    %227 = vector.broadcast %226 : vector<1x12xf32> to vector<16x12xf32>
    %228 = arith.addf %225, %227 : vector<16x12xf32>
    %c0_118 = arith.constant 0 : index
    %c0_119 = arith.constant 0 : index
    %229 = vector.load %arg24[%c0_118, %c0_119] : memref<16x12xf32, #tpu.memory_space<vmem>>, vector<16x12xf32>
    tpu.vector_store %arg24[%c0_118, %c0_119], %228 {strides = array<i32>} : memref<16x12xf32, #tpu.memory_space<vmem>>, vector<16x12xf32>,
    return
  }
}

</mosaic_0001>

<bundles_post_ra>
// kernel: tile.9
= control target key start
LH: loop header
LB: loop body
LE: loop exit
PB: predicated region body
PF: predicated region fallthrough
CT: control target
= control target key end

     0   :  { %vm4_vm0 = vcmask 1047556   ;;  %s99_s14 = smov 56   ;;  %s100_s19 = smov 40   ;;  %vm6_vm1 = vcmask 64512   ;;  %vm16_vm2 = vcmask 523712   ;;  %vm26_vm3 = vcmask 458112   ;;  %s196_s0 = inlined_call_operand.vmem [shape: f32[8,8,8], index: 0, kind: input, shape index: {}]   ;;  %s197_s1 = inlined_call_operand.vmem [shape: f32[64,8], index: 1, kind: output, shape index: {}]  }
   0x1   :  { %v78_v0 = vld [vmem:[%s196_s0 + $0x7] ss:$8 sm:$0xf]   ;;  %v82_v3 = vld [vmem:[%s196_s0 + $0x5] ss:$8 sm:$0xf]  }
   0x2   :  { %v79_v1 = vld [vmem:[%s196_s0 + $0x7] ss:$8 sm:$0xf0]   ;;  %v83_v4 = vld [vmem:[%s196_s0 + $0x5] ss:$8 sm:$0xf0]  }
   0x3   :  { %v13_v2 = vsel %vm4_vm0, %v79_v1, %v78_v0  ;;  %v33_v5 = vsel %vm4_vm0, %v83_v4, %v82_v3  ;;  %v80_v6 = vld [vmem:[%s196_s0 + $0x6] ss:$8 sm:$0xf]   ;;  %v84_v9 = vld [vmem:[%s196_s0 + $0x4] ss:$8 sm:$0xf]  }
   0x4   :  { %14 = vrot.lane.b32.xlu0 %v13_v2, %s99_s14  ;;  %v81_v7 = vld [vmem:[%s196_s0 + $0x6] ss:$8 sm:$0xf0]   ;;  %34 = vrot.lane.b32.xlu1 %v33_v5, %s100_s19  ;;  %v85_v10 = vld [vmem:[%s196_s0 + $0x4] ss:$8 sm:$0xf0]  }
   0x5   :  { %v23_v8 = vsel %vm4_vm0, %v81_v7, %v80_v6  ;;  %v86_v11 = vld [vmem:[%s196_s0 + $0x3] ss:$8 sm:$0xf]   ;;  %v43_v12 = vsel %vm4_vm0, %v85_v10, %v84_v9  ;;  %s101_s28 = smov 48   ;;  %s102_s4 = smov 32   ;;  %vm36_vm4 = vcmask 392512  }
   0x6   :  { %v87_v13 = vld [vmem:[%s196_s0 + $0x3] ss:$8 sm:$0xf0]   ;;  %v88_v14 = vld [vmem:[%s196_s0 + $0x2] ss:$8 sm:$0xf]  }
   0x7   :  { %v89_v15 = vld [vmem:[%s196_s0 + $0x2] ss:$8 sm:$0xf0]   ;;  %v53_v16 = vsel %vm4_vm0, %v87_v13, %v86_v11  ;;  %v90_v17 = vld [vmem:[%s196_s0 + $0x1] ss:$8 sm:$0xf]  }
   0x8   :  { %24 = vrot.lane.b32.xlu0 %v23_v8, %s101_s28  ;;  %44 = vrot.lane.b32.xlu1 %v43_v12, %s102_s4  ;;  %v63_v18 = vsel %vm4_vm0, %v89_v15, %v88_v14  ;;  %v91_v19 = vld [vmem:[%s196_s0 + $0x1] ss:$8 sm:$0xf0]   ;;  %v2_v20 = vld [vmem:[%s196_s0] ss:$8 sm:$0xf]  }
   0x9   :  { %v3_v21 = vld [vmem:[%s196_s0] ss:$8 sm:$0xf0]   ;;  %s103_s0 = smov 24   ;;  %s104_s13 = smov 16   ;;  %v73_v23 = vsel %vm4_vm0, %v91_v19, %v90_v17  ;;  %vm46_vm5 = vcmask 326912  }
   0xa   :  { %v5_v22 = vsel %vm4_vm0, %v3_v21, %v2_v20  ;;  %s105_s16 = smov 8   ;;  %vm56_vm6 = vcmask 261312   ;;  %vm66_vm7 = vcmask 195712   ;;  %vm76_vm8 = vcmask 130112  }
   0xb   :  { %7 = vst.msk [vmem:[%s197_s1] sm:$0xff] %vm6_vm1, %v5_v22  }
   0xc   :  { %54 = vrot.lane.b32.xlu0 %v53_v16, %s103_s0  ;;  %64 = vrot.lane.b32.xlu1 %v63_v18, %s104_s13 }
  0x10   :  { %74 = vrot.lane.b32.xlu0 %v73_v23, %s105_s16 }
  0x76   :  { %v15_v24 = vpop.permute.xlu0 %14   ;;  %v35_v25 = vpop.permute.xlu1 %34  }
  0x77   :  { %17 = vst.msk [vmem:[%s197_s1] sm:$0xff] %vm16_vm2, %v15_v24  }
  0x7a   :  { %v25_v26 = vpop.permute.xlu0 %24   ;;  %v45_v27 = vpop.permute.xlu1 %44  }
  0x7b   :  { %27 = vst.msk [vmem:[%s197_s1] sm:$0xff] %vm26_vm3, %v25_v26  }
  0x7c   :  { %37 = vst.msk [vmem:[%s197_s1] sm:$0xff] %vm36_vm4, %v35_v25  }
  0x7d   :  { %47 = vst.msk [vmem:[%s197_s1] sm:$0xff] %vm46_vm5, %v45_v27  }
  0x7e   :  { %v55_v28 = vpop.permute.xlu0 %54   ;;  %v65_v29 = vpop.permute.xlu1 %64  }
  0x7f   :  { %57 = vst.msk [vmem:[%s197_s1] sm:$0xff] %vm56_vm6, %v55_v28  }
  0x80   :  { %67 = vst.msk [vmem:[%s197_s1] sm:$0xff] %vm66_vm7, %v65_v29  }
  0x82   :  { %v75_v30 = vpop.permute.xlu0 %74  }
  0x83   :  { %77 = vst.msk [vmem:[%s197_s1] sm:$0xff] %vm76_vm8, %v75_v30  }

// kernel: synaptic_attention_forward.1
= control target key start
LH: loop header
LB: loop body
LE: loop exit
PB: predicated region body
PF: predicated region fallthrough
CT: control target
= control target key end

     0   :  { %v18088_v0 = vmov 0.0   ;;  %vm82_vm0 = vcmask 261120   ;;  %vm13101_vm1 = vmmov 0   ;;  %vm130_vm2 = vcmask 64512   ;;  %s13105_s28 = smov 12   ;;  %s13108_s29 = smov 24   ;;  %s18059_s7 = inlined_call_operand.vmem [shape: f32[8,32], index: 7, kind: input, shape index: {}]   ;;  %s18060_s6 = inlined_call_operand.vmem [shape: f32[8,32], index: 6, kind: input, shape index: {}]   ;;  %s18061_s3 = inlined_call_operand.vmem [shape: f32[64,8], index: 3, kind: input, shape index: {}]   ;;  %s18062_s8 = inlined_call_operand.vmem [shape: f32[4,32], index: 8, kind: input, shape index: {}]   ;;  %s18063_s0 = inlined_call_operand.vmem [shape: f32[64,4], index: 0, kind: input, shape index: {}]   ;;  %s18064_s4 = inlined_call_operand.vmem [shape: f32[8,64], index: 4, kind: input, shape index: {}]   ;;  %s18065_s10 = inlined_call_operand.vmem [shape: f32[2,8,32,4], index: 10, kind: input, shape index: {}]   ;;  %s18066_s9 = inlined_call_operand.vmem [shape: f32[1,32], index: 9, kind: input, shape index: {}]   ;;  %s18067_s11 = inlined_call_operand.vmem [shape: f32[2,8,32,4], index: 11, kind: input, shape index: {}]   ;;  %s18068_s12 = inlined_call_operand.vmem [shape: f32[2,8,32,4], index: 12, kind: input, shape index: {}]   ;;  %s18069_s5 = inlined_call_operand.vmem [shape: f32[64,64], index: 5, kind: input, shape index: {}]   ;;  %s18070_s14 = inlined_call_operand.vmem [shape: f32[2,8,1,1], index: 14, kind: input, shape index: {}]   ;;  %s18071_s2 = inlined_call_operand.vmem [shape: f32[64,64], index: 2, kind: input, shape index: {}]   ;;  %s18072_s1 = inlined_call_operand.vmem [shape: f32[64,64], index: 1, kind: input, shape index: {}]   ;;  %s18073_s15 = inlined_call_operand.vmem [shape: f32[2,32,32], index: 15, kind: input, shape index: {}]   ;;  %s18074_s13 = inlined_call_operand.vmem [shape: f32[2,1,32], index: 13, kind: input, shape index: {}]   ;;  %s18075_s18 = inlined_call_operand.vmem [shape: f32[2,32,32], index: 18, kind: input, shape index: {}]   ;;  %s18076_s17 = inlined_call_operand.vmem [shape: f32[2,32,32], index: 17, kind: input, shape index: {}]   ;;  %s18077_s19 = inlined_call_operand.vmem [shape: f32[2,1,32], index: 19, kind: input, shape index: {}]   ;;  %s18078_s20 = inlined_call_operand.vmem [shape: f32[32,64], index: 20, kind: input, shape index: {}]   ;;  %s18079_s22 = inlined_call_operand.vmem [shape: f32[64,12], index: 22, kind: input, shape index: {}]   ;;  %s18080_s16 = inlined_call_operand.vmem [shape: f32[2,1,32], index: 16, kind: input, shape index: {}]   ;;  %s18081_s21 = inlined_call_operand.vmem [shape: f32[1,64], index: 21, kind: input, shape index: {}]   ;;  %s18082_s23 = inlined_call_operand.vmem [shape: f32[1,12], index: 23, kind: input, shape index: {}]   ;;  %s18083_s24 = inlined_call_operand.vmem [shape: f32[16,12], index: 24, kind: output, shape index: {}]  }
   0x1   :  { %18281 = sst [smem:[#allocation67_spill]] %s18059_s7  ;;  %11257 = vmatprep.subr.bf16.mxu0 %v18088_v0  ;;  %11259 = vmatprep.mubr.msk.bf16.mxu0 %vm13101_vm1, %v18088_v0  ;;  %vm167_vm3 = vcmask 1043456   ;;  %vm372_vm4 = vcmask 1041408   ;;  %vm359_vm5 = vcmask 31744   ;;  %vm3289_vm6 = vcmask 523264  }
   0x2   :  { %18282 = sst [smem:[#allocation68_spill]] %s18060_s6  ;;  %s18290_s27 = sld [smem:[#allocation67_spill]]  ;;  %vm4914_vm7 = vcmask 97280   ;;  %vm4923_vm8 = vcmask 130048   ;;  %vm4932_vm9 = vcmask 162816   ;;  %vm4941_vm10 = vcmask 195584  }
   0x3   :  { %18283 = sst [smem:[#allocation69_spill]] %s18061_s3  ;;  %s18291_s3 = sld [smem:[#allocation68_spill]]  ;;  %vm4950_vm11 = vcmask 228352  }
   0x4   :  { %18284 = sst [smem:[#allocation70_spill]] %s18062_s8 }
   0x5   :  { %18285 = sst [smem:[#allocation71_spill]] %s18063_s0  ;;  %s18293_s0 = sld [smem:[#allocation70_spill]] }
   0x6   :  { %18286 = sst [smem:[#allocation72_spill]] %s18064_s4  ;;  %s18294_s6 = sld [smem:[#allocation71_spill]] }
   0x7   :  { %18287 = sst [smem:[#allocation73_spill]] %s18065_s10 }
   0x8   :  { %18288 = sst [smem:[#allocation74_spill]] %s18066_s9  ;;  %v80_v1 = vld [vmem:[%s18290_s27] sm:$0xff]  ;;  %s18292_s9 = sld [smem:[#allocation69_spill]] }
   0x9   :  { %18289 = sst [smem:[#allocation75_spill]] %s18067_s11  ;;  %v81_v2 = vpack.c.bf16 %v80_v1, %v80_v1  ;;  %v78_v4 = vld [vmem:[%s18291_s3] sm:$0xff]  ;;  %s18295_s27 = sld [smem:[#allocation72_spill]] }
   0xa   :  { %v79_v5 = vpack.c.bf16 %v78_v4, %v78_v4  ;;  %s18296_s10 = sld [smem:[#allocation73_spill]]  ;;  %s18297_s26 = sld [smem:[#allocation74_spill]] }
   0xb   :  { %v87_v3 = vsel %vm82_vm0, %v81_v2, 0  ;;  %v346_v22 = vld [vmem:[%s18293_s0] sm:$0xf]  ;;  %s13107_s3 = smov 20  }
   0xc   :  { %11258 = vmatpush3.bf16.xpose.msra.mxu0 %v87_v3  ;;  %v351_v27 = vpack.c.bf16 %v346_v22, %v346_v22  ;;  %v338_v36 = vld [vmem:[%s18294_s6] sm:$0xff]  ;;  %v339_v37 = vld [vmem:[%s18294_s6 + $0x8] sm:$0xff]  ;;  %v340_v40 = vld [vmem:[%s18294_s6 + $0x10] sm:$0xff] }
   0xd   :  { %v347_v39 = vpack.c.bf16 %v339_v37, %v338_v36  ;;  %v341_v41 = vld [vmem:[%s18294_s6 + $0x18] sm:$0xff]  ;;  %v342_v42 = vld [vmem:[%s18294_s6 + $0x20] sm:$0xff]  ;;  %v343_v43 = vld [vmem:[%s18294_s6 + $0x28] sm:$0xff] }
   0xe   :  { %v142_v17 = vld [vmem:[%s18292_s9] sm:$0xff]  ;;  %v143_v18 = vld [vmem:[%s18292_s9 + $0x8] sm:$0xff]  ;;  %v144_v24 = vld [vmem:[%s18292_s9 + $0x10] sm:$0xff]  ;;  %v374_v33 = vsel %vm372_vm4, %v351_v27, 0  ;;  %v348_v44 = vpack.c.bf16 %v341_v41, %v340_v40  ;;  %v349_v45 = vpack.c.bf16 %v343_v43, %v342_v42 }
   0xf   :  { %v150_v19 = vpack.c.bf16 %v143_v18, %v142_v17  ;;  %v145_v25 = vld [vmem:[%s18292_s9 + $0x18] sm:$0xff]  ;;  %v146_v28 = vld [vmem:[%s18292_s9 + $0x20] sm:$0xff]  ;;  %v147_v29 = vld [vmem:[%s18292_s9 + $0x28] sm:$0xff] }
  0x10   :  { %v151_v31 = vpack.c.bf16 %v145_v25, %v144_v24  ;;  %v152_v32 = vpack.c.bf16 %v147_v29, %v146_v28  ;;  %v148_v34 = vld [vmem:[%s18292_s9 + $0x30] sm:$0xff]  ;;  %v149_v35 = vld [vmem:[%s18292_s9 + $0x38] sm:$0xff]  ;;  %v236_v49 = vld [vmem:[%s18295_s27] sm:$0xff]  ;;  %s18310_s27 = sld [smem:[#allocation75_spill]]  ;;  %s13106_s9 = smov 16  }
  0x11   :  { %11265 = vmatprep.mubr.msk.bf16.mxu1 %vm130_vm2, %v150_v19  ;;  %v153_v38 = vpack.c.bf16 %v149_v35, %v148_v34  ;;  %v344_v46 = vld [vmem:[%s18294_s6 + $0x30] sm:$0xff]  ;;  %v345_v47 = vld [vmem:[%s18294_s6 + $0x38] sm:$0xff]  ;;  %v241_v50 = vpack.c.bf16 %v236_v49, %v236_v49  ;;  %v461_v52 = vld [vmem:[%s18296_s10] sm:$0xff]  ;;  %s18199_s6 = smov 28  }
  0x12   :  { %v350_v48 = vpack.c.bf16 %v345_v47, %v344_v46  ;;  %v462_v53 = vld [vmem:[%s18296_s10 + $0x8] sm:$0xff]  ;;  %v465_v55 = vld [vmem:[%s18296_s10 + $0x20] sm:$0xff]  ;;  %v467_v58 = vld [vmem:[%s18296_s10 + $0x30] sm:$0xff] }
  0x13   :  { %11260 = vmatmul.mubr.msk.bf16.vlgmr.msra.gmra.mrb[0].mxu0 %vm82_vm0, %v79_v5  ;;  %12490 = vmatprep.subr.msk.bf16.mxu0 %vm167_vm3, %v241_v50  ;;  %v255_v51 = vsel %vm167_vm3, %v241_v50, 0  ;;  %v493_v54 = vpack.c.bf16 %v462_v53, %v461_v52  ;;  %v466_v56 = vld [vmem:[%s18296_s10 + $0x28] sm:$0xff]  ;;  %v468_v59 = vld [vmem:[%s18296_s10 + $0x38] sm:$0xff]  ;;  %v473_v61 = vld [vmem:[%s18296_s10 + $0x60] sm:$0xff] }
  0x14   :  { %11274 = vmatpush3.bf16.msra.mxu0 %v255_v51  ;;  %v495_v57 = vpack.c.bf16 %v466_v56, %v465_v55  ;;  %v496_v60 = vpack.c.bf16 %v468_v59, %v467_v58  ;;  %v474_v62 = vld [vmem:[%s18296_s10 + $0x68] sm:$0xff]  ;;  %v463_v4 = vld [vmem:[%s18296_s10 + $0x10] sm:$0xff]  ;;  %v464_v5 = vld [vmem:[%s18296_s10 + $0x18] sm:$0xff] }
  0x15   :  { %11293 = vmatprep.subr.bf16.mxu0 %v493_v54  ;;  %v499_v63 = vpack.c.bf16 %v474_v62, %v473_v61  ;;  %v471_v25 = vld [vmem:[%s18296_s10 + $0x50] sm:$0xff]  ;;  %v472_v28 = vld [vmem:[%s18296_s10 + $0x58] sm:$0xff]  ;;  %v477_v36 = vld [vmem:[%s18296_s10 + $0x80] sm:$0xff] }
  0x16   :  { %v475_v29 = vld [vmem:[%s18296_s10 + $0x70] sm:$0xff]  ;;  %v498_v34 = vpack.c.bf16 %v472_v28, %v471_v25  ;;  %v482_v40 = vld [vmem:[%s18296_s10 + $0xa8] sm:$0xff]  ;;  %v480_v53 = vld [vmem:[%s18296_s10 + $0x98] sm:$0xff] }
  0x17   :  { %v479_v52 = vld [vmem:[%s18296_s10 + $0x90] sm:$0xff]  ;;  %v484_v55 = vld [vmem:[%s18296_s10 + $0xb8] sm:$0xff]  ;;  %v485_v58 = vld [vmem:[%s18296_s10 + $0xc0] sm:$0xff] }
  0x18   :  { %v502_v56 = vpack.c.bf16 %v480_v53, %v479_v52  ;;  %v486_v59 = vld [vmem:[%s18296_s10 + $0xc8] sm:$0xff]  ;;  %v1051_v28 = vld [vmem:[%s18310_s27 + $0x50] sm:$0xff]  ;;  %v1064_v52 = vld [vmem:[%s18310_s27 + $0xb8] sm:$0xff] }
  0x19   :  { %v490_v61 = vld [vmem:[%s18296_s10 + $0xe8] sm:$0xff]  ;;  %v505_v62 = vpack.c.bf16 %v486_v59, %v485_v58 }
  0x1a   :  { %v1070_v58 = vld [vmem:[%s18310_s27 + $0xe8] sm:$0xff] }
  0xe6   :  { %v123_v6 = vpop.f32.mrb[0].mxu0 }
  0xe7   :  { %v11261_v7 = vpop.f32.mrb[1].mxu0  ;;  %v129_v8 = vmax.f32 %v123_v6, 0.0 }
  0xe8   :  { %v126_v9 = vpop.f32.mrb[2].mxu0 }
  0xe9   :  { %v11262_v10 = vpop.f32.mrb[3].mxu0  ;;  %v131_v11 = vsel %vm130_vm2, %v129_v8, -inf  ;;  %v494_v9 = vpack.c.bf16 %v464_v5, %v463_v4  ;;  %v492_v4 = vld [vmem:[%s18296_s10 + $0xf8] sm:$0xff] }
  0xea   :  { %132 = vmax.xlane.f32.xlu0 %v131_v11  ;;  %v469_v10 = vld [vmem:[%s18296_s10 + $0x40] sm:$0xff]  ;;  %v470_v11 = vld [vmem:[%s18296_s10 + $0x48] sm:$0xff] }
 0x177   :  { %v133_v12 = vpop.xlane.xlu0 %132 }
 0x178   :  { %v134_v13 = vsub.f32 %v129_v8, %v133_v12 }
 0x17a   :  { %v135_v14 = vmul.f32 1.442695, %v134_v13 }
 0x17c   :  { %12568 = vpow2.f32 %v135_v14  ;;  %v497_v14 = vpack.c.bf16 %v470_v11, %v469_v10  ;;  %v1046_v10 = vld [vmem:[%s18310_s27 + $0x28] sm:$0xff] }
 0x186   :  { %v12569_v15 = vpop.eup %12568 }
 0x187   :  { %v137_v16 = vsel %vm130_vm2, %v12569_v15, 0.0 }
 0x188   :  { %138 = vadd.xlane.f32.xlu0 %v137_v16 }
 0x215   :  { %v139_v20 = vpop.xlane.xlu0 %138 }
 0x216   :  { %12570 = vrcp.f32 %v139_v20  ;;  %v10164_v20 = vld [vmem:[%s18297_s26] ss:$0 sm:$0xff]  ;;  %s13104_s26 = smov 8  }
 0x220   :  { %v12571_v21 = vpop.eup %12570 }
 0x221   :  { %v141_v23 = vmul.f32 %v12571_v21, %v12569_v15 }
 0x223   :  { %v154_v26 = vpack.c.bf16 %v141_v23, %v141_v23 }
 0x225   :  { %12489 = vmatprep.subr.msk.bf16.mxu1 %vm167_vm3, %v154_v26  ;;  %v169_v30 = vsel %vm167_vm3, %v154_v26, 0 }
 0x226   :  { %11264 = vmatpush3.bf16.msra.mxu1 %v169_v30  ;;  %v476_v30 = vld [vmem:[%s18296_s10 + $0x78] sm:$0xff] }
 0x227   :  { %12491 = vmatprep.subr.msk.bf16.mxu1 %vm372_vm4, %v351_v27  ;;  %v500_v35 = vpack.c.bf16 %v476_v30, %v475_v29  ;;  %v1052_v29 = vld [vmem:[%s18310_s27 + $0x58] sm:$0xff]  ;;  %v1055_v30 = vld [vmem:[%s18310_s27 + $0x70] sm:$0xff] }
 0x229   :  { %11266 = vmatmul.mubr.msk.bf16.vlgmr.msra.gmra.mrb[0].mxu1 %vm130_vm2, %v151_v31 }
 0x22a   :  { %11284 = vmatpush3.bf16.msra.mxu1 %v374_v33  ;;  %11269 = vmatprep.mubr.msk.bf16.mxu1 %vm130_vm2, %v152_v32 }
 0x22b   :  { %11305 = vmatprep.subr.bf16.mxu1 %v495_v57 }
 0x231   :  { %11270 = vmatmul.mubr.msk.bf16.gmra.mrb[4].mxu1 %vm130_vm2, %v153_v38  ;;  %v478_v38 = vld [vmem:[%s18296_s10 + $0x88] sm:$0xff] }
 0x232   :  { %11285 = vmatprep.mubr.msk.bf16.mxu1 %vm359_vm5, %v347_v39  ;;  %v481_v39 = vld [vmem:[%s18296_s10 + $0xa0] sm:$0xff] }
 0x233   :  { %v503_v46 = vpack.c.bf16 %v482_v40, %v481_v39  ;;  %v1061_v39 = vld [vmem:[%s18310_s27 + $0xa0] sm:$0xff]  ;;  %v1062_v40 = vld [vmem:[%s18310_s27 + $0xa8] sm:$0xff] }
 0x239   :  { %11286 = vmatmul.mubr.msk.bf16.vlgmr.msra.gmra.mrb[8].mxu1 %vm359_vm5, %v348_v44 }
 0x23a   :  { %11289 = vmatprep.mubr.msk.bf16.mxu1 %vm359_vm5, %v349_v45  ;;  %11306 = vmatpush3.bf16.msra.mxu1 %v495_v57  ;;  %v501_v45 = vpack.c.bf16 %v478_v38, %v477_v36  ;;  %v1058_v38 = vld [vmem:[%s18310_s27 + $0x88] sm:$0xff] }
 0x23b   :  { %11307 = vmatprep.subr.bf16.mxu1 %v496_v60 }
 0x23e   :  { %11308 = vmatpush3.bf16.msra.mxu1 %v496_v60  ;;  %v489_v60 = vld [vmem:[%s18296_s10 + $0xe0] sm:$0xff] }
 0x23f   :  { %11329 = vmatprep.subr.bf16.mxu1 %v499_v63 }
 0x241   :  { %11290 = vmatmul.mubr.msk.bf16.gmra.mrb[12].mxu1 %vm359_vm5, %v350_v48 }
 0x2fc   :  { %v11267_v1 = vpop.f32.mrb[0].mxu1 }
 0x2fd   :  { %v205_v2 = vpop.f32.mrb[1].mxu1 }
 0x2fe   :  { %v11268_v3 = vpop.f32.mrb[2].mxu1 }
 0x2ff   :  { %v238_v6 = vpack.c.bf16 %v11268_v3, %v11267_v1  ;;  %v208_v7 = vpop.f32.mrb[3].mxu1  ;;  %v487_v1 = vld [vmem:[%s18296_s10 + $0xd0] sm:$0xff] }
 0x300   :  { %v237_v8 = vpack.c.bf16 %v208_v7, %v205_v2  ;;  %v488_v2 = vld [vmem:[%s18296_s10 + $0xd8] sm:$0xff]  ;;  %v491_v3 = vld [vmem:[%s18296_s10 + $0xf0] sm:$0xff]  ;;  %v1041_v7 = vld [vmem:[%s18310_s27] sm:$0xff] }
 0x301   :  { %v506_v5 = vpack.c.bf16 %v488_v2, %v487_v1  ;;  %v1072_v1 = vld [vmem:[%s18310_s27 + $0xf8] sm:$0xff] }
 0x302   :  { %11275 = vmatprep.mubr.msk.bf16.mxu0 %vm130_vm2, %v237_v8  ;;  %v1042_v8 = vld [vmem:[%s18310_s27 + $0x8] sm:$0xff] }
 0x303   :  { %11276 = vmatmul.mubr.msk.bf16.vlgmr.msra.gmra.mrb[4].mxu0 %vm130_vm2, %v238_v6  ;;  %v508_v6 = vpack.c.bf16 %v492_v4, %v491_v3  ;;  %v1073_v11 = vpack.c.bf16 %v1042_v8, %v1041_v7  ;;  %v1609_v4 = vld [vmem:[%s18068_s12] sm:$0xff]  ;;  %v1614_v7 = vld [vmem:[%s18068_s12 + $0x28] sm:$0xff] }
 0x304   :  { %v11271_v12 = vpop.f32.mrb[4].mxu1  ;;  %11294 = vmatpush3.bf16.msra.mxu0 %v493_v54  ;;  %v483_v54 = vld [vmem:[%s18296_s10 + $0xb0] sm:$0xff] }
 0x305   :  { %v221_v13 = vpop.f32.mrb[5].mxu1  ;;  %11295 = vmatprep.subr.bf16.mxu0 %v494_v9  ;;  %v504_v57 = vpack.c.bf16 %v484_v55, %v483_v54  ;;  %v1065_v55 = vld [vmem:[%s18310_s27 + $0xc0] sm:$0xff] }
 0x306   :  { %v11272_v15 = vpop.f32.mrb[6].mxu1 }
 0x307   :  { %v240_v16 = vpack.c.bf16 %v11272_v15, %v11271_v12  ;;  %v224_v17 = vpop.f32.mrb[7].mxu1  ;;  %v1047_v15 = vld [vmem:[%s18310_s27 + $0x30] sm:$0xff] }
 0x308   :  { %v239_v18 = vpack.c.bf16 %v224_v17, %v221_v13  ;;  %11296 = vmatpush3.bf16.msra.mxu0 %v494_v9  ;;  %v1045_v9 = vld [vmem:[%s18310_s27 + $0x20] sm:$0xff]  ;;  %v1043_v13 = vld [vmem:[%s18310_s27 + $0x10] sm:$0xff] }
 0x309   :  { %11317 = vmatprep.subr.bf16.mxu0 %v497_v14  ;;  %v1075_v12 = vpack.c.bf16 %v1046_v10, %v1045_v9  ;;  %v1611_v10 = vld [vmem:[%s18068_s12 + $0x10] sm:$0xff] }
 0x30a   :  { %11279 = vmatprep.mubr.msk.bf16.mxu0 %vm130_vm2, %v239_v18 }
 0x30b   :  { %11280 = vmatmul.mubr.msk.bf16.gmra.mrb[8].mxu0 %vm130_vm2, %v240_v16  ;;  %v1048_v16 = vld [vmem:[%s18310_s27 + $0x38] sm:$0xff] }
 0x30c   :  { %v11287_v19 = vpop.f32.mrb[8].mxu1  ;;  %v1076_v18 = vpack.c.bf16 %v1048_v16, %v1047_v15  ;;  %v1617_v16 = vld [vmem:[%s18068_s12 + $0x40] sm:$0xff] }
 0x30d   :  { %v410_v21 = vpop.f32.mrb[9].mxu1  ;;  %v13375_v31 = vadd.f32 %v11287_v19, %v10164_v20  ;;  %v1049_v19 = vld [vmem:[%s18310_s27 + $0x40] sm:$0xff] }
 0x30e   :  { %v11288_v22 = vpop.f32.mrb[10].mxu1  ;;  %v13362_v26 = vadd.f32 %v10164_v20, %v410_v21  ;;  %v1053_v21 = vld [vmem:[%s18310_s27 + $0x60] sm:$0xff] }
 0x30f   :  { %v13357_v23 = vadd.f32 %v11288_v22, %v10164_v20  ;;  %v413_v24 = vpop.f32.mrb[11].mxu1  ;;  %18301 = vst [vmem:[#allocation5_spill] sm:$0xff] %v13375_v31  ;;  %v1054_v22 = vld [vmem:[%s18310_s27 + $0x68] sm:$0xff] }
 0x310   :  { %18299 = vst [vmem:[#allocation3_spill] sm:$0xff] %v13362_v26  ;;  %v13364_v27 = vadd.f32 %v10164_v20, %v413_v24  ;;  %v1079_v25 = vpack.c.bf16 %v1054_v22, %v1053_v21  ;;  %v1619_v22 = vld [vmem:[%s18068_s12 + $0x50] sm:$0xff] }
 0x311   :  { %18298 = vst [vmem:[#allocation2_spill] sm:$0xff] %v13357_v23  ;;  %v13383_v33 = vpack.c.bf16 %v13357_v23, %v13375_v31  ;;  %v10302_v31 = vld [vmem:[%s18070_s14 + $0x5] ss:$0 sm:$0xff] }
 0x312   :  { %18300 = vst [vmem:[#allocation4_spill] sm:$0xff] %v13364_v27  ;;  %v13379_v32 = vpack.c.bf16 %v13364_v27, %v13362_v26 }
 0x313   :  { %18303 = vst [vmem:[#allocation7_spill] sm:$0xff] %v13383_v33 }
 0x314   :  { %18302 = vst [vmem:[#allocation6_spill] sm:$0xff] %v13379_v32  ;;  %v11291_v37 = vpop.f32.mrb[12].mxu1  ;;  %11297 = vmatprep.mubr.msk.bf16.mxu0 %vm82_vm0, %v13379_v32  ;;  %11309 = vmatprep.mubr.msk.bf16.mxu1 %vm82_vm0, %v13379_v32 }
 0x315   :  { %v426_v41 = vpop.f32.mrb[13].mxu1  ;;  %11298 = vmatmul.mubr.msk.bf16.vlgmr.msra.gmra.mrb[12].mxu0 %vm82_vm0, %v13383_v33  ;;  %11310 = vmatmul.mubr.msk.bf16.vlgmr.msra.gmra.mrb[16].mxu1 %vm82_vm0, %v13383_v33  ;;  %v13411_v49 = vadd.f32 %v11291_v37, %v10164_v20  ;;  %v1057_v37 = vld [vmem:[%s18310_s27 + $0x80] sm:$0xff] }
 0x316   :  { %v11292_v42 = vpop.f32.mrb[14].mxu1  ;;  %11318 = vmatpush3.bf16.msra.mxu0 %v497_v14  ;;  %11330 = vmatpush3.bf16.msra.mxu1 %v499_v63  ;;  %v13407_v47 = vadd.f32 %v10164_v20, %v426_v41  ;;  %v507_v63 = vpack.c.bf16 %v490_v61, %v489_v60  ;;  %v1044_v14 = vld [vmem:[%s18310_s27 + $0x18] sm:$0xff]  ;;  %v1081_v41 = vpack.c.bf16 %v1058_v38, %v1057_v37  ;;  %v1067_v61 = vld [vmem:[%s18310_s27 + $0xd0] sm:$0xff]  ;;  %v1630_v37 = vld [vmem:[%s18068_s12 + $0xa8] sm:$0xff] }
 0x317   :  { %v13405_v43 = vadd.f32 %v11292_v42, %v10164_v20  ;;  %v429_v44 = vpop.f32.mrb[15].mxu1  ;;  %11319 = vmatprep.subr.bf16.mxu0 %v498_v34  ;;  %11331 = vmatprep.subr.bf16.mxu1 %v500_v35  ;;  %18307 = vst [vmem:[#allocation11_spill] sm:$0xff] %v13411_v49  ;;  %v1074_v17 = vpack.c.bf16 %v1044_v14, %v1043_v13  ;;  %v1616_v13 = vld [vmem:[%s18068_s12 + $0x38] sm:$0xff] }
 0x318   :  { %18305 = vst [vmem:[#allocation9_spill] sm:$0xff] %v13407_v47  ;;  %v13409_v48 = vadd.f32 %v10164_v20, %v429_v44  ;;  %v1050_v20 = vld [vmem:[%s18310_s27 + $0x48] sm:$0xff]  ;;  %v1083_v42 = vpack.c.bf16 %v1062_v40, %v1061_v39  ;;  %v1059_v44 = vld [vmem:[%s18310_s27 + $0x90] sm:$0xff] }
 0x319   :  { %18304 = vst [vmem:[#allocation8_spill] sm:$0xff] %v13405_v43  ;;  %v13419_v51 = vpack.c.bf16 %v13405_v43, %v13411_v49  ;;  %v1077_v24 = vpack.c.bf16 %v1050_v20, %v1049_v19  ;;  %v1622_v19 = vld [vmem:[%s18068_s12 + $0x68] sm:$0xff]  ;;  %v1627_v40 = vld [vmem:[%s18068_s12 + $0x90] sm:$0xff] }
 0x31a   :  { %18306 = vst [vmem:[#allocation10_spill] sm:$0xff] %v13409_v48  ;;  %v13415_v50 = vpack.c.bf16 %v13409_v48, %v13407_v47  ;;  %11320 = vmatpush3.bf16.msra.mxu0 %v498_v34  ;;  %11332 = vmatpush3.bf16.msra.mxu1 %v500_v35  ;;  %v1056_v34 = vld [vmem:[%s18310_s27 + $0x78] sm:$0xff]  ;;  %v1078_v35 = vpack.c.bf16 %v1052_v29, %v1051_v28 }
 0x31b   :  { %18309 = vst [vmem:[#allocation13_spill] sm:$0xff] %v13419_v51  ;;  %11341 = vmatprep.subr.bf16.mxu0 %v501_v45  ;;  %11353 = vmatprep.subr.bf16.mxu1 %v503_v46  ;;  %v1080_v36 = vpack.c.bf16 %v1056_v34, %v1055_v30  ;;  %v1624_v28 = vld [vmem:[%s18068_s12 + $0x78] sm:$0xff]  ;;  %v1625_v34 = vld [vmem:[%s18068_s12 + $0x80] sm:$0xff] }
 0x31c   :  { %18308 = vst [vmem:[#allocation12_spill] sm:$0xff] %v13415_v50  ;;  %11301 = vmatprep.mubr.msk.bf16.mxu0 %vm82_vm0, %v13415_v50  ;;  %11313 = vmatprep.mubr.msk.bf16.mxu1 %vm82_vm0, %v13415_v50 }
 0x31d   :  { %11302 = vmatmul.mubr.msk.bf16.gmra.mrb[16].mxu0 %vm82_vm0, %v13419_v51  ;;  %11314 = vmatmul.mubr.msk.bf16.gmra.mrb[20].mxu1 %vm82_vm0, %v13419_v51 }
 0x31e   :  { %11321 = vmatprep.mubr.msk.bf16.mxu0 %vm82_vm0, %v13379_v32  ;;  %11333 = vmatprep.mubr.msk.bf16.mxu1 %vm82_vm0, %v13379_v32 }
 0x325   :  { %11322 = vmatmul.mubr.msk.bf16.vlgmr.msra.gmra.mrb[20].mxu0 %vm82_vm0, %v13383_v33  ;;  %11334 = vmatmul.mubr.msk.bf16.vlgmr.msra.gmra.mrb[24].mxu1 %vm82_vm0, %v13383_v33 }
 0x326   :  { %11325 = vmatprep.mubr.msk.bf16.mxu0 %vm82_vm0, %v13415_v50  ;;  %11337 = vmatprep.mubr.msk.bf16.mxu1 %vm82_vm0, %v13415_v50 }
 0x327   :  { %11342 = vmatpush3.bf16.msra.mxu0 %v501_v45  ;;  %11354 = vmatpush3.bf16.msra.mxu1 %v503_v46  ;;  %v1060_v45 = vld [vmem:[%s18310_s27 + $0x98] sm:$0xff]  ;;  %v1063_v46 = vld [vmem:[%s18310_s27 + $0xb0] sm:$0xff] }
 0x328   :  { %11343 = vmatprep.subr.bf16.mxu0 %v502_v56  ;;  %11355 = vmatprep.subr.bf16.mxu1 %v504_v57  ;;  %v1082_v53 = vpack.c.bf16 %v1060_v45, %v1059_v44  ;;  %v1084_v54 = vpack.c.bf16 %v1064_v52, %v1063_v46  ;;  %v1632_v44 = vld [vmem:[%s18068_s12 + $0xb8] sm:$0xff]  ;;  %v1633_v52 = vld [vmem:[%s18068_s12 + $0xc0] sm:$0xff] }
 0x32b   :  { %11344 = vmatpush3.bf16.msra.mxu0 %v502_v56  ;;  %11356 = vmatpush3.bf16.msra.mxu1 %v504_v57  ;;  %v1066_v56 = vld [vmem:[%s18310_s27 + $0xc8] sm:$0xff]  ;;  %v1069_v57 = vld [vmem:[%s18310_s27 + $0xe0] sm:$0xff] }
 0x32c   :  { %11365 = vmatprep.subr.bf16.mxu0 %v505_v62  ;;  %11377 = vmatprep.subr.bf16.mxu1 %v507_v63  ;;  %v1085_v59 = vpack.c.bf16 %v1066_v56, %v1065_v55  ;;  %v1087_v60 = vpack.c.bf16 %v1070_v58, %v1069_v57  ;;  %v1638_v55 = vld [vmem:[%s18068_s12 + $0xe8] sm:$0xff]  ;;  %v1635_v58 = vld [vmem:[%s18068_s12 + $0xd0] sm:$0xff] }
 0x32d   :  { %11326 = vmatmul.mubr.msk.bf16.gmra.mrb[24].mxu0 %vm82_vm0, %v13419_v51  ;;  %11338 = vmatmul.mubr.msk.bf16.gmra.mrb[28].mxu1 %vm82_vm0, %v13419_v51 }
 0x32e   :  { %11345 = vmatprep.mubr.msk.bf16.mxu0 %vm82_vm0, %v13379_v32  ;;  %11357 = vmatprep.mubr.msk.bf16.mxu1 %vm82_vm0, %v13379_v32 }
 0x335   :  { %11346 = vmatmul.mubr.msk.bf16.vlgmr.msra.gmra.mrb[28].mxu0 %vm82_vm0, %v13383_v33  ;;  %11358 = vmatmul.mubr.msk.bf16.vlgmr.msra.gmra.mrb[32].mxu1 %vm82_vm0, %v13383_v33 }
 0x336   :  { %11349 = vmatprep.mubr.msk.bf16.mxu0 %vm82_vm0, %v13415_v50  ;;  %11361 = vmatprep.mubr.msk.bf16.mxu1 %vm82_vm0, %v13415_v50 }
 0x337   :  { %11366 = vmatpush3.bf16.msra.mxu0 %v505_v62  ;;  %11378 = vmatpush3.bf16.msra.mxu1 %v507_v63  ;;  %v1068_v62 = vld [vmem:[%s18310_s27 + $0xd8] sm:$0xff]  ;;  %v1071_v63 = vld [vmem:[%s18310_s27 + $0xf0] sm:$0xff] }
 0x338   :  { %11367 = vmatprep.subr.bf16.mxu0 %v506_v5  ;;  %11379 = vmatprep.subr.bf16.mxu1 %v508_v6  ;;  %v1086_v2 = vpack.c.bf16 %v1068_v62, %v1067_v61  ;;  %v1088_v3 = vpack.c.bf16 %v1072_v1, %v1071_v63  ;;  %v1640_v61 = vld [vmem:[%s18068_s12 + $0xf8] sm:$0xff] }
 0x33b   :  { %11368 = vmatpush3.bf16.msra.mxu0 %v506_v5  ;;  %11380 = vmatpush3.bf16.msra.mxu1 %v508_v6  ;;  %v1610_v5 = vld [vmem:[%s18068_s12 + $0x8] sm:$0xff]  ;;  %v1613_v6 = vld [vmem:[%s18068_s12 + $0x20] sm:$0xff] }
 0x33c   :  { %11389 = vmatprep.subr.bf16.mxu0 %v1073_v11  ;;  %11401 = vmatprep.subr.bf16.mxu1 %v1075_v12  ;;  %v1641_v8 = vpack.c.bf16 %v1610_v5, %v1609_v4  ;;  %v1643_v9 = vpack.c.bf16 %v1614_v7, %v1613_v6  ;;  %v322_v5 = vld [vmem:[%s18069_s5] sm:$0xff]  ;;  %v323_v6 = vld [vmem:[%s18069_s5 + $0x8] sm:$0xff] }
 0x33d   :  { %11350 = vmatmul.mubr.msk.bf16.gmra.mrb[32].mxu0 %vm82_vm0, %v13419_v51  ;;  %11362 = vmatmul.mubr.msk.bf16.gmra.mrb[36].mxu1 %vm82_vm0, %v13419_v51 }
 0x33e   :  { %11369 = vmatprep.mubr.msk.bf16.mxu0 %vm82_vm0, %v13379_v32  ;;  %11381 = vmatprep.mubr.msk.bf16.mxu1 %vm82_vm0, %v13379_v32 }
 0x345   :  { %11370 = vmatmul.mubr.msk.bf16.vlgmr.msra.gmra.mrb[36].mxu0 %vm82_vm0, %v13383_v33  ;;  %11382 = vmatmul.mubr.msk.bf16.vlgmr.msra.gmra.mrb[40].mxu1 %vm82_vm0, %v13383_v33 }
 0x346   :  { %11373 = vmatprep.mubr.msk.bf16.mxu0 %vm82_vm0, %v13415_v50  ;;  %11385 = vmatprep.mubr.msk.bf16.mxu1 %vm82_vm0, %v13415_v50 }
 0x347   :  { %11390 = vmatpush3.bf16.msra.mxu0 %v1073_v11  ;;  %11402 = vmatpush3.bf16.msra.mxu1 %v1075_v12  ;;  %v1612_v11 = vld [vmem:[%s18068_s12 + $0x18] sm:$0xff]  ;;  %v1615_v12 = vld [vmem:[%s18068_s12 + $0x30] sm:$0xff] }
 0x348   :  { %11391 = vmatprep.subr.bf16.mxu0 %v1074_v17  ;;  %11403 = vmatprep.subr.bf16.mxu1 %v1076_v18  ;;  %v1642_v14 = vpack.c.bf16 %v1612_v11, %v1611_v10  ;;  %v1644_v15 = vpack.c.bf16 %v1616_v13, %v1615_v12 }
 0x34b   :  { %11392 = vmatpush3.bf16.msra.mxu0 %v1074_v17  ;;  %11404 = vmatpush3.bf16.msra.mxu1 %v1076_v18  ;;  %v1618_v17 = vld [vmem:[%s18068_s12 + $0x48] sm:$0xff]  ;;  %v1621_v18 = vld [vmem:[%s18068_s12 + $0x60] sm:$0xff] }
 0x34c   :  { %11413 = vmatprep.subr.bf16.mxu0 %v1077_v24  ;;  %11425 = vmatprep.subr.bf16.mxu1 %v1079_v25  ;;  %v1645_v20 = vpack.c.bf16 %v1618_v17, %v1617_v16  ;;  %v1647_v21 = vpack.c.bf16 %v1622_v19, %v1621_v18  ;;  %v328_v16 = vld [vmem:[%s18069_s5 + $0x30] sm:$0xff]  ;;  %v329_v17 = vld [vmem:[%s18069_s5 + $0x38] sm:$0xff]  ;;  %v326_v19 = vld [vmem:[%s18069_s5 + $0x20] sm:$0xff] }
 0x34d   :  { %11374 = vmatmul.mubr.msk.bf16.gmra.mrb[40].mxu0 %vm82_vm0, %v13419_v51  ;;  %11386 = vmatmul.mubr.msk.bf16.gmra.mrb[44].mxu1 %vm82_vm0, %v13419_v51 }
 0x34e   :  { %11393 = vmatprep.mubr.msk.bf16.mxu0 %vm82_vm0, %v13379_v32  ;;  %11405 = vmatprep.mubr.msk.bf16.mxu1 %vm82_vm0, %v13379_v32 }
 0x355   :  { %11394 = vmatmul.mubr.msk.bf16.vlgmr.msra.gmra.mrb[44].mxu0 %vm82_vm0, %v13383_v33  ;;  %11406 = vmatmul.mubr.msk.bf16.vlgmr.msra.gmra.mrb[48].mxu1 %vm82_vm0, %v13383_v33 }
 0x356   :  { %11397 = vmatprep.mubr.msk.bf16.mxu0 %vm82_vm0, %v13415_v50  ;;  %11409 = vmatprep.mubr.msk.bf16.mxu1 %vm82_vm0, %v13415_v50 }
 0x357   :  { %11414 = vmatpush3.bf16.msra.mxu0 %v1077_v24  ;;  %11426 = vmatpush3.bf16.msra.mxu1 %v1079_v25  ;;  %v1620_v24 = vld [vmem:[%s18068_s12 + $0x58] sm:$0xff]  ;;  %v1623_v25 = vld [vmem:[%s18068_s12 + $0x70] sm:$0xff] }
 0x358   :  { %11415 = vmatprep.subr.bf16.mxu0 %v1078_v35  ;;  %11427 = vmatprep.subr.bf16.mxu1 %v1080_v36  ;;  %v1646_v29 = vpack.c.bf16 %v1620_v24, %v1619_v22  ;;  %v1648_v30 = vpack.c.bf16 %v1624_v28, %v1623_v25 }
 0x35b   :  { %11416 = vmatpush3.bf16.msra.mxu0 %v1078_v35  ;;  %11428 = vmatpush3.bf16.msra.mxu1 %v1080_v36  ;;  %v1626_v35 = vld [vmem:[%s18068_s12 + $0x88] sm:$0xff]  ;;  %v1629_v36 = vld [vmem:[%s18068_s12 + $0xa0] sm:$0xff] }
 0x35c   :  { %11437 = vmatprep.subr.bf16.mxu0 %v1081_v41  ;;  %11449 = vmatprep.subr.bf16.mxu1 %v1083_v42  ;;  %v1649_v38 = vpack.c.bf16 %v1626_v35, %v1625_v34  ;;  %v1651_v39 = vpack.c.bf16 %v1630_v37, %v1629_v36 }
 0x35d   :  { %11398 = vmatmul.mubr.msk.bf16.gmra.mrb[48].mxu0 %vm82_vm0, %v13419_v51  ;;  %11410 = vmatmul.mubr.msk.bf16.gmra.mrb[52].mxu1 %vm82_vm0, %v13419_v51 }
 0x35e   :  { %11417 = vmatprep.mubr.msk.bf16.mxu0 %vm82_vm0, %v13379_v32  ;;  %11429 = vmatprep.mubr.msk.bf16.mxu1 %vm82_vm0, %v13379_v32 }
 0x365   :  { %11418 = vmatmul.mubr.msk.bf16.vlgmr.msra.gmra.mrb[52].mxu0 %vm82_vm0, %v13383_v33  ;;  %11430 = vmatmul.mubr.msk.bf16.vlgmr.msra.gmra.mrb[56].mxu1 %vm82_vm0, %v13383_v33 }
 0x366   :  { %11421 = vmatprep.mubr.msk.bf16.mxu0 %vm82_vm0, %v13415_v50  ;;  %11433 = vmatprep.mubr.msk.bf16.mxu1 %vm82_vm0, %v13415_v50 }
 0x367   :  { %11438 = vmatpush3.bf16.msra.mxu0 %v1081_v41  ;;  %11450 = vmatpush3.bf16.msra.mxu1 %v1083_v42  ;;  %v1628_v41 = vld [vmem:[%s18068_s12 + $0x98] sm:$0xff]  ;;  %v1631_v42 = vld [vmem:[%s18068_s12 + $0xb0] sm:$0xff] }
 0x368   :  { %11439 = vmatprep.subr.bf16.mxu0 %v1082_v53  ;;  %11451 = vmatprep.subr.bf16.mxu1 %v1084_v54  ;;  %v1650_v45 = vpack.c.bf16 %v1628_v41, %v1627_v40  ;;  %v1652_v46 = vpack.c.bf16 %v1632_v44, %v1631_v42 }
 0x36b   :  { %11440 = vmatpush3.bf16.msra.mxu0 %v1082_v53  ;;  %11452 = vmatpush3.bf16.msra.mxu1 %v1084_v54  ;;  %v1634_v53 = vld [vmem:[%s18068_s12 + $0xc8] sm:$0xff]  ;;  %v1637_v54 = vld [vmem:[%s18068_s12 + $0xe0] sm:$0xff] }
 0x36c   :  { %11461 = vmatprep.subr.bf16.mxu0 %v1085_v59  ;;  %11473 = vmatprep.subr.bf16.mxu1 %v1087_v60  ;;  %v1653_v56 = vpack.c.bf16 %v1634_v53, %v1633_v52  ;;  %v1655_v57 = vpack.c.bf16 %v1638_v55, %v1637_v54 }
 0x36d   :  { %11422 = vmatmul.mubr.msk.bf16.gmra.mrb[56].mxu0 %vm82_vm0, %v13419_v51  ;;  %11434 = vmatmul.mubr.msk.bf16.gmra.mrb[60].mxu1 %vm82_vm0, %v13419_v51 }
 0x36e   :  { %11441 = vmatprep.mubr.msk.bf16.mxu0 %vm82_vm0, %v13379_v32  ;;  %11453 = vmatprep.mubr.msk.bf16.mxu1 %vm82_vm0, %v13379_v32 }
 0x375   :  { %11442 = vmatmul.mubr.msk.bf16.vlgmr.msra.gmra.mrb[60].mxu0 %vm82_vm0, %v13383_v33  ;;  %11454 = vmatmul.mubr.msk.bf16.vlgmr.msra.gmra.mrb[64].mxu1 %vm82_vm0, %v13383_v33 }
 0x376   :  { %11445 = vmatprep.mubr.msk.bf16.mxu0 %vm82_vm0, %v13415_v50  ;;  %11457 = vmatprep.mubr.msk.bf16.mxu1 %vm82_vm0, %v13415_v50 }
 0x377   :  { %11462 = vmatpush3.bf16.msra.mxu0 %v1085_v59  ;;  %11474 = vmatpush3.bf16.msra.mxu1 %v1087_v60  ;;  %v1636_v59 = vld [vmem:[%s18068_s12 + $0xd8] sm:$0xff]  ;;  %v1639_v60 = vld [vmem:[%s18068_s12 + $0xf0] sm:$0xff] }
 0x378   :  { %11463 = vmatprep.subr.bf16.mxu0 %v1086_v2  ;;  %11475 = vmatprep.subr.bf16.mxu1 %v1088_v3  ;;  %v1654_v62 = vpack.c.bf16 %v1636_v59, %v1635_v58  ;;  %v1656_v63 = vpack.c.bf16 %v1640_v61, %v1639_v60 }
 0x37b   :  { %11464 = vmatpush3.bf16.msra.mxu0 %v1086_v2  ;;  %11476 = vmatpush3.bf16.msra.mxu1 %v1088_v3  ;;  %v324_v2 = vld [vmem:[%s18069_s5 + $0x10] sm:$0xff]  ;;  %v325_v3 = vld [vmem:[%s18069_s5 + $0x18] sm:$0xff] }
 0x37c   :  { %11485 = vmatprep.subr.bf16.mxu0 %v1641_v8  ;;  %11497 = vmatprep.subr.bf16.mxu1 %v1643_v9 }
 0x37d   :  { %11446 = vmatmul.mubr.msk.bf16.gmra.mrb[64].mxu0 %vm82_vm0, %v13419_v51  ;;  %11458 = vmatmul.mubr.msk.bf16.gmra.mrb[68].mxu1 %vm82_vm0, %v13419_v51 }
 0x37e   :  { %11465 = vmatprep.mubr.msk.bf16.mxu0 %vm82_vm0, %v13379_v32  ;;  %11477 = vmatprep.mubr.msk.bf16.mxu1 %vm82_vm0, %v13379_v32 }
 0x385   :  { %11466 = vmatmul.mubr.msk.bf16.vlgmr.msra.gmra.mrb[68].mxu0 %vm82_vm0, %v13383_v33  ;;  %11478 = vmatmul.mubr.msk.bf16.vlgmr.msra.gmra.mrb[72].mxu1 %vm82_vm0, %v13383_v33 }
 0x386   :  { %11469 = vmatprep.mubr.msk.bf16.mxu0 %vm82_vm0, %v13415_v50  ;;  %11481 = vmatprep.mubr.msk.bf16.mxu1 %vm82_vm0, %v13415_v50 }
 0x387   :  { %11486 = vmatpush3.bf16.msra.mxu0 %v1641_v8  ;;  %11498 = vmatpush3.bf16.msra.mxu1 %v1643_v9 }
 0x388   :  { %11487 = vmatprep.subr.bf16.mxu0 %v1642_v14  ;;  %11499 = vmatprep.subr.bf16.mxu1 %v1644_v15 }
 0x38b   :  { %11488 = vmatpush3.bf16.msra.mxu0 %v1642_v14  ;;  %11500 = vmatpush3.bf16.msra.mxu1 %v1644_v15 }
 0x38c   :  { %11509 = vmatprep.subr.bf16.mxu0 %v1645_v20  ;;  %11521 = vmatprep.subr.bf16.mxu1 %v1647_v21 }
 0x38d   :  { %11470 = vmatmul.mubr.msk.bf16.gmra.mrb[72].mxu0 %vm82_vm0, %v13419_v51  ;;  %11482 = vmatmul.mubr.msk.bf16.gmra.mrb[76].mxu1 %vm82_vm0, %v13419_v51 }
 0x38e   :  { %11489 = vmatprep.mubr.msk.bf16.mxu0 %vm82_vm0, %v13379_v32  ;;  %11501 = vmatprep.mubr.msk.bf16.mxu1 %vm82_vm0, %v13379_v32 }
 0x395   :  { %11490 = vmatmul.mubr.msk.bf16.vlgmr.msra.gmra.mrb[76].mxu0 %vm82_vm0, %v13383_v33  ;;  %11502 = vmatmul.mubr.msk.bf16.vlgmr.msra.gmra.mrb[80].mxu1 %vm82_vm0, %v13383_v33 }
 0x396   :  { %11493 = vmatprep.mubr.msk.bf16.mxu0 %vm82_vm0, %v13415_v50  ;;  %11505 = vmatprep.mubr.msk.bf16.mxu1 %vm82_vm0, %v13415_v50 }
 0x397   :  { %11510 = vmatpush3.bf16.msra.mxu0 %v1645_v20  ;;  %11522 = vmatpush3.bf16.msra.mxu1 %v1647_v21  ;;  %v327_v20 = vld [vmem:[%s18069_s5 + $0x28] sm:$0xff]  ;;  %s13103_s5 = smov 4  }
 0x398   :  { %11511 = vmatprep.subr.bf16.mxu0 %v1646_v29  ;;  %11523 = vmatprep.subr.bf16.mxu1 %v1648_v30 }
 0x39b   :  { %11512 = vmatpush3.bf16.msra.mxu0 %v1646_v29  ;;  %11524 = vmatpush3.bf16.msra.mxu1 %v1648_v30 }
 0x39c   :  { %11533 = vmatprep.subr.bf16.mxu0 %v1649_v38  ;;  %11545 = vmatprep.subr.bf16.mxu1 %v1651_v39 }
 0x39d   :  { %11494 = vmatmul.mubr.msk.bf16.gmra.mrb[80].mxu0 %vm82_vm0, %v13419_v51  ;;  %11506 = vmatmul.mubr.msk.bf16.gmra.mrb[84].mxu1 %vm82_vm0, %v13419_v51 }
 0x39e   :  { %11513 = vmatprep.mubr.msk.bf16.mxu0 %vm82_vm0, %v13379_v32  ;;  %11525 = vmatprep.mubr.msk.bf16.mxu1 %vm82_vm0, %v13379_v32 }
 0x3a5   :  { %11514 = vmatmul.mubr.msk.bf16.vlgmr.msra.gmra.mrb[84].mxu0 %vm82_vm0, %v13383_v33  ;;  %11526 = vmatmul.mubr.msk.bf16.vlgmr.msra.gmra.mrb[88].mxu1 %vm82_vm0, %v13383_v33 }
 0x3a6   :  { %11517 = vmatprep.mubr.msk.bf16.mxu0 %vm82_vm0, %v13415_v50  ;;  %11529 = vmatprep.mubr.msk.bf16.mxu1 %vm82_vm0, %v13415_v50 }
 0x3a7   :  { %11534 = vmatpush3.bf16.msra.mxu0 %v1649_v38  ;;  %11546 = vmatpush3.bf16.msra.mxu1 %v1651_v39 }
 0x3a8   :  { %11535 = vmatprep.subr.bf16.mxu0 %v1650_v45  ;;  %11547 = vmatprep.subr.bf16.mxu1 %v1652_v46 }
 0x3ab   :  { %11536 = vmatpush3.bf16.msra.mxu0 %v1650_v45  ;;  %11548 = vmatpush3.bf16.msra.mxu1 %v1652_v46 }
 0x3ac   :  { %11557 = vmatprep.subr.bf16.mxu0 %v1653_v56  ;;  %11569 = vmatprep.subr.bf16.mxu1 %v1655_v57 }
 0x3ad   :  { %11518 = vmatmul.mubr.msk.bf16.gmra.mrb[88].mxu0 %vm82_vm0, %v13419_v51  ;;  %11530 = vmatmul.mubr.msk.bf16.gmra.mrb[92].mxu1 %vm82_vm0, %v13419_v51 }
 0x3ae   :  { %11537 = vmatprep.mubr.msk.bf16.mxu0 %vm82_vm0, %v13379_v32  ;;  %11549 = vmatprep.mubr.msk.bf16.mxu1 %vm82_vm0, %v13379_v32 }
 0x3b5   :  { %11538 = vmatmul.mubr.msk.bf16.vlgmr.msra.gmra.mrb[92].mxu0 %vm82_vm0, %v13383_v33  ;;  %11550 = vmatmul.mubr.msk.bf16.vlgmr.msra.gmra.mrb[96].mxu1 %vm82_vm0, %v13383_v33 }
 0x3b6   :  { %11541 = vmatprep.mubr.msk.bf16.mxu0 %vm82_vm0, %v13415_v50  ;;  %11553 = vmatprep.mubr.msk.bf16.mxu1 %vm82_vm0, %v13415_v50 }
 0x3b7   :  { %11558 = vmatpush3.bf16.msra.mxu0 %v1653_v56  ;;  %11570 = vmatpush3.bf16.msra.mxu1 %v1655_v57 }
 0x3b8   :  { %11559 = vmatprep.subr.bf16.mxu0 %v1654_v62  ;;  %11571 = vmatprep.subr.bf16.mxu1 %v1656_v63 }
 0x3bb   :  { %11560 = vmatpush3.bf16.msra.mxu0 %v1654_v62  ;;  %11572 = vmatpush3.bf16.msra.mxu1 %v1656_v63 }
 0x3bd   :  { %11542 = vmatmul.mubr.msk.bf16.gmra.mrb[96].mxu0 %vm82_vm0, %v13419_v51  ;;  %11554 = vmatmul.mubr.msk.bf16.gmra.mrb[100].mxu1 %vm82_vm0, %v13419_v51 }
 0x3be   :  { %11561 = vmatprep.mubr.msk.bf16.mxu0 %vm82_vm0, %v13379_v32  ;;  %11573 = vmatprep.mubr.msk.bf16.mxu1 %vm82_vm0, %v13379_v32  ;;  %v10304_v32 = vld [vmem:[%s18070_s14 + $0x7] ss:$0 sm:$0xff] }
 0x3c5   :  { %11562 = vmatmul.mubr.msk.bf16.vlgmr.msra.gmra.mrb[100].mxu0 %vm82_vm0, %v13383_v33  ;;  %11574 = vmatmul.mubr.msk.bf16.vlgmr.msra.gmra.mrb[104].mxu1 %vm82_vm0, %v13383_v33 }
 0x3c6   :  { %11565 = vmatprep.mubr.msk.bf16.mxu0 %vm82_vm0, %v13415_v50  ;;  %11577 = vmatprep.mubr.msk.bf16.mxu1 %vm82_vm0, %v13415_v50 }
 0x3cd   :  { %11566 = vmatmul.mubr.msk.bf16.gmra.mrb[104].mxu0 %vm82_vm0, %v13419_v51  ;;  %11578 = vmatmul.mubr.msk.bf16.gmra.mrb[108].mxu1 %vm82_vm0, %v13419_v51 }
 0x3d6   :  { %v11277_v1 = vpop.f32.mrb[4].mxu0 }
 0x3d7   :  { %v291_v4 = vpop.f32.mrb[5].mxu0  ;;  %v332_v8 = vmul.f32 %v11277_v1, %v324_v2 }
 0x3d8   :  { %v11278_v7 = vpop.f32.mrb[6].mxu0  ;;  %v330_v11 = vmul.f32 %v322_v5, %v291_v4 }
 0x3d9   :  { %v333_v9 = vmul.f32 %v11278_v7, %v325_v3  ;;  %v294_v10 = vpop.f32.mrb[7].mxu0 }
 0x3da   :  { %v331_v12 = vmul.f32 %v323_v6, %v294_v10 }
 0x3db   :  { %v13845_v13 = vpack.c.bf16 %v333_v9, %v332_v8  ;;  %v13102_v9 = vmov 0   ;;  %v10297_v8 = vld [vmem:[%s18070_s14] ss:$0 sm:$0xff] }
 0x3dc   :  { %v13847_v14 = vpack.c.bf16 %v331_v12, %v330_v11  ;;  %12566 = vset.pattern.permute.xlu1 %v13102_v9  ;;  %12567 = vset.pattern.permute.xlu0 %v13102_v9 }
 0x3dd   :  { %18311 = vst [vmem:[#allocation14_spill] sm:$0xff] %v13845_v13  ;;  %3066 = vperm.xlu1 %12566, %v10297_v8  }
 0x3de   :  { %18312 = vst [vmem:[#allocation15_spill] sm:$0xff] %v13847_v14  ;;  %v11281_v15 = vpop.f32.mrb[8].mxu0 }
 0x3df   :  { %v307_v18 = vpop.f32.mrb[9].mxu0  ;;  %v336_v22 = vmul.f32 %v11281_v15, %v328_v16 }
 0x3e0   :  { %v11282_v21 = vpop.f32.mrb[10].mxu0  ;;  %v334_v28 = vmul.f32 %v326_v19, %v307_v18 }
 0x3e1   :  { %v337_v24 = vmul.f32 %v11282_v21, %v329_v17  ;;  %v310_v25 = vpop.f32.mrb[11].mxu0 }
 0x3e2   :  { %v335_v29 = vmul.f32 %v327_v20, %v310_v25 }
 0x3e3   :  { %v13861_v30 = vpack.c.bf16 %v337_v24, %v336_v22  ;;  %v10298_v22 = vld [vmem:[%s18070_s14 + $0x1] ss:$0 sm:$0xff]  ;;  %v10301_v24 = vld [vmem:[%s18070_s14 + $0x4] ss:$0 sm:$0xff] }
 0x3e4   :  { %v13863_v34 = vpack.c.bf16 %v335_v29, %v334_v28  ;;  %3070 = vperm.xlu1 %12566, %v10298_v22   ;;  %v10300_v22 = vld [vmem:[%s18070_s14 + $0x3] ss:$0 sm:$0xff] }
 0x3e5   :  { %18313 = vst [vmem:[#allocation16_spill] sm:$0xff] %v13861_v30 }
 0x3e6   :  { %18314 = vst [vmem:[#allocation17_spill] sm:$0xff] %v13863_v34 }
 0x3e8   :  { %v13865_v35 = vpop.f32.mrb[12].mxu0  ;;  %v13867_v36 = vpop.f32.mrb[16].mxu1  ;;  %3078 = vperm.xlu1 %12566, %v10300_v22   ;;  %v10303_v22 = vld [vmem:[%s18070_s14 + $0x6] ss:$0 sm:$0xff] }
 0x3e9   :  { %v555_v37 = vpop.f32.mrb[13].mxu0  ;;  %v620_v38 = vpop.f32.mrb[17].mxu1 }
 0x3ea   :  { %v13869_v39 = vpop.f32.mrb[14].mxu0  ;;  %v13871_v40 = vpop.f32.mrb[18].mxu1 }
 0x3eb   :  { %v558_v44 = vpop.f32.mrb[15].mxu0  ;;  %v623_v45 = vpop.f32.mrb[19].mxu1 }
 0x3ec   :  { %v2177_v46 = vpack.c.bf16 %v558_v44, %v555_v37  ;;  %v2181_v52 = vpack.c.bf16 %v623_v45, %v620_v38  ;;  %3082 = vperm.xlu1 %12566, %v10301_v24  }
 0x3ee   :  { %11589 = vmatprep.mubr.msk.bf16.mxu0 %vm359_vm5, %v2177_v46  ;;  %11605 = vmatprep.mubr.msk.bf16.mxu1 %vm359_vm5, %v2181_v52 }
 0x3f0   :  { %v13879_v53 = vpop.f32.mrb[16].mxu0  ;;  %v13881_v54 = vpop.f32.mrb[20].mxu1  ;;  %3086 = vperm.xlu1 %12566, %v10302_v31  }
 0x3f1   :  { %v13883_v55 = vpop.f32.mrb[17].mxu0  ;;  %v13885_v56 = vpop.f32.mrb[21].mxu1 }
 0x3f2   :  { %v13887_v57 = vpop.f32.mrb[18].mxu0  ;;  %v13889_v58 = vpop.f32.mrb[22].mxu1 }
 0x3f3   :  { %v13895_v61 = vpop.f32.mrb[19].mxu0  ;;  %v13897_v62 = vpop.f32.mrb[23].mxu1 }
 0x3f4   :  { %3090 = vperm.xlu1 %12566, %v10303_v22  }
 0x3f8   :  { %v13903_v2 = vpop.f32.mrb[20].mxu0  ;;  %v13905_v3 = vpop.f32.mrb[24].mxu1  ;;  %3094 = vperm.xlu1 %12566, %v10304_v32  }
 0x3f9   :  { %v13907_v4 = vpop.f32.mrb[21].mxu0  ;;  %v13909_v5 = vpop.f32.mrb[25].mxu1 }
 0x3fa   :  { %v13911_v6 = vpop.f32.mrb[22].mxu0  ;;  %v13913_v7 = vpop.f32.mrb[26].mxu1 }
 0x3fb   :  { %v13919_v10 = vpop.f32.mrb[23].mxu0  ;;  %v13921_v11 = vpop.f32.mrb[27].mxu1 }
 0x400   :  { %v13927_v16 = vpop.f32.mrb[24].mxu0  ;;  %v13929_v17 = vpop.f32.mrb[28].mxu1 }
 0x401   :  { %v13931_v18 = vpop.f32.mrb[25].mxu0  ;;  %v13933_v19 = vpop.f32.mrb[29].mxu1 }
 0x402   :  { %v13935_v20 = vpop.f32.mrb[26].mxu0  ;;  %v13937_v21 = vpop.f32.mrb[30].mxu1 }
 0x403   :  { %v13943_v25 = vpop.f32.mrb[27].mxu0  ;;  %v13945_v28 = vpop.f32.mrb[31].mxu1 }
 0x408   :  { %v13951_v38 = vpop.f32.mrb[28].mxu0  ;;  %v13953_v44 = vpop.f32.mrb[32].mxu1 }
 0x409   :  { %v13955_v45 = vpop.f32.mrb[29].mxu0  ;;  %v13957_v46 = vpop.f32.mrb[33].mxu1 }
 0x40a   :  { %v13959_v52 = vpop.f32.mrb[30].mxu0  ;;  %v13961_v0 = vpop.f32.mrb[34].mxu1 }
 0x40b   :  { %v13967_v29 = vpop.f32.mrb[31].mxu0  ;;  %v13969_v37 = vpop.f32.mrb[35].mxu1 }
 0x410   :  { %v13981_v12 = vpop.f32.mrb[32].mxu0  ;;  %v13983_v60 = vpop.f32.mrb[36].mxu1 }
 0x411   :  { %18315 = vst [vmem:[#allocation18_spill] sm:$0xff] %v13983_v60  ;;  %v13985_v59 = vpop.f32.mrb[33].mxu0  ;;  %v13987_v1 = vpop.f32.mrb[37].mxu1 }
 0x412   :  { %v13989_v9 = vpop.f32.mrb[34].mxu0  ;;  %v13991_v15 = vpop.f32.mrb[38].mxu1 }
 0x413   :  { %18316 = vst [vmem:[#allocation19_spill] sm:$0xff] %v13991_v15  ;;  %v13997_v63 = vpop.f32.mrb[35].mxu0  ;;  %v13999_v42 = vpop.f32.mrb[39].mxu1 }
 0x418   :  { %v14008_v47 = vpop.f32.mrb[36].mxu0  ;;  %v14010_v8 = vpop.f32.mrb[40].mxu1 }
 0x419   :  { %18317 = vst [vmem:[#allocation20_spill] sm:$0xff] %v14008_v47  ;;  %18318 = vst [vmem:[#allocation21_spill] sm:$0xff] %v14010_v8  ;;  %v14015_v43 = vpop.f32.mrb[37].mxu0  ;;  %v14017_v49 = vpop.f32.mrb[41].mxu1 }
 0x41a   :  { %18319 = vst [vmem:[#allocation22_spill] sm:$0xff] %v14015_v43  ;;  %18320 = vst [vmem:[#allocation23_spill] sm:$0xff] %v14017_v49  ;;  %v14019_v27 = vpop.f32.mrb[38].mxu0  ;;  %v14021_v41 = vpop.f32.mrb[42].mxu1 }
 0x41b   :  { %18321 = vst [vmem:[#allocation24_spill] sm:$0xff] %v14019_v27  ;;  %18322 = vst [vmem:[#allocation25_spill] sm:$0xff] %v14021_v41  ;;  %v14027_v26 = vpop.f32.mrb[39].mxu0  ;;  %v14029_v23 = vpop.f32.mrb[43].mxu1 }
 0x41c   :  { %18323 = vst [vmem:[#allocation26_spill] sm:$0xff] %v14027_v26  ;;  %18324 = vst [vmem:[#allocation27_spill] sm:$0xff] %v14029_v23 }
 0x420   :  { %v14041_v48 = vpop.f32.mrb[40].mxu0  ;;  %v14043_v34 = vpop.f32.mrb[44].mxu1 }
 0x421   :  { %18325 = vst [vmem:[#allocation28_spill] sm:$0xff] %v14041_v48  ;;  %18326 = vst [vmem:[#allocation29_spill] sm:$0xff] %v14043_v34  ;;  %v14045_v13 = vpop.f32.mrb[41].mxu0  ;;  %v14047_v14 = vpop.f32.mrb[45].mxu1 }
 0x422   :  { %18327 = vst [vmem:[#allocation30_spill] sm:$0xff] %v14045_v13  ;;  %18328 = vst [vmem:[#allocation31_spill] sm:$0xff] %v14047_v14  ;;  %v14049_v51 = vpop.f32.mrb[42].mxu0  ;;  %v14051_v24 = vpop.f32.mrb[46].mxu1 }
 0x423   :  { %18329 = vst [vmem:[#allocation32_spill] sm:$0xff] %v14049_v51  ;;  %18330 = vst [vmem:[#allocation33_spill] sm:$0xff] %v14051_v24  ;;  %v14057_v50 = vpop.f32.mrb[43].mxu0  ;;  %v14059_v33 = vpop.f32.mrb[47].mxu1 }
 0x424   :  { %18331 = vst [vmem:[#allocation34_spill] sm:$0xff] %v14057_v50  ;;  %18332 = vst [vmem:[#allocation35_spill] sm:$0xff] %v14059_v33 }
 0x428   :  { %v11395_v41 = vpop.f32.mrb[44].mxu0  ;;  %v11407_v31 = vpop.f32.mrb[48].mxu1 }
 0x429   :  { %v1123_v48 = vpop.f32.mrb[45].mxu0  ;;  %v1188_v51 = vpop.f32.mrb[49].mxu1 }
 0x42a   :  { %v11396_v30 = vpop.f32.mrb[46].mxu0  ;;  %v11408_v34 = vpop.f32.mrb[50].mxu1 }
 0x42b   :  { %v2210_v24 = vpack.c.bf16 %v11396_v30, %v11395_v41  ;;  %v2214_v47 = vpack.c.bf16 %v11408_v34, %v11407_v31  ;;  %v1126_v27 = vpop.f32.mrb[47].mxu0  ;;  %v1191_v49 = vpop.f32.mrb[51].mxu1 }
 0x42c   :  { %v2209_v23 = vpack.c.bf16 %v1126_v27, %v1123_v48  ;;  %v2213_v43 = vpack.c.bf16 %v1191_v49, %v1188_v51 }
 0x42e   :  { %12492 = vmatprep.subr.msk.bf16.mxu0 %vm359_vm5, %v2209_v23  ;;  %12496 = vmatprep.subr.msk.bf16.mxu1 %vm359_vm5, %v2213_v43  ;;  %v2254_v22 = vsel %vm359_vm5, %v2209_v23, 0  ;;  %v2343_v32 = vsel %vm359_vm5, %v2213_v43, 0  ;;  %v2257_v43 = vsel %vm359_vm5, %v2210_v24, 0 }
 0x42f   :  { %11582 = vmatpush3.bf16.xpose.msra.mxu0 %v2254_v22  ;;  %11598 = vmatpush3.bf16.xpose.msra.mxu1 %v2343_v32  ;;  %v2346_v22 = vsel %vm359_vm5, %v2214_v47, 0 }
 0x430   :  { %v11399_v8 = vpop.f32.mrb[48].mxu0  ;;  %v11411_v14 = vpop.f32.mrb[52].mxu1  ;;  %12493 = vmatprep.subr.msk.bf16.mxu0 %vm359_vm5, %v2210_v24  ;;  %12497 = vmatprep.subr.msk.bf16.mxu1 %vm359_vm5, %v2214_v47 }
 0x431   :  { %v1139_v30 = vpop.f32.mrb[49].mxu0  ;;  %v1204_v34 = vpop.f32.mrb[53].mxu1 }
 0x432   :  { %v11400_v27 = vpop.f32.mrb[50].mxu0  ;;  %v11412_v48 = vpop.f32.mrb[54].mxu1 }
 0x433   :  { %v2212_v49 = vpack.c.bf16 %v11400_v27, %v11399_v8  ;;  %v2216_v51 = vpack.c.bf16 %v11412_v48, %v11411_v14  ;;  %v1142_v41 = vpop.f32.mrb[51].mxu0  ;;  %v1207_v31 = vpop.f32.mrb[55].mxu1 }
 0x434   :  { %v2211_v33 = vpack.c.bf16 %v1142_v41, %v1139_v30  ;;  %v2215_v23 = vpack.c.bf16 %v1207_v31, %v1204_v34 }
 0x435   :  { %v2352_v60 = vsel %vm359_vm5, %v2216_v51, 0 }
 0x436   :  { %v2260_v41 = vsel %vm359_vm5, %v2211_v33, 0  ;;  %v2349_v31 = vsel %vm359_vm5, %v2215_v23, 0 }
 0x437   :  { %11584 = vmatpush3.bf16.xpose.msra.mxu0 %v2257_v43  ;;  %11600 = vmatpush3.bf16.xpose.msra.mxu1 %v2346_v22 }
 0x438   :  { %v11419_v32 = vpop.f32.mrb[52].mxu0  ;;  %v11431_v13 = vpop.f32.mrb[56].mxu1  ;;  %12494 = vmatprep.subr.msk.bf16.mxu0 %vm359_vm5, %v2211_v33  ;;  %12498 = vmatprep.subr.msk.bf16.mxu1 %vm359_vm5, %v2215_v23 }
 0x439   :  { %v1253_v50 = vpop.f32.mrb[53].mxu0  ;;  %v1318_v26 = vpop.f32.mrb[57].mxu1 }
 0x43a   :  { %v11420_v8 = vpop.f32.mrb[54].mxu0  ;;  %v11432_v14 = vpop.f32.mrb[58].mxu1 }
 0x43b   :  { %v14078_v27 = vpack.c.bf16 %v11420_v8, %v11419_v32  ;;  %v14080_v30 = vpack.c.bf16 %v11432_v14, %v11431_v13  ;;  %v1256_v34 = vpop.f32.mrb[55].mxu0  ;;  %v1321_v24 = vpop.f32.mrb[59].mxu1  ;;  %v10299_v13 = vld [vmem:[%s18070_s14 + $0x2] ss:$0 sm:$0xff] }
 0x43c   :  { %v2217_v48 = vpack.c.bf16 %v1256_v34, %v1253_v50  ;;  %v2221_v47 = vpack.c.bf16 %v1321_v24, %v1318_v26  ;;  %3074 = vperm.xlu0 %12567, %v10299_v13  }
 0x43f   :  { %11586 = vmatpush3.bf16.xpose.msra.mxu0 %v2260_v41  ;;  %11602 = vmatpush3.bf16.xpose.msra.mxu1 %v2349_v31  ;;  %v2263_v31 = vsel %vm359_vm5, %v2212_v49, 0 }
 0x440   :  { %v11423_v43 = vpop.f32.mrb[56].mxu0  ;;  %v11435_v22 = vpop.f32.mrb[60].mxu1  ;;  %12495 = vmatprep.subr.msk.bf16.mxu0 %vm359_vm5, %v2212_v49  ;;  %12499 = vmatprep.subr.msk.bf16.mxu1 %vm359_vm5, %v2216_v51 }
 0x441   :  { %v1269_v32 = vpop.f32.mrb[57].mxu0  ;;  %v1334_v8 = vpop.f32.mrb[61].mxu1 }
 0x442   :  { %v11424_v26 = vpop.f32.mrb[58].mxu0  ;;  %v11436_v50 = vpop.f32.mrb[62].mxu1 }
 0x443   :  { %v14089_v33 = vpack.c.bf16 %v11424_v26, %v11423_v43  ;;  %v14091_v23 = vpack.c.bf16 %v11436_v50, %v11435_v22  ;;  %v1272_v14 = vpop.f32.mrb[59].mxu0  ;;  %v1337_v34 = vpop.f32.mrb[63].mxu1 }
 0x444   :  { %v14093_v24 = vpack.c.bf16 %v1272_v14, %v1269_v32  ;;  %v14095_v41 = vpack.c.bf16 %v1337_v34, %v1334_v8 }
 0x447   :  { %11588 = vmatpush3.bf16.xpose.msra.mxu0 %v2263_v31  ;;  %11604 = vmatpush3.bf16.xpose.msra.mxu1 %v2352_v60  ;;  %v18333_v60 = vpack.c.bf16 %v13869_v39, %v13865_v35  ;;  %v18334_v31 = vpack.c.bf16 %v13871_v40, %v13867_v36  ;;  %v2521_v35 = vsel %vm359_vm5, %v2221_v47, 0 }
 0x448   :  { %v11443_v15 = vpop.f32.mrb[60].mxu0  ;;  %v11455_v13 = vpop.f32.mrb[64].mxu1  ;;  %12500 = vmatprep.subr.msk.bf16.mxu0 %vm359_vm5, %v2217_v48  ;;  %12504 = vmatprep.subr.msk.bf16.mxu1 %vm359_vm5, %v2221_v47 }
 0x449   :  { %v1383_v43 = vpop.f32.mrb[61].mxu0  ;;  %v1448_v22 = vpop.f32.mrb[65].mxu1 }
 0x44a   :  { %v11444_v26 = vpop.f32.mrb[62].mxu0  ;;  %v11456_v50 = vpop.f32.mrb[66].mxu1 }
 0x44b   :  { %v14101_v32 = vpack.c.bf16 %v11444_v26, %v11443_v15  ;;  %v14103_v8 = vpack.c.bf16 %v11456_v50, %v11455_v13  ;;  %v1386_v14 = vpop.f32.mrb[63].mxu0  ;;  %v1451_v49 = vpop.f32.mrb[67].mxu1  ;;  %v18335_v15 = vpack.c.bf16 %v13895_v61, %v13883_v55  ;;  %v18336_v13 = vpack.c.bf16 %v13897_v62, %v13885_v56 }
 0x44c   :  { %v14105_v34 = vpack.c.bf16 %v1386_v14, %v1383_v43  ;;  %v14107_v51 = vpack.c.bf16 %v1451_v49, %v1448_v22  ;;  %v2432_v43 = vsel %vm359_vm5, %v2217_v48, 0  ;;  %v18337_v14 = vpack.c.bf16 %v13887_v57, %v13879_v53 }
 0x44d   :  { %v18338_v49 = vpack.c.bf16 %v13889_v58, %v13881_v54  ;;  %v18340_v53 = vpack.c.bf16 %v13921_v11, %v13909_v5 }
 0x44e   :  { %11590 = vmatmul.mubr.msk.bf16.vlgmr.msra.gmra.mrb[108].mxu0 %vm359_vm5, %v18333_v60  ;;  %11606 = vmatmul.mubr.msk.bf16.vlgmr.msra.gmra.mrb[112].mxu1 %vm359_vm5, %v18334_v31  ;;  %v2435_v60 = vsel %vm359_vm5, %v14078_v27, 0  ;;  %v18339_v31 = vpack.c.bf16 %v13919_v10, %v13907_v4 }
 0x44f   :  { %11593 = vmatprep.mubr.msk.bf16.mxu0 %vm359_vm5, %v18335_v15  ;;  %11609 = vmatprep.mubr.msk.bf16.mxu1 %vm359_vm5, %v18336_v13  ;;  %v2524_v15 = vsel %vm359_vm5, %v14080_v30, 0 }
 0x450   :  { %11614 = vmatpush3.bf16.xpose.msra.mxu0 %v2432_v43  ;;  %11630 = vmatpush3.bf16.xpose.msra.mxu1 %v2521_v35  ;;  %v11447_v39 = vpop.f32.mrb[64].mxu0  ;;  %v11459_v36 = vpop.f32.mrb[68].mxu1 }
 0x451   :  { %12501 = vmatprep.subr.msk.bf16.mxu0 %vm359_vm5, %v14078_v27  ;;  %12505 = vmatprep.subr.msk.bf16.mxu1 %vm359_vm5, %v14080_v30  ;;  %v1399_v40 = vpop.f32.mrb[65].mxu0  ;;  %v1464_v55 = vpop.f32.mrb[69].mxu1 }
 0x452   :  { %v11448_v61 = vpop.f32.mrb[66].mxu0  ;;  %v11460_v56 = vpop.f32.mrb[70].mxu1 }
 0x453   :  { %v14131_v62 = vpack.c.bf16 %v11448_v61, %v11447_v39  ;;  %v14133_v22 = vpack.c.bf16 %v11460_v56, %v11459_v36  ;;  %v1402_v48 = vpop.f32.mrb[67].mxu0  ;;  %v1467_v47 = vpop.f32.mrb[71].mxu1  ;;  %v2438_v39 = vsel %vm359_vm5, %v14093_v24, 0  ;;  %v2527_v36 = vsel %vm359_vm5, %v14095_v41, 0 }
 0x454   :  { %v14135_v26 = vpack.c.bf16 %v1402_v48, %v1399_v40  ;;  %v14137_v50 = vpack.c.bf16 %v1467_v47, %v1464_v55 }
 0x456   :  { %11594 = vmatmul.mubr.msk.bf16.gmra.mrb[112].mxu0 %vm359_vm5, %v18337_v14  ;;  %11610 = vmatmul.mubr.msk.bf16.gmra.mrb[116].mxu1 %vm359_vm5, %v18338_v49 }
 0x457   :  { %11621 = vmatprep.mubr.msk.bf16.mxu0 %vm359_vm5, %v18339_v31  ;;  %11637 = vmatprep.mubr.msk.bf16.mxu1 %vm359_vm5, %v18340_v53  ;;  %v2530_v53 = vsel %vm359_vm5, %v14091_v23, 0 }
 0x458   :  { %11616 = vmatpush3.bf16.xpose.msra.mxu0 %v2435_v60  ;;  %11632 = vmatpush3.bf16.xpose.msra.mxu1 %v2524_v15  ;;  %v11467_v54 = vpop.f32.mrb[68].mxu0  ;;  %v11479_v57 = vpop.f32.mrb[72].mxu1  ;;  %v2441_v15 = vsel %vm359_vm5, %v14089_v33, 0 }
 0x459   :  { %12502 = vmatprep.subr.msk.bf16.mxu0 %vm359_vm5, %v14093_v24  ;;  %12506 = vmatprep.subr.msk.bf16.mxu1 %vm359_vm5, %v14095_v41  ;;  %v1513_v58 = vpop.f32.mrb[69].mxu0  ;;  %v1578_v4 = vpop.f32.mrb[73].mxu1 }
 0x45a   :  { %v11468_v10 = vpop.f32.mrb[70].mxu0  ;;  %v11480_v27 = vpop.f32.mrb[74].mxu1 }
 0x45b   :  { %v14163_v30 = vpack.c.bf16 %v11468_v10, %v11467_v54  ;;  %v14165_v13 = vpack.c.bf16 %v11480_v27, %v11479_v57  ;;  %v1516_v5 = vpop.f32.mrb[71].mxu0  ;;  %v1581_v11 = vpop.f32.mrb[75].mxu1 }
 0x45c   :  { %v14167_v43 = vpack.c.bf16 %v1516_v5, %v1513_v58  ;;  %v14169_v35 = vpack.c.bf16 %v1581_v11, %v1578_v4 }
 0x460   :  { %11618 = vmatpush3.bf16.xpose.msra.mxu0 %v2438_v39  ;;  %11634 = vmatpush3.bf16.xpose.msra.mxu1 %v2527_v36  ;;  %v11471_v40 = vpop.f32.mrb[72].mxu0  ;;  %v11483_v55 = vpop.f32.mrb[76].mxu1 }
 0x461   :  { %12503 = vmatprep.subr.msk.bf16.mxu0 %vm359_vm5, %v14089_v33  ;;  %12507 = vmatprep.subr.msk.bf16.mxu1 %vm359_vm5, %v14091_v23  ;;  %v1529_v61 = vpop.f32.mrb[73].mxu0  ;;  %v1594_v56 = vpop.f32.mrb[77].mxu1 }
 0x462   :  { %v11472_v48 = vpop.f32.mrb[74].mxu0  ;;  %v11484_v47 = vpop.f32.mrb[78].mxu1 }
 0x463   :  { %v14179_v14 = vpack.c.bf16 %v11472_v48, %v11471_v40  ;;  %v14181_v24 = vpack.c.bf16 %v11484_v47, %v11483_v55  ;;  %v1532_v49 = vpop.f32.mrb[75].mxu0  ;;  %v1597_v41 = vpop.f32.mrb[79].mxu1  ;;  %v18341_v40 = vpack.c.bf16 %v13911_v6, %v13903_v2  ;;  %v18342_v55 = vpack.c.bf16 %v13913_v7, %v13905_v3 }
 0x464   :  { %v14183_v60 = vpack.c.bf16 %v1532_v49, %v1529_v61  ;;  %v14185_v31 = vpack.c.bf16 %v1597_v41, %v1594_v56  ;;  %v18343_v61 = vpack.c.bf16 %v13943_v25, %v13931_v18  ;;  %v18344_v56 = vpack.c.bf16 %v13945_v28, %v13933_v19 }
 0x465   :  { %v2610_v2 = vsel %vm359_vm5, %v14105_v34, 0  ;;  %v2699_v6 = vsel %vm359_vm5, %v14107_v51, 0 }
 0x468   :  { %11620 = vmatpush3.bf16.xpose.msra.mxu0 %v2441_v15  ;;  %11636 = vmatpush3.bf16.xpose.msra.mxu1 %v2530_v53  ;;  %v11491_v54 = vpop.f32.mrb[76].mxu0  ;;  %v11503_v57 = vpop.f32.mrb[80].mxu1  ;;  %v18345_v15 = vpack.c.bf16 %v13935_v20, %v13927_v16  ;;  %v18346_v53 = vpack.c.bf16 %v13937_v21, %v13929_v17  ;;  %v18348_v16 = vpack.c.bf16 %v13969_v37, %v13957_v46 }
 0x469   :  { %12508 = vmatprep.subr.msk.bf16.mxu0 %vm359_vm5, %v14105_v34  ;;  %12512 = vmatprep.subr.msk.bf16.mxu1 %vm359_vm5, %v14107_v51  ;;  %v1691_v58 = vpop.f32.mrb[77].mxu0  ;;  %v1756_v4 = vpop.f32.mrb[81].mxu1 }
 0x46a   :  { %v11492_v10 = vpop.f32.mrb[78].mxu0  ;;  %v11504_v27 = vpop.f32.mrb[82].mxu1 }
 0x46b   :  { %v14195_v5 = vpack.c.bf16 %v11492_v10, %v11491_v54  ;;  %v14197_v33 = vpack.c.bf16 %v11504_v27, %v11503_v57  ;;  %v1694_v11 = vpop.f32.mrb[79].mxu0  ;;  %v1759_v23 = vpop.f32.mrb[83].mxu1  ;;  %v2613_v54 = vsel %vm359_vm5, %v14101_v32, 0  ;;  %v18347_v57 = vpack.c.bf16 %v13967_v29, %v13955_v45 }
 0x46c   :  { %v14199_v39 = vpack.c.bf16 %v1694_v11, %v1691_v58  ;;  %v14201_v36 = vpack.c.bf16 %v1759_v23, %v1756_v4  ;;  %v2702_v58 = vsel %vm359_vm5, %v14103_v8, 0  ;;  %v2616_v11 = vsel %vm359_vm5, %v14135_v26, 0 }
 0x46d   :  { %v2705_v23 = vsel %vm359_vm5, %v14137_v50, 0 }
 0x46f   :  { %11622 = vmatmul.mubr.msk.bf16.vlgmr.msra.gmra.mrb[116].mxu0 %vm359_vm5, %v18341_v40  ;;  %11638 = vmatmul.mubr.msk.bf16.vlgmr.msra.gmra.mrb[120].mxu1 %vm359_vm5, %v18342_v55 }
 0x470   :  { %11625 = vmatprep.mubr.msk.bf16.mxu0 %vm359_vm5, %v18343_v61  ;;  %11641 = vmatprep.mubr.msk.bf16.mxu1 %vm359_vm5, %v18344_v56  ;;  %v11495_v48 = vpop.f32.mrb[80].mxu0  ;;  %v11507_v3 = vpop.f32.mrb[84].mxu1 }
 0x471   :  { %11646 = vmatpush3.bf16.xpose.msra.mxu0 %v2610_v2  ;;  %11662 = vmatpush3.bf16.xpose.msra.mxu1 %v2699_v6  ;;  %v1707_v7 = vpop.f32.mrb[81].mxu0  ;;  %v1772_v47 = vpop.f32.mrb[85].mxu1 }
 0x472   :  { %12509 = vmatprep.subr.msk.bf16.mxu0 %vm359_vm5, %v14101_v32  ;;  %12513 = vmatprep.subr.msk.bf16.mxu1 %vm359_vm5, %v14103_v8  ;;  %v11496_v18 = vpop.f32.mrb[82].mxu0  ;;  %v11508_v19 = vpop.f32.mrb[86].mxu1 }
 0x473   :  { %v14227_v25 = vpack.c.bf16 %v11496_v18, %v11495_v48  ;;  %v14229_v28 = vpack.c.bf16 %v11508_v19, %v11507_v3  ;;  %v1710_v34 = vpop.f32.mrb[83].mxu0  ;;  %v1775_v51 = vpop.f32.mrb[87].mxu1  ;;  %v2619_v18 = vsel %vm359_vm5, %v14131_v62, 0  ;;  %v2708_v19 = vsel %vm359_vm5, %v14133_v22, 0 }
 0x474   :  { %v14231_v49 = vpack.c.bf16 %v1710_v34, %v1707_v7  ;;  %v14233_v41 = vpack.c.bf16 %v1775_v51, %v1772_v47 }
 0x477   :  { %11626 = vmatmul.mubr.msk.bf16.gmra.mrb[120].mxu0 %vm359_vm5, %v18345_v15  ;;  %11642 = vmatmul.mubr.msk.bf16.gmra.mrb[124].mxu1 %vm359_vm5, %v18346_v53 }
 0x478   :  { %11653 = vmatprep.mubr.msk.bf16.mxu0 %vm359_vm5, %v18347_v57  ;;  %11669 = vmatprep.mubr.msk.bf16.mxu1 %vm359_vm5, %v18348_v16  ;;  %v11515_v20 = vpop.f32.mrb[84].mxu0  ;;  %v11527_v17 = vpop.f32.mrb[88].mxu1 }
 0x479   :  { %11648 = vmatpush3.bf16.xpose.msra.mxu0 %v2613_v54  ;;  %11664 = vmatpush3.bf16.xpose.msra.mxu1 %v2702_v58  ;;  %v1821_v21 = vpop.f32.mrb[85].mxu0  ;;  %v1886_v4 = vpop.f32.mrb[89].mxu1 }
 0x47a   :  { %12510 = vmatprep.subr.msk.bf16.mxu0 %vm359_vm5, %v14135_v26  ;;  %12514 = vmatprep.subr.msk.bf16.mxu1 %vm359_vm5, %v14137_v50  ;;  %v11516_v29 = vpop.f32.mrb[86].mxu0  ;;  %v11528_v45 = vpop.f32.mrb[90].mxu1 }
 0x47b   :  { %v14259_v32 = vpack.c.bf16 %v11516_v29, %v11515_v20  ;;  %v14261_v8 = vpack.c.bf16 %v11528_v45, %v11527_v17  ;;  %v1824_v37 = vpop.f32.mrb[87].mxu0  ;;  %v1889_v46 = vpop.f32.mrb[91].mxu1 }
 0x47c   :  { %v14263_v10 = vpack.c.bf16 %v1824_v37, %v1821_v21  ;;  %v14265_v27 = vpack.c.bf16 %v1889_v46, %v1886_v4  ;;  %v18361_v21 = vpack.c.bf16 %v13959_v52, %v13951_v38  ;;  %v18362_v4 = vpack.c.bf16 %v13961_v0, %v13953_v44 }
 0x47d   :  { %18349 = vst [vmem:[#allocation36_spill] sm:$0xff] %v14259_v32  ;;  %18350 = vst [vmem:[#allocation37_spill] sm:$0xff] %v14261_v8  ;;  %v18363_v37 = vpack.c.bf16 %v13997_v63, %v13985_v59  ;;  %v18364_v46 = vpack.c.bf16 %v13999_v42, %v13987_v1  ;;  %v2788_v38 = vsel %vm359_vm5, %v14167_v43, 0  ;;  %v2877_v0 = vsel %vm359_vm5, %v14169_v35, 0 }
 0x47e   :  { %18351 = vst [vmem:[#allocation38_spill] sm:$0xff] %v14263_v10  ;;  %18352 = vst [vmem:[#allocation39_spill] sm:$0xff] %v14265_v27 }
 0x480   :  { %v11519_v40 = vpop.f32.mrb[88].mxu0  ;;  %v11531_v55 = vpop.f32.mrb[92].mxu1 }
 0x481   :  { %11650 = vmatpush3.bf16.xpose.msra.mxu0 %v2616_v11  ;;  %11666 = vmatpush3.bf16.xpose.msra.mxu1 %v2705_v23  ;;  %v1837_v61 = vpop.f32.mrb[89].mxu0  ;;  %v1902_v56 = vpop.f32.mrb[93].mxu1 }
 0x482   :  { %12511 = vmatprep.subr.msk.bf16.mxu0 %vm359_vm5, %v14131_v62  ;;  %12515 = vmatprep.subr.msk.bf16.mxu1 %vm359_vm5, %v14133_v22  ;;  %v11520_v2 = vpop.f32.mrb[90].mxu0  ;;  %v11532_v6 = vpop.f32.mrb[94].mxu1 }
 0x483   :  { %v14275_v48 = vpack.c.bf16 %v11520_v2, %v11519_v40  ;;  %v14277_v26 = vpack.c.bf16 %v11532_v6, %v11531_v55  ;;  %v1840_v3 = vpop.f32.mrb[91].mxu0  ;;  %v1905_v50 = vpop.f32.mrb[95].mxu1  ;;  %v18369_v40 = vpack.c.bf16 %v13989_v9, %v13981_v12  ;;  %v18370_v55 = vld [vmem:[#allocation19_spill] sm:$0xff]  ;;  %v2880_v12 = vsel %vm359_vm5, %v14165_v13, 0 }
 0x484   :  { %v14279_v7 = vpack.c.bf16 %v1840_v3, %v1837_v61  ;;  %v14281_v47 = vpack.c.bf16 %v1905_v50, %v1902_v56  ;;  %v18371_v61 = vld [vmem:[#allocation18_spill] sm:$0xff]  ;;  %v2791_v3 = vsel %vm359_vm5, %v14163_v30, 0  ;;  %v18376_v9 = vld [vmem:[#allocation27_spill] sm:$0xff] }
 0x485   :  { %18353 = vst [vmem:[#allocation40_spill] sm:$0xff] %v14275_v48  ;;  %18354 = vst [vmem:[#allocation41_spill] sm:$0xff] %v14277_v26  ;;  %v18372_v56 = vpack.c.bf16 %v18370_v55, %v18371_v61  ;;  %v18373_v50 = vld [vmem:[#allocation26_spill] sm:$0xff]  ;;  %v2886_v55 = vsel %vm359_vm5, %v14181_v24, 0  ;;  %v18387_v61 = vld [vmem:[#allocation24_spill] sm:$0xff] }
 0x486   :  { %18355 = vst [vmem:[#allocation42_spill] sm:$0xff] %v14279_v7  ;;  %18356 = vst [vmem:[#allocation43_spill] sm:$0xff] %v14281_v47 }
 0x488   :  { %v11539_v34 = vpop.f32.mrb[92].mxu0  ;;  %v11551_v51 = vpop.f32.mrb[96].mxu1 }
 0x489   :  { %11652 = vmatpush3.bf16.xpose.msra.mxu0 %v2619_v18  ;;  %11668 = vmatpush3.bf16.xpose.msra.mxu1 %v2708_v19  ;;  %v1951_v15 = vpop.f32.mrb[93].mxu0  ;;  %v2016_v53 = vpop.f32.mrb[97].mxu1  ;;  %v18374_v18 = vld [vmem:[#allocation22_spill] sm:$0xff] }
 0x48a   :  { %12516 = vmatprep.subr.msk.bf16.mxu0 %vm359_vm5, %v14167_v43  ;;  %12520 = vmatprep.subr.msk.bf16.mxu1 %vm359_vm5, %v14169_v35  ;;  %v11540_v54 = vpop.f32.mrb[94].mxu0  ;;  %v11552_v57 = vpop.f32.mrb[98].mxu1  ;;  %v18375_v19 = vpack.c.bf16 %v18373_v50, %v18374_v18  ;;  %v18394_v18 = vld [vmem:[#allocation30_spill] sm:$0xff] }
 0x48b   :  { %v14291_v58 = vpack.c.bf16 %v11540_v54, %v11539_v34  ;;  %v14293_v62 = vpack.c.bf16 %v11552_v57, %v11551_v51  ;;  %v1954_v16 = vpop.f32.mrb[95].mxu0  ;;  %v2019_v22 = vpop.f32.mrb[99].mxu1  ;;  %v18377_v34 = vld [vmem:[#allocation23_spill] sm:$0xff] }
 0x48c   :  { %v14295_v20 = vpack.c.bf16 %v1954_v16, %v1951_v15  ;;  %v14297_v17 = vpack.c.bf16 %v2019_v22, %v2016_v53  ;;  %v18378_v51 = vpack.c.bf16 %v18376_v9, %v18377_v34  ;;  %v18399_v34 = vld [vmem:[#allocation32_spill] sm:$0xff] }
 0x48d   :  { %18357 = vst [vmem:[#allocation44_spill] sm:$0xff] %v14291_v58  ;;  %18358 = vst [vmem:[#allocation45_spill] sm:$0xff] %v14293_v62 }
 0x48e   :  { %18359 = vst [vmem:[#allocation46_spill] sm:$0xff] %v14295_v20  ;;  %18360 = vst [vmem:[#allocation47_spill] sm:$0xff] %v14297_v17 }
 0x490   :  { %11654 = vmatmul.mubr.msk.bf16.vlgmr.msra.gmra.mrb[124].mxu0 %vm359_vm5, %v18361_v21  ;;  %11670 = vmatmul.mubr.msk.bf16.vlgmr.msra.gmra.mrb[128].mxu1 %vm359_vm5, %v18362_v4  ;;  %v11543_v29 = vpop.f32.mrb[96].mxu0  ;;  %v11555_v45 = vpop.f32.mrb[100].mxu1 }
 0x491   :  { %11657 = vmatprep.mubr.msk.bf16.mxu0 %vm359_vm5, %v18363_v37  ;;  %11673 = vmatprep.mubr.msk.bf16.mxu1 %vm359_vm5, %v18364_v46  ;;  %v1967_v44 = vpop.f32.mrb[97].mxu0  ;;  %v2032_v52 = vpop.f32.mrb[101].mxu1  ;;  %v2794_v37 = vsel %vm359_vm5, %v14183_v60, 0  ;;  %v2883_v46 = vsel %vm359_vm5, %v14185_v31, 0 }
 0x492   :  { %11678 = vmatpush3.bf16.xpose.msra.mxu0 %v2788_v38  ;;  %11694 = vmatpush3.bf16.xpose.msra.mxu1 %v2877_v0  ;;  %v11544_v11 = vpop.f32.mrb[98].mxu0  ;;  %v11556_v23 = vpop.f32.mrb[102].mxu1 }
 0x493   :  { %12517 = vmatprep.subr.msk.bf16.mxu0 %vm359_vm5, %v14163_v30  ;;  %12521 = vmatprep.subr.msk.bf16.mxu1 %vm359_vm5, %v14165_v13  ;;  %v14323_v42 = vpack.c.bf16 %v11544_v11, %v11543_v29  ;;  %v14325_v59 = vpack.c.bf16 %v11556_v23, %v11555_v45  ;;  %v1970_v63 = vpop.f32.mrb[99].mxu0  ;;  %v2035_v1 = vpop.f32.mrb[103].mxu1 }
 0x494   :  { %v14327_v43 = vpack.c.bf16 %v1970_v63, %v1967_v44  ;;  %v14329_v35 = vpack.c.bf16 %v2035_v1, %v2032_v52 }
 0x495   :  { %18365 = vst [vmem:[#allocation48_spill] sm:$0xff] %v14323_v42  ;;  %18366 = vst [vmem:[#allocation49_spill] sm:$0xff] %v14325_v59 }
 0x496   :  { %18367 = vst [vmem:[#allocation50_spill] sm:$0xff] %v14327_v43  ;;  %18368 = vst [vmem:[#allocation51_spill] sm:$0xff] %v14329_v35 }
 0x498   :  { %11658 = vmatmul.mubr.msk.bf16.gmra.mrb[128].mxu0 %vm359_vm5, %v18369_v40  ;;  %11674 = vmatmul.mubr.msk.bf16.gmra.mrb[132].mxu1 %vm359_vm5, %v18372_v56  ;;  %v11563_v2 = vpop.f32.mrb[100].mxu0  ;;  %v11575_v6 = vpop.f32.mrb[104].mxu1  ;;  %v2797_v40 = vsel %vm359_vm5, %v14179_v14, 0  ;;  %v18388_v56 = vld [vmem:[#allocation20_spill] sm:$0xff] }
 0x499   :  { %11685 = vmatprep.mubr.msk.bf16.mxu0 %vm359_vm5, %v18375_v19  ;;  %11701 = vmatprep.mubr.msk.bf16.mxu1 %vm359_vm5, %v18378_v51  ;;  %v2081_v15 = vpop.f32.mrb[101].mxu0  ;;  %v2146_v53 = vpop.f32.mrb[105].mxu1  ;;  %v18400_v51 = vld [vmem:[#allocation28_spill] sm:$0xff] }
 0x49a   :  { %11680 = vmatpush3.bf16.xpose.msra.mxu0 %v2791_v3  ;;  %11696 = vmatpush3.bf16.xpose.msra.mxu1 %v2880_v12  ;;  %v11564_v54 = vpop.f32.mrb[102].mxu0  ;;  %v11576_v57 = vpop.f32.mrb[106].mxu1  ;;  %v18391_v3 = vld [vmem:[#allocation21_spill] sm:$0xff]  ;;  %v18397_v12 = vld [vmem:[#allocation31_spill] sm:$0xff] }
 0x49b   :  { %12518 = vmatprep.subr.msk.bf16.mxu0 %vm359_vm5, %v14183_v60  ;;  %12522 = vmatprep.subr.msk.bf16.mxu1 %vm359_vm5, %v14185_v31  ;;  %v14355_v30 = vpack.c.bf16 %v11564_v54, %v11563_v2  ;;  %v14357_v13 = vpack.c.bf16 %v11576_v57, %v11575_v6  ;;  %v2084_v16 = vpop.f32.mrb[103].mxu0  ;;  %v2149_v22 = vpop.f32.mrb[107].mxu1  ;;  %v18389_v2 = vpack.c.bf16 %v18387_v61, %v18388_v56  ;;  %v18390_v6 = vld [vmem:[#allocation25_spill] sm:$0xff] }
 0x49c   :  { %v14359_v21 = vpack.c.bf16 %v2084_v16, %v2081_v15  ;;  %v14361_v4 = vpack.c.bf16 %v2149_v22, %v2146_v53  ;;  %v18392_v50 = vpack.c.bf16 %v18390_v6, %v18391_v3  ;;  %v18401_v15 = vpack.c.bf16 %v18399_v34, %v18400_v51  ;;  %v18403_v53 = vld [vmem:[#allocation29_spill] sm:$0xff] }
 0x49d   :  { %18379 = vst [vmem:[#allocation19_spill] sm:$0xff] %v14355_v30  ;;  %18380 = vst [vmem:[#allocation18_spill] sm:$0xff] %v14357_v13  ;;  %v14446_v54 = vld [vmem:[%s18071_s2 + $0x18] sm:$0xff] }
 0x49e   :  { %18381 = vst [vmem:[#allocation26_spill] sm:$0xff] %v14359_v21  ;;  %18382 = vst [vmem:[#allocation22_spill] sm:$0xff] %v14361_v4 }
 0x4a0   :  { %v11567_v29 = vpop.f32.mrb[104].mxu0  ;;  %v11579_v45 = vpop.f32.mrb[108].mxu1 }
 0x4a1   :  { %v2097_v38 = vpop.f32.mrb[105].mxu0  ;;  %v2162_v0 = vpop.f32.mrb[109].mxu1 }
 0x4a2   :  { %11682 = vmatpush3.bf16.xpose.msra.mxu0 %v2794_v37  ;;  %11698 = vmatpush3.bf16.xpose.msra.mxu1 %v2883_v46  ;;  %v11568_v44 = vpop.f32.mrb[106].mxu0  ;;  %v11580_v52 = vpop.f32.mrb[110].mxu1  ;;  %v14451_v46 = vld [vmem:[%s18071_s2 + $0x8] sm:$0xff] }
 0x4a3   :  { %12519 = vmatprep.subr.msk.bf16.mxu0 %vm359_vm5, %v14179_v14  ;;  %12523 = vmatprep.subr.msk.bf16.mxu1 %vm359_vm5, %v14181_v24  ;;  %v14371_v11 = vpack.c.bf16 %v11568_v44, %v11567_v29  ;;  %v14373_v23 = vpack.c.bf16 %v11580_v52, %v11579_v45  ;;  %v2100_v60 = vpop.f32.mrb[107].mxu0  ;;  %v2165_v63 = vpop.f32.mrb[111].mxu1  ;;  %v18393_v14 = vld [vmem:[#allocation34_spill] sm:$0xff]  ;;  %v18396_v24 = vld [vmem:[#allocation35_spill] sm:$0xff] }
 0x4a4   :  { %v14375_v1 = vpack.c.bf16 %v2100_v60, %v2097_v38  ;;  %v14377_v31 = vpack.c.bf16 %v2165_v63, %v2162_v0  ;;  %v18395_v19 = vpack.c.bf16 %v18393_v14, %v18394_v18  ;;  %v18398_v9 = vpack.c.bf16 %v18396_v24, %v18397_v12  ;;  %v14460_v60 = vld [vmem:[%s18072_s1 + $0x10] sm:$0xff] }
 0x4a5   :  { %18383 = vst [vmem:[#allocation27_spill] sm:$0xff] %v14371_v11  ;;  %18384 = vst [vmem:[#allocation23_spill] sm:$0xff] %v14373_v23 }
 0x4a6   :  { %18385 = vst [vmem:[#allocation52_spill] sm:$0xff] %v14375_v1  ;;  %18386 = vst [vmem:[#allocation53_spill] sm:$0xff] %v14377_v31 }
 0x4aa   :  { %11684 = vmatpush3.bf16.xpose.msra.mxu0 %v2797_v40  ;;  %11700 = vmatpush3.bf16.xpose.msra.mxu1 %v2886_v55 }
 0x4ab   :  { %11709 = vmatprep.subr.bf16.mxu0 %v14199_v39  ;;  %11725 = vmatprep.subr.bf16.mxu1 %v14201_v36 }
 0x4b1   :  { %11686 = vmatmul.mubr.msk.bf16.vlgmr.msra.gmra.mrb[132].mxu0 %vm359_vm5, %v18389_v2  ;;  %11702 = vmatmul.mubr.msk.bf16.vlgmr.msra.gmra.mrb[136].mxu1 %vm359_vm5, %v18392_v50  ;;  %v14467_v50 = vld [vmem:[%s18072_s1 + $0x18] sm:$0xff] }
 0x4b2   :  { %11689 = vmatprep.mubr.msk.bf16.mxu0 %vm359_vm5, %v18395_v19  ;;  %11705 = vmatprep.mubr.msk.bf16.mxu1 %vm359_vm5, %v18398_v9  ;;  %v14477_v9 = vld [vmem:[%s18072_s1 + $0x8] sm:$0xff] }
 0x4b3   :  { %11710 = vmatpush3.bf16.msra.mxu0 %v14199_v39  ;;  %11726 = vmatpush3.bf16.msra.mxu1 %v14201_v36  ;;  %v18402_v39 = vld [vmem:[#allocation33_spill] sm:$0xff] }
 0x4b4   :  { %11711 = vmatprep.subr.bf16.mxu0 %v14195_v5  ;;  %11727 = vmatprep.subr.bf16.mxu1 %v14197_v33  ;;  %v18404_v36 = vpack.c.bf16 %v18402_v39, %v18403_v53  ;;  %v14487_v39 = vld [vmem:[%s18071_s2 + $0x38] sm:$0xff] }
 0x4b7   :  { %11712 = vmatpush3.bf16.msra.mxu0 %v14195_v5  ;;  %11728 = vmatpush3.bf16.msra.mxu1 %v14197_v33  ;;  %v14425_v5 = vpop.permute.xlu1 %3066  ;;  %v14430_v33 = vld [vmem:[%s18071_s2 + $0x10] sm:$0xff] }
 0x4b8   :  { %11713 = vmatprep.subr.bf16.mxu0 %v14231_v49  ;;  %11729 = vmatprep.subr.bf16.mxu1 %v14233_v41  ;;  %v3098_v3 = vmul.f32 %v14425_v5, %v14451_v46 }
 0x4b9   :  { %11690 = vmatmul.mubr.msk.bf16.gmra.mrb[136].mxu0 %vm359_vm5, %v18401_v15  ;;  %11706 = vmatmul.mubr.msk.bf16.gmra.mrb[140].mxu1 %vm359_vm5, %v18404_v36 }
 0x4bb   :  { %11714 = vmatpush3.bf16.msra.mxu0 %v14231_v49  ;;  %11730 = vmatpush3.bf16.msra.mxu1 %v14233_v41  ;;  %v14432_v49 = vpop.permute.xlu1 %3070  ;;  %v3099_v41 = vmul.f32 %v14425_v5, %v14430_v33 }
 0x4bc   :  { %11715 = vmatprep.subr.bf16.mxu0 %v14227_v25  ;;  %11731 = vmatprep.subr.bf16.mxu1 %v14229_v28  ;;  %v3108_v52 = vmul.f32 %v14432_v49, %v14446_v54 }
 0x4bf   :  { %11716 = vmatpush3.bf16.msra.mxu0 %v14227_v25  ;;  %11732 = vmatpush3.bf16.msra.mxu1 %v14229_v28  ;;  %v3107_v25 = vmul.f32 %v14432_v49, %v14430_v33  ;;  %v14441_v28 = vld [vmem:[%s18071_s2] sm:$0xff] }
 0x4c0   :  { %11741 = vmatprep.subr.bf16.mxu0 %v14263_v10  ;;  %11757 = vmatprep.subr.bf16.mxu1 %v14265_v27  ;;  %v3097_v38 = vmul.f32 %v14425_v5, %v14441_v28  ;;  %v3105_v24 = vmul.f32 %v14432_v49, %v14441_v28 }
 0x521   :  { %v11591_v57 = vpop.f32.mrb[108].mxu0  ;;  %v11607_v16 = vpop.f32.mrb[112].mxu1 }
 0x522   :  { %v2955_v22 = vmul.f32 0.5, %v11591_v57  ;;  %v2963_v29 = vmul.f32 0.5, %v11607_v16  ;;  %v2299_v45 = vpop.f32.mrb[109].mxu0  ;;  %v2388_v37 = vpop.f32.mrb[113].mxu1 }
 0x523   :  { %v11592_v0 = vpop.f32.mrb[110].mxu0  ;;  %v11608_v44 = vpop.f32.mrb[114].mxu1  ;;  %v2953_v55 = vmul.f32 0.5, %v2299_v45  ;;  %v2961_v19 = vmul.f32 0.5, %v2388_v37 }
 0x524   :  { %v3163_v63 = vadd.f32 %v3099_v41, %v2955_v22  ;;  %v3171_v40 = vadd.f32 %v3107_v25, %v2963_v29  ;;  %v2964_v61 = vmul.f32 0.5, %v11608_v44  ;;  %v2302_v56 = vpop.f32.mrb[111].mxu0  ;;  %v2391_v2 = vpop.f32.mrb[115].mxu1  ;;  %v14495_v25 = vld [vmem:[%s18072_s1] sm:$0xff]  ;;  %v2956_v37 = vmul.f32 0.5, %v11592_v0 }
 0x525   :  { %v2954_v6 = vmul.f32 0.5, %v2302_v56  ;;  %v3161_v34 = vadd.f32 %v3097_v38, %v2953_v55  ;;  %v3169_v45 = vadd.f32 %v3105_v24, %v2961_v19  ;;  %v3104_v44 = vmul.f32 %v14425_v5, %v14487_v39  ;;  %v14525_v19 = vld [vmem:[%s18072_s1 + $0x38] sm:$0xff] }
 0x526   :  { %v3172_v14 = vadd.f32 %v3108_v52, %v2964_v61  ;;  %v14470_v18 = vadd.f32 %v3163_v63, %v14460_v60  ;;  %v14490_v53 = vadd.f32 %v3171_v40, %v14460_v60  ;;  %v3112_v63 = vmul.f32 %v14432_v49, %v14487_v39  ;;  %v14513_v61 = vld [vmem:[%s18071_s2 + $0x28] sm:$0xff] }
 0x527   :  { %v3162_v12 = vadd.f32 %v3098_v3, %v2954_v6  ;;  %v14518_v3 = vadd.f32 %v3161_v34, %v14495_v25  ;;  %v3102_v34 = vmul.f32 %v14425_v5, %v14513_v61  ;;  %v14537_v31 = vadd.f32 %v3169_v45, %v14495_v25 }
 0x528   :  { %v3296_v51 = vsel %vm3289_vm6, %v14470_v18, -inf  ;;  %v14482_v15 = vadd.f32 %v3172_v14, %v14467_v50  ;;  %v3320_v0 = vsel %vm3289_vm6, %v14490_v53, -inf  ;;  %v3100_v14 = vmul.f32 %v14425_v5, %v14446_v54 }
 0x529   :  { %v11611_v36 = vpop.f32.mrb[116].mxu1  ;;  %3297 = vmax.xlane.f32.xlu1 %v3296_v51  ;;  %v11595_v41 = vpop.f32.mrb[112].mxu0  ;;  %v14504_v29 = vadd.f32 %v3162_v12, %v14477_v9  ;;  %v3110_v45 = vmul.f32 %v14432_v49, %v14513_v61 }
 0x52a   :  { %v14497_v57 = vpop.f32.mrb[113].mxu0  ;;  %v14499_v16 = vpop.f32.mrb[117].mxu1  ;;  %v3323_v22 = vsel %vm3289_vm6, %v14482_v15, -inf }
 0x52b   :  { %3324 = vmax.xlane.f32.xlu0 %v3323_v22  ;;  %v11596_v38 = vpop.f32.mrb[114].mxu0  ;;  %v11612_v52 = vpop.f32.mrb[118].mxu1  ;;  %v3293_v22 = vsel %vm3289_vm6, %v14504_v29, -inf }
 0x52c   :  { %v2960_v40 = vmul.f32 0.5, %v11596_v38  ;;  %v2968_v55 = vmul.f32 0.5, %v11612_v52  ;;  %v2318_v56 = vpop.f32.mrb[115].mxu0  ;;  %v2407_v6 = vpop.f32.mrb[119].mxu1  ;;  %v2962_v38 = vmul.f32 0.5, %v2391_v2  ;;  %v3164_v52 = vadd.f32 %v3100_v14, %v2956_v37 }
 0x52d   :  { %3321 = vmax.xlane.f32.xlu1 %v3320_v0  ;;  %v2958_v51 = vmul.f32 0.5, %v2318_v56  ;;  %v3290_v0 = vsel %vm3289_vm6, %v14518_v3, -inf  ;;  %v2966_v2 = vmul.f32 0.5, %v2407_v6  ;;  %v14556_v56 = vld [vmem:[%s18072_s1 + $0x28] sm:$0xff]  ;;  %v2959_v14 = vmul.f32 0.5, %v11595_v41 }
 0x52e   :  { %v3168_v24 = vadd.f32 %v3104_v44, %v2960_v40  ;;  %v3176_v12 = vadd.f32 %v3112_v63, %v2968_v55  ;;  %v3106_v44 = vmul.f32 %v14432_v49, %v14451_v46  ;;  %v14549_v55 = vld [vmem:[%s18071_s2 + $0x30] sm:$0xff] }
 0x52f   :  { %3294 = vmax.xlane.f32.xlu0 %v3293_v22  ;;  %v3166_v63 = vadd.f32 %v3102_v34, %v2958_v51  ;;  %v3103_v51 = vmul.f32 %v14425_v5, %v14549_v55  ;;  %v3174_v22 = vadd.f32 %v3110_v45, %v2966_v2  ;;  %v14578_v2 = vld [vmem:[%s18072_s1 + $0x30] sm:$0xff]  ;;  %v14590_v45 = vld [vmem:[%s18071_s2 + $0x20] sm:$0xff] }
 0x530   :  { %v14534_v23 = vadd.f32 %v3168_v24, %v14525_v19  ;;  %v14544_v37 = vadd.f32 %v3176_v12, %v14525_v19  ;;  %v3170_v6 = vadd.f32 %v3106_v44, %v2962_v38  ;;  %v3314_v24 = vsel %vm3289_vm6, %v14537_v31, -inf }
 0x531   :  { %3291 = vmax.xlane.f32.xlu1 %v3290_v0  ;;  %v14561_v12 = vadd.f32 %v3164_v52, %v14467_v50  ;;  %v14568_v0 = vadd.f32 %v3166_v63, %v14556_v56  ;;  %v2967_v38 = vmul.f32 0.5, %v11611_v36  ;;  %v3167_v41 = vadd.f32 %v3103_v51, %v2959_v14 }
 0x532   :  { %v3311_v40 = vsel %vm3289_vm6, %v14534_v23, -inf  ;;  %v3335_v34 = vsel %vm3289_vm6, %v14544_v37, -inf  ;;  %v14573_v52 = vadd.f32 %v3170_v6, %v14477_v9  ;;  %v14585_v36 = vadd.f32 %v3174_v22, %v14556_v56 }
 0x533   :  { %3312 = vmax.xlane.f32.xlu0 %v3311_v40  ;;  %v3299_v44 = vsel %vm3289_vm6, %v14561_v12, -inf  ;;  %v3111_v40 = vmul.f32 %v14432_v49, %v14549_v55  ;;  %v3305_v63 = vsel %vm3289_vm6, %v14568_v0, -inf  ;;  %v2957_v14 = vmul.f32 0.5, %v14497_v57 }
 0x534   :  { %v14596_v51 = vadd.f32 %v3167_v41, %v14578_v2  ;;  %v3101_v22 = vmul.f32 %v14425_v5, %v14590_v45  ;;  %v14610_v41 = vpop.permute.xlu1 %3078  ;;  %v14615_v5 = vld [vmem:[%s18072_s1 + $0x20] sm:$0xff] }
 0x535   :  { %3315 = vmax.xlane.f32.xlu1 %v3314_v24  ;;  %v3175_v6 = vadd.f32 %v3111_v40, %v2967_v38  ;;  %v3317_v24 = vsel %vm3289_vm6, %v14573_v52, -inf  ;;  %v14603_v38 = vpop.permute.xlu0 %3074  ;;  %v3124_v35 = vmul.f32 %v14610_v41, %v14446_v54 }
 0x536   :  { %v3308_v57 = vsel %vm3289_vm6, %v14596_v51, -inf }
 0x537   :  { %3336 = vmax.xlane.f32.xlu0 %v3335_v34  ;;  %v3329_v34 = vsel %vm3289_vm6, %v14585_v36, -inf  ;;  %v14608_v40 = vadd.f32 %v3175_v6, %v14578_v2  ;;  %v3116_v6 = vmul.f32 %v14603_v38, %v14446_v54 }
 0x539   :  { %3300 = vmax.xlane.f32.xlu1 %v3299_v44  ;;  %v3165_v44 = vadd.f32 %v3101_v22, %v2957_v14  ;;  %v3109_v14 = vmul.f32 %v14432_v49, %v14590_v45  ;;  %v3115_v22 = vmul.f32 %v14603_v38, %v14430_v33  ;;  %v3332_v4 = vsel %vm3289_vm6, %v14608_v40, -inf }
 0x53b   :  { %3306 = vmax.xlane.f32.xlu0 %v3305_v63  ;;  %v2965_v63 = vmul.f32 0.5, %v14499_v16  ;;  %v14626_v21 = vadd.f32 %v3165_v44, %v14615_v5 }
 0x53d   :  { %3318 = vmax.xlane.f32.xlu1 %v3317_v24  ;;  %v3173_v13 = vadd.f32 %v3109_v14, %v2965_v63  ;;  %v3114_v14 = vmul.f32 %v14603_v38, %v14451_v46  ;;  %v3302_v44 = vsel %vm3289_vm6, %v14626_v21, -inf }
 0x53f   :  { %3330 = vmax.xlane.f32.xlu0 %v3329_v34 }
 0x541   :  { %3309 = vmax.xlane.f32.xlu1 %v3308_v57 }
 0x542   :  { %v11639_v16 = vpop.f32.mrb[120].mxu1  ;;  %v11623_v24 = vpop.f32.mrb[116].mxu0 }
 0x543   :  { %v2477_v34 = vpop.f32.mrb[117].mxu0  ;;  %v2566_v11 = vpop.f32.mrb[121].mxu1  ;;  %v2971_v57 = vmul.f32 0.5, %v11623_v24  ;;  %v2979_v24 = vmul.f32 0.5, %v11639_v16 }
 0x544   :  { %v11624_v1 = vpop.f32.mrb[118].mxu0  ;;  %v11640_v30 = vpop.f32.mrb[122].mxu1 }
 0x545   :  { %v2972_v49 = vmul.f32 0.5, %v11624_v1  ;;  %v2980_v59 = vmul.f32 0.5, %v11640_v30  ;;  %v2480_v42 = vpop.f32.mrb[119].mxu0  ;;  %v2569_v62 = vpop.f32.mrb[123].mxu1  ;;  %3333 = vmax.xlane.f32.xlu1 %v3332_v4  ;;  %v3179_v17 = vadd.f32 %v3115_v22, %v2971_v57  ;;  %v14635_v1 = vadd.f32 %v3173_v13, %v14615_v5 }
 0x546   :  { %v2970_v63 = vmul.f32 0.5, %v2480_v42  ;;  %v3123_v4 = vmul.f32 %v14610_v41, %v14430_v33  ;;  %v3113_v42 = vmul.f32 %v14603_v38, %v14441_v28  ;;  %v2978_v22 = vmul.f32 0.5, %v2569_v62 }
 0x547   :  { %v3180_v43 = vadd.f32 %v3116_v6, %v2972_v49  ;;  %v3188_v58 = vadd.f32 %v3124_v35, %v2980_v59  ;;  %v3326_v47 = vsel %vm3289_vm6, %v14635_v1, -inf  ;;  %v14652_v48 = vadd.f32 %v3179_v17, %v14460_v60 }
 0x548   :  { %v3178_v16 = vadd.f32 %v3114_v14, %v2970_v63  ;;  %v3122_v62 = vmul.f32 %v14610_v41, %v14451_v46  ;;  %v2977_v17 = vmul.f32 0.5, %v2566_v11 }
 0x549   :  { %3303 = vmax.xlane.f32.xlu1 %v3302_v44  ;;  %v14638_v30 = vadd.f32 %v3180_v43, %v14467_v50  ;;  %v14647_v49 = vadd.f32 %v3188_v58, %v14467_v50  ;;  %v3187_v43 = vadd.f32 %v3123_v4, %v2979_v24  ;;  %v2969_v44 = vmul.f32 0.5, %v2477_v34 }
 0x54a   :  { %v11643_v59 = vpop.f32.mrb[124].mxu1  ;;  %v11627_v35 = vpop.f32.mrb[120].mxu0  ;;  %v3120_v58 = vmul.f32 %v14603_v38, %v14487_v39  ;;  %v3186_v24 = vadd.f32 %v3122_v62, %v2978_v22  ;;  %v3344_v7 = vsel %vm3289_vm6, %v14652_v48, -inf }
 0x54b   :  { %v2493_v6 = vpop.f32.mrb[121].mxu0  ;;  %v2582_v57 = vpop.f32.mrb[125].mxu1  ;;  %v3347_v13 = vsel %vm3289_vm6, %v14638_v30, -inf  ;;  %18405 = vst [vmem:[#allocation24_spill] sm:$0xff] %v14647_v49  ;;  %v3371_v4 = vsel %vm3289_vm6, %v14647_v49, -inf  ;;  %v3177_v8 = vadd.f32 %v3113_v42, %v2969_v44  ;;  %v14666_v27 = vadd.f32 %v3187_v43, %v14460_v60 }
 0x54c   :  { %v11644_v20 = vpop.f32.mrb[126].mxu1  ;;  %3348 = vmax.xlane.f32.xlu0 %v3347_v13  ;;  %v11628_v26 = vpop.f32.mrb[122].mxu0  ;;  %v14661_v13 = vadd.f32 %v3178_v16, %v14477_v9  ;;  %v14675_v11 = vadd.f32 %v3186_v24, %v14477_v9  ;;  %v2975_v44 = vmul.f32 0.5, %v11627_v35 }
 0x54d   :  { %v2496_v63 = vpop.f32.mrb[123].mxu0  ;;  %v2585_v14 = vpop.f32.mrb[127].mxu1  ;;  %3327 = vmax.xlane.f32.xlu1 %v3326_v47  ;;  %v2976_v34 = vmul.f32 0.5, %v11628_v26  ;;  %v3121_v47 = vmul.f32 %v14610_v41, %v14441_v28  ;;  %v3119_v26 = vmul.f32 %v14603_v38, %v14549_v55  ;;  %v2984_v22 = vmul.f32 0.5, %v11644_v20 }
 0x54e   :  { %18406 = vst [vmem:[#allocation20_spill] sm:$0xff] %v14661_v13  ;;  %v3341_v42 = vsel %vm3289_vm6, %v14661_v13, -inf  ;;  %18407 = vst [vmem:[#allocation25_spill] sm:$0xff] %v14675_v11  ;;  %v14680_v43 = vadd.f32 %v3177_v8, %v14495_v25  ;;  %v3118_v20 = vmul.f32 %v14603_v38, %v14513_v61  ;;  %v3365_v24 = vsel %vm3289_vm6, %v14675_v11, -inf }
 0x54f   :  { %v3184_v62 = vadd.f32 %v3120_v58, %v2976_v34  ;;  %v3185_v16 = vadd.f32 %v3121_v47, %v2977_v17  ;;  %v2974_v34 = vmul.f32 0.5, %v2496_v63  ;;  %v2983_v17 = vmul.f32 0.5, %v11643_v59 }
 0x550   :  { %3372 = vmax.xlane.f32.xlu0 %v3371_v4  ;;  %18408 = vst [vmem:[#allocation21_spill] sm:$0xff] %v14680_v43  ;;  %v3128_v4 = vmul.f32 %v14610_v41, %v14487_v39  ;;  %v3183_v47 = vadd.f32 %v3119_v26, %v2975_v44  ;;  %v3338_v8 = vsel %vm3289_vm6, %v14680_v43, -inf  ;;  %v2973_v63 = vmul.f32 0.5, %v2493_v6  ;;  %v14705_v44 = vpop.permute.xlu1 %3082 }
 0x551   :  { %3345 = vmax.xlane.f32.xlu1 %v3344_v7  ;;  %v3368_v7 = vsel %vm3289_vm6, %v14666_v27, -inf  ;;  %v14689_v35 = vadd.f32 %v3184_v62, %v14525_v19  ;;  %v2982_v62 = vmul.f32 0.5, %v2585_v14  ;;  %v2981_v14 = vmul.f32 0.5, %v2582_v57 }
 0x552   :  { %v3192_v58 = vadd.f32 %v3128_v4, %v2984_v22  ;;  %v3127_v22 = vmul.f32 %v14610_v41, %v14549_v55  ;;  %v3182_v4 = vadd.f32 %v3118_v20, %v2974_v34  ;;  %v14710_v6 = vadd.f32 %v3183_v47, %v14578_v2 }
 0x553   :  { %18409 = vst [vmem:[#allocation34_spill] sm:$0xff] %v14689_v35  ;;  %v3359_v59 = vsel %vm3289_vm6, %v14689_v35, -inf }
 0x554   :  { %3342 = vmax.xlane.f32.xlu0 %v3341_v42  ;;  %v14694_v42 = vadd.f32 %v3185_v16, %v14495_v25  ;;  %v14703_v26 = vadd.f32 %v3192_v58, %v14525_v19  ;;  %v3191_v16 = vadd.f32 %v3127_v22, %v2983_v17  ;;  %18412 = vst [vmem:[#allocation31_spill] sm:$0xff] %v14710_v6  ;;  %v3356_v17 = vsel %vm3289_vm6, %v14710_v6, -inf  ;;  %v14726_v57 = vpop.permute.xlu1 %3086 }
 0x555   :  { %3369 = vmax.xlane.f32.xlu1 %v3368_v7  ;;  %v3117_v7 = vmul.f32 %v14603_v38, %v14590_v45  ;;  %v3126_v38 = vmul.f32 %v14610_v41, %v14513_v61  ;;  %v3125_v22 = vmul.f32 %v14610_v41, %v14590_v45 }
 0x556   :  { %18410 = vst [vmem:[#allocation30_spill] sm:$0xff] %v14694_v42  ;;  %18411 = vst [vmem:[#allocation35_spill] sm:$0xff] %v14703_v26  ;;  %v3383_v58 = vsel %vm3289_vm6, %v14703_v26, -inf  ;;  %v14722_v47 = vadd.f32 %v3191_v16, %v14578_v2 }
 0x557   :  { %v3181_v20 = vadd.f32 %v3117_v7, %v2973_v63  ;;  %v3190_v34 = vadd.f32 %v3126_v38, %v2982_v62  ;;  %v3189_v63 = vadd.f32 %v3125_v22, %v2981_v14  ;;  %v3131_v14 = vmul.f32 %v14705_v44, %v14430_v33 }
 0x558   :  { %3366 = vmax.xlane.f32.xlu0 %v3365_v24  ;;  %v3362_v24 = vsel %vm3289_vm6, %v14694_v42, -inf  ;;  %18414 = vst [vmem:[#allocation28_spill] sm:$0xff] %v14722_v47  ;;  %v3380_v41 = vsel %vm3289_vm6, %v14722_v47, -inf }
 0x559   :  { %3339 = vmax.xlane.f32.xlu1 %v3338_v8  ;;  %v14717_v8 = vadd.f32 %v3182_v4, %v14556_v56  ;;  %v14749_v35 = vadd.f32 %v3189_v63, %v14615_v5 }
 0x55b   :  { %18413 = vst [vmem:[#allocation32_spill] sm:$0xff] %v14717_v8  ;;  %v3353_v4 = vsel %vm3289_vm6, %v14717_v8, -inf  ;;  %18417 = vst [vmem:[#allocation54_spill] sm:$0xff] %v14749_v35 }
 0x55c   :  { %3360 = vmax.xlane.f32.xlu0 %v3359_v59  ;;  %v14731_v59 = vadd.f32 %v3190_v34, %v14556_v56  ;;  %v3140_v34 = vmul.f32 %v14726_v57, %v14446_v54 }
 0x55d   :  { %3363 = vmax.xlane.f32.xlu1 %v3362_v24  ;;  %v14734_v24 = vadd.f32 %v3181_v20, %v14615_v5  ;;  %v3132_v20 = vmul.f32 %v14705_v44, %v14446_v54 }
 0x55e   :  { %18415 = vst [vmem:[#allocation33_spill] sm:$0xff] %v14731_v59  ;;  %v3377_v26 = vsel %vm3289_vm6, %v14731_v59, -inf }
 0x55f   :  { %18416 = vst [vmem:[#allocation29_spill] sm:$0xff] %v14734_v24  ;;  %v3350_v47 = vsel %vm3289_vm6, %v14734_v24, -inf }
 0x560   :  { %3384 = vmax.xlane.f32.xlu0 %v3383_v58 }
 0x561   :  { %3357 = vmax.xlane.f32.xlu1 %v3356_v17 }
 0x563   :  { %v11671_v7 = vpop.f32.mrb[128].mxu1  ;;  %v11655_v62 = vpop.f32.mrb[124].mxu0 }
 0x564   :  { %v2987_v16 = vmul.f32 0.5, %v11655_v62  ;;  %v2655_v38 = vpop.f32.mrb[125].mxu0  ;;  %v2744_v58 = vpop.f32.mrb[129].mxu1  ;;  %3354 = vmax.xlane.f32.xlu0 %v3353_v4  ;;  %v2995_v4 = vmul.f32 0.5, %v11671_v7  ;;  %v3130_v7 = vmul.f32 %v14705_v44, %v14451_v46 }
 0x565   :  { %v11672_v17 = vpop.f32.mrb[130].mxu1  ;;  %v11656_v22 = vpop.f32.mrb[126].mxu0  ;;  %3381 = vmax.xlane.f32.xlu1 %v3380_v41  ;;  %v2985_v24 = vmul.f32 0.5, %v2655_v38  ;;  %v3138_v38 = vmul.f32 %v14726_v57, %v14451_v46 }
 0x566   :  { %v2996_v32 = vmul.f32 0.5, %v11672_v17  ;;  %v2988_v10 = vmul.f32 0.5, %v11656_v22  ;;  %v2658_v62 = vpop.f32.mrb[127].mxu0  ;;  %v2747_v8 = vpop.f32.mrb[131].mxu1  ;;  %v3195_v41 = vadd.f32 %v3131_v14, %v2987_v16  ;;  %v3139_v22 = vmul.f32 %v14726_v57, %v14430_v33 }
 0x567   :  { %v2986_v11 = vmul.f32 0.5, %v2658_v62  ;;  %v2994_v13 = vmul.f32 0.5, %v2747_v8  ;;  %v3129_v8 = vmul.f32 %v14705_v44, %v14441_v28 }
 0x568   :  { %v3204_v17 = vadd.f32 %v3140_v34, %v2996_v32  ;;  %v3196_v6 = vadd.f32 %v3132_v20, %v2988_v10  ;;  %3378 = vmax.xlane.f32.xlu0 %v3377_v26  ;;  %v3203_v42 = vadd.f32 %v3139_v22, %v2995_v4  ;;  %v3374_v32 = vsel %vm3289_vm6, %v14749_v35, -inf }
 0x569   :  { %3351 = vmax.xlane.f32.xlu1 %v3350_v47  ;;  %v3194_v10 = vadd.f32 %v3130_v7, %v2986_v11  ;;  %v3193_v4 = vadd.f32 %v3129_v8, %v2985_v24  ;;  %v2993_v22 = vmul.f32 0.5, %v2744_v58  ;;  %v3202_v7 = vadd.f32 %v3138_v38, %v2994_v13 }
 0x56a   :  { %v14756_v59 = vadd.f32 %v3196_v6, %v14467_v50  ;;  %v14763_v14 = vadd.f32 %v3204_v17, %v14467_v50  ;;  %v14766_v6 = vadd.f32 %v3195_v41, %v14460_v60  ;;  %v14773_v17 = vadd.f32 %v3203_v42, %v14460_v60 }
 0x56b   :  { %v11675_v63 = vpop.f32.mrb[132].mxu1  ;;  %v11659_v43 = vpop.f32.mrb[128].mxu0  ;;  %v14780_v49 = vadd.f32 %v3194_v10, %v14477_v9  ;;  %v3136_v13 = vmul.f32 %v14705_v44, %v14487_v39  ;;  %v14789_v58 = vadd.f32 %v3202_v7, %v14477_v9 }
 0x56c   :  { %18418 = vst [vmem:[#allocation55_spill] sm:$0xff] %v14756_v59  ;;  %v2671_v26 = vpop.f32.mrb[129].mxu0  ;;  %v2760_v16 = vpop.f32.mrb[133].mxu1  ;;  %v3395_v47 = vsel %vm3289_vm6, %v14756_v59, -inf  ;;  %v3419_v59 = vsel %vm3289_vm6, %v14763_v14, -inf  ;;  %v3392_v35 = vsel %vm3289_vm6, %v14766_v6, -inf }
 0x56d   :  { %v11676_v34 = vpop.f32.mrb[134].mxu1  ;;  %3396 = vmax.xlane.f32.xlu0 %v3395_v47  ;;  %v11660_v11 = vpop.f32.mrb[130].mxu0  ;;  %3375 = vmax.xlane.f32.xlu1 %v3374_v32  ;;  %18419 = vst [vmem:[#allocation56_spill] sm:$0xff] %v14780_v49  ;;  %v3137_v32 = vmul.f32 %v14726_v57, %v14441_v28  ;;  %v3416_v24 = vsel %vm3289_vm6, %v14773_v17, -inf  ;;  %18420 = vst [vmem:[#allocation57_spill] sm:$0xff] %v14789_v58  ;;  %v14792_v47 = vadd.f32 %v3193_v4, %v14495_v25 }
 0x56e   :  { %v2674_v20 = vpop.f32.mrb[131].mxu0  ;;  %v2763_v62 = vpop.f32.mrb[135].mxu1  ;;  %v2992_v41 = vmul.f32 0.5, %v11660_v11  ;;  %v2991_v10 = vmul.f32 0.5, %v11659_v43  ;;  %v3000_v8 = vmul.f32 0.5, %v11676_v34  ;;  %v3144_v11 = vmul.f32 %v14726_v57, %v14487_v39 }
 0x56f   :  { %v3201_v42 = vadd.f32 %v3137_v32, %v2993_v22  ;;  %v2999_v22 = vmul.f32 0.5, %v11675_v63  ;;  %v3413_v7 = vsel %vm3289_vm6, %v14789_v58, -inf  ;;  %v3386_v43 = vsel %vm3289_vm6, %v14792_v47, -inf }
 0x570   :  { %v3200_v38 = vadd.f32 %v3136_v13, %v2992_v41  ;;  %v3208_v41 = vadd.f32 %v3144_v11, %v3000_v8  ;;  %v2990_v32 = vmul.f32 0.5, %v2674_v20  ;;  %v3134_v63 = vmul.f32 %v14705_v44, %v14513_v61 }
 0x571   :  { %3420 = vmax.xlane.f32.xlu0 %v3419_v59  ;;  %3393 = vmax.xlane.f32.xlu1 %v3392_v35  ;;  %v3389_v59 = vsel %vm3289_vm6, %v14780_v49, -inf  ;;  %v3135_v35 = vmul.f32 %v14705_v44, %v14549_v55  ;;  %v14805_v34 = vadd.f32 %v3201_v42, %v14495_v25  ;;  %v2989_v58 = vmul.f32 0.5, %v2671_v26 }
 0x572   :  { %v14808_v13 = vadd.f32 %v3200_v38, %v14525_v19  ;;  %v2998_v49 = vmul.f32 0.5, %v2763_v62  ;;  %v14819_v8 = vadd.f32 %v3208_v41, %v14525_v19  ;;  %v3133_v11 = vmul.f32 %v14705_v44, %v14590_v45 }
 0x573   :  { %18421 = vst [vmem:[#allocation58_spill] sm:$0xff] %v14805_v34  ;;  %v3199_v4 = vadd.f32 %v3135_v35, %v2991_v10  ;;  %v3410_v42 = vsel %vm3289_vm6, %v14805_v34, -inf  ;;  %v3198_v10 = vadd.f32 %v3134_v63, %v2990_v32  ;;  %v14824_v35 = vpop.permute.xlu1 %3090  ;;  %v3142_v26 = vmul.f32 %v14726_v57, %v14513_v61 }
 0x574   :  { %18422 = vst [vmem:[#allocation59_spill] sm:$0xff] %v14808_v13  ;;  %v3407_v20 = vsel %vm3289_vm6, %v14808_v13, -inf  ;;  %18423 = vst [vmem:[#allocation60_spill] sm:$0xff] %v14819_v8  ;;  %v3197_v62 = vadd.f32 %v3133_v11, %v2989_v58  ;;  %v3141_v44 = vmul.f32 %v14726_v57, %v14590_v45 }
 0x575   :  { %3390 = vmax.xlane.f32.xlu0 %v3389_v59  ;;  %3417 = vmax.xlane.f32.xlu1 %v3416_v24  ;;  %v3143_v24 = vmul.f32 %v14726_v57, %v14549_v55  ;;  %v14822_v38 = vadd.f32 %v3199_v4, %v14578_v2  ;;  %v3431_v4 = vsel %vm3289_vm6, %v14819_v8, -inf  ;;  %v14838_v32 = vadd.f32 %v3198_v10, %v14556_v56 }
 0x577   :  { %v3207_v59 = vadd.f32 %v3143_v24, %v2999_v22  ;;  %18424 = vst [vmem:[#allocation61_spill] sm:$0xff] %v14822_v38  ;;  %v2997_v22 = vmul.f32 0.5, %v2760_v16  ;;  %v3404_v41 = vsel %vm3289_vm6, %v14822_v38, -inf  ;;  %18426 = vst [vmem:[#allocation63_spill] sm:$0xff] %v14838_v32  ;;  %v14842_v58 = vpop.permute.xlu1 %3094  ;;  %v14845_v16 = vadd.f32 %v3197_v62, %v14615_v5 }
 0x579   :  { %3414 = vmax.xlane.f32.xlu0 %v3413_v7  ;;  %3387 = vmax.xlane.f32.xlu1 %v3386_v43  ;;  %v14831_v7 = vadd.f32 %v3207_v59, %v14578_v2  ;;  %v3206_v43 = vadd.f32 %v3142_v26, %v2998_v49  ;;  %18427 = vst [vmem:[#allocation64_spill] sm:$0xff] %v14845_v16  ;;  %v3401_v59 = vsel %vm3289_vm6, %v14838_v32, -inf }
 0x57a   :  { %v3205_v49 = vadd.f32 %v3141_v44, %v2997_v22  ;;  %v3147_v26 = vmul.f32 %v14824_v35, %v14430_v33  ;;  %v3156_v44 = vmul.f32 %v14842_v58, %v14446_v54 }
 0x57b   :  { %18425 = vst [vmem:[#allocation62_spill] sm:$0xff] %v14831_v7  ;;  %v14852_v10 = vadd.f32 %v3206_v43, %v14556_v56 }
 0x57c   :  { %v14865_v13 = vadd.f32 %v3205_v49, %v14615_v5 }
 0x57d   :  { %3408 = vmax.xlane.f32.xlu0 %v3407_v20  ;;  %3411 = vmax.xlane.f32.xlu1 %v3410_v42  ;;  %v3428_v42 = vsel %vm3289_vm6, %v14831_v7, -inf  ;;  %18428 = vst [vmem:[#allocation65_spill] sm:$0xff] %v14852_v10  ;;  %v3425_v7 = vsel %vm3289_vm6, %v14852_v10, -inf }
 0x57e   :  { %v3422_v49 = vsel %vm3289_vm6, %v14865_v13, -inf }
 0x581   :  { %3432 = vmax.xlane.f32.xlu0 %v3431_v4  ;;  %3405 = vmax.xlane.f32.xlu1 %v3404_v41  ;;  %v3148_v4 = vmul.f32 %v14824_v35, %v14446_v54  ;;  %v3155_v54 = vmul.f32 %v14842_v58, %v14430_v33 }
 0x584   :  { %v11703_v24 = vpop.f32.mrb[136].mxu1  ;;  %v11687_v63 = vpop.f32.mrb[132].mxu0 }
 0x585   :  { %v3003_v20 = vmul.f32 0.5, %v11687_v63  ;;  %v2833_v11 = vpop.f32.mrb[133].mxu0  ;;  %v2922_v57 = vpop.f32.mrb[137].mxu1  ;;  %3402 = vmax.xlane.f32.xlu0 %v3401_v59  ;;  %3429 = vmax.xlane.f32.xlu1 %v3428_v42  ;;  %v3398_v63 = vsel %vm3289_vm6, %v14845_v16, -inf  ;;  %v3011_v59 = vmul.f32 0.5, %v11703_v24 }
 0x586   :  { %v11704_v62 = vpop.f32.mrb[138].mxu1  ;;  %v11688_v22 = vpop.f32.mrb[134].mxu0 }
 0x587   :  { %v3012_v41 = vmul.f32 0.5, %v11704_v62  ;;  %v3004_v32 = vmul.f32 0.5, %v11688_v22  ;;  %v2836_v43 = vpop.f32.mrb[135].mxu0  ;;  %v2925_v8 = vpop.f32.mrb[139].mxu1  ;;  %v3211_v42 = vadd.f32 %v3147_v26, %v3003_v20  ;;  %v3146_v22 = vmul.f32 %v14824_v35, %v14451_v46 }
 0x588   :  { %v3002_v62 = vmul.f32 0.5, %v2836_v43  ;;  %v3219_v20 = vadd.f32 %v3155_v54, %v3011_v59  ;;  %v3001_v26 = vmul.f32 0.5, %v2833_v11  ;;  %v3145_v11 = vmul.f32 %v14824_v35, %v14441_v28 }
 0x589   :  { %v3220_v38 = vadd.f32 %v3156_v44, %v3012_v41  ;;  %v3212_v34 = vadd.f32 %v3148_v4, %v3004_v32  ;;  %3426 = vmax.xlane.f32.xlu0 %v3425_v7  ;;  %3399 = vmax.xlane.f32.xlu1 %v3398_v63  ;;  %v14877_v32 = vadd.f32 %v3211_v42, %v14460_v60  ;;  %v3010_v4 = vmul.f32 0.5, %v2925_v8 }
 0x58a   :  { %v3210_v7 = vadd.f32 %v3146_v22, %v3002_v62  ;;  %v3154_v59 = vmul.f32 %v14842_v58, %v14451_v46  ;;  %v3209_v62 = vadd.f32 %v3145_v11, %v3001_v26  ;;  %v3009_v54 = vmul.f32 0.5, %v2922_v57 }
 0x58b   :  { %v14872_v24 = vadd.f32 %v3212_v34, %v14467_v50  ;;  %v14882_v34 = vadd.f32 %v3220_v38, %v14467_v50  ;;  %v3440_v22 = vsel %vm3289_vm6, %v14877_v32, -inf  ;;  %v3153_v46 = vmul.f32 %v14842_v58, %v14441_v28 }
 0x58c   :  { %v11707_v10 = vpop.f32.mrb[140].mxu1  ;;  %v11691_v16 = vpop.f32.mrb[136].mxu0  ;;  %v3218_v50 = vadd.f32 %v3154_v59, %v3010_v4  ;;  %v3152_v57 = vmul.f32 %v14824_v35, %v14487_v39 }
 0x58d   :  { %18429 = vst [vmem:[#allocation66_spill] sm:$0xff] %v14872_v24  ;;  %v2849_v41 = vpop.f32.mrb[137].mxu0  ;;  %v2938_v33 = vpop.f32.mrb[141].mxu1  ;;  %v3443_v44 = vsel %vm3289_vm6, %v14872_v24, -inf  ;;  %3423 = vmax.xlane.f32.xlu1 %v3422_v49  ;;  %v14891_v49 = vadd.f32 %v3219_v20, %v14460_v60  ;;  %v3467_v24 = vsel %vm3289_vm6, %v14882_v34, -inf  ;;  %v3217_v26 = vadd.f32 %v3153_v46, %v3009_v54 }
 0x58e   :  { %v11708_v43 = vpop.f32.mrb[142].mxu1  ;;  %3444 = vmax.xlane.f32.xlu0 %v3443_v44  ;;  %v11692_v63 = vpop.f32.mrb[138].mxu0  ;;  %v14896_v44 = vadd.f32 %v3210_v7, %v14477_v9  ;;  %v3007_v11 = vmul.f32 0.5, %v11691_v16  ;;  %v14905_v20 = vadd.f32 %v3209_v62, %v14495_v25  ;;  %v14910_v28 = vadd.f32 %v3218_v50, %v14477_v9 }
 0x58f   :  { %v2852_v42 = vpop.f32.mrb[139].mxu0  ;;  %v2941_v8 = vpop.f32.mrb[143].mxu1  ;;  %v3008_v38 = vmul.f32 0.5, %v11692_v63  ;;  %v3464_v60 = vsel %vm3289_vm6, %v14891_v49, -inf  ;;  %v3016_v4 = vmul.f32 0.5, %v11708_v43  ;;  %v3160_v16 = vmul.f32 %v14842_v58, %v14487_v39 }
 0x590   :  { %v3437_v7 = vsel %vm3289_vm6, %v14896_v44, -inf  ;;  %v3015_v59 = vmul.f32 0.5, %v11707_v10  ;;  %v3434_v43 = vsel %vm3289_vm6, %v14905_v20, -inf  ;;  %v14919_v62 = vadd.f32 %v3217_v26, %v14495_v25 }
 0x591   :  { %3441 = vmax.xlane.f32.xlu1 %v3440_v22  ;;  %v3216_v63 = vadd.f32 %v3152_v57, %v3008_v38  ;;  %v3224_v22 = vadd.f32 %v3160_v16, %v3016_v4  ;;  %v3006_v38 = vmul.f32 0.5, %v2852_v42  ;;  %v3461_v9 = vsel %vm3289_vm6, %v14910_v28, -inf }
 0x592   :  { %3468 = vmax.xlane.f32.xlu0 %v3467_v24  ;;  %v3151_v24 = vmul.f32 %v14824_v35, %v14549_v55  ;;  %v3159_v39 = vmul.f32 %v14842_v58, %v14549_v55  ;;  %v3150_v10 = vmul.f32 %v14824_v35, %v14513_v61  ;;  %v3005_v57 = vmul.f32 0.5, %v2849_v41 }
 0x593   :  { %v14924_v50 = vadd.f32 %v3216_v63, %v14525_v19  ;;  %v3458_v25 = vsel %vm3289_vm6, %v14919_v62, -inf  ;;  %v14938_v55 = vadd.f32 %v3224_v22, %v14525_v19  ;;  %v3149_v4 = vmul.f32 %v14824_v35, %v14590_v45 }
 0x594   :  { %v3215_v54 = vadd.f32 %v3151_v24, %v3007_v11  ;;  %v3223_v46 = vadd.f32 %v3159_v39, %v3015_v59  ;;  %v3214_v26 = vadd.f32 %v3150_v10, %v3006_v38  ;;  %v3014_v11 = vmul.f32 0.5, %v2941_v8 }
 0x595   :  { %3465 = vmax.xlane.f32.xlu1 %v3464_v60  ;;  %v3455_v60 = vsel %vm3289_vm6, %v14924_v50, -inf  ;;  %v3158_v41 = vmul.f32 %v14842_v58, %v14513_v61  ;;  %v3213_v63 = vadd.f32 %v3149_v4, %v3005_v57  ;;  %v3479_v19 = vsel %vm3289_vm6, %v14938_v55, -inf }
 0x596   :  { %3438 = vmax.xlane.f32.xlu0 %v3437_v7  ;;  %v14933_v42 = vadd.f32 %v3215_v54, %v14578_v2  ;;  %v3013_v7 = vmul.f32 0.5, %v2938_v33  ;;  %v14947_v8 = vadd.f32 %v3223_v46, %v14578_v2  ;;  %v14952_v59 = vadd.f32 %v3214_v26, %v14556_v56 }
 0x597   :  { %v3222_v16 = vadd.f32 %v3158_v41, %v3014_v11  ;;  %v3157_v35 = vmul.f32 %v14842_v58, %v14590_v45  ;;  %v14959_v54 = vadd.f32 %v3213_v63, %v14615_v5 }
 0x598   :  { %v3452_v24 = vsel %vm3289_vm6, %v14933_v42, -inf  ;;  %v3476_v33 = vsel %vm3289_vm6, %v14947_v8, -inf  ;;  %v3449_v2 = vsel %vm3289_vm6, %v14952_v59, -inf }
 0x599   :  { %3435 = vmax.xlane.f32.xlu1 %v3434_v43  ;;  %v3221_v61 = vadd.f32 %v3157_v35, %v3013_v7  ;;  %v14964_v43 = vadd.f32 %v3222_v16, %v14556_v56  ;;  %v3446_v22 = vsel %vm3289_vm6, %v14959_v54, -inf }
 0x59a   :  { %3462 = vmax.xlane.f32.xlu0 %v3461_v9 }
 0x59b   :  { %v14969_v45 = vadd.f32 %v3221_v61, %v14615_v5  ;;  %v3473_v58 = vsel %vm3289_vm6, %v14964_v43, -inf }
 0x59d   :  { %3459 = vmax.xlane.f32.xlu1 %v3458_v25  ;;  %v3470_v38 = vsel %vm3289_vm6, %v14969_v45, -inf }
 0x59e   :  { %3456 = vmax.xlane.f32.xlu0 %v3455_v60 }
 0x5a1   :  { %3453 = vmax.xlane.f32.xlu1 %v3452_v24 }
 0x5a2   :  { %3480 = vmax.xlane.f32.xlu0 %v3479_v19 }
 0x5a5   :  { %3477 = vmax.xlane.f32.xlu1 %v3476_v33 }
 0x5a6   :  { %3450 = vmax.xlane.f32.xlu0 %v3449_v2 }
 0x5a9   :  { %3447 = vmax.xlane.f32.xlu1 %v3446_v22 }
 0x5aa   :  { %3474 = vmax.xlane.f32.xlu0 %v3473_v58 }
 0x5ad   :  { %3471 = vmax.xlane.f32.xlu1 %v3470_v38 }
 0x5b6   :  { %v3298_v9 = vpop.xlane.xlu1 %3297 }
 0x5b7   :  { %v3484_v56 = vsub.f32 %v14470_v18, %v3298_v9 }
 0x5b8   :  { %v3325_v39 = vpop.xlane.xlu0 %3324 }
 0x5b9   :  { %v3550_v10 = vmul.f32 1.442695, %v3484_v56  ;;  %v3493_v18 = vsub.f32 %v14482_v15, %v3325_v39 }
 0x5ba   :  { %v3322_v46 = vpop.xlane.xlu1 %3321 }
 0x5bb   :  { %12572 = vpow2.f32 %v3550_v10  ;;  %v3492_v57 = vsub.f32 %v14490_v53, %v3322_v46  ;;  %v3568_v35 = vmul.f32 1.442695, %v3493_v18 }
 0x5bc   :  { %v3295_v25 = vpop.xlane.xlu0 %3294 }
 0x5bd   :  { %v3566_v5 = vmul.f32 1.442695, %v3492_v57  ;;  %v3483_v61 = vsub.f32 %v14504_v29, %v3295_v25 }
 0x5be   :  { %v3292_v26 = vpop.xlane.xlu1 %3291 }
 0x5bf   :  { %12574 = vpow2.f32 %v3566_v5  ;;  %v3482_v11 = vsub.f32 %v14518_v3, %v3292_v26  ;;  %v3548_v58 = vmul.f32 1.442695, %v3483_v61 }
 0x5c0   :  { %v3313_v41 = vpop.xlane.xlu0 %3312 }
 0x5c1   :  { %v3546_v60 = vmul.f32 1.442695, %v3482_v11  ;;  %v3489_v10 = vsub.f32 %v14534_v23, %v3313_v41 }
 0x5c2   :  { %v3316_v4 = vpop.xlane.xlu1 %3315 }
 0x5c3   :  { %12576 = vpow2.f32 %v3546_v60  ;;  %v3490_v63 = vsub.f32 %v14537_v31, %v3316_v4  ;;  %v3560_v11 = vmul.f32 1.442695, %v3489_v10 }
 0x5c4   :  { %v3337_v33 = vpop.xlane.xlu0 %3336 }
 0x5c5   :  { %v14979_v7 = vpop.eup %12572  ;;  %v3562_v24 = vmul.f32 1.442695, %v3490_v63 }
 0x5c6   :  { %v3301_v16 = vpop.xlane.xlu1 %3300  ;;  %v3680_v53 = vsel %vm3289_vm6, %v14979_v7, 0.0 }
 0x5c7   :  { %12578 = vpow2.f32 %v3562_v24  ;;  %v3485_v19 = vsub.f32 %v14561_v12, %v3301_v16  ;;  %3681 = vadd.xlane.f32.xlu1 %v3680_v53 }
 0x5c8   :  { %v3307_v56 = vpop.xlane.xlu0 %3306 }
 0x5c9   :  { %v14985_v3 = vpop.eup %12574  ;;  %v3552_v31 = vmul.f32 1.442695, %v3485_v19  ;;  %v3487_v24 = vsub.f32 %v14568_v0, %v3307_v56 }
 0x5ca   :  { %v3319_v2 = vpop.xlane.xlu1 %3318  ;;  %v3704_v15 = vsel %vm3289_vm6, %v14985_v3, 0.0 }
 0x5cb   :  { %12580 = vpow2.f32 %v3552_v31  ;;  %3705 = vadd.xlane.f32.xlu1 %v3704_v15  ;;  %v3491_v12 = vsub.f32 %v14573_v52, %v3319_v2 }
 0x5cc   :  { %12582 = vpow2.f32 %v3568_v35  ;;  %v3331_v60 = vpop.xlane.xlu0 %3330 }
 0x5cd   :  { %v14990_v22 = vpop.eup %12576  ;;  %12584 = vpow2.f32 %v3548_v58  ;;  %v3564_v46 = vmul.f32 1.442695, %v3491_v12  ;;  %v3495_v31 = vsub.f32 %v14585_v36, %v3331_v60 }
 0x5ce   :  { %v3310_v38 = vpop.xlane.xlu1 %3309  ;;  %v3674_v9 = vsel %vm3289_vm6, %v14990_v22, 0.0 }
 0x5cf   :  { %v3488_v29 = vsub.f32 %v14596_v51, %v3310_v38  ;;  %3675 = vadd.xlane.f32.xlu1 %v3674_v9  ;;  %v3497_v51 = vsub.f32 %v14544_v37, %v3337_v33  ;;  %v3572_v36 = vmul.f32 1.442695, %v3495_v31 }
 0x5d1   :  { %v14996_v39 = vpop.eup %12578  ;;  %v3558_v57 = vmul.f32 1.442695, %v3488_v29 }
 0x5d2   :  { %v3334_v5 = vpop.xlane.xlu1 %3333  ;;  %v3698_v25 = vsel %vm3289_vm6, %v14996_v39, 0.0 }
 0x5d3   :  { %12586 = vpow2.f32 %v3558_v57  ;;  %v3496_v52 = vsub.f32 %v14608_v40, %v3334_v5  ;;  %3699 = vadd.xlane.f32.xlu1 %v3698_v25  ;;  %v3576_v40 = vmul.f32 1.442695, %v3497_v51 }
 0x5d4   :  { %12588 = vpow2.f32 %v3564_v46 }
 0x5d5   :  { %v15002_v26 = vpop.eup %12580  ;;  %v3574_v4 = vmul.f32 1.442695, %v3496_v52 }
 0x5d6   :  { %v3304_v63 = vpop.xlane.xlu1 %3303  ;;  %v3683_v23 = vsel %vm3289_vm6, %v15002_v26, 0.0  ;;  %v15007_v41 = vpop.eup %12582 }
 0x5d7   :  { %12590 = vpow2.f32 %v3574_v4  ;;  %v3486_v18 = vsub.f32 %v14626_v21, %v3304_v63  ;;  %3684 = vadd.xlane.f32.xlu0 %v3683_v23  ;;  %v3707_v19 = vsel %vm3289_vm6, %v15007_v41, 0.0  ;;  %v15013_v35 = vpop.eup %12584  ;;  %v3556_v21 = vmul.f32 1.442695, %v3487_v24 }
 0x5d8   :  { %12592 = vpow2.f32 %v3560_v11  ;;  %v3677_v12 = vsel %vm3289_vm6, %v15013_v35, 0.0  ;;  %v18430_v11 = vld [vmem:[#allocation24_spill] sm:$0xff] }
 0x5d9   :  { %v3554_v16 = vmul.f32 1.442695, %v3486_v18  ;;  %v3349_v53 = vpop.xlane.xlu0 %3348 }
 0x5da   :  { %v3328_v37 = vpop.xlane.xlu1 %3327  ;;  %v3501_v56 = vsub.f32 %v14638_v30, %v3349_v53 }
 0x5db   :  { %12594 = vpow2.f32 %v3554_v16  ;;  %v3494_v61 = vsub.f32 %v14635_v1, %v3328_v37  ;;  %3708 = vadd.xlane.f32.xlu0 %v3707_v19  ;;  %v18432_v37 = vld [vmem:[#allocation20_spill] sm:$0xff] }
 0x5dc   :  { %12596 = vpow2.f32 %v3576_v40  ;;  %v3584_v30 = vmul.f32 1.442695, %v3501_v56  ;;  %v18434_v56 = vld [vmem:[#allocation25_spill] sm:$0xff] }
 0x5dd   :  { %v15016_v33 = vpop.eup %12586  ;;  %v3570_v2 = vmul.f32 1.442695, %v3494_v61  ;;  %v3373_v0 = vpop.xlane.xlu0 %3372 }
 0x5de   :  { %v3346_v15 = vpop.xlane.xlu1 %3345  ;;  %v3692_v58 = vsel %vm3289_vm6, %v15016_v33, 0.0  ;;  %v15023_v38 = vpop.eup %12588  ;;  %v3509_v51 = vsub.f32 %v18430_v11, %v3373_v0  ;;  %v18435_v11 = vld [vmem:[#allocation31_spill] sm:$0xff] }
 0x5df   :  { %12598 = vpow2.f32 %v3570_v2  ;;  %v3500_v1 = vsub.f32 %v14652_v48, %v3346_v15  ;;  %3693 = vadd.xlane.f32.xlu1 %v3692_v58  ;;  %3678 = vadd.xlane.f32.xlu0 %v3677_v12  ;;  %v3701_v5 = vsel %vm3289_vm6, %v15023_v38, 0.0  ;;  %v18433_v58 = vld [vmem:[#allocation30_spill] sm:$0xff] }
 0x5e0   :  { %12600 = vpow2.f32 %v3556_v21  ;;  %v3600_v53 = vmul.f32 1.442695, %v3509_v51 }
 0x5e1   :  { %v15026_v9 = vpop.eup %12590  ;;  %v3582_v29 = vmul.f32 1.442695, %v3500_v1  ;;  %v3343_v10 = vpop.xlane.xlu0 %3342 }
 0x5e2   :  { %v3370_v46 = vpop.xlane.xlu1 %3369  ;;  %v3716_v57 = vsel %vm3289_vm6, %v15026_v9, 0.0  ;;  %v15033_v25 = vpop.eup %12592  ;;  %v3499_v19 = vsub.f32 %v18432_v37, %v3343_v10 }
 0x5e3   :  { %12602 = vpow2.f32 %v3582_v29  ;;  %v3508_v48 = vsub.f32 %v14666_v27, %v3370_v46  ;;  %3717 = vadd.xlane.f32.xlu1 %v3716_v57  ;;  %3702 = vadd.xlane.f32.xlu0 %v3701_v5  ;;  %v3695_v18 = vsel %vm3289_vm6, %v15033_v25, 0.0  ;;  %v18431_v27 = vld [vmem:[#allocation21_spill] sm:$0xff] }
 0x5e4   :  { %12604 = vpow2.f32 %v3572_v36  ;;  %v3580_v36 = vmul.f32 1.442695, %v3499_v19 }
 0x5e5   :  { %v15036_v52 = vpop.eup %12594  ;;  %v3598_v60 = vmul.f32 1.442695, %v3508_v48  ;;  %v3367_v4 = vpop.xlane.xlu0 %3366 }
 0x5e6   :  { %v3340_v63 = vpop.xlane.xlu1 %3339  ;;  %v3686_v23 = vsel %vm3289_vm6, %v15036_v52, 0.0  ;;  %v15043_v40 = vpop.eup %12596  ;;  %v3507_v29 = vsub.f32 %v18434_v56, %v3367_v4 }
 0x5e7   :  { %12606 = vpow2.f32 %v3598_v60  ;;  %v3498_v24 = vsub.f32 %v18431_v27, %v3340_v63  ;;  %3687 = vadd.xlane.f32.xlu1 %v3686_v23  ;;  %3696 = vadd.xlane.f32.xlu0 %v3695_v18  ;;  %v3719_v0 = vsel %vm3289_vm6, %v15043_v40, 0.0  ;;  %v18436_v63 = vld [vmem:[#allocation34_spill] sm:$0xff] }
 0x5e8   :  { %12608 = vpow2.f32 %v3584_v30  ;;  %v3596_v4 = vmul.f32 1.442695, %v3507_v29 }
 0x5e9   :  { %v15046_v16 = vpop.eup %12598  ;;  %v3578_v61 = vmul.f32 1.442695, %v3498_v24  ;;  %v3361_v21 = vpop.xlane.xlu0 %3360 }
 0x5ea   :  { %v3364_v31 = vpop.xlane.xlu1 %3363  ;;  %v3710_v2 = vsel %vm3289_vm6, %v15046_v16, 0.0  ;;  %v15053_v15 = vpop.eup %12600  ;;  %v3505_v23 = vsub.f32 %v18436_v63, %v3361_v21 }
 0x5eb   :  { %12610 = vpow2.f32 %v3578_v61  ;;  %v3506_v12 = vsub.f32 %v18433_v58, %v3364_v31  ;;  %3711 = vadd.xlane.f32.xlu1 %v3710_v2  ;;  %3720 = vadd.xlane.f32.xlu0 %v3719_v0  ;;  %v3689_v48 = vsel %vm3289_vm6, %v15053_v15, 0.0  ;;  %v18437_v61 = vld [vmem:[#allocation28_spill] sm:$0xff]  ;;  %v18438_v0 = vld [vmem:[#allocation35_spill] sm:$0xff] }
 0x5ec   :  { %12612 = vpow2.f32 %v3600_v53  ;;  %v3592_v21 = vmul.f32 1.442695, %v3505_v23 }
 0x5ed   :  { %v15056_v1 = vpop.eup %12602  ;;  %v3594_v10 = vmul.f32 1.442695, %v3506_v12  ;;  %v3385_v46 = vpop.xlane.xlu0 %3384 }
 0x5ee   :  { %v3358_v57 = vpop.xlane.xlu1 %3357  ;;  %v3728_v5 = vsel %vm3289_vm6, %v15056_v1, 0.0  ;;  %v15063_v30 = vpop.eup %12604  ;;  %v3513_v58 = vsub.f32 %v18438_v0, %v3385_v46  ;;  %v18443_v0 = vld [vmem:[#allocation33_spill] sm:$0xff] }
 0x5ef   :  { %12614 = vpow2.f32 %v3594_v10  ;;  %v3504_v51 = vsub.f32 %v18435_v11, %v3358_v57  ;;  %3729 = vadd.xlane.f32.xlu1 %v3728_v5  ;;  %3690 = vadd.xlane.f32.xlu0 %v3689_v48  ;;  %v3713_v37 = vsel %vm3289_vm6, %v15063_v30, 0.0  ;;  %v18439_v5 = vld [vmem:[#allocation29_spill] sm:$0xff] }
 0x5f0   :  { %12616 = vpow2.f32 %v3580_v36  ;;  %v3608_v46 = vmul.f32 1.442695, %v3513_v58 }
 0x5f1   :  { %v15066_v60 = vpop.eup %12606  ;;  %v3590_v18 = vmul.f32 1.442695, %v3504_v51  ;;  %v3355_v27 = vpop.xlane.xlu0 %3354  ;;  %v18440_v51 = vld [vmem:[#allocation32_spill] sm:$0xff] }
 0x5f2   :  { %v3382_v24 = vpop.xlane.xlu1 %3381  ;;  %v3752_v53 = vsel %vm3289_vm6, %v15066_v60, 0.0  ;;  %v15073_v19 = vpop.eup %12608 }
 0x5f3   :  { %12618 = vpow2.f32 %v3590_v18  ;;  %v3512_v31 = vsub.f32 %v18437_v61, %v3382_v24  ;;  %3753 = vadd.xlane.f32.xlu1 %v3752_v53  ;;  %3714 = vadd.xlane.f32.xlu0 %v3713_v37  ;;  %v3731_v10 = vsel %vm3289_vm6, %v15073_v19, 0.0  ;;  %v18441_v61 = vld [vmem:[#allocation54_spill] sm:$0xff] }
 0x5f4   :  { %12620 = vpow2.f32 %v3596_v4  ;;  %v3503_v4 = vsub.f32 %v18440_v51, %v3355_v27 }
 0x5f5   :  { %v15076_v2 = vpop.eup %12610  ;;  %v3606_v12 = vmul.f32 1.442695, %v3512_v31  ;;  %v3379_v36 = vpop.xlane.xlu0 %3378 }
 0x5f6   :  { %v3352_v56 = vpop.xlane.xlu1 %3351  ;;  %v3722_v29 = vsel %vm3289_vm6, %v15076_v2, 0.0  ;;  %v15083_v57 = vpop.eup %12612  ;;  %v3588_v27 = vmul.f32 1.442695, %v3503_v4  ;;  %v3511_v58 = vsub.f32 %v18443_v0, %v3379_v36  ;;  %v18445_v4 = vld [vmem:[#allocation55_spill] sm:$0xff] }
 0x5f7   :  { %12622 = vpow2.f32 %v3606_v12  ;;  %v3502_v48 = vsub.f32 %v18439_v5, %v3352_v56  ;;  %3723 = vadd.xlane.f32.xlu1 %v3722_v29  ;;  %3732 = vadd.xlane.f32.xlu0 %v3731_v10  ;;  %v3755_v53 = vsel %vm3289_vm6, %v15083_v57, 0.0 }
 0x5f8   :  { %12624 = vpow2.f32 %v3592_v21  ;;  %v3604_v36 = vmul.f32 1.442695, %v3511_v58 }
 0x5f9   :  { %v15086_v11 = vpop.eup %12614  ;;  %v3586_v63 = vmul.f32 1.442695, %v3502_v48 }
 0x5fa   :  { %v3397_v23 = vpop.xlane.xlu0 %3396  ;;  %v3376_v18 = vpop.xlane.xlu1 %3375  ;;  %v3746_v24 = vsel %vm3289_vm6, %v15086_v11, 0.0 }
 0x5fb   :  { %v15093_v37 = vpop.eup %12616  ;;  %12626 = vpow2.f32 %v3586_v63  ;;  %v3510_v31 = vsub.f32 %v18441_v61, %v3376_v18  ;;  %3747 = vadd.xlane.f32.xlu1 %v3746_v24  ;;  %3756 = vadd.xlane.f32.xlu0 %v3755_v53  ;;  %v3517_v63 = vsub.f32 %v18445_v4, %v3397_v23 }
 0x5fc   :  { %12628 = vpow2.f32 %v3608_v46  ;;  %v3725_v5 = vsel %vm3289_vm6, %v15093_v37, 0.0 }
 0x5fd   :  { %v15096_v21 = vpop.eup %12618  ;;  %v3602_v12 = vmul.f32 1.442695, %v3510_v31  ;;  %v3616_v23 = vmul.f32 1.442695, %v3517_v63  ;;  %v18447_v63 = vld [vmem:[#allocation56_spill] sm:$0xff] }
 0x5fe   :  { %18442 = vst [vmem:[#allocation24_spill] sm:$0xff] %v15096_v21  ;;  %v3421_v56 = vpop.xlane.xlu0 %3420  ;;  %v3394_v29 = vpop.xlane.xlu1 %3393  ;;  %v3740_v10 = vsel %vm3289_vm6, %v15096_v21, 0.0 }
 0x5ff   :  { %v15103_v48 = vpop.eup %12620  ;;  %v3516_v51 = vsub.f32 %v14766_v6, %v3394_v29  ;;  %3741 = vadd.xlane.f32.xlu1 %v3740_v10  ;;  %3726 = vadd.xlane.f32.xlu0 %v3725_v5  ;;  %12630 = vpow2.f32 %v3602_v12  ;;  %v3525_v58 = vsub.f32 %v14763_v14, %v3421_v56 }
 0x600   :  { %12632 = vpow2.f32 %v3588_v27  ;;  %v3749_v31 = vsel %vm3289_vm6, %v15103_v48, 0.0 }
 0x601   :  { %v15106_v46 = vpop.eup %12622  ;;  %v3614_v18 = vmul.f32 1.442695, %v3516_v51 }
 0x602   :  { %18444 = vst [vmem:[#allocation21_spill] sm:$0xff] %v15106_v46  ;;  %v3391_v24 = vpop.xlane.xlu0 %3390  ;;  %v3418_v53 = vpop.xlane.xlu1 %3417  ;;  %v3764_v61 = vsel %vm3289_vm6, %v15106_v46, 0.0  ;;  %v18449_v46 = vld [vmem:[#allocation58_spill] sm:$0xff] }
 0x603   :  { %v15113_v0 = vpop.eup %12624  ;;  %v3524_v6 = vsub.f32 %v14773_v17, %v3418_v53  ;;  %3765 = vadd.xlane.f32.xlu1 %v3764_v61  ;;  %3750 = vadd.xlane.f32.xlu0 %v3749_v31  ;;  %12634 = vpow2.f32 %v3614_v18  ;;  %v3515_v14 = vsub.f32 %v18447_v63, %v3391_v24 }
 0x604   :  { %12636 = vpow2.f32 %v3604_v36  ;;  %v3743_v51 = vsel %vm3289_vm6, %v15113_v0, 0.0  ;;  %v3632_v36 = vmul.f32 1.442695, %v3525_v58 }
 0x605   :  { %v15116_v27 = vpop.eup %12626  ;;  %v3630_v12 = vmul.f32 1.442695, %v3524_v6  ;;  %v3612_v24 = vmul.f32 1.442695, %v3515_v14 }
 0x606   :  { %v3415_v29 = vpop.xlane.xlu0 %3414  ;;  %v3388_v10 = vpop.xlane.xlu1 %3387  ;;  %v3734_v5 = vsel %vm3289_vm6, %v15116_v27, 0.0 }
 0x607   :  { %v15123_v4 = vpop.eup %12628  ;;  %v3514_v17 = vsub.f32 %v14792_v47, %v3388_v10  ;;  %3735 = vadd.xlane.f32.xlu1 %v3734_v5  ;;  %3744 = vadd.xlane.f32.xlu0 %v3743_v51  ;;  %12638 = vpow2.f32 %v3630_v12 }
 0x608   :  { %18446 = vst [vmem:[#allocation20_spill] sm:$0xff] %v15123_v4  ;;  %12640 = vpow2.f32 %v3616_v23  ;;  %v3767_v31 = vsel %vm3289_vm6, %v15123_v4, 0.0  ;;  %v18450_v23 = vld [vmem:[#allocation57_spill] sm:$0xff] }
 0x609   :  { %v3610_v56 = vmul.f32 1.442695, %v3514_v17  ;;  %v15127_v18 = vpop.eup %12630  ;;  %v3523_v58 = vsub.f32 %v18450_v23, %v3415_v29 }
 0x60a   :  { %18448 = vst [vmem:[#allocation30_spill] sm:$0xff] %v15127_v18  ;;  %v3409_v53 = vpop.xlane.xlu0 %3408  ;;  %v3412_v61 = vpop.xlane.xlu1 %3411  ;;  %v3758_v47 = vsel %vm3289_vm6, %v15127_v18, 0.0 }
 0x60b   :  { %v15131_v6 = vpop.eup %12632  ;;  %v3522_v21 = vsub.f32 %v18449_v46, %v3412_v61  ;;  %3768 = vadd.xlane.f32.xlu0 %v3767_v31  ;;  %12642 = vpow2.f32 %v3610_v56  ;;  %3759 = vadd.xlane.f32.xlu1 %v3758_v47  ;;  %v18453_v46 = vld [vmem:[#allocation61_spill] sm:$0xff]  ;;  %v3628_v29 = vmul.f32 1.442695, %v3523_v58 }
 0x60c   :  { %12644 = vpow2.f32 %v3632_v36  ;;  %v3737_v17 = vsel %vm3289_vm6, %v15131_v6, 0.0 }
 0x60d   :  { %v3626_v12 = vmul.f32 1.442695, %v3522_v21  ;;  %v15137_v10 = vpop.eup %12634  ;;  %v18454_v21 = vld [vmem:[#allocation59_spill] sm:$0xff] }
 0x60e   :  { %18451 = vst [vmem:[#allocation25_spill] sm:$0xff] %v15137_v10  ;;  %v3433_v5 = vpop.xlane.xlu0 %3432  ;;  %v3406_v51 = vpop.xlane.xlu1 %3405  ;;  %v3776_v56 = vsel %vm3289_vm6, %v15137_v10, 0.0  ;;  %v3521_v36 = vsub.f32 %v18454_v21, %v3409_v53 }
 0x60f   :  { %v15141_v63 = vpop.eup %12636  ;;  %v3520_v61 = vsub.f32 %v18453_v46, %v3406_v51  ;;  %3738 = vadd.xlane.f32.xlu0 %v3737_v17  ;;  %12646 = vpow2.f32 %v3626_v12  ;;  %3777 = vadd.xlane.f32.xlu1 %v3776_v56  ;;  %v18456_v51 = vld [vmem:[#allocation62_spill] sm:$0xff] }
 0x610   :  { %18452 = vst [vmem:[#allocation31_spill] sm:$0xff] %v15141_v63  ;;  %12648 = vpow2.f32 %v3612_v24  ;;  %v3761_v18 = vsel %vm3289_vm6, %v15141_v63, 0.0  ;;  %v3624_v53 = vmul.f32 1.442695, %v3521_v36  ;;  %v18457_v24 = vld [vmem:[#allocation60_spill] sm:$0xff] }
 0x611   :  { %v3622_v14 = vmul.f32 1.442695, %v3520_v61  ;;  %v15147_v31 = vpop.eup %12638  ;;  %v3529_v58 = vsub.f32 %v18457_v24, %v3433_v5 }
 0x612   :  { %18455 = vst [vmem:[#allocation34_spill] sm:$0xff] %v15147_v31  ;;  %v3403_v47 = vpop.xlane.xlu0 %3402  ;;  %v3430_v23 = vpop.xlane.xlu1 %3429  ;;  %v3800_v12 = vsel %vm3289_vm6, %v15147_v31, 0.0 }
 0x613   :  { %v15151_v4 = vpop.eup %12640  ;;  %v3528_v46 = vsub.f32 %v18456_v51, %v3430_v23  ;;  %3762 = vadd.xlane.f32.xlu0 %v3761_v18  ;;  %12650 = vpow2.f32 %v3622_v14  ;;  %3801 = vadd.xlane.f32.xlu1 %v3800_v12  ;;  %v18459_v23 = vld [vmem:[#allocation64_spill] sm:$0xff]  ;;  %v3640_v5 = vmul.f32 1.442695, %v3529_v58 }
 0x614   :  { %12652 = vpow2.f32 %v3628_v29  ;;  %v3779_v10 = vsel %vm3289_vm6, %v15151_v4, 0.0  ;;  %v18460_v29 = vld [vmem:[#allocation63_spill] sm:$0xff] }
 0x615   :  { %v3638_v17 = vmul.f32 1.442695, %v3528_v46  ;;  %v15157_v61 = vpop.eup %12642  ;;  %v3519_v36 = vsub.f32 %v18460_v29, %v3403_v47 }
 0x616   :  { %v3427_v56 = vpop.xlane.xlu0 %3426  ;;  %v3400_v21 = vpop.xlane.xlu1 %3399  ;;  %v3770_v18 = vsel %vm3289_vm6, %v15157_v61, 0.0 }
 0x617   :  { %v15161_v63 = vpop.eup %12644  ;;  %v3518_v51 = vsub.f32 %v18459_v23, %v3400_v21  ;;  %3780 = vadd.xlane.f32.xlu0 %v3779_v10  ;;  %12654 = vpow2.f32 %v3638_v17  ;;  %3771 = vadd.xlane.f32.xlu1 %v3770_v18  ;;  %v3620_v47 = vmul.f32 1.442695, %v3519_v36 }
 0x618   :  { %18458 = vst [vmem:[#allocation28_spill] sm:$0xff] %v15161_v63  ;;  %12656 = vpow2.f32 %v3624_v53  ;;  %v3803_v24 = vsel %vm3289_vm6, %v15161_v63, 0.0  ;;  %v18461_v53 = vld [vmem:[#allocation65_spill] sm:$0xff] }
 0x619   :  { %v3618_v14 = vmul.f32 1.442695, %v3518_v51  ;;  %v15167_v46 = vpop.eup %12646  ;;  %v3527_v58 = vsub.f32 %v18461_v53, %v3427_v56 }
 0x61a   :  { %v3424_v12 = vpop.xlane.xlu1 %3423  ;;  %v15171_v31 = vpop.eup %12648  ;;  %v3794_v10 = vsel %vm3289_vm6, %v15167_v46, 0.0 }
 0x61b   :  { %v3445_v21 = vpop.xlane.xlu0 %3444  ;;  %v3526_v23 = vsub.f32 %v14865_v13, %v3424_v12  ;;  %3804 = vadd.xlane.f32.xlu0 %v3803_v24  ;;  %12658 = vpow2.f32 %v3618_v14  ;;  %3795 = vadd.xlane.f32.xlu1 %v3794_v10  ;;  %v3773_v29 = vsel %vm3289_vm6, %v15171_v31, 0.0  ;;  %v3636_v56 = vmul.f32 1.442695, %v3527_v58 }
 0x61c   :  { %12660 = vpow2.f32 %v3640_v5  ;;  %v18462_v5 = vld [vmem:[#allocation66_spill] sm:$0xff] }
 0x61d   :  { %v3634_v17 = vmul.f32 1.442695, %v3526_v23  ;;  %v15177_v51 = vpop.eup %12650  ;;  %v3533_v36 = vsub.f32 %v18462_v5, %v3445_v21 }
 0x61e   :  { %v3442_v18 = vpop.xlane.xlu1 %3441  ;;  %v15181_v63 = vpop.eup %12652  ;;  %v3788_v14 = vsel %vm3289_vm6, %v15177_v51, 0.0 }
 0x61f   :  { %12662 = vpow2.f32 %v3634_v17  ;;  %v3469_v13 = vpop.xlane.xlu0 %3468  ;;  %v3532_v12 = vsub.f32 %v14877_v32, %v3442_v18  ;;  %3774 = vadd.xlane.f32.xlu0 %v3773_v29  ;;  %3789 = vadd.xlane.f32.xlu1 %v3788_v14  ;;  %v3797_v53 = vsel %vm3289_vm6, %v15181_v63, 0.0  ;;  %v3648_v21 = vmul.f32 1.442695, %v3533_v36 }
 0x620   :  { %12664 = vpow2.f32 %v3620_v47  ;;  %v3541_v47 = vsub.f32 %v14882_v34, %v3469_v13 }
 0x621   :  { %v3646_v24 = vmul.f32 1.442695, %v3532_v12  ;;  %v15187_v23 = vpop.eup %12654 }
 0x622   :  { %18463 = vst [vmem:[#allocation35_spill] sm:$0xff] %v15187_v23  ;;  %v3466_v10 = vpop.xlane.xlu1 %3465  ;;  %v15191_v17 = vpop.eup %12656  ;;  %v3812_v29 = vsel %vm3289_vm6, %v15187_v23, 0.0  ;;  %v3664_v34 = vmul.f32 1.442695, %v3541_v47 }
 0x623   :  { %12666 = vpow2.f32 %v3646_v24  ;;  %v3439_v32 = vpop.xlane.xlu0 %3438  ;;  %v3540_v18 = vsub.f32 %v14891_v49, %v3466_v10  ;;  %3798 = vadd.xlane.f32.xlu0 %v3797_v53  ;;  %3813 = vadd.xlane.f32.xlu1 %v3812_v29  ;;  %v3791_v5 = vsel %vm3289_vm6, %v15191_v17, 0.0 }
 0x624   :  { %12668 = vpow2.f32 %v3636_v56  ;;  %v3531_v13 = vsub.f32 %v14896_v44, %v3439_v32 }
 0x625   :  { %v3662_v58 = vmul.f32 1.442695, %v3540_v18  ;;  %v15197_v12 = vpop.eup %12658 }
 0x626   :  { %v3436_v14 = vpop.xlane.xlu1 %3435  ;;  %v15201_v24 = vpop.eup %12660  ;;  %v3782_v53 = vsel %vm3289_vm6, %v15197_v12, 0.0  ;;  %v3644_v44 = vmul.f32 1.442695, %v3531_v13 }
 0x627   :  { %12670 = vpow2.f32 %v3662_v58  ;;  %v3463_v49 = vpop.xlane.xlu0 %3462  ;;  %v3530_v10 = vsub.f32 %v14905_v20, %v3436_v14  ;;  %3792 = vadd.xlane.f32.xlu0 %v3791_v5  ;;  %3783 = vadd.xlane.f32.xlu1 %v3782_v53  ;;  %v3815_v58 = vsel %vm3289_vm6, %v15201_v24, 0.0 }
 0x628   :  { %12672 = vpow2.f32 %v3648_v21  ;;  %v3539_v32 = vsub.f32 %v14910_v28, %v3463_v49 }
 0x629   :  { %v15206_v56 = vpop.eup %12662  ;;  %v3642_v36 = vmul.f32 1.442695, %v3530_v10 }
 0x62a   :  { %v3460_v18 = vpop.xlane.xlu1 %3459  ;;  %v3806_v29 = vsel %vm3289_vm6, %v15206_v56, 0.0  ;;  %v15213_v20 = vpop.eup %12664  ;;  %v3660_v28 = vmul.f32 1.442695, %v3539_v32 }
 0x62b   :  { %12674 = vpow2.f32 %v3642_v36  ;;  %v3457_v14 = vpop.xlane.xlu0 %3456  ;;  %v3538_v5 = vsub.f32 %v14919_v62, %v3460_v18  ;;  %3816 = vadd.xlane.f32.xlu0 %v3815_v58  ;;  %3807 = vadd.xlane.f32.xlu1 %v3806_v29  ;;  %v3785_v23 = vsel %vm3289_vm6, %v15213_v20, 0.0 }
 0x62c   :  { %12676 = vpow2.f32 %v3664_v34  ;;  %v3537_v49 = vsub.f32 %v14924_v50, %v3457_v14 }
 0x62d   :  { %v15216_v21 = vpop.eup %12666  ;;  %v3658_v47 = vmul.f32 1.442695, %v3538_v5 }
 0x62e   :  { %18464 = vst [vmem:[#allocation29_spill] sm:$0xff] %v15216_v21  ;;  %v3454_v10 = vpop.xlane.xlu1 %3453  ;;  %v3824_v53 = vsel %vm3289_vm6, %v15216_v21, 0.0  ;;  %v15223_v36 = vpop.eup %12668 }
 0x62f   :  { %12678 = vpow2.f32 %v3658_v47  ;;  %v3481_v62 = vpop.xlane.xlu0 %3480  ;;  %v3536_v18 = vsub.f32 %v14933_v42, %v3454_v10  ;;  %3786 = vadd.xlane.f32.xlu0 %v3785_v23  ;;  %3825 = vadd.xlane.f32.xlu1 %v3824_v53  ;;  %v3809_v5 = vsel %vm3289_vm6, %v15223_v36, 0.0 }
 0x630   :  { %12680 = vpow2.f32 %v3644_v44  ;;  %v3656_v44 = vmul.f32 1.442695, %v3537_v49 }
 0x631   :  { %v15226_v34 = vpop.eup %12670  ;;  %v3654_v13 = vmul.f32 1.442695, %v3536_v18 }
 0x632   :  { %18465 = vst [vmem:[#allocation32_spill] sm:$0xff] %v15226_v34  ;;  %v3478_v29 = vpop.xlane.xlu1 %3477  ;;  %v3848_v58 = vsel %vm3289_vm6, %v15226_v34, 0.0  ;;  %v15233_v47 = vpop.eup %12672 }
 0x633   :  { %12682 = vpow2.f32 %v3654_v13  ;;  %v3451_v42 = vpop.xlane.xlu0 %3450  ;;  %3810 = vadd.xlane.f32.xlu0 %v3809_v5  ;;  %3849 = vadd.xlane.f32.xlu1 %v3848_v58  ;;  %v3827_v10 = vsel %vm3289_vm6, %v15233_v47, 0.0  ;;  %v3544_v58 = vsub.f32 %v14947_v8, %v3478_v29 }
 0x634   :  { %12684 = vpow2.f32 %v3660_v28  ;;  %v3535_v50 = vsub.f32 %v14952_v59, %v3451_v42 }
 0x635   :  { %v15235_v23 = vpop.eup %12674  ;;  %12686 = vpow2.f32 %v3656_v44 }
 0x636   :  { %18466 = vst [vmem:[#allocation54_spill] sm:$0xff] %v15235_v23  ;;  %v3448_v14 = vpop.xlane.xlu1 %3447  ;;  %v3818_v32 = vsel %vm3289_vm6, %v15235_v23, 0.0  ;;  %v15242_v53 = vpop.eup %12676  ;;  %v3652_v59 = vmul.f32 1.442695, %v3535_v50 }
 0x637   :  { %v3475_v18 = vpop.xlane.xlu0 %3474  ;;  %v3534_v13 = vsub.f32 %v14959_v54, %v3448_v14  ;;  %3828 = vadd.xlane.f32.xlu0 %v3827_v10  ;;  %3819 = vadd.xlane.f32.xlu1 %v3818_v32  ;;  %v3851_v21 = vsel %vm3289_vm6, %v15242_v53, 0.0  ;;  %v3670_v54 = vmul.f32 1.442695, %v3544_v58 }
 0x638   :  { %v3543_v49 = vsub.f32 %v14964_v43, %v3475_v18  ;;  %v3545_v43 = vsub.f32 %v14938_v55, %v3481_v62 }
 0x639   :  { %v15246_v28 = vpop.eup %12678  ;;  %v3650_v5 = vmul.f32 1.442695, %v3534_v13 }
 0x63a   :  { %18467 = vst [vmem:[#allocation33_spill] sm:$0xff] %v15246_v28  ;;  %v3472_v42 = vpop.xlane.xlu1 %3471  ;;  %v3842_v34 = vsel %vm3289_vm6, %v15246_v28, 0.0  ;;  %v15253_v23 = vpop.eup %12680  ;;  %v3668_v44 = vmul.f32 1.442695, %v3543_v49 }
 0x63b   :  { %12688 = vpow2.f32 %v3650_v5  ;;  %v3542_v8 = vsub.f32 %v14969_v45, %v3472_v42  ;;  %3852 = vadd.xlane.f32.xlu0 %v3851_v21  ;;  %3843 = vadd.xlane.f32.xlu1 %v3842_v34  ;;  %v3821_v32 = vsel %vm3289_vm6, %v15253_v23, 0.0  ;;  %v3672_v45 = vmul.f32 1.442695, %v3545_v43 }
 0x63c   :  { %12690 = vpow2.f32 %v3652_v59 }
 0x63d   :  { %v15256_v29 = vpop.eup %12682  ;;  %v3666_v50 = vmul.f32 1.442695, %v3542_v8 }
 0x63e   :  { %18468 = vst [vmem:[#allocation55_spill] sm:$0xff] %v15256_v29  ;;  %v3836_v14 = vsel %vm3289_vm6, %v15256_v29, 0.0  ;;  %v15263_v10 = vpop.eup %12684 }
 0x63f   :  { %18469 = vst [vmem:[#allocation56_spill] sm:$0xff] %v15263_v10  ;;  %12692 = vpow2.f32 %v3666_v50  ;;  %3822 = vadd.xlane.f32.xlu0 %v3821_v32  ;;  %3837 = vadd.xlane.f32.xlu1 %v3836_v14  ;;  %v3845_v55 = vsel %vm3289_vm6, %v15263_v10, 0.0  ;;  %v15267_v21 = vpop.eup %12686 }
 0x640   :  { %12694 = vpow2.f32 %v3670_v54  ;;  %18470 = vst [vmem:[#allocation58_spill] sm:$0xff] %v15267_v21  ;;  %v3839_v18 = vsel %vm3289_vm6, %v15267_v21, 0.0 }
 0x641   :  { %12696 = vpow2.f32 %v3668_v44 }
 0x642   :  { %12698 = vpow2.f32 %v3672_v45 }
 0x643   :  { %3846 = vadd.xlane.f32.xlu0 %v3845_v55 }
 0x645   :  { %v15269_v62 = vpop.eup %12688 }
 0x646   :  { %18471 = vst [vmem:[#allocation57_spill] sm:$0xff] %v15269_v62  ;;  %v3830_v34 = vsel %vm3289_vm6, %v15269_v62, 0.0  ;;  %v15275_v13 = vpop.eup %12690 }
 0x647   :  { %18472 = vst [vmem:[#allocation61_spill] sm:$0xff] %v15275_v13  ;;  %3831 = vadd.xlane.f32.xlu1 %v3830_v34  ;;  %3840 = vadd.xlane.f32.xlu0 %v3839_v18  ;;  %v3833_v5 = vsel %vm3289_vm6, %v15275_v13, 0.0 }
 0x649   :  { %v15277_v58 = vpop.eup %12692 }
 0x64a   :  { %18473 = vst [vmem:[#allocation59_spill] sm:$0xff] %v15277_v58  ;;  %v15279_v59 = vpop.eup %12694  ;;  %v3854_v49 = vsel %vm3289_vm6, %v15277_v58, 0.0 }
 0x64b   :  { %18474 = vst [vmem:[#allocation62_spill] sm:$0xff] %v15279_v59  ;;  %v15285_v42 = vpop.eup %12696  ;;  %3855 = vadd.xlane.f32.xlu1 %v3854_v49  ;;  %3834 = vadd.xlane.f32.xlu0 %v3833_v5  ;;  %v3860_v8 = vsel %vm3289_vm6, %v15279_v59, 0.0 }
 0x64c   :  { %18475 = vst [vmem:[#allocation60_spill] sm:$0xff] %v15285_v42  ;;  %v3857_v54 = vsel %vm3289_vm6, %v15285_v42, 0.0  ;;  %v15291_v43 = vpop.eup %12698 }
 0x64d   :  { %18476 = vst [vmem:[#allocation64_spill] sm:$0xff] %v15291_v43  ;;  %v3863_v44 = vsel %vm3289_vm6, %v15291_v43, 0.0 }
 0x64f   :  { %3861 = vadd.xlane.f32.xlu1 %v3860_v8  ;;  %3858 = vadd.xlane.f32.xlu0 %v3857_v54 }
 0x653   :  { %3864 = vadd.xlane.f32.xlu0 %v3863_v44 }
 0x654   :  { %v3682_v50 = vpop.xlane.xlu1 %3681 }
 0x658   :  { %v3706_v14 = vpop.xlane.xlu1 %3705 }
 0x65c   :  { %v3676_v32 = vpop.xlane.xlu1 %3675 }
 0x660   :  { %v3700_v55 = vpop.xlane.xlu1 %3699 }
 0x664   :  { %v3685_v45 = vpop.xlane.xlu0 %3684 }
 0x665   :  { %12700 = vrcp.f32 %v3685_v45 }
 0x666   :  { %12702 = vrcp.f32 %v3676_v32 }
 0x667   :  { %12704 = vrcp.f32 %v3682_v50 }
 0x668   :  { %v3709_v34 = vpop.xlane.xlu0 %3708 }
 0x66c   :  { %v3694_v18 = vpop.xlane.xlu1 %3693  ;;  %v3679_v49 = vpop.xlane.xlu0 %3678 }
 0x66d   :  { %12706 = vrcp.f32 %v3679_v49 }
 0x66e   :  { %12708 = vrcp.f32 %v3709_v34 }
 0x66f   :  { %12710 = vrcp.f32 %v3700_v55  ;;  %v12701_v43 = vpop.eup %12700 }
 0x670   :  { %v3718_v5 = vpop.xlane.xlu1 %3717  ;;  %v3703_v8 = vpop.xlane.xlu0 %3702  ;;  %12712 = vrcp.f32 %v3706_v14  ;;  %v3933_v29 = vmul.f32 %v12701_v43, %v15002_v26 }
 0x671   :  { %12714 = vrcp.f32 %v3703_v8  ;;  %v12703_v59 = vpop.eup %12702 }
 0x672   :  { %v12705_v42 = vpop.eup %12704  ;;  %v3930_v50 = vmul.f32 %v12703_v59, %v14990_v22 }
 0x673   :  { %v3932_v49 = vmul.f32 %v12705_v42, %v14979_v7  ;;  %v18477_v7 = vld [vmem:[#allocation38_spill] sm:$0xff] }
 0x674   :  { %v3688_v54 = vpop.xlane.xlu1 %3687  ;;  %v3697_v44 = vpop.xlane.xlu0 %3696 }
 0x675   :  { %12716 = vrcp.f32 %v3697_v44  ;;  %v3995_v21 = vpack.c.bf16 %v3933_v29, %v3932_v49  ;;  %v18483_v44 = vld [vmem:[#allocation43_spill] sm:$0xff] }
 0x676   :  { %12718 = vrcp.f32 %v3688_v54  ;;  %v18482_v54 = vld [vmem:[#allocation40_spill] sm:$0xff] }
 0x677   :  { %v12707_v58 = vpop.eup %12706  ;;  %12720 = vrcp.f32 %v3694_v18 }
 0x678   :  { %v3712_v45 = vpop.xlane.xlu1 %3711  ;;  %v3721_v32 = vpop.xlane.xlu0 %3720  ;;  %v3931_v34 = vmul.f32 %v12707_v58, %v15013_v35 }
 0x679   :  { %v12709_v13 = vpop.eup %12708 }
 0x67a   :  { %v12711_v55 = vpop.eup %12710  ;;  %v3994_v8 = vpack.c.bf16 %v3931_v34, %v3930_v50  ;;  %v3941_v10 = vmul.f32 %v12709_v13, %v15007_v41  ;;  %v18478_v13 = vld [vmem:[#allocation36_spill] sm:$0xff] }
 0x67b   :  { %v12713_v14 = vpop.eup %12712  ;;  %v3938_v22 = vmul.f32 %v12711_v55, %v14996_v39  ;;  %v18480_v39 = vld [vmem:[#allocation42_spill] sm:$0xff] }
 0x67c   :  { %v12715_v62 = vpop.eup %12714  ;;  %v3730_v28 = vpop.xlane.xlu1 %3729  ;;  %11717 = vmatprep.mubr.msk.bf16.mxu0 %vm3289_vm6, %v3994_v8  ;;  %v3940_v58 = vmul.f32 %v12713_v14, %v14985_v3  ;;  %v18479_v3 = vld [vmem:[#allocation39_spill] sm:$0xff] }
 0x67d   :  { %v3691_v26 = vpop.xlane.xlu0 %3690  ;;  %v3939_v35 = vmul.f32 %v12715_v62, %v15023_v38  ;;  %11718 = vmatmul.mubr.msk.bf16.vlgmr.msra.gmra.mrb[140].mxu0 %vm3289_vm6, %v3995_v21  ;;  %v18481_v38 = vld [vmem:[#allocation37_spill] sm:$0xff] }
 0x67e   :  { %12722 = vrcp.f32 %v3691_v26  ;;  %11742 = vmatpush3.bf16.msra.mxu0 %v18477_v7  ;;  %v3999_v41 = vpack.c.bf16 %v3941_v10, %v3940_v58  ;;  %v18484_v58 = vld [vmem:[#allocation41_spill] sm:$0xff] }
 0x67f   :  { %12724 = vrcp.f32 %v3721_v32  ;;  %v3998_v29 = vpack.c.bf16 %v3939_v35, %v3938_v22  ;;  %11743 = vmatprep.subr.bf16.mxu0 %v18478_v13  ;;  %v12717_v62 = vpop.eup %12716 }
 0x680   :  { %12726 = vrcp.f32 %v3712_v45  ;;  %v3754_v59 = vpop.xlane.xlu1 %3753  ;;  %v12719_v43 = vpop.eup %12718  ;;  %v3937_v50 = vmul.f32 %v12717_v62, %v15033_v25  ;;  %v18485_v25 = vld [vmem:[#allocation46_spill] sm:$0xff] }
 0x681   :  { %v3715_v42 = vpop.xlane.xlu0 %3714  ;;  %12728 = vrcp.f32 %v3718_v5  ;;  %11733 = vmatprep.mubr.msk.bf16.mxu1 %vm3289_vm6, %v3998_v29  ;;  %v12721_v18 = vpop.eup %12720  ;;  %v3934_v55 = vmul.f32 %v12719_v43, %v15036_v52 }
 0x682   :  { %12730 = vrcp.f32 %v3715_v42  ;;  %11734 = vmatmul.mubr.msk.bf16.vlgmr.msra.gmra.mrb[144].mxu1 %vm3289_vm6, %v3999_v41  ;;  %11744 = vmatpush3.bf16.msra.mxu0 %v18478_v13  ;;  %v3936_v8 = vmul.f32 %v12721_v18, %v15016_v33 }
 0x683   :  { %11758 = vmatpush3.bf16.msra.mxu1 %v18479_v3  ;;  %11745 = vmatprep.subr.bf16.mxu0 %v18480_v39  ;;  %v18486_v3 = vld [vmem:[#allocation47_spill] sm:$0xff] }
 0x684   :  { %11759 = vmatprep.subr.bf16.mxu1 %v18481_v38  ;;  %v3724_v10 = vpop.xlane.xlu1 %3723  ;;  %v3997_v29 = vpack.c.bf16 %v3937_v50, %v3936_v8 }
 0x685   :  { %v3733_v21 = vpop.xlane.xlu0 %3732 }
 0x686   :  { %11746 = vmatpush3.bf16.msra.mxu0 %v18480_v39  ;;  %12732 = vrcp.f32 %v3733_v21 }
 0x687   :  { %11760 = vmatpush3.bf16.msra.mxu1 %v18481_v38  ;;  %11747 = vmatprep.subr.bf16.mxu0 %v18482_v54  ;;  %12734 = vrcp.f32 %v3724_v10 }
 0x688   :  { %v12723_v5 = vpop.eup %12722  ;;  %11761 = vmatprep.subr.bf16.mxu1 %v18483_v44  ;;  %v3748_v45 = vpop.xlane.xlu1 %3747  ;;  %12736 = vrcp.f32 %v3730_v28 }
 0x689   :  { %v3757_v32 = vpop.xlane.xlu0 %3756  ;;  %v12725_v34 = vpop.eup %12724  ;;  %v3935_v49 = vmul.f32 %v12723_v5, %v15053_v15 }
 0x68a   :  { %v12727_v14 = vpop.eup %12726  ;;  %11748 = vmatpush3.bf16.msra.mxu0 %v18482_v54  ;;  %v3945_v15 = vmul.f32 %v12725_v34, %v15043_v40 }
 0x68b   :  { %v12729_v26 = vpop.eup %12728  ;;  %11762 = vmatpush3.bf16.msra.mxu1 %v18483_v44  ;;  %v3996_v22 = vpack.c.bf16 %v3935_v49, %v3934_v55  ;;  %11773 = vmatprep.subr.bf16.mxu0 %v18485_v25  ;;  %v3942_v33 = vmul.f32 %v12727_v14, %v15046_v16 }
 0x68c   :  { %v12731_v35 = vpop.eup %12730  ;;  %11763 = vmatprep.subr.bf16.mxu1 %v18484_v58  ;;  %v3742_v7 = vpop.xlane.xlu1 %3741  ;;  %v3944_v13 = vmul.f32 %v12729_v26, %v15026_v9  ;;  %v18487_v26 = vld [vmem:[#allocation44_spill] sm:$0xff] }
 0x68d   :  { %v3727_v52 = vpop.xlane.xlu0 %3726  ;;  %11721 = vmatprep.mubr.msk.bf16.mxu0 %vm3289_vm6, %v3996_v22  ;;  %v3943_v41 = vmul.f32 %v12731_v35, %v15063_v30 }
 0x68e   :  { %12738 = vrcp.f32 %v3727_v52  ;;  %11722 = vmatmul.mubr.msk.bf16.gmra.mrb[144].mxu0 %vm3289_vm6, %v3997_v29  ;;  %v4001_v39 = vpack.c.bf16 %v3945_v15, %v3944_v13 }
 0x68f   :  { %12740 = vrcp.f32 %v3757_v32  ;;  %11764 = vmatpush3.bf16.msra.mxu1 %v18484_v58  ;;  %v4000_v42 = vpack.c.bf16 %v3943_v41, %v3942_v33  ;;  %v18490_v33 = vld [vmem:[#allocation48_spill] sm:$0xff]  ;;  %v18491_v41 = vld [vmem:[#allocation51_spill] sm:$0xff] }
 0x690   :  { %12742 = vrcp.f32 %v3748_v45  ;;  %11789 = vmatprep.subr.bf16.mxu1 %v18486_v3  ;;  %v3766_v40 = vpop.xlane.xlu1 %3765  ;;  %v12733_v38 = vpop.eup %12732 }
 0x691   :  { %v3751_v28 = vpop.xlane.xlu0 %3750  ;;  %12744 = vrcp.f32 %v3754_v59  ;;  %11737 = vmatprep.mubr.msk.bf16.mxu1 %vm3289_vm6, %v4000_v42  ;;  %v12735_v9 = vpop.eup %12734  ;;  %v3949_v62 = vmul.f32 %v12733_v38, %v15073_v19  ;;  %v18492_v38 = vld [vmem:[#allocation24_spill] sm:$0xff] }
 0x692   :  { %12746 = vrcp.f32 %v3751_v28  ;;  %11738 = vmatmul.mubr.msk.bf16.gmra.mrb[148].mxu1 %vm3289_vm6, %v4001_v39  ;;  %v12737_v10 = vpop.eup %12736  ;;  %v3946_v54 = vmul.f32 %v12735_v9, %v15076_v2 }
 0x693   :  { %v3948_v45 = vmul.f32 %v12737_v10, %v15056_v1 }
 0x694   :  { %v3736_v16 = vpop.xlane.xlu1 %3735 }
 0x695   :  { %v3745_v30 = vpop.xlane.xlu0 %3744  ;;  %12748 = vrcp.f32 %v3736_v16  ;;  %v4003_v55 = vpack.c.bf16 %v3949_v62, %v3948_v45  ;;  %v18498_v45 = vld [vmem:[#allocation21_spill] sm:$0xff] }
 0x696   :  { %12750 = vrcp.f32 %v3745_v30 }
 0x697   :  { %12752 = vrcp.f32 %v3742_v7 }
 0x698   :  { %v12739_v21 = vpop.eup %12738  ;;  %v3760_v5 = vpop.xlane.xlu1 %3759 }
 0x699   :  { %v3769_v43 = vpop.xlane.xlu0 %3768  ;;  %v12741_v18 = vpop.eup %12740  ;;  %v3947_v59 = vmul.f32 %v12739_v21, %v15093_v37  ;;  %v18493_v21 = vld [vmem:[#allocation20_spill] sm:$0xff] }
 0x69a   :  { %v12743_v44 = vpop.eup %12742  ;;  %v3957_v49 = vmul.f32 %v12741_v18, %v15083_v57  ;;  %v18496_v18 = vld [vmem:[#allocation30_spill] sm:$0xff] }
 0x69b   :  { %v12745_v32 = vpop.eup %12744  ;;  %v4002_v50 = vpack.c.bf16 %v3947_v59, %v3946_v54  ;;  %v3954_v2 = vmul.f32 %v12743_v44, %v15086_v11  ;;  %v18488_v11 = vld [vmem:[#allocation50_spill] sm:$0xff]  ;;  %v18497_v54 = vld [vmem:[#allocation31_spill] sm:$0xff] }
 0x69c   :  { %v12747_v34 = vpop.eup %12746  ;;  %v3778_v14 = vpop.xlane.xlu1 %3777  ;;  %v3956_v1 = vmul.f32 %v12745_v32, %v15066_v60 }
 0x69d   :  { %v3739_v19 = vpop.xlane.xlu0 %3738  ;;  %11749 = vmatprep.mubr.msk.bf16.mxu0 %vm3289_vm6, %v4002_v50  ;;  %v3955_v37 = vmul.f32 %v12747_v34, %v15103_v48  ;;  %v18489_v48 = vld [vmem:[#allocation45_spill] sm:$0xff] }
 0x69e   :  { %12754 = vrcp.f32 %v3739_v19  ;;  %11750 = vmatmul.mubr.msk.bf16.vlgmr.msra.gmra.mrb[148].mxu0 %vm3289_vm6, %v4003_v55  ;;  %v4007_v57 = vpack.c.bf16 %v3957_v49, %v3956_v1  ;;  %v18499_v55 = vld [vmem:[#allocation22_spill] sm:$0xff] }
 0x69f   :  { %12756 = vrcp.f32 %v3769_v43  ;;  %11774 = vmatpush3.bf16.msra.mxu0 %v18485_v25  ;;  %v4006_v8 = vpack.c.bf16 %v3955_v37, %v3954_v2  ;;  %v12749_v60 = vpop.eup %12748 }
 0x6a0   :  { %12758 = vrcp.f32 %v3760_v5  ;;  %11775 = vmatprep.subr.bf16.mxu0 %v18487_v26  ;;  %v3802_v35 = vpop.xlane.xlu1 %3801  ;;  %v12751_v25 = vpop.eup %12750  ;;  %v3950_v42 = vmul.f32 %v12749_v60, %v15116_v27  ;;  %v18494_v27 = vld [vmem:[#allocation49_spill] sm:$0xff] }
 0x6a1   :  { %12760 = vrcp.f32 %v3766_v40  ;;  %v3763_v22 = vpop.xlane.xlu0 %3762  ;;  %11765 = vmatprep.mubr.msk.bf16.mxu1 %vm3289_vm6, %v4006_v8  ;;  %v12753_v52 = vpop.eup %12752  ;;  %v3953_v40 = vmul.f32 %v12751_v25, %v15113_v0 }
 0x6a2   :  { %12762 = vrcp.f32 %v3763_v22  ;;  %11766 = vmatmul.mubr.msk.bf16.vlgmr.msra.gmra.mrb[152].mxu1 %vm3289_vm6, %v4007_v57  ;;  %v3952_v9 = vmul.f32 %v12753_v52, %v18492_v38  ;;  %v18505_v38 = vld [vmem:[#allocation18_spill] sm:$0xff] }
 0x6a3   :  { %11776 = vmatpush3.bf16.msra.mxu0 %v18487_v26  ;;  %11790 = vmatpush3.bf16.msra.mxu1 %v18486_v3 }
 0x6a4   :  { %11777 = vmatprep.subr.bf16.mxu0 %v18488_v11  ;;  %11791 = vmatprep.subr.bf16.mxu1 %v18489_v48  ;;  %v3772_v7 = vpop.xlane.xlu1 %3771  ;;  %v4005_v43 = vpack.c.bf16 %v3953_v40, %v3952_v9 }
 0x6a5   :  { %v3781_v58 = vpop.xlane.xlu0 %3780 }
 0x6a6   :  { %12764 = vrcp.f32 %v3781_v58  ;;  %v18500_v58 = vld [vmem:[#allocation25_spill] sm:$0xff] }
 0x6a7   :  { %11778 = vmatpush3.bf16.msra.mxu0 %v18488_v11  ;;  %11792 = vmatpush3.bf16.msra.mxu1 %v18489_v48  ;;  %12766 = vrcp.f32 %v3772_v7 }
 0x6a8   :  { %v12755_v29 = vpop.eup %12754  ;;  %11779 = vmatprep.subr.bf16.mxu0 %v18490_v33  ;;  %11793 = vmatprep.subr.bf16.mxu1 %v18491_v41  ;;  %v3796_v39 = vpop.xlane.xlu1 %3795  ;;  %12768 = vrcp.f32 %v3778_v14 }
 0x6a9   :  { %v12757_v15 = vpop.eup %12756  ;;  %v3805_v13 = vpop.xlane.xlu0 %3804  ;;  %v3951_v3 = vmul.f32 %v12755_v29, %v15131_v6  ;;  %v18495_v6 = vld [vmem:[#allocation26_spill] sm:$0xff] }
 0x6aa   :  { %v12759_v28 = vpop.eup %12758  ;;  %v3961_v62 = vmul.f32 %v12757_v15, %v18493_v21 }
 0x6ab   :  { %v12761_v16 = vpop.eup %12760  ;;  %v4004_v30 = vpack.c.bf16 %v3951_v3, %v3950_v42  ;;  %11780 = vmatpush3.bf16.msra.mxu0 %v18490_v33  ;;  %11794 = vmatpush3.bf16.msra.mxu1 %v18491_v41  ;;  %v3958_v5 = vmul.f32 %v12759_v28, %v18496_v18  ;;  %v18501_v41 = vld [vmem:[#allocation28_spill] sm:$0xff]  ;;  %v18502_v42 = vld [vmem:[#allocation34_spill] sm:$0xff] }
 0x6ac   :  { %v12763_v10 = vpop.eup %12762  ;;  %11795 = vmatprep.subr.bf16.mxu1 %v18494_v27  ;;  %11805 = vmatprep.subr.bf16.mxu0 %v18495_v6  ;;  %v3790_v44 = vpop.xlane.xlu1 %3789  ;;  %v3960_v32 = vmul.f32 %v12761_v16, %v18498_v45  ;;  %v18503_v16 = vld [vmem:[#allocation19_spill] sm:$0xff] }
 0x6ad   :  { %v3775_v0 = vpop.xlane.xlu0 %3774  ;;  %v3959_v59 = vmul.f32 %v12763_v10, %v18497_v54  ;;  %11753 = vmatprep.mubr.msk.bf16.mxu0 %vm3289_vm6, %v4004_v30 }
 0x6ae   :  { %12770 = vrcp.f32 %v3775_v0  ;;  %11754 = vmatmul.mubr.msk.bf16.gmra.mrb[152].mxu0 %vm3289_vm6, %v4005_v43  ;;  %v4009_v34 = vpack.c.bf16 %v3961_v62, %v3960_v32  ;;  %v18506_v0 = vld [vmem:[#allocation27_spill] sm:$0xff]  ;;  %v18507_v43 = vld [vmem:[#allocation53_spill] sm:$0xff] }
 0x6af   :  { %12772 = vrcp.f32 %v3805_v13  ;;  %v4008_v50 = vpack.c.bf16 %v3959_v59, %v3958_v5  ;;  %11796 = vmatpush3.bf16.msra.mxu1 %v18494_v27 }
 0x6b0   :  { %12774 = vrcp.f32 %v3796_v39  ;;  %11821 = vmatprep.subr.bf16.mxu1 %v18499_v55  ;;  %v3814_v19 = vpop.xlane.xlu1 %3813  ;;  %v12765_v14 = vpop.eup %12764 }
 0x6b1   :  { %12776 = vrcp.f32 %v3802_v35  ;;  %11769 = vmatprep.mubr.msk.bf16.mxu1 %vm3289_vm6, %v4008_v50  ;;  %v3799_v49 = vpop.xlane.xlu0 %3798  ;;  %v12767_v37 = vpop.eup %12766  ;;  %v3965_v26 = vmul.f32 %v12765_v14, %v15151_v4 }
 0x6b2   :  { %12778 = vrcp.f32 %v3799_v49  ;;  %11770 = vmatmul.mubr.msk.bf16.gmra.mrb[156].mxu1 %vm3289_vm6, %v4009_v34  ;;  %v12769_v8 = vpop.eup %12768  ;;  %v3962_v35 = vmul.f32 %v12767_v37, %v15157_v61 }
 0x6b3   :  { %v3964_v25 = vmul.f32 %v12769_v8, %v18500_v58  ;;  %v18510_v8 = vld [vmem:[#allocation6_spill] sm:$0xff] }
 0x6b4   :  { %v3784_v1 = vpop.xlane.xlu1 %3783 }
 0x6b5   :  { %v3793_v2 = vpop.xlane.xlu0 %3792  ;;  %v4011_v33 = vpack.c.bf16 %v3965_v26, %v3964_v25 }
 0x6b6   :  { %12780 = vrcp.f32 %v3793_v2  ;;  %v18509_v2 = vld [vmem:[#allocation35_spill] sm:$0xff] }
 0x6b7   :  { %12782 = vrcp.f32 %v3784_v1 }
 0x6b8   :  { %v12771_v57 = vpop.eup %12770  ;;  %v3808_v7 = vpop.xlane.xlu1 %3807  ;;  %12784 = vrcp.f32 %v3790_v44 }
 0x6b9   :  { %v12773_v22 = vpop.eup %12772  ;;  %v3817_v60 = vpop.xlane.xlu0 %3816  ;;  %v3963_v11 = vmul.f32 %v12771_v57, %v15171_v31 }
 0x6ba   :  { %v12775_v48 = vpop.eup %12774  ;;  %v3973_v13 = vmul.f32 %v12773_v22, %v18501_v41  ;;  %v18512_v41 = vld [vmem:[#allocation29_spill] sm:$0xff] }
 0x6bb   :  { %v12777_v52 = vpop.eup %12776  ;;  %v4010_v29 = vpack.c.bf16 %v3963_v11, %v3962_v35  ;;  %v3970_v61 = vmul.f32 %v12775_v48, %v15167_v46 }
 0x6bc   :  { %v12779_v15 = vpop.eup %12778  ;;  %v3972_v3 = vmul.f32 %v12777_v52, %v18502_v42  ;;  %v3826_v40 = vpop.xlane.xlu1 %3825  ;;  %v18511_v52 = vld [vmem:[#allocation54_spill] sm:$0xff] }
 0x6bd   :  { %11781 = vmatprep.mubr.msk.bf16.mxu0 %vm3289_vm6, %v4010_v29  ;;  %v3787_v4 = vpop.xlane.xlu0 %3786  ;;  %v3971_v31 = vmul.f32 %v12779_v15, %v15181_v63  ;;  %v18504_v63 = vld [vmem:[#allocation52_spill] sm:$0xff] }
 0x6be   :  { %12786 = vrcp.f32 %v3787_v4  ;;  %11782 = vmatmul.mubr.msk.bf16.vlgmr.msra.gmra.mrb[156].mxu0 %vm3289_vm6, %v4011_v33  ;;  %v4015_v39 = vpack.c.bf16 %v3973_v13, %v3972_v3 }
 0x6bf   :  { %12788 = vrcp.f32 %v3817_v60  ;;  %11806 = vmatpush3.bf16.msra.mxu0 %v18495_v6  ;;  %v4014_v28 = vpack.c.bf16 %v3971_v31, %v3970_v61 }
 0x6c0   :  { %12790 = vrcp.f32 %v3808_v7  ;;  %11807 = vmatprep.subr.bf16.mxu0 %v18503_v16  ;;  %v3850_v30 = vpop.xlane.xlu1 %3849  ;;  %v12781_v9 = vpop.eup %12780 }
 0x6c1   :  { %12792 = vrcp.f32 %v3814_v19  ;;  %11797 = vmatprep.mubr.msk.bf16.mxu1 %vm3289_vm6, %v4014_v28  ;;  %v3811_v46 = vpop.xlane.xlu0 %3810  ;;  %v12783_v21 = vpop.eup %12782  ;;  %v3969_v18 = vmul.f32 %v12781_v9, %v15191_v17  ;;  %v18508_v17 = vld [vmem:[#allocation23_spill] sm:$0xff]  ;;  %v18513_v28 = vld [vmem:[#allocation33_spill] sm:$0xff] }
 0x6c2   :  { %12794 = vrcp.f32 %v3811_v46  ;;  %11798 = vmatmul.mubr.msk.bf16.vlgmr.msra.gmra.mrb[160].mxu1 %vm3289_vm6, %v4015_v39  ;;  %v12785_v27 = vpop.eup %12784  ;;  %v3966_v59 = vmul.f32 %v12783_v21, %v15197_v12  ;;  %v18515_v46 = vld [vmem:[#allocation32_spill] sm:$0xff] }
 0x6c3   :  { %11808 = vmatpush3.bf16.msra.mxu0 %v18503_v16  ;;  %11822 = vmatpush3.bf16.msra.mxu1 %v18499_v55  ;;  %v3968_v32 = vmul.f32 %v12785_v27, %v15177_v51  ;;  %v18514_v16 = vld [vmem:[#allocation56_spill] sm:$0xff] }
 0x6c4   :  { %11809 = vmatprep.subr.bf16.mxu0 %v18504_v63  ;;  %11823 = vmatprep.subr.bf16.mxu1 %v18505_v38  ;;  %v3820_v62 = vpop.xlane.xlu1 %3819 }
 0x6c5   :  { %v3829_v10 = vpop.xlane.xlu0 %3828  ;;  %v4013_v19 = vpack.c.bf16 %v3969_v18, %v3968_v32  ;;  %v18521_v32 = vld [vmem:[#allocation12_spill] sm:$0xff] }
 0x6c6   :  { %12796 = vrcp.f32 %v3829_v10 }
 0x6c7   :  { %11810 = vmatpush3.bf16.msra.mxu0 %v18504_v63  ;;  %11824 = vmatpush3.bf16.msra.mxu1 %v18505_v38  ;;  %12798 = vrcp.f32 %v3820_v62  ;;  %v18516_v62 = vld [vmem:[#allocation7_spill] sm:$0xff] }
 0x6c8   :  { %v12787_v6 = vpop.eup %12786  ;;  %11811 = vmatprep.subr.bf16.mxu0 %v18506_v0  ;;  %11825 = vmatprep.subr.bf16.mxu1 %v18507_v43  ;;  %v3844_v34 = vpop.xlane.xlu1 %3843  ;;  %12800 = vrcp.f32 %v3826_v40 }
 0x6c9   :  { %v12789_v5 = vpop.eup %12788  ;;  %v3853_v54 = vpop.xlane.xlu0 %3852  ;;  %v3967_v44 = vmul.f32 %v12787_v6, %v15213_v20  ;;  %v18517_v6 = vld [vmem:[#allocation58_spill] sm:$0xff] }
 0x6ca   :  { %v12791_v45 = vpop.eup %12790  ;;  %v3977_v12 = vmul.f32 %v12789_v5, %v15201_v24  ;;  %v18519_v5 = vld [vmem:[#allocation61_spill] sm:$0xff] }
 0x6cb   :  { %v12793_v50 = vpop.eup %12792  ;;  %11812 = vmatpush3.bf16.msra.mxu0 %v18506_v0  ;;  %11826 = vmatpush3.bf16.msra.mxu1 %v18507_v43  ;;  %v4012_v55 = vpack.c.bf16 %v3967_v44, %v3966_v59  ;;  %v3974_v51 = vmul.f32 %v12791_v45, %v15206_v56  ;;  %v18518_v43 = vld [vmem:[#allocation57_spill] sm:$0xff]  ;;  %v18520_v44 = vld [vmem:[#allocation55_spill] sm:$0xff] }
 0x6cc   :  { %v12795_v49 = vpop.eup %12794  ;;  %11827 = vmatprep.subr.bf16.mxu1 %v18508_v17  ;;  %v3976_v37 = vmul.f32 %v12793_v50, %v18509_v2  ;;  %v3838_v57 = vpop.xlane.xlu1 %3837 }
 0x6cd   :  { %11785 = vmatprep.mubr.msk.bf16.mxu0 %vm3289_vm6, %v4012_v55  ;;  %v3823_v20 = vpop.xlane.xlu0 %3822  ;;  %v3975_v14 = vmul.f32 %v12795_v49, %v15223_v36 }
 0x6ce   :  { %12802 = vrcp.f32 %v3823_v20  ;;  %11786 = vmatmul.mubr.msk.bf16.gmra.mrb[160].mxu0 %vm3289_vm6, %v4013_v19  ;;  %v4017_v24 = vpack.c.bf16 %v3977_v12, %v3976_v37  ;;  %v18523_v12 = vld [vmem:[#allocation60_spill] sm:$0xff]  ;;  %v18525_v37 = vld [vmem:[#allocation62_spill] sm:$0xff] }
 0x6cf   :  { %12804 = vrcp.f32 %v3853_v54  ;;  %11828 = vmatpush3.bf16.msra.mxu1 %v18508_v17  ;;  %v4016_v1 = vpack.c.bf16 %v3975_v14, %v3974_v51  ;;  %v18522_v17 = vld [vmem:[#allocation59_spill] sm:$0xff]  ;;  %v18524_v14 = vld [vmem:[#allocation13_spill] sm:$0xff] }
 0x6d0   :  { %12806 = vrcp.f32 %v3844_v34  ;;  %11849 = vmatprep.subr.bf16.mxu1 %v18510_v8  ;;  %v12797_v36 = vpop.eup %12796 }
 0x6d1   :  { %12808 = vrcp.f32 %v3850_v30  ;;  %11801 = vmatprep.mubr.msk.bf16.mxu1 %vm3289_vm6, %v4016_v1  ;;  %v3847_v56 = vpop.xlane.xlu0 %3846  ;;  %v12799_v60 = vpop.eup %12798  ;;  %v3981_v48 = vmul.f32 %v12797_v36, %v15233_v47  ;;  %v18528_v36 = vld [vmem:[#allocation14_spill] sm:$0xff] }
 0x6d2   :  { %12810 = vrcp.f32 %v3847_v56  ;;  %11802 = vmatmul.mubr.msk.bf16.gmra.mrb[164].mxu1 %vm3289_vm6, %v4017_v24  ;;  %v12801_v35 = vpop.eup %12800  ;;  %v3978_v29 = vmul.f32 %v12799_v60, %v18511_v52  ;;  %v18527_v56 = vld [vmem:[#allocation15_spill] sm:$0xff]  ;;  %v4974_v60 = vld [vmem:[%s18073_s15] sm:$0xff] }
 0x6d3   :  { %v3980_v13 = vmul.f32 %v12801_v35, %v18512_v41  ;;  %v4975_v35 = vld [vmem:[%s18073_s15 + $0x8] sm:$0xff] }
 0x6d4   :  { %v3832_v26 = vpop.xlane.xlu1 %3831 }
 0x6d5   :  { %v3841_v22 = vpop.xlane.xlu0 %3840  ;;  %v4019_v42 = vpack.c.bf16 %v3981_v48, %v3980_v13 }
 0x6d6   :  { %12812 = vrcp.f32 %v3841_v22  ;;  %v18530_v22 = vld [vmem:[#allocation16_spill] sm:$0xff] }
 0x6d7   :  { %12814 = vrcp.f32 %v3832_v26  ;;  %v18529_v26 = vld [vmem:[#allocation17_spill] sm:$0xff] }
 0x6d8   :  { %v12803_v11 = vpop.eup %12802  ;;  %v3856_v25 = vpop.xlane.xlu1 %3855  ;;  %12816 = vrcp.f32 %v3838_v57 }
 0x6d9   :  { %v12805_v58 = vpop.eup %12804  ;;  %v3835_v7 = vpop.xlane.xlu0 %3834  ;;  %v3979_v15 = vmul.f32 %v12803_v11, %v15253_v23  ;;  %v4982_v11 = vpack.c.bf16 %v4975_v35, %v4974_v60 }
 0x6da   :  { %v12807_v33 = vpop.eup %12806  ;;  %12818 = vrcp.f32 %v3835_v7  ;;  %v3989_v47 = vmul.f32 %v12805_v58, %v15242_v53  ;;  %v4976_v58 = vld [vmem:[%s18073_s15 + $0x10] sm:$0xff] }
 0x6db   :  { %v12809_v4 = vpop.eup %12808  ;;  %v4018_v61 = vpack.c.bf16 %v3979_v15, %v3978_v29  ;;  %12820 = vrcp.f32 %v3856_v25  ;;  %v3986_v39 = vmul.f32 %v12807_v33, %v18513_v28  ;;  %11837 = vmatprep.subr.bf16.mxu0 %v4982_v11  ;;  %v4977_v25 = vld [vmem:[%s18073_s15 + $0x18] sm:$0xff] }
 0x6dc   :  { %v12811_v31 = vpop.eup %12810  ;;  %v3862_v3 = vpop.xlane.xlu1 %3861  ;;  %v3988_v30 = vmul.f32 %v12809_v4, %v18515_v46  ;;  %v4983_v52 = vpack.c.bf16 %v4977_v25, %v4976_v58 }
 0x6dd   :  { %11813 = vmatprep.mubr.msk.bf16.mxu0 %vm3289_vm6, %v4018_v61  ;;  %v3859_v40 = vpop.xlane.xlu0 %3858  ;;  %v3987_v23 = vmul.f32 %v12811_v31, %v18514_v16 }
 0x6de   :  { %11814 = vmatmul.mubr.msk.bf16.vlgmr.msra.gmra.mrb[164].mxu0 %vm3289_vm6, %v4019_v42  ;;  %12822 = vrcp.f32 %v3859_v40  ;;  %v4023_v38 = vpack.c.bf16 %v3989_v47, %v3988_v30 }
 0x6df   :  { %v4022_v63 = vpack.c.bf16 %v3987_v23, %v3986_v39  ;;  %12824 = vrcp.f32 %v3862_v3  ;;  %11838 = vmatpush3.bf16.msra.mxu0 %v4982_v11 }
 0x6e0   :  { %v12813_v9 = vpop.eup %12812  ;;  %11839 = vmatprep.subr.bf16.mxu0 %v4983_v52 }
 0x6e1   :  { %11829 = vmatprep.mubr.msk.bf16.mxu1 %vm3289_vm6, %v4022_v63  ;;  %v3865_v53 = vpop.xlane.xlu0 %3864  ;;  %v12815_v10 = vpop.eup %12814  ;;  %v3985_v0 = vmul.f32 %v12813_v9, %v18517_v6 }
 0x6e2   :  { %12826 = vrcp.f32 %v3865_v53  ;;  %11830 = vmatmul.mubr.msk.bf16.vlgmr.msra.gmra.mrb[168].mxu1 %vm3289_vm6, %v4023_v38  ;;  %v12817_v21 = vpop.eup %12816  ;;  %v3982_v18 = vmul.f32 %v12815_v10, %v18518_v43 }
 0x6e3   :  { %11850 = vmatpush3.bf16.msra.mxu1 %v18510_v8  ;;  %v3984_v45 = vmul.f32 %v12817_v21, %v18520_v44  ;;  %v18526_v8 = vld [vmem:[#allocation64_spill] sm:$0xff]  ;;  %11840 = vmatpush3.bf16.msra.mxu0 %v4983_v52 }
 0x6e4   :  { %11851 = vmatprep.subr.bf16.mxu1 %v18516_v62  ;;  %v12819_v27 = vpop.eup %12818 }
 0x6e5   :  { %v3983_v54 = vmul.f32 %v12819_v27, %v18519_v5  ;;  %v12821_v59 = vpop.eup %12820  ;;  %v4021_v55 = vpack.c.bf16 %v3985_v0, %v3984_v45 }
 0x6e6   :  { %v3990_v19 = vmul.f32 %v12821_v59, %v18522_v17 }
 0x6e7   :  { %11852 = vmatpush3.bf16.msra.mxu1 %v18516_v62  ;;  %v4020_v50 = vpack.c.bf16 %v3983_v54, %v3982_v18 }
 0x6e8   :  { %11853 = vmatprep.subr.bf16.mxu1 %v18521_v32  ;;  %v12823_v34 = vpop.eup %12822 }
 0x6e9   :  { %v12825_v49 = vpop.eup %12824  ;;  %11817 = vmatprep.mubr.msk.bf16.mxu0 %vm3289_vm6, %v4020_v50  ;;  %v3991_v20 = vmul.f32 %v12823_v34, %v18523_v12 }
 0x6ea   :  { %11818 = vmatmul.mubr.msk.bf16.gmra.mrb[168].mxu0 %vm3289_vm6, %v4021_v55  ;;  %v3992_v1 = vmul.f32 %v12825_v49, %v18525_v37 }
 0x6eb   :  { %11854 = vmatpush3.bf16.msra.mxu1 %v18521_v32  ;;  %v4024_v2 = vpack.c.bf16 %v3991_v20, %v3990_v19 }
 0x6ec   :  { %v12827_v51 = vpop.eup %12826  ;;  %11855 = vmatprep.subr.bf16.mxu1 %v18524_v14 }
 0x6ed   :  { %v3993_v24 = vmul.f32 %v12827_v51, %v18526_v8  ;;  %11833 = vmatprep.mubr.msk.bf16.mxu1 %vm3289_vm6, %v4024_v2 }
 0x6ef   :  { %11856 = vmatpush3.bf16.msra.mxu1 %v18524_v14  ;;  %v4025_v57 = vpack.c.bf16 %v3993_v24, %v3992_v1 }
 0x6f1   :  { %11834 = vmatmul.mubr.msk.bf16.gmra.mrb[172].mxu1 %vm3289_vm6, %v4025_v57 }
 0x6f2   :  { %11857 = vmatprep.mubr.msk.bf16.mxu1 %vm3289_vm6, %v18527_v56 }
 0x6f9   :  { %11858 = vmatmul.mubr.msk.bf16.vlgmr.msra.gmra.mrb[176].mxu1 %vm3289_vm6, %v18528_v36 }
 0x6fa   :  { %11861 = vmatprep.mubr.msk.bf16.mxu1 %vm3289_vm6, %v18529_v26 }
 0x701   :  { %11862 = vmatmul.mubr.msk.bf16.gmra.mrb[180].mxu1 %vm3289_vm6, %v18530_v22 }
 0x750   :  { %v15459_v48 = vpop.f32.mrb[140].mxu0 }
 0x751   :  { %v15467_v7 = vpop.f32.mrb[141].mxu0 }
 0x752   :  { %v15469_v29 = vpop.f32.mrb[142].mxu0 }
 0x753   :  { %v15471_v15 = vpop.f32.mrb[143].mxu0 }
 0x755   :  { %v11735_v33 = vpop.f32.mrb[144].mxu1 }
 0x756   :  { %4686 = vrot.lane.b32.xlu1 %v11735_v33, %s13103_s5  ;;  %v4181_v41 = vpop.f32.mrb[145].mxu1 }
 0x757   :  { %v11736_v13 = vpop.f32.mrb[146].mxu1 }
 0x758   :  { %v4184_v4 = vpop.f32.mrb[147].mxu1 }
 0x759   :  { %4684 = vrot.lane.b32.xlu0 %v4184_v4, %s13103_s5 }
 0x75a   :  { %4682 = vrot.lane.b32.xlu1 %v4181_v41, %s13103_s5 }
 0x75e   :  { %4688 = vrot.lane.b32.xlu1 %v11736_v13, %s13103_s5 }
 0x761   :  { %v15477_v61 = vpop.f32.mrb[144].mxu0 }
 0x762   :  { %v15479_v31 = vpop.f32.mrb[145].mxu0 }
 0x763   :  { %v15481_v42 = vpop.f32.mrb[146].mxu0 }
 0x764   :  { %v15483_v47 = vpop.f32.mrb[147].mxu0 }
 0x765   :  { %v11739_v3 = vpop.f32.mrb[148].mxu1 }
 0x766   :  { %4694 = vrot.lane.b32.xlu0 %v11739_v3, %s13103_s5  ;;  %v4197_v40 = vpop.f32.mrb[149].mxu1 }
 0x767   :  { %v11740_v28 = vpop.f32.mrb[150].mxu1 }
 0x768   :  { %4696 = vrot.lane.b32.xlu1 %v11740_v28, %s13103_s5  ;;  %v4200_v39 = vpop.f32.mrb[151].mxu1 }
 0x76a   :  { %4690 = vrot.lane.b32.xlu0 %v4197_v40, %s13103_s5 }
 0x76c   :  { %4692 = vrot.lane.b32.xlu1 %v4200_v39, %s13103_s5 }
 0x771   :  { %v11751_v16 = vpop.f32.mrb[148].mxu0 }
 0x772   :  { %4718 = vrot.lane.b32.xlu0 %v11751_v16, %s13104_s26  ;;  %v4258_v23 = vpop.f32.mrb[149].mxu0 }
 0x773   :  { %v11752_v46 = vpop.f32.mrb[150].mxu0 }
 0x774   :  { %4720 = vrot.lane.b32.xlu1 %v11752_v46, %s13104_s26  ;;  %v4261_v30 = vpop.f32.mrb[151].mxu0 }
 0x775   :  { %v11767_v63 = vpop.f32.mrb[152].mxu1 }
 0x776   :  { %4750 = vrot.lane.b32.xlu0 %v11767_v63, %s13105_s28  ;;  %v4335_v38 = vpop.f32.mrb[153].mxu1  ;;  %v10593_v63 = vld [vmem:[%s18070_s14 + $0x9] ss:$0 sm:$0xff] }
 0x777   :  { %v11768_v53 = vpop.f32.mrb[154].mxu1 }
 0x778   :  { %4752 = vrot.lane.b32.xlu1 %v11768_v53, %s13105_s28  ;;  %v4338_v9 = vpop.f32.mrb[155].mxu1 }
 0x77a   :  { %4714 = vrot.lane.b32.xlu0 %v4258_v23, %s13104_s26 }
 0x77c   :  { %4716 = vrot.lane.b32.xlu1 %v4261_v30, %s13104_s26  ;;  %v10592_v30 = vld [vmem:[%s18070_s14 + $0x8] ss:$0 sm:$0xff] }
 0x77e   :  { %4746 = vrot.lane.b32.xlu0 %v4335_v38, %s13105_s28 }
 0x780   :  { %4748 = vrot.lane.b32.xlu1 %v4338_v9, %s13105_s28  ;;  %v10594_v9 = vld [vmem:[%s18070_s14 + $0xa] ss:$0 sm:$0xff] }
 0x781   :  { %v11755_v10 = vpop.f32.mrb[152].mxu0 }
 0x782   :  { %4726 = vrot.lane.b32.xlu0 %v11755_v10, %s13104_s26  ;;  %v4274_v21 = vpop.f32.mrb[153].mxu0 }
 0x783   :  { %v11756_v62 = vpop.f32.mrb[154].mxu0 }
 0x784   :  { %4728 = vrot.lane.b32.xlu1 %v11756_v62, %s13104_s26  ;;  %v4277_v27 = vpop.f32.mrb[155].mxu0  ;;  %v10595_v62 = vld [vmem:[%s18070_s14 + $0xb] ss:$0 sm:$0xff] }
 0x785   :  { %v11771_v6 = vpop.f32.mrb[156].mxu1 }
 0x786   :  { %v4351_v0 = vpop.f32.mrb[157].mxu1  ;;  %4758 = vrot.lane.b32.xlu0 %v11771_v6, %s13105_s28 }
 0x787   :  { %v11772_v43 = vpop.f32.mrb[158].mxu1 }
 0x788   :  { %v4354_v18 = vpop.f32.mrb[159].mxu1  ;;  %4760 = vrot.lane.b32.xlu1 %v11772_v43, %s13105_s28 }
 0x78a   :  { %4722 = vrot.lane.b32.xlu0 %v4274_v21, %s13104_s26 }
 0x78c   :  { %4724 = vrot.lane.b32.xlu1 %v4277_v27, %s13104_s26 }
 0x78e   :  { %4754 = vrot.lane.b32.xlu0 %v4351_v0, %s13105_s28 }
 0x790   :  { %4756 = vrot.lane.b32.xlu1 %v4354_v18, %s13105_s28  ;;  %v10596_v18 = vld [vmem:[%s18070_s14 + $0xc] ss:$0 sm:$0xff] }
 0x791   :  { %v11783_v5 = vpop.f32.mrb[156].mxu0 }
 0x792   :  { %v4412_v54 = vpop.f32.mrb[157].mxu0  ;;  %4782 = vrot.lane.b32.xlu0 %v11783_v5, %s13106_s9 }
 0x793   :  { %v11784_v59 = vpop.f32.mrb[158].mxu0 }
 0x794   :  { %v4415_v44 = vpop.f32.mrb[159].mxu0  ;;  %4784 = vrot.lane.b32.xlu1 %v11784_v59, %s13106_s9 }
 0x795   :  { %v11799_v45 = vpop.f32.mrb[160].mxu1 }
 0x796   :  { %v4489_v32 = vpop.f32.mrb[161].mxu1  ;;  %4814 = vrot.lane.b32.xlu0 %v11799_v45, %s13107_s3 }
 0x797   :  { %v11800_v50 = vpop.f32.mrb[162].mxu1 }
 0x798   :  { %v4492_v34 = vpop.f32.mrb[163].mxu1  ;;  %4816 = vrot.lane.b32.xlu1 %v11800_v50, %s13107_s3 }
 0x79a   :  { %4778 = vrot.lane.b32.xlu0 %v4412_v54, %s13106_s9  ;;  %v10597_v54 = vld [vmem:[%s18070_s14 + $0xd] ss:$0 sm:$0xff] }
 0x79c   :  { %4780 = vrot.lane.b32.xlu1 %v4415_v44, %s13106_s9  ;;  %v10598_v44 = vld [vmem:[%s18070_s14 + $0xe] ss:$0 sm:$0xff] }
 0x79e   :  { %4810 = vrot.lane.b32.xlu0 %v4489_v32, %s13107_s3  ;;  %v10599_v32 = vld [vmem:[%s18070_s14 + $0xf] ss:$0 sm:$0xff] }
 0x7a0   :  { %4812 = vrot.lane.b32.xlu1 %v4492_v34, %s13107_s3 }
 0x7a1   :  { %v11787_v55 = vpop.f32.mrb[160].mxu0 }
 0x7a2   :  { %v4428_v49 = vpop.f32.mrb[161].mxu0  ;;  %4790 = vrot.lane.b32.xlu0 %v11787_v55, %s13106_s9 }
 0x7a3   :  { %v11788_v17 = vpop.f32.mrb[162].mxu0 }
 0x7a4   :  { %v4431_v19 = vpop.f32.mrb[163].mxu0  ;;  %4792 = vrot.lane.b32.xlu1 %v11788_v17, %s13106_s9 }
 0x7a5   :  { %v11803_v12 = vpop.f32.mrb[164].mxu1 }
 0x7a6   :  { %v4505_v20 = vpop.f32.mrb[165].mxu1  ;;  %4822 = vrot.lane.b32.xlu0 %v11803_v12, %s13107_s3 }
 0x7a7   :  { %v11804_v51 = vpop.f32.mrb[166].mxu1 }
 0x7a8   :  { %v4508_v14 = vpop.f32.mrb[167].mxu1  ;;  %4824 = vrot.lane.b32.xlu1 %v11804_v51, %s13107_s3 }
 0x7aa   :  { %4786 = vrot.lane.b32.xlu0 %v4428_v49, %s13106_s9 }
 0x7ac   :  { %4788 = vrot.lane.b32.xlu1 %v4431_v19, %s13106_s9 }
 0x7ae   :  { %4818 = vrot.lane.b32.xlu0 %v4505_v20, %s13107_s3 }
 0x7b0   :  { %4820 = vrot.lane.b32.xlu1 %v4508_v14, %s13107_s3 }
 0x7b1   :  { %v11815_v2 = vpop.f32.mrb[164].mxu0 }
 0x7b2   :  { %v4566_v37 = vpop.f32.mrb[165].mxu0  ;;  %4846 = vrot.lane.b32.xlu0 %v11815_v2, %s13108_s29 }
 0x7b3   :  { %v11816_v1 = vpop.f32.mrb[166].mxu0 }
 0x7b4   :  { %v4569_v8 = vpop.f32.mrb[167].mxu0  ;;  %4848 = vrot.lane.b32.xlu1 %v11816_v1, %s13108_s29 }
 0x7b5   :  { %v11831_v24 = vpop.f32.mrb[168].mxu1 }
 0x7b6   :  { %v4643_v57 = vpop.f32.mrb[169].mxu1  ;;  %4878 = vrot.lane.b32.xlu0 %v11831_v24, %s18199_s6 }
 0x7b7   :  { %v11832_v60 = vpop.f32.mrb[170].mxu1 }
 0x7b8   :  { %v4646_v35 = vpop.f32.mrb[171].mxu1  ;;  %4880 = vrot.lane.b32.xlu1 %v11832_v60, %s18199_s6 }
 0x7ba   :  { %4842 = vrot.lane.b32.xlu0 %v4566_v37, %s13108_s29 }
 0x7bc   :  { %4844 = vrot.lane.b32.xlu1 %v4569_v8, %s13108_s29 }
 0x7bd   :  { %v11819_v11 = vpop.f32.mrb[168].mxu0 }
 0x7be   :  { %4874 = vrot.lane.b32.xlu0 %v4643_v57, %s18199_s6  ;;  %v4582_v58 = vpop.f32.mrb[169].mxu0 }
 0x7bf   :  { %v11820_v25 = vpop.f32.mrb[170].mxu0 }
 0x7c0   :  { %4876 = vrot.lane.b32.xlu1 %v4646_v35, %s18199_s6  ;;  %v4585_v52 = vpop.f32.mrb[171].mxu0 }
 0x7c2   :  { %4854 = vrot.lane.b32.xlu0 %v11819_v11, %s13108_s29 }
 0x7c4   :  { %v11835_v33 = vpop.f32.mrb[172].mxu1  ;;  %4856 = vrot.lane.b32.xlu1 %v11820_v25, %s13108_s29 }
 0x7c5   :  { %v4659_v41 = vpop.f32.mrb[173].mxu1 }
 0x7c6   :  { %v11836_v13 = vpop.f32.mrb[174].mxu1  ;;  %4850 = vrot.lane.b32.xlu0 %v4582_v58, %s13108_s29 }
 0x7c7   :  { %v4662_v4 = vpop.f32.mrb[175].mxu1 }
 0x7c8   :  { %4852 = vrot.lane.b32.xlu1 %v4585_v52, %s13108_s29  ;;  %v15534_v40 = vpop.permute.xlu1 %4686 }
 0x7ca   :  { %4882 = vrot.lane.b32.xlu0 %v4659_v41, %s18199_s6 }
 0x7cb   :  { %v15558_v27 = vpop.permute.xlu0 %4684 }
 0x7cc   :  { %v11859_v3 = vpop.f32.mrb[176].mxu1  ;;  %4884 = vrot.lane.b32.xlu1 %v4662_v4, %s18199_s6  ;;  %v15550_v38 = vpop.permute.xlu1 %4682 }
 0x7cd   :  { %v5112_v28 = vpop.f32.mrb[177].mxu1 }
 0x7ce   :  { %v11860_v39 = vpop.f32.mrb[178].mxu1  ;;  %4886 = vrot.lane.b32.xlu0 %v11835_v33, %s18199_s6 }
 0x7cf   :  { %v15538_v16 = vpack.c.bf16 %v11860_v39, %v11859_v3  ;;  %v5115_v23 = vpop.f32.mrb[179].mxu1 }
 0x7d0   :  { %v15540_v46 = vpack.c.bf16 %v5115_v23, %v5112_v28  ;;  %4888 = vrot.lane.b32.xlu1 %v11836_v13, %s18199_s6  ;;  %v4689_v5 = vpop.permute.xlu1 %4688 }
 0x7d2   :  { %11865 = vmatprep.subr.bf16.mxu0 %v15540_v46  ;;  %8026 = vperm.xlu0 %12567, %v10592_v30  }
 0x7d4   :  { %v11863_v53 = vpop.f32.mrb[180].mxu1  ;;  %8030 = vperm.xlu1 %12566, %v10593_v63  }
 0x7d5   :  { %v5128_v10 = vpop.f32.mrb[181].mxu1 }
 0x7d6   :  { %v11864_v21 = vpop.f32.mrb[182].mxu1  ;;  %8034 = vperm.xlu0 %12567, %v10594_v9  }
 0x7d7   :  { %v15560_v6 = vpack.c.bf16 %v11864_v21, %v11863_v53  ;;  %v5131_v0 = vpop.f32.mrb[183].mxu1 }
 0x7d8   :  { %v15562_v43 = vpack.c.bf16 %v5131_v0, %v5128_v10  ;;  %8038 = vperm.xlu1 %12566, %v10595_v62   ;;  %v15570_v59 = vpop.permute.xlu0 %4694  ;;  %v4901_v0 = vsel %vm359_vm5, %v15469_v29, %v4689_v5  ;;  %v4899_v5 = vsel %vm359_vm5, %v15471_v15, %v15558_v27 }
 0x7da   :  { %8042 = vperm.xlu0 %12567, %v10596_v18   ;;  %v15575_v45 = vpop.permute.xlu1 %4696 }
 0x7dc   :  { %8046 = vperm.xlu1 %12566, %v10597_v54   ;;  %v15580_v50 = vpop.permute.xlu0 %4690  ;;  %v4898_v54 = vsel %vm359_vm5, %v15467_v7, %v15550_v38 }
 0x7de   :  { %8050 = vperm.xlu0 %12567, %v10598_v44   ;;  %v15582_v34 = vpop.permute.xlu1 %4692 }
 0x7e0   :  { %8054 = vperm.xlu1 %12566, %v10599_v32   ;;  %v4900_v32 = vsel %vm359_vm5, %v15459_v48, %v15534_v40 }
 0x7e4   :  { %v4719_v55 = vpop.permute.xlu0 %4718 }
 0x7e5   :  { %v4908_v7 = vsel %vm130_vm2, %v4900_v32, %v4719_v55 }
 0x7e6   :  { %v4721_v49 = vpop.permute.xlu1 %4720 }
 0x7e7   :  { %v4909_v44 = vsel %vm130_vm2, %v4901_v0, %v4721_v49 }
 0x7e8   :  { %v4751_v17 = vpop.permute.xlu0 %4750 }
 0x7e9   :  { %v4917_v0 = vsel %vm4914_vm7, %v4908_v7, %v4751_v17 }
 0x7ea   :  { %v4753_v19 = vpop.permute.xlu1 %4752 }
 0x7eb   :  { %v4918_v22 = vsel %vm4914_vm7, %v4909_v44, %v4753_v19 }
 0x7ec   :  { %v4715_v12 = vpop.permute.xlu0 %4714 }
 0x7ed   :  { %v4906_v26 = vsel %vm130_vm2, %v4898_v54, %v4715_v12 }
 0x7ee   :  { %v4717_v20 = vpop.permute.xlu1 %4716 }
 0x7ef   :  { %v4907_v48 = vsel %vm130_vm2, %v4899_v5, %v4717_v20 }
 0x7f0   :  { %v4747_v51 = vpop.permute.xlu0 %4746 }
 0x7f1   :  { %v4915_v38 = vsel %vm4914_vm7, %v4906_v26, %v4747_v51 }
 0x7f2   :  { %v4749_v14 = vpop.permute.xlu1 %4748 }
 0x7f3   :  { %v4916_v54 = vsel %vm4914_vm7, %v4907_v48, %v4749_v14  ;;  %v4904_v48 = vsel %vm359_vm5, %v15477_v61, %v15570_v59  ;;  %v4905_v61 = vsel %vm359_vm5, %v15481_v42, %v15575_v45 }
 0x7f4   :  { %v15584_v2 = vpop.permute.xlu0 %4726 }
 0x7f6   :  { %v15586_v37 = vpop.permute.xlu1 %4728 }
 0x7f8   :  { %v15588_v1 = vpop.permute.xlu0 %4758 }
 0x7fa   :  { %v15590_v8 = vpop.permute.xlu1 %4760 }
 0x7fc   :  { %v15592_v24 = vpop.permute.xlu0 %4722 }
 0x7fe   :  { %v15594_v57 = vpop.permute.xlu1 %4724 }
 0x800   :  { %v15596_v60 = vpop.permute.xlu0 %4754 }
 0x802   :  { %v15598_v35 = vpop.permute.xlu1 %4756 }
 0x804   :  { %v4783_v11 = vpop.permute.xlu0 %4782 }
 0x805   :  { %v4926_v44 = vsel %vm4923_vm8, %v4917_v0, %v4783_v11  ;;  %v10337_v11 = vld [vmem:[%s18074_s13] ss:$0 sm:$0xff] }
 0x806   :  { %v4785_v58 = vpop.permute.xlu1 %4784 }
 0x807   :  { %v4927_v49 = vsel %vm4923_vm8, %v4918_v22, %v4785_v58 }
 0x808   :  { %v4815_v25 = vpop.permute.xlu0 %4814 }
 0x809   :  { %v4935_v26 = vsel %vm4932_vm9, %v4926_v44, %v4815_v25 }
 0x80a   :  { %v4817_v52 = vpop.permute.xlu1 %4816 }
 0x80b   :  { %v4936_v40 = vsel %vm4932_vm9, %v4927_v49, %v4817_v52  ;;  %v4903_v49 = vsel %vm359_vm5, %v15483_v47, %v15582_v34 }
 0x80c   :  { %v4779_v33 = vpop.permute.xlu0 %4778 }
 0x80d   :  { %v4924_v19 = vsel %vm4923_vm8, %v4915_v38, %v4779_v33 }
 0x80e   :  { %v4781_v41 = vpop.permute.xlu1 %4780 }
 0x80f   :  { %v4925_v22 = vsel %vm4923_vm8, %v4916_v54, %v4781_v41 }
 0x810   :  { %v4811_v13 = vpop.permute.xlu0 %4810 }
 0x811   :  { %v4933_v15 = vsel %vm4932_vm9, %v4924_v19, %v4811_v13 }
 0x812   :  { %v4813_v4 = vpop.permute.xlu1 %4812 }
 0x813   :  { %v4934_v51 = vsel %vm4932_vm9, %v4925_v22, %v4813_v4 }
 0x814   :  { %v15600_v3 = vpop.permute.xlu0 %4790 }
 0x816   :  { %v15602_v28 = vpop.permute.xlu1 %4792 }
 0x818   :  { %v15604_v39 = vpop.permute.xlu0 %4822 }
 0x81a   :  { %v15606_v23 = vpop.permute.xlu1 %4824 }
 0x81c   :  { %v15608_v30 = vpop.permute.xlu0 %4786 }
 0x81e   :  { %v15610_v63 = vpop.permute.xlu1 %4788 }
 0x820   :  { %v15612_v53 = vpop.permute.xlu0 %4818 }
 0x822   :  { %v15614_v9 = vpop.permute.xlu1 %4820 }
 0x824   :  { %v4847_v10 = vpop.permute.xlu0 %4846 }
 0x825   :  { %v4944_v58 = vsel %vm4941_vm10, %v4935_v26, %v4847_v10 }
 0x826   :  { %v4849_v21 = vpop.permute.xlu1 %4848 }
 0x827   :  { %v4945_v27 = vsel %vm4941_vm10, %v4936_v40, %v4849_v21 }
 0x828   :  { %v4879_v62 = vpop.permute.xlu0 %4878 }
 0x829   :  { %v4953_v52 = vsel %vm4950_vm11, %v4944_v58, %v4879_v62  ;;  %v4902_v62 = vsel %vm359_vm5, %v15479_v31, %v15580_v50  ;;  %v4911_v31 = vsel %vm130_vm2, %v4903_v49, %v15594_v57  ;;  %v4912_v57 = vsel %vm130_vm2, %v4904_v48, %v15584_v2  ;;  %v5219_v58 = vld [vmem:[%s18075_s18 + $0x8] sm:$0xff] }
 0x82a   :  { %v4881_v18 = vpop.permute.xlu1 %4880  ;;  %v4910_v7 = vsel %vm130_vm2, %v4902_v62, %v15592_v24  ;;  %v4920_v47 = vsel %vm4914_vm7, %v4911_v31, %v15598_v35  ;;  %v4921_v59 = vsel %vm4914_vm7, %v4912_v57, %v15588_v1  ;;  %v4913_v2 = vsel %vm130_vm2, %v4905_v61, %v15586_v37 }
 0x82b   :  { %v4954_v55 = vsel %vm4950_vm11, %v4945_v27, %v4881_v18  ;;  %v15660_v18 = vadd.f32 %v10337_v11, %v4953_v52  ;;  %v4919_v0 = vsel %vm4914_vm7, %v4910_v7, %v15596_v60  ;;  %v4929_v60 = vsel %vm4923_vm8, %v4920_v47, %v15610_v63  ;;  %v5212_v52 = vld [vmem:[%s18076_s17] sm:$0xff]  ;;  %v5214_v47 = vld [vmem:[%s18076_s17 + $0x10] sm:$0xff] }
 0x82c   :  { %v4843_v29 = vpop.permute.xlu0 %4842  ;;  %v15653_v41 = vadd.f32 %v10337_v11, %v4954_v55  ;;  %v4928_v50 = vsel %vm4923_vm8, %v4919_v0, %v15608_v30  ;;  %v4938_v35 = vsel %vm4932_vm9, %v4929_v60, %v15614_v9  ;;  %v4930_v63 = vsel %vm4923_vm8, %v4921_v59, %v15600_v3 }
 0x82d   :  { %v4942_v17 = vsel %vm4941_vm10, %v4933_v15, %v4843_v29  ;;  %v4937_v34 = vsel %vm4932_vm9, %v4928_v50, %v15612_v53  ;;  %v4922_v42 = vsel %vm4914_vm7, %v4913_v2, %v15590_v8  ;;  %v4939_v45 = vsel %vm4932_vm9, %v4930_v63, %v15604_v39 }
 0x82e   :  { %v4845_v12 = vpop.permute.xlu1 %4844  ;;  %v4979_v5 = vpack.c.bf16 %v15653_v41, %v15660_v18  ;;  %v4931_v37 = vsel %vm4923_vm8, %v4922_v42, %v15602_v28 }
 0x82f   :  { %v4943_v25 = vsel %vm4941_vm10, %v4934_v51, %v4845_v12  ;;  %v4940_v8 = vsel %vm4932_vm9, %v4931_v37, %v15606_v23  ;;  %v5218_v51 = vld [vmem:[%s18075_s18] sm:$0xff] }
 0x830   :  { %v4875_v20 = vpop.permute.xlu0 %4874  ;;  %v10364_v37 = vld [vmem:[%s18296_s10 + $0x120] sm:$0xff] }
 0x831   :  { %v4951_v14 = vsel %vm4950_vm11, %v4942_v17, %v4875_v20  ;;  %v18531_v17 = vld [vmem:[#allocation17_spill] sm:$0xff]  ;;  %v18532_v20 = vld [vmem:[#allocation16_spill] sm:$0xff] }
 0x832   :  { %v4877_v33 = vpop.permute.xlu1 %4876  ;;  %v15656_v21 = vadd.f32 %v10337_v11, %v4951_v14  ;;  %v5226_v14 = vpack.c.bf16 %v5219_v58, %v5218_v51 }
 0x833   :  { %v4952_v13 = vsel %vm4950_vm11, %v4943_v25, %v4877_v33  ;;  %v5213_v25 = vld [vmem:[%s18076_s17 + $0x8] sm:$0xff] }
 0x834   :  { %v15658_v4 = vadd.f32 %v10337_v11, %v4952_v13  ;;  %v4855_v10 = vpop.permute.xlu0 %4854  ;;  %11881 = vmatprep.subr.bf16.mxu1 %v5226_v14  ;;  %v5216_v33 = vpack.c.bf16 %v5213_v25, %v5212_v52  ;;  %v10360_v13 = vld [vmem:[%s18296_s10 + $0x100] sm:$0xff]  ;;  %v18535_v25 = vld [vmem:[#allocation5_spill] sm:$0xff] }
 0x835   :  { %v4948_v3 = vsel %vm4941_vm10, %v4939_v45, %v4855_v10  ;;  %11882 = vmatpush3.bf16.msra.mxu1 %v5226_v14  ;;  %v10361_v10 = vld [vmem:[%s18296_s10 + $0x108] sm:$0xff]  ;;  %v10371_v45 = vld [vmem:[%s18296_s10 + $0x158] sm:$0xff] }
 0x836   :  { %v4978_v32 = vpack.c.bf16 %v15658_v4, %v15656_v21  ;;  %v4857_v29 = vpop.permute.xlu1 %4856 }
 0x837   :  { %v4949_v39 = vsel %vm4941_vm10, %v4940_v8, %v4857_v29 }
 0x838   :  { %11841 = vmatprep.mubr.msk.bf16.mxu0 %vm82_vm0, %v4978_v32  ;;  %v4851_v38 = vpop.permute.xlu0 %4850  ;;  %v5450_v32 = vpack.c.bf16 %v10361_v10, %v10360_v13  ;;  %v18536_v13 = vld [vmem:[#allocation2_spill] sm:$0xff] }
 0x839   :  { %11842 = vmatmul.mubr.msk.bf16.vlgmr.msra.gmra.mrb[172].mxu0 %vm82_vm0, %v4979_v5  ;;  %v4946_v30 = vsel %vm4941_vm10, %v4937_v34, %v4851_v38  ;;  %v5215_v34 = vld [vmem:[%s18076_s17 + $0x18] sm:$0xff]  ;;  %s18733_s17 = smov 28  }
 0x83a   :  { %11866 = vmatpush3.bf16.msra.mxu0 %v15540_v46  ;;  %v4853_v24 = vpop.permute.xlu1 %4852 }
 0x83b   :  { %11867 = vmatprep.subr.bf16.mxu0 %v15538_v16  ;;  %v4947_v19 = vsel %vm4941_vm10, %v4938_v35, %v4853_v24 }
 0x83c   :  { %v4883_v40 = vpop.permute.xlu0 %4882 }
 0x83d   :  { %v4955_v53 = vsel %vm4950_vm11, %v4946_v30, %v4883_v40  ;;  %v5217_v40 = vpack.c.bf16 %v5215_v34, %v5214_v47 }
 0x83e   :  { %11868 = vmatpush3.bf16.msra.mxu0 %v15538_v16  ;;  %v4885_v12 = vpop.permute.xlu1 %4884  ;;  %v15719_v9 = vadd.f32 %v10337_v11, %v4955_v53 }
 0x83f   :  { %v4956_v1 = vsel %vm4950_vm11, %v4947_v19, %v4885_v12  ;;  %11869 = vmatprep.subr.bf16.mxu0 %v15562_v43  ;;  %v10368_v19 = vld [vmem:[%s18296_s10 + $0x140] sm:$0xff]  ;;  %v10369_v12 = vld [vmem:[%s18296_s10 + $0x148] sm:$0xff] }
 0x840   :  { %v15721_v54 = vadd.f32 %v10337_v11, %v4956_v1  ;;  %v4887_v44 = vpop.permute.xlu0 %4886  ;;  %v5454_v42 = vpack.c.bf16 %v10369_v12, %v10368_v19  ;;  %v18539_v12 = vld [vmem:[#allocation11_spill] sm:$0xff] }
 0x841   :  { %v4957_v15 = vsel %vm4950_vm11, %v4948_v3, %v4887_v44  ;;  %v10365_v3 = vld [vmem:[%s18296_s10 + $0x128] sm:$0xff]  ;;  %v10376_v44 = vld [vmem:[%s18296_s10 + $0x180] sm:$0xff] }
 0x842   :  { %v4980_v27 = vpack.c.bf16 %v15721_v54, %v15719_v9  ;;  %11870 = vmatpush3.bf16.msra.mxu0 %v15562_v43  ;;  %v4889_v28 = vpop.permute.xlu1 %4888  ;;  %v15732_v22 = vadd.f32 %v10337_v11, %v4957_v15  ;;  %v5452_v8 = vpack.c.bf16 %v10365_v3, %v10364_v37  ;;  %v10377_v15 = vld [vmem:[%s18296_s10 + $0x188] sm:$0xff] }
 0x843   :  { %v4958_v26 = vsel %vm4950_vm11, %v4949_v39, %v4889_v28  ;;  %11871 = vmatprep.subr.bf16.mxu0 %v15560_v6  ;;  %v5458_v39 = vpack.c.bf16 %v10377_v15, %v10376_v44  ;;  %v10375_v44 = vld [vmem:[%s18296_s10 + $0x178] sm:$0xff] }
 0x844   :  { %v15734_v55 = vadd.f32 %v10337_v11, %v4958_v26  ;;  %11845 = vmatprep.mubr.msk.bf16.mxu0 %vm82_vm0, %v4980_v27  ;;  %v10359_v27 = vld [vmem:[%s18077_s19] ss:$0 sm:$0xff]  ;;  %v10387_v15 = vld [vmem:[%s18296_s10 + $0x1d8] sm:$0xff] }
 0x846   :  { %v4981_v23 = vpack.c.bf16 %v15734_v55, %v15732_v22  ;;  %11872 = vmatpush3.bf16.msra.mxu0 %v15560_v6 }
 0x847   :  { %11905 = vmatprep.subr.bf16.mxu0 %v5450_v32 }
 0x848   :  { %11846 = vmatmul.mubr.msk.bf16.gmra.mrb[176].mxu0 %vm82_vm0, %v4981_v23 }
 0x849   :  { %11873 = vmatprep.mubr.msk.bf16.mxu0 %vm3289_vm6, %v18527_v56  ;;  %v5220_v56 = vld [vmem:[%s18075_s18 + $0x10] sm:$0xff] }
 0x850   :  { %11874 = vmatmul.mubr.msk.bf16.vlgmr.msra.gmra.mrb[180].mxu0 %vm3289_vm6, %v18528_v36  ;;  %v5221_v36 = vld [vmem:[%s18075_s18 + $0x18] sm:$0xff] }
 0x851   :  { %11877 = vmatprep.mubr.msk.bf16.mxu0 %vm3289_vm6, %v18531_v17  ;;  %v5227_v11 = vpack.c.bf16 %v5221_v36, %v5220_v56  ;;  %11906 = vmatpush3.bf16.msra.mxu0 %v5450_v32  ;;  %v10366_v32 = vld [vmem:[%s18296_s10 + $0x130] sm:$0xff] }
 0x853   :  { %11883 = vmatprep.subr.bf16.mxu1 %v5227_v11 }
 0x854   :  { %11884 = vmatpush3.bf16.msra.mxu1 %v5227_v11 }
 0x855   :  { %11893 = vmatprep.subr.bf16.mxu1 %v5216_v33 }
 0x858   :  { %11878 = vmatmul.mubr.msk.bf16.gmra.mrb[184].mxu0 %vm3289_vm6, %v18532_v20 }
 0x90c   :  { %v11843_v29 = vpop.f32.mrb[172].mxu0 }
 0x90d   :  { %v5037_v62 = vpop.f32.mrb[173].mxu0  ;;  %v18537_v29 = vld [vmem:[#allocation3_spill] sm:$0xff] }
 0x90e   :  { %v11844_v5 = vpop.f32.mrb[174].mxu0 }
 0x90f   :  { %v5039_v7 = vpop.f32.mrb[175].mxu0 }
 0x91b   :  { %v15773_v38 = vpop.f32.mrb[176].mxu0 }
 0x91c   :  { %18533 = vst [vmem:[#allocation63_spill] sm:$0xff] %v15773_v38  ;;  %v5049_v49 = vpop.f32.mrb[177].mxu0 }
 0x91d   :  { %v15775_v0 = vpop.f32.mrb[178].mxu0 }
 0x91e   :  { %18534 = vst [vmem:[#allocation65_spill] sm:$0xff] %v15775_v0  ;;  %v5051_v31 = vpop.f32.mrb[179].mxu0 }
 0x923   :  { %v11875_v50 = vpop.f32.mrb[180].mxu0 }
 0x924   :  { %v5181_v24 = vpop.f32.mrb[181].mxu0 }
 0x925   :  { %v11876_v48 = vpop.f32.mrb[182].mxu0 }
 0x926   :  { %v5223_v57 = vpack.c.bf16 %v11876_v48, %v11875_v50  ;;  %v5184_v60 = vpop.f32.mrb[183].mxu0 }
 0x927   :  { %v5222_v30 = vpack.c.bf16 %v5184_v60, %v5181_v24 }
 0x929   :  { %11885 = vmatprep.mubr.msk.bf16.mxu1 %vm82_vm0, %v5222_v30 }
 0x92a   :  { %11886 = vmatmul.mubr.msk.bf16.vlgmr.msra.gmra.mrb[184].mxu1 %vm82_vm0, %v5223_v57 }
 0x92b   :  { %v11879_v61 = vpop.f32.mrb[184].mxu0  ;;  %11894 = vmatpush3.bf16.msra.mxu1 %v5216_v33 }
 0x92c   :  { %v5197_v59 = vpop.f32.mrb[185].mxu0  ;;  %11895 = vmatprep.subr.bf16.mxu1 %v5217_v40 }
 0x92d   :  { %v11880_v35 = vpop.f32.mrb[186].mxu0 }
 0x92e   :  { %v5225_v53 = vpack.c.bf16 %v11880_v35, %v11879_v61  ;;  %v5200_v2 = vpop.f32.mrb[187].mxu0  ;;  %v10372_v61 = vld [vmem:[%s18296_s10 + $0x160] sm:$0xff] }
 0x92f   :  { %v5224_v63 = vpack.c.bf16 %v5200_v2, %v5197_v59  ;;  %11896 = vmatpush3.bf16.msra.mxu1 %v5217_v40  ;;  %v10373_v59 = vld [vmem:[%s18296_s10 + $0x168] sm:$0xff] }
 0x930   :  { %11929 = vmatprep.subr.bf16.mxu1 %v5454_v42  ;;  %v10385_v2 = vld [vmem:[%s18296_s10 + $0x1c8] sm:$0xff]  ;;  %v5456_v19 = vpack.c.bf16 %v10373_v59, %v10372_v61  ;;  %v10436_v59 = vld [vmem:[%s18310_s27 + $0x160] sm:$0xff] }
 0x931   :  { %11889 = vmatprep.mubr.msk.bf16.mxu1 %vm82_vm0, %v5224_v63 }
 0x932   :  { %11890 = vmatmul.mubr.msk.bf16.gmra.mrb[188].mxu1 %vm82_vm0, %v5225_v53 }
 0x933   :  { %11897 = vmatprep.mubr.msk.bf16.mxu1 %vm82_vm0, %v15540_v46  ;;  %v10363_v46 = vld [vmem:[%s18296_s10 + $0x118] sm:$0xff] }
 0x93a   :  { %11898 = vmatmul.mubr.msk.bf16.vlgmr.msra.gmra.mrb[184].mxu1 %vm82_vm0, %v15538_v16  ;;  %v10362_v16 = vld [vmem:[%s18296_s10 + $0x110] sm:$0xff] }
 0x93b   :  { %11901 = vmatprep.mubr.msk.bf16.mxu1 %vm82_vm0, %v15562_v43  ;;  %11930 = vmatpush3.bf16.msra.mxu1 %v5454_v42  ;;  %v10370_v43 = vld [vmem:[%s18296_s10 + $0x150] sm:$0xff] }
 0x93c   :  { %v5455_v1 = vpack.c.bf16 %v10371_v45, %v10370_v43  ;;  %v18541_v43 = vld [vmem:[#allocation9_spill] sm:$0xff]  ;;  %v18542_v45 = vld [vmem:[#allocation10_spill] sm:$0xff] }
 0x93e   :  { %11931 = vmatprep.subr.bf16.mxu1 %v5455_v1 }
 0x93f   :  { %11932 = vmatpush3.bf16.msra.mxu1 %v5455_v1 }
 0x940   :  { %11953 = vmatprep.subr.bf16.mxu1 %v5458_v39 }
 0x942   :  { %11902 = vmatmul.mubr.msk.bf16.gmra.mrb[188].mxu1 %vm82_vm0, %v15560_v6  ;;  %v5451_v6 = vpack.c.bf16 %v10363_v46, %v10362_v16  ;;  %v18540_v16 = vld [vmem:[#allocation8_spill] sm:$0xff] }
 0x944   :  { %11907 = vmatprep.subr.bf16.mxu0 %v5451_v6 }
 0x945   :  { %11908 = vmatpush3.bf16.msra.mxu0 %v5451_v6 }
 0x946   :  { %11917 = vmatprep.subr.bf16.mxu0 %v5452_v8 }
 0xa0d   :  { %v11899_v28 = vpop.f32.mrb[184].mxu1 }
 0xa0e   :  { %v5391_v26 = vadd.f32 %v11899_v28, %v10359_v27  ;;  %v5351_v23 = vpop.f32.mrb[185].mxu1  ;;  %v10380_v28 = vld [vmem:[%s18296_s10 + $0x1a0] sm:$0xff] }
 0xa0f   :  { %v5389_v17 = vadd.f32 %v10359_v27, %v5351_v23  ;;  %v11900_v20 = vpop.f32.mrb[186].mxu1  ;;  %v10424_v23 = vld [vmem:[%s18310_s27 + $0x100] sm:$0xff] }
 0xa10   :  { %v5399_v51 = vadd.f32 %v5391_v26, %v15660_v18  ;;  %v5392_v58 = vadd.f32 %v11900_v20, %v10359_v27  ;;  %v5354_v14 = vpop.f32.mrb[187].mxu1  ;;  %v18538_v18 = vld [vmem:[#allocation4_spill] sm:$0xff]  ;;  %v10381_v26 = vld [vmem:[%s18296_s10 + $0x1a8] sm:$0xff] }
 0xa11   :  { %v5397_v56 = vadd.f32 %v5389_v17, %v15656_v21  ;;  %v5390_v36 = vadd.f32 %v10359_v27, %v5354_v14  ;;  %v10367_v21 = vld [vmem:[%s18296_s10 + $0x138] sm:$0xff]  ;;  %v10425_v17 = vld [vmem:[%s18310_s27 + $0x108] sm:$0xff]  ;;  %v5460_v20 = vpack.c.bf16 %v10381_v26, %v10380_v28 }
 0xa12   :  { %v5400_v11 = vadd.f32 %v5392_v58, %v15653_v41  ;;  %v5407_v33 = vadd.f32 %v5399_v51, %v18535_v25  ;;  %v10378_v41 = vld [vmem:[%s18296_s10 + $0x190] sm:$0xff]  ;;  %v5453_v30 = vpack.c.bf16 %v10367_v21, %v10366_v32  ;;  %v6031_v51 = vpack.c.bf16 %v10425_v17, %v10424_v23  ;;  %v10383_v14 = vld [vmem:[%s18296_s10 + $0x1b8] sm:$0xff]  ;;  %v10388_v25 = vld [vmem:[%s18296_s10 + $0x1e0] sm:$0xff] }
 0xa13   :  { %v5398_v52 = vadd.f32 %v5390_v36, %v15658_v4  ;;  %v5405_v62 = vadd.f32 %v5397_v56, %v18537_v29  ;;  %v10379_v4 = vld [vmem:[%s18296_s10 + $0x198] sm:$0xff]  ;;  %v10382_v58 = vld [vmem:[%s18296_s10 + $0x1b0] sm:$0xff]  ;;  %v10452_v23 = vld [vmem:[%s18310_s27 + $0x1e0] sm:$0xff] }
 0xa14   :  { %v5408_v10 = vadd.f32 %v5400_v11, %v18536_v13  ;;  %v5459_v40 = vpack.c.bf16 %v10379_v4, %v10378_v41  ;;  %v10426_v56 = vld [vmem:[%s18310_s27 + $0x110] sm:$0xff]  ;;  %v10427_v36 = vld [vmem:[%s18310_s27 + $0x118] sm:$0xff]  ;;  %v5461_v11 = vpack.c.bf16 %v10383_v14, %v10382_v58  ;;  %v10432_v13 = vld [vmem:[%s18310_s27 + $0x140] sm:$0xff] }
 0xa15   :  { %v5406_v5 = vadd.f32 %v5398_v52, %v18538_v18  ;;  %v11903_v7 = vpop.f32.mrb[188].mxu1  ;;  %v6032_v52 = vpack.c.bf16 %v10427_v36, %v10426_v56  ;;  %v10391_v18 = vld [vmem:[%s18296_s10 + $0x1f8] sm:$0xff]  ;;  %v10428_v41 = vld [vmem:[%s18310_s27 + $0x120] sm:$0xff]  ;;  %v10429_v4 = vld [vmem:[%s18310_s27 + $0x128] sm:$0xff] }
 0xa16   :  { %v15848_v49 = vpack.c.bf16 %v5408_v10, %v5407_v33  ;;  %v5395_v31 = vadd.f32 %v11903_v7, %v10359_v27  ;;  %v5367_v50 = vpop.f32.mrb[189].mxu1  ;;  %v10389_v33 = vld [vmem:[%s18296_s10 + $0x1e8] sm:$0xff]  ;;  %v10435_v7 = vld [vmem:[%s18310_s27 + $0x158] sm:$0xff]  ;;  %v10454_v56 = vld [vmem:[%s18310_s27 + $0x1f0] sm:$0xff] }
 0xa17   :  { %v15850_v24 = vpack.c.bf16 %v5406_v5, %v5405_v62  ;;  %v5393_v48 = vadd.f32 %v10359_v27, %v5367_v50  ;;  %v11904_v47 = vpop.f32.mrb[190].mxu1  ;;  %v10433_v10 = vld [vmem:[%s18310_s27 + $0x148] sm:$0xff]  ;;  %v5464_v32 = vpack.c.bf16 %v10389_v33, %v10388_v25  ;;  %v10390_v62 = vld [vmem:[%s18296_s10 + $0x1f0] sm:$0xff]  ;;  %v6033_v50 = vpack.c.bf16 %v10429_v4, %v10428_v41  ;;  %v10455_v36 = vld [vmem:[%s18310_s27 + $0x1f8] sm:$0xff] }
 0xa18   :  { %v5403_v34 = vadd.f32 %v5395_v31, %v15732_v22  ;;  %v5396_v57 = vadd.f32 %v11904_v47, %v10359_v27  ;;  %v5370_v60 = vpop.f32.mrb[191].mxu1  ;;  %v10384_v22 = vld [vmem:[%s18296_s10 + $0x1c0] sm:$0xff]  ;;  %v6035_v29 = vpack.c.bf16 %v10433_v10, %v10432_v13  ;;  %v10434_v5 = vld [vmem:[%s18310_s27 + $0x150] sm:$0xff]  ;;  %v5465_v21 = vpack.c.bf16 %v10391_v18, %v10390_v62  ;;  %v10441_v47 = vld [vmem:[%s18310_s27 + $0x188] sm:$0xff] }
 0xa19   :  { %v5401_v35 = vadd.f32 %v5393_v48, %v15719_v9  ;;  %v5394_v53 = vadd.f32 %v10359_v27, %v5370_v60  ;;  %11909 = vmatprep.mubr.msk.bf16.mxu0 %vm82_vm0, %v15850_v24  ;;  %11933 = vmatprep.mubr.msk.bf16.mxu1 %vm82_vm0, %v15850_v24  ;;  %v5462_v6 = vpack.c.bf16 %v10385_v2, %v10384_v22  ;;  %v10440_v48 = vld [vmem:[%s18310_s27 + $0x180] sm:$0xff]  ;;  %v10431_v60 = vld [vmem:[%s18310_s27 + $0x138] sm:$0xff]  ;;  %v10453_v17 = vld [vmem:[%s18310_s27 + $0x1e8] sm:$0xff] }
 0xa1a   :  { %v5404_v63 = vadd.f32 %v5396_v57, %v15734_v55  ;;  %11910 = vmatmul.mubr.msk.bf16.vlgmr.msra.gmra.mrb[188].mxu0 %vm82_vm0, %v15848_v49  ;;  %11934 = vmatmul.mubr.msk.bf16.vlgmr.msra.gmra.mrb[192].mxu1 %vm82_vm0, %v15848_v49  ;;  %v5411_v42 = vadd.f32 %v5403_v34, %v18539_v12  ;;  %v6036_v31 = vpack.c.bf16 %v10435_v7, %v10434_v5  ;;  %v10430_v57 = vld [vmem:[%s18310_s27 + $0x130] sm:$0xff]  ;;  %v10448_v2 = vld [vmem:[%s18310_s27 + $0x1c0] sm:$0xff]  ;;  %v10439_v12 = vld [vmem:[%s18310_s27 + $0x178] sm:$0xff] }
 0xa1b   :  { %v5402_v9 = vadd.f32 %v5394_v53, %v15721_v54  ;;  %11918 = vmatpush3.bf16.msra.mxu0 %v5452_v8  ;;  %11954 = vmatpush3.bf16.msra.mxu1 %v5458_v39  ;;  %v5409_v55 = vadd.f32 %v5401_v35, %v18541_v43  ;;  %v10374_v54 = vld [vmem:[%s18296_s10 + $0x170] sm:$0xff]  ;;  %v6039_v34 = vpack.c.bf16 %v10441_v47, %v10440_v48  ;;  %v10437_v35 = vld [vmem:[%s18310_s27 + $0x168] sm:$0xff]  ;;  %v10444_v43 = vld [vmem:[%s18310_s27 + $0x1a0] sm:$0xff] }
 0xa1c   :  { %v5412_v46 = vadd.f32 %v5404_v63, %v18540_v16  ;;  %11919 = vmatprep.subr.bf16.mxu0 %v5453_v30  ;;  %11955 = vmatprep.subr.bf16.mxu1 %v5459_v40  ;;  %v10386_v8 = vld [vmem:[%s18296_s10 + $0x1d0] sm:$0xff]  ;;  %v5457_v39 = vpack.c.bf16 %v10375_v44, %v10374_v54  ;;  %v6034_v61 = vpack.c.bf16 %v10431_v60, %v10430_v57  ;;  %v10449_v63 = vld [vmem:[%s18310_s27 + $0x1c8] sm:$0xff]  ;;  %v10451_v16 = vld [vmem:[%s18310_s27 + $0x1d8] sm:$0xff] }
 0xa1d   :  { %v5410_v1 = vadd.f32 %v5402_v9, %v18542_v45  ;;  %v5463_v27 = vpack.c.bf16 %v10387_v15, %v10386_v8  ;;  %v6037_v22 = vpack.c.bf16 %v10437_v35, %v10436_v59  ;;  %v6043_v9 = vpack.c.bf16 %v10449_v63, %v10448_v2  ;;  %v10488_v45 = vld [vmem:[%s18068_s12 + $0x100] sm:$0xff]  ;;  %v10446_v8 = vld [vmem:[%s18310_s27 + $0x1b0] sm:$0xff]  ;;  %v10447_v15 = vld [vmem:[%s18310_s27 + $0x1b8] sm:$0xff] }
 0xa1e   :  { %v15880_v37 = vpack.c.bf16 %v5412_v46, %v5411_v42  ;;  %v10450_v42 = vld [vmem:[%s18310_s27 + $0x1d0] sm:$0xff]  ;;  %v6042_v28 = vpack.c.bf16 %v10447_v15, %v10446_v8  ;;  %v6045_v58 = vpack.c.bf16 %v10453_v17, %v10452_v23  ;;  %v6046_v25 = vpack.c.bf16 %v10455_v36, %v10454_v56  ;;  %v10492_v13 = vld [vmem:[%s18068_s12 + $0x120] sm:$0xff]  ;;  %v10493_v10 = vld [vmem:[%s18068_s12 + $0x128] sm:$0xff] }
 0xa1f   :  { %v15882_v3 = vpack.c.bf16 %v5410_v1, %v5409_v55  ;;  %11920 = vmatpush3.bf16.msra.mxu0 %v5453_v30  ;;  %11956 = vmatpush3.bf16.msra.mxu1 %v5459_v40  ;;  %v10442_v30 = vld [vmem:[%s18310_s27 + $0x190] sm:$0xff]  ;;  %v10443_v40 = vld [vmem:[%s18310_s27 + $0x198] sm:$0xff]  ;;  %v10445_v55 = vld [vmem:[%s18310_s27 + $0x1a8] sm:$0xff]  ;;  %v6602_v62 = vpack.c.bf16 %v10493_v10, %v10492_v13 }
 0xa20   :  { %11941 = vmatprep.subr.bf16.mxu0 %v5456_v19  ;;  %11977 = vmatprep.subr.bf16.mxu1 %v5462_v6  ;;  %v6040_v53 = vpack.c.bf16 %v10443_v40, %v10442_v30  ;;  %v10489_v1 = vld [vmem:[%s18068_s12 + $0x108] sm:$0xff]  ;;  %v6041_v54 = vpack.c.bf16 %v10445_v55, %v10444_v43  ;;  %v10494_v5 = vld [vmem:[%s18068_s12 + $0x130] sm:$0xff]  ;;  %v10495_v7 = vld [vmem:[%s18068_s12 + $0x138] sm:$0xff] }
 0xa21   :  { %11913 = vmatprep.mubr.msk.bf16.mxu0 %vm82_vm0, %v15882_v3  ;;  %11937 = vmatprep.mubr.msk.bf16.mxu1 %vm82_vm0, %v15882_v3  ;;  %v6600_v44 = vpack.c.bf16 %v10489_v1, %v10488_v45  ;;  %v10507_v41 = vld [vmem:[%s18068_s12 + $0x198] sm:$0xff]  ;;  %v6603_v4 = vpack.c.bf16 %v10495_v7, %v10494_v5  ;;  %v10501_v48 = vld [vmem:[%s18068_s12 + $0x168] sm:$0xff]  ;;  %v10512_v47 = vld [vmem:[%s18068_s12 + $0x1c0] sm:$0xff] }
 0xa22   :  { %11914 = vmatmul.mubr.msk.bf16.gmra.mrb[192].mxu0 %vm82_vm0, %v15880_v37  ;;  %11938 = vmatmul.mubr.msk.bf16.gmra.mrb[196].mxu1 %vm82_vm0, %v15880_v37  ;;  %v10502_v30 = vld [vmem:[%s18068_s12 + $0x170] sm:$0xff]  ;;  %v10503_v40 = vld [vmem:[%s18068_s12 + $0x178] sm:$0xff]  ;;  %v10509_v2 = vld [vmem:[%s18068_s12 + $0x1a8] sm:$0xff] }
 0xa23   :  { %11921 = vmatprep.mubr.msk.bf16.mxu0 %vm82_vm0, %v15850_v24  ;;  %11957 = vmatprep.mubr.msk.bf16.mxu1 %vm82_vm0, %v15850_v24  ;;  %v10515_v59 = vld [vmem:[%s18068_s12 + $0x1d8] sm:$0xff]  ;;  %v6607_v35 = vpack.c.bf16 %v10503_v40, %v10502_v30 }
 0xa24   :  { %v10519_v43 = vld [vmem:[%s18068_s12 + $0x1f8] sm:$0xff] }
 0xa2a   :  { %11922 = vmatmul.mubr.msk.bf16.vlgmr.msra.gmra.mrb[196].mxu0 %vm82_vm0, %v15848_v49  ;;  %11958 = vmatmul.mubr.msk.bf16.vlgmr.msra.gmra.mrb[200].mxu1 %vm82_vm0, %v15848_v49 }
 0xa2b   :  { %11925 = vmatprep.mubr.msk.bf16.mxu0 %vm82_vm0, %v15882_v3  ;;  %11942 = vmatpush3.bf16.msra.mxu0 %v5456_v19  ;;  %v10438_v19 = vld [vmem:[%s18310_s27 + $0x170] sm:$0xff] }
 0xa2c   :  { %11961 = vmatprep.mubr.msk.bf16.mxu1 %vm82_vm0, %v15882_v3  ;;  %11978 = vmatpush3.bf16.msra.mxu1 %v5462_v6  ;;  %v6038_v46 = vpack.c.bf16 %v10439_v12, %v10438_v19  ;;  %v6044_v6 = vpack.c.bf16 %v10451_v16, %v10450_v42  ;;  %v10511_v19 = vld [vmem:[%s18068_s12 + $0x1b8] sm:$0xff]  ;;  %v10516_v42 = vld [vmem:[%s18068_s12 + $0x1e0] sm:$0xff]  ;;  %v10517_v16 = vld [vmem:[%s18068_s12 + $0x1e8] sm:$0xff] }
 0xa2d   :  { %11943 = vmatprep.subr.bf16.mxu0 %v5457_v39  ;;  %11979 = vmatprep.subr.bf16.mxu1 %v5463_v27 }
 0xa2f   :  { %11944 = vmatpush3.bf16.msra.mxu0 %v5457_v39  ;;  %v10490_v39 = vld [vmem:[%s18068_s12 + $0x110] sm:$0xff] }
 0xa30   :  { %11980 = vmatpush3.bf16.msra.mxu1 %v5463_v27  ;;  %11965 = vmatprep.subr.bf16.mxu0 %v5460_v20  ;;  %v10491_v27 = vld [vmem:[%s18068_s12 + $0x118] sm:$0xff] }
 0xa31   :  { %12001 = vmatprep.subr.bf16.mxu1 %v6031_v51  ;;  %v6601_v26 = vpack.c.bf16 %v10491_v27, %v10490_v39 }
 0xa32   :  { %11926 = vmatmul.mubr.msk.bf16.gmra.mrb[200].mxu0 %vm82_vm0, %v15880_v37  ;;  %11962 = vmatmul.mubr.msk.bf16.gmra.mrb[204].mxu1 %vm82_vm0, %v15880_v37 }
 0xa33   :  { %11945 = vmatprep.mubr.msk.bf16.mxu0 %vm82_vm0, %v15850_v24  ;;  %11981 = vmatprep.mubr.msk.bf16.mxu1 %vm82_vm0, %v15850_v24 }
 0xa3a   :  { %11946 = vmatmul.mubr.msk.bf16.vlgmr.msra.gmra.mrb[204].mxu0 %vm82_vm0, %v15848_v49  ;;  %11982 = vmatmul.mubr.msk.bf16.vlgmr.msra.gmra.mrb[208].mxu1 %vm82_vm0, %v15848_v49 }
 0xa3b   :  { %11949 = vmatprep.mubr.msk.bf16.mxu0 %vm82_vm0, %v15882_v3  ;;  %11966 = vmatpush3.bf16.msra.mxu0 %v5460_v20  ;;  %v10496_v20 = vld [vmem:[%s18068_s12 + $0x140] sm:$0xff] }
 0xa3c   :  { %11985 = vmatprep.mubr.msk.bf16.mxu1 %vm82_vm0, %v15882_v3  ;;  %12002 = vmatpush3.bf16.msra.mxu1 %v6031_v51  ;;  %v10497_v51 = vld [vmem:[%s18068_s12 + $0x148] sm:$0xff] }
 0xa3d   :  { %11967 = vmatprep.subr.bf16.mxu0 %v5461_v11  ;;  %12003 = vmatprep.subr.bf16.mxu1 %v6032_v52  ;;  %v6604_v14 = vpack.c.bf16 %v10497_v51, %v10496_v20 }
 0xa3f   :  { %11968 = vmatpush3.bf16.msra.mxu0 %v5461_v11  ;;  %v10498_v11 = vld [vmem:[%s18068_s12 + $0x150] sm:$0xff] }
 0xa40   :  { %12004 = vmatpush3.bf16.msra.mxu1 %v6032_v52  ;;  %11989 = vmatprep.subr.bf16.mxu0 %v5464_v32  ;;  %v10499_v52 = vld [vmem:[%s18068_s12 + $0x158] sm:$0xff] }
 0xa41   :  { %12025 = vmatprep.subr.bf16.mxu1 %v6035_v29  ;;  %v6605_v33 = vpack.c.bf16 %v10499_v52, %v10498_v11 }
 0xa42   :  { %11950 = vmatmul.mubr.msk.bf16.gmra.mrb[208].mxu0 %vm82_vm0, %v15880_v37  ;;  %11986 = vmatmul.mubr.msk.bf16.gmra.mrb[212].mxu1 %vm82_vm0, %v15880_v37 }
 0xa43   :  { %11969 = vmatprep.mubr.msk.bf16.mxu0 %vm82_vm0, %v15850_v24  ;;  %12005 = vmatprep.mubr.msk.bf16.mxu1 %vm82_vm0, %v15850_v24 }
 0xa4a   :  { %11970 = vmatmul.mubr.msk.bf16.vlgmr.msra.gmra.mrb[212].mxu0 %vm82_vm0, %v15848_v49  ;;  %12006 = vmatmul.mubr.msk.bf16.vlgmr.msra.gmra.mrb[216].mxu1 %vm82_vm0, %v15848_v49 }
 0xa4b   :  { %11973 = vmatprep.mubr.msk.bf16.mxu0 %vm82_vm0, %v15882_v3  ;;  %11990 = vmatpush3.bf16.msra.mxu0 %v5464_v32  ;;  %v10504_v32 = vld [vmem:[%s18068_s12 + $0x180] sm:$0xff] }
 0xa4c   :  { %12009 = vmatprep.mubr.msk.bf16.mxu1 %vm82_vm0, %v15882_v3  ;;  %11991 = vmatprep.subr.bf16.mxu0 %v5465_v21 }
 0xa4d   :  { %12026 = vmatpush3.bf16.msra.mxu1 %v6035_v29  ;;  %v10505_v29 = vld [vmem:[%s18068_s12 + $0x188] sm:$0xff] }
 0xa4e   :  { %12027 = vmatprep.subr.bf16.mxu1 %v6036_v31  ;;  %v6608_v18 = vpack.c.bf16 %v10505_v29, %v10504_v32 }
 0xa4f   :  { %11992 = vmatpush3.bf16.msra.mxu0 %v5465_v21  ;;  %v10506_v21 = vld [vmem:[%s18068_s12 + $0x190] sm:$0xff] }
 0xa50   :  { %12013 = vmatprep.subr.bf16.mxu0 %v6033_v50 }
 0xa51   :  { %12028 = vmatpush3.bf16.msra.mxu1 %v6036_v31  ;;  %v6609_v31 = vpack.c.bf16 %v10507_v41, %v10506_v21 }
 0xa52   :  { %11974 = vmatmul.mubr.msk.bf16.gmra.mrb[216].mxu0 %vm82_vm0, %v15880_v37  ;;  %12010 = vmatmul.mubr.msk.bf16.gmra.mrb[220].mxu1 %vm82_vm0, %v15880_v37 }
 0xa53   :  { %11993 = vmatprep.mubr.msk.bf16.mxu0 %vm82_vm0, %v15850_v24  ;;  %12029 = vmatprep.mubr.msk.bf16.mxu1 %vm82_vm0, %v15850_v24 }
 0xa54   :  { %12049 = vmatprep.subr.bf16.mxu1 %v6039_v34 }
 0xa5a   :  { %11994 = vmatmul.mubr.msk.bf16.vlgmr.msra.gmra.mrb[220].mxu0 %vm82_vm0, %v15848_v49  ;;  %12030 = vmatmul.mubr.msk.bf16.vlgmr.msra.gmra.mrb[224].mxu1 %vm82_vm0, %v15848_v49 }
 0xa5b   :  { %11997 = vmatprep.mubr.msk.bf16.mxu0 %vm82_vm0, %v15882_v3  ;;  %12014 = vmatpush3.bf16.msra.mxu0 %v6033_v50  ;;  %v10500_v50 = vld [vmem:[%s18068_s12 + $0x160] sm:$0xff] }
 0xa5c   :  { %12033 = vmatprep.mubr.msk.bf16.mxu1 %vm82_vm0, %v15882_v3  ;;  %12015 = vmatprep.subr.bf16.mxu0 %v6034_v61  ;;  %v6606_v57 = vpack.c.bf16 %v10501_v48, %v10500_v50 }
 0xa5d   :  { %12050 = vmatpush3.bf16.msra.mxu1 %v6039_v34  ;;  %v10513_v34 = vld [vmem:[%s18068_s12 + $0x1c8] sm:$0xff] }
 0xa5e   :  { %12051 = vmatprep.subr.bf16.mxu1 %v6040_v53  ;;  %v6612_v60 = vpack.c.bf16 %v10513_v34, %v10512_v47 }
 0xa5f   :  { %12016 = vmatpush3.bf16.msra.mxu0 %v6034_v61  ;;  %v10514_v61 = vld [vmem:[%s18068_s12 + $0x1d0] sm:$0xff] }
 0xa60   :  { %12037 = vmatprep.subr.bf16.mxu0 %v6037_v22 }
 0xa61   :  { %12052 = vmatpush3.bf16.msra.mxu1 %v6040_v53  ;;  %v6613_v53 = vpack.c.bf16 %v10515_v59, %v10514_v61 }
 0xa62   :  { %11998 = vmatmul.mubr.msk.bf16.gmra.mrb[224].mxu0 %vm82_vm0, %v15880_v37  ;;  %12034 = vmatmul.mubr.msk.bf16.gmra.mrb[228].mxu1 %vm82_vm0, %v15880_v37 }
 0xa63   :  { %12017 = vmatprep.mubr.msk.bf16.mxu0 %vm82_vm0, %v15850_v24  ;;  %12053 = vmatprep.mubr.msk.bf16.mxu1 %vm82_vm0, %v15850_v24 }
 0xa64   :  { %12073 = vmatprep.subr.bf16.mxu1 %v6043_v9 }
 0xa6a   :  { %12018 = vmatmul.mubr.msk.bf16.vlgmr.msra.gmra.mrb[228].mxu0 %vm82_vm0, %v15848_v49  ;;  %12054 = vmatmul.mubr.msk.bf16.vlgmr.msra.gmra.mrb[232].mxu1 %vm82_vm0, %v15848_v49 }
 0xa6b   :  { %12021 = vmatprep.mubr.msk.bf16.mxu0 %vm82_vm0, %v15882_v3  ;;  %12057 = vmatprep.mubr.msk.bf16.mxu1 %vm82_vm0, %v15882_v3 }
 0xa6c   :  { %12038 = vmatpush3.bf16.msra.mxu0 %v6037_v22  ;;  %12074 = vmatpush3.bf16.msra.mxu1 %v6043_v9  ;;  %v10508_v22 = vld [vmem:[%s18068_s12 + $0x1a0] sm:$0xff]  ;;  %v10510_v9 = vld [vmem:[%s18068_s12 + $0x1b0] sm:$0xff] }
 0xa6d   :  { %12039 = vmatprep.subr.bf16.mxu0 %v6038_v46  ;;  %12075 = vmatprep.subr.bf16.mxu1 %v6044_v6  ;;  %v6610_v63 = vpack.c.bf16 %v10509_v2, %v10508_v22  ;;  %v6611_v12 = vpack.c.bf16 %v10511_v19, %v10510_v9 }
 0xa70   :  { %12040 = vmatpush3.bf16.msra.mxu0 %v6038_v46  ;;  %12076 = vmatpush3.bf16.msra.mxu1 %v6044_v6  ;;  %v6614_v46 = vpack.c.bf16 %v10517_v16, %v10516_v42  ;;  %v10518_v6 = vld [vmem:[%s18068_s12 + $0x1f0] sm:$0xff] }
 0xa71   :  { %12061 = vmatprep.subr.bf16.mxu0 %v6041_v54  ;;  %12097 = vmatprep.subr.bf16.mxu1 %v6600_v44  ;;  %v6615_v55 = vpack.c.bf16 %v10519_v43, %v10518_v6 }
 0xa72   :  { %12022 = vmatmul.mubr.msk.bf16.gmra.mrb[232].mxu0 %vm82_vm0, %v15880_v37  ;;  %12058 = vmatmul.mubr.msk.bf16.gmra.mrb[236].mxu1 %vm82_vm0, %v15880_v37 }
 0xa73   :  { %12041 = vmatprep.mubr.msk.bf16.mxu0 %vm82_vm0, %v15850_v24  ;;  %12077 = vmatprep.mubr.msk.bf16.mxu1 %vm82_vm0, %v15850_v24 }
 0xa7a   :  { %12042 = vmatmul.mubr.msk.bf16.vlgmr.msra.gmra.mrb[236].mxu0 %vm82_vm0, %v15848_v49  ;;  %12078 = vmatmul.mubr.msk.bf16.vlgmr.msra.gmra.mrb[240].mxu1 %vm82_vm0, %v15848_v49 }
 0xa7b   :  { %12045 = vmatprep.mubr.msk.bf16.mxu0 %vm82_vm0, %v15882_v3  ;;  %12081 = vmatprep.mubr.msk.bf16.mxu1 %vm82_vm0, %v15882_v3 }
 0xa7c   :  { %12062 = vmatpush3.bf16.msra.mxu0 %v6041_v54  ;;  %12098 = vmatpush3.bf16.msra.mxu1 %v6600_v44 }
 0xa7d   :  { %12063 = vmatprep.subr.bf16.mxu0 %v6042_v28  ;;  %12099 = vmatprep.subr.bf16.mxu1 %v6601_v26 }
 0xa80   :  { %12064 = vmatpush3.bf16.msra.mxu0 %v6042_v28  ;;  %12100 = vmatpush3.bf16.msra.mxu1 %v6601_v26 }
 0xa81   :  { %12085 = vmatprep.subr.bf16.mxu0 %v6045_v58  ;;  %12121 = vmatprep.subr.bf16.mxu1 %v6604_v14 }
 0xa82   :  { %12046 = vmatmul.mubr.msk.bf16.gmra.mrb[240].mxu0 %vm82_vm0, %v15880_v37  ;;  %12082 = vmatmul.mubr.msk.bf16.gmra.mrb[244].mxu1 %vm82_vm0, %v15880_v37 }
 0xa83   :  { %12065 = vmatprep.mubr.msk.bf16.mxu0 %vm82_vm0, %v15850_v24  ;;  %12101 = vmatprep.mubr.msk.bf16.mxu1 %vm82_vm0, %v15850_v24 }
 0xa8a   :  { %12066 = vmatmul.mubr.msk.bf16.vlgmr.msra.gmra.mrb[244].mxu0 %vm82_vm0, %v15848_v49  ;;  %12102 = vmatmul.mubr.msk.bf16.vlgmr.msra.gmra.mrb[248].mxu1 %vm82_vm0, %v15848_v49 }
 0xa8b   :  { %12069 = vmatprep.mubr.msk.bf16.mxu0 %vm82_vm0, %v15882_v3  ;;  %12105 = vmatprep.mubr.msk.bf16.mxu1 %vm82_vm0, %v15882_v3 }
 0xa8c   :  { %12086 = vmatpush3.bf16.msra.mxu0 %v6045_v58  ;;  %12122 = vmatpush3.bf16.msra.mxu1 %v6604_v14 }
 0xa8d   :  { %12087 = vmatprep.subr.bf16.mxu0 %v6046_v25  ;;  %12123 = vmatprep.subr.bf16.mxu1 %v6605_v33 }
 0xa90   :  { %12088 = vmatpush3.bf16.msra.mxu0 %v6046_v25  ;;  %12124 = vmatpush3.bf16.msra.mxu1 %v6605_v33 }
 0xa91   :  { %12109 = vmatprep.subr.bf16.mxu0 %v6602_v62  ;;  %12145 = vmatprep.subr.bf16.mxu1 %v6608_v18 }
 0xa92   :  { %12070 = vmatmul.mubr.msk.bf16.gmra.mrb[248].mxu0 %vm82_vm0, %v15880_v37  ;;  %12106 = vmatmul.mubr.msk.bf16.gmra.mrb[252].mxu1 %vm82_vm0, %v15880_v37 }
 0xa93   :  { %12089 = vmatprep.mubr.msk.bf16.mxu0 %vm82_vm0, %v15850_v24  ;;  %12125 = vmatprep.mubr.msk.bf16.mxu1 %vm82_vm0, %v15850_v24 }
 0xa9a   :  { %12090 = vmatmul.mubr.msk.bf16.vlgmr.msra.gmra.mrb[252].mxu0 %vm82_vm0, %v15848_v49  ;;  %12126 = vmatmul.mubr.msk.bf16.vlgmr.msra.gmra.mrb[0].mxu1 %vm82_vm0, %v15848_v49 }
 0xa9b   :  { %12093 = vmatprep.mubr.msk.bf16.mxu0 %vm82_vm0, %v15882_v3  ;;  %12129 = vmatprep.mubr.msk.bf16.mxu1 %vm82_vm0, %v15882_v3 }
 0xa9c   :  { %12110 = vmatpush3.bf16.msra.mxu0 %v6602_v62  ;;  %12146 = vmatpush3.bf16.msra.mxu1 %v6608_v18 }
 0xa9d   :  { %12111 = vmatprep.subr.bf16.mxu0 %v6603_v4  ;;  %12147 = vmatprep.subr.bf16.mxu1 %v6609_v31 }
 0xaa0   :  { %12112 = vmatpush3.bf16.msra.mxu0 %v6603_v4  ;;  %12148 = vmatpush3.bf16.msra.mxu1 %v6609_v31 }
 0xaa1   :  { %12133 = vmatprep.subr.bf16.mxu0 %v6606_v57  ;;  %12169 = vmatprep.subr.bf16.mxu1 %v6612_v60 }
 0xaa2   :  { %12094 = vmatmul.mubr.msk.bf16.gmra.mrb[0].mxu0 %vm82_vm0, %v15880_v37  ;;  %12130 = vmatmul.mubr.msk.bf16.gmra.mrb[4].mxu1 %vm82_vm0, %v15880_v37 }
 0xaa3   :  { %12113 = vmatprep.mubr.msk.bf16.mxu0 %vm82_vm0, %v15850_v24  ;;  %12149 = vmatprep.mubr.msk.bf16.mxu1 %vm82_vm0, %v15850_v24 }
 0xaaa   :  { %12114 = vmatmul.mubr.msk.bf16.vlgmr.msra.gmra.mrb[4].mxu0 %vm82_vm0, %v15848_v49  ;;  %12150 = vmatmul.mubr.msk.bf16.vlgmr.msra.gmra.mrb[8].mxu1 %vm82_vm0, %v15848_v49 }
 0xaab   :  { %12117 = vmatprep.mubr.msk.bf16.mxu0 %vm82_vm0, %v15882_v3  ;;  %12153 = vmatprep.mubr.msk.bf16.mxu1 %vm82_vm0, %v15882_v3 }
 0xaac   :  { %12134 = vmatpush3.bf16.msra.mxu0 %v6606_v57  ;;  %12170 = vmatpush3.bf16.msra.mxu1 %v6612_v60 }
 0xaad   :  { %12135 = vmatprep.subr.bf16.mxu0 %v6607_v35  ;;  %12171 = vmatprep.subr.bf16.mxu1 %v6613_v53 }
 0xab0   :  { %12136 = vmatpush3.bf16.msra.mxu0 %v6607_v35  ;;  %12172 = vmatpush3.bf16.msra.mxu1 %v6613_v53 }
 0xab1   :  { %12157 = vmatprep.subr.bf16.mxu0 %v6610_v63 }
 0xab2   :  { %12118 = vmatmul.mubr.msk.bf16.gmra.mrb[8].mxu0 %vm82_vm0, %v15880_v37  ;;  %12154 = vmatmul.mubr.msk.bf16.gmra.mrb[12].mxu1 %vm82_vm0, %v15880_v37 }
 0xab3   :  { %12137 = vmatprep.mubr.msk.bf16.mxu0 %vm82_vm0, %v15850_v24  ;;  %12173 = vmatprep.mubr.msk.bf16.mxu1 %vm82_vm0, %v15850_v24 }
 0xaba   :  { %12138 = vmatmul.mubr.msk.bf16.vlgmr.msra.gmra.mrb[12].mxu0 %vm82_vm0, %v15848_v49  ;;  %12174 = vmatmul.mubr.msk.bf16.vlgmr.msra.gmra.mrb[16].mxu1 %vm82_vm0, %v15848_v49 }
 0xabb   :  { %12141 = vmatprep.mubr.msk.bf16.mxu0 %vm82_vm0, %v15882_v3  ;;  %12177 = vmatprep.mubr.msk.bf16.mxu1 %vm82_vm0, %v15882_v3 }
 0xabc   :  { %12158 = vmatpush3.bf16.msra.mxu0 %v6610_v63 }
 0xabd   :  { %12159 = vmatprep.subr.bf16.mxu0 %v6611_v12 }
 0xac0   :  { %12160 = vmatpush3.bf16.msra.mxu0 %v6611_v12 }
 0xac1   :  { %12181 = vmatprep.subr.bf16.mxu0 %v6614_v46 }
 0xac2   :  { %12142 = vmatmul.mubr.msk.bf16.gmra.mrb[16].mxu0 %vm82_vm0, %v15880_v37  ;;  %12178 = vmatmul.mubr.msk.bf16.gmra.mrb[20].mxu1 %vm82_vm0, %v15880_v37 }
 0xac3   :  { %12161 = vmatprep.mubr.msk.bf16.mxu0 %vm82_vm0, %v15850_v24 }
 0xaca   :  { %12162 = vmatmul.mubr.msk.bf16.vlgmr.msra.gmra.mrb[20].mxu0 %vm82_vm0, %v15848_v49 }
 0xacb   :  { %12165 = vmatprep.mubr.msk.bf16.mxu0 %vm82_vm0, %v15882_v3  ;;  %12182 = vmatpush3.bf16.msra.mxu0 %v6614_v46 }
 0xacc   :  { %12183 = vmatprep.subr.bf16.mxu0 %v6615_v55 }
 0xacf   :  { %12184 = vmatpush3.bf16.msra.mxu0 %v6615_v55 }
 0xad2   :  { %12166 = vmatmul.mubr.msk.bf16.gmra.mrb[24].mxu0 %vm82_vm0, %v15880_v37 }
 0xad3   :  { %12185 = vmatprep.mubr.msk.bf16.mxu0 %vm82_vm0, %v15850_v24 }
 0xada   :  { %12186 = vmatmul.mubr.msk.bf16.vlgmr.msra.gmra.mrb[28].mxu0 %vm82_vm0, %v15848_v49 }
 0xadb   :  { %12189 = vmatprep.mubr.msk.bf16.mxu0 %vm82_vm0, %v15882_v3 }
 0xae2   :  { %12190 = vmatmul.mubr.msk.bf16.gmra.mrb[32].mxu0 %vm82_vm0, %v15880_v37 }
 0xaed   :  { %v16296_v45 = vpop.f32.mrb[188].mxu0  ;;  %v16298_v1 = vpop.f32.mrb[192].mxu1 }
 0xaee   :  { %v5512_v54 = vpop.f32.mrb[189].mxu0  ;;  %v16300_v44 = vpop.f32.mrb[193].mxu1 }
 0xaef   :  { %v16302_v8 = vpop.f32.mrb[190].mxu0  ;;  %v16304_v15 = vpop.f32.mrb[194].mxu1 }
 0xaf0   :  { %v5515_v3 = vpop.f32.mrb[191].mxu0  ;;  %v16310_v39 = vpop.f32.mrb[195].mxu1 }
 0xaf1   :  { %v7136_v37 = vpack.c.bf16 %v5515_v3, %v5512_v54 }
 0xaf3   :  { %12201 = vmatprep.mubr.msk.bf16.mxu1 %vm359_vm5, %v7136_v37 }
 0xaf5   :  { %v16315_v28 = vpop.f32.mrb[192].mxu0  ;;  %v16317_v26 = vpop.f32.mrb[196].mxu1 }
 0xaf6   :  { %v16319_v23 = vpop.f32.mrb[193].mxu0  ;;  %v16321_v17 = vpop.f32.mrb[197].mxu1 }
 0xaf7   :  { %v16323_v20 = vpop.f32.mrb[194].mxu0  ;;  %v16325_v51 = vpop.f32.mrb[198].mxu1 }
 0xaf8   :  { %v16331_v56 = vpop.f32.mrb[195].mxu0  ;;  %v16333_v36 = vpop.f32.mrb[199].mxu1 }
 0xafd   :  { %v16339_v25 = vpop.f32.mrb[196].mxu0  ;;  %v16341_v33 = vpop.f32.mrb[200].mxu1 }
 0xafe   :  { %v5577_v13 = vpop.f32.mrb[197].mxu0  ;;  %v16343_v10 = vpop.f32.mrb[201].mxu1 }
 0xaff   :  { %v16345_v32 = vpop.f32.mrb[198].mxu0  ;;  %v16347_v29 = vpop.f32.mrb[202].mxu1 }
 0xb00   :  { %v5580_v5 = vpop.f32.mrb[199].mxu0  ;;  %v16353_v7 = vpop.f32.mrb[203].mxu1 }
 0xb01   :  { %v7140_v21 = vpack.c.bf16 %v5580_v5, %v5577_v13 }
 0xb03   :  { %12217 = vmatprep.mubr.msk.bf16.mxu0 %vm359_vm5, %v7140_v21 }
 0xb05   :  { %v16358_v4 = vpop.f32.mrb[200].mxu0  ;;  %v16360_v31 = vpop.f32.mrb[204].mxu1 }
 0xb06   :  { %v16362_v50 = vpop.f32.mrb[201].mxu0  ;;  %v16364_v48 = vpop.f32.mrb[205].mxu1 }
 0xb07   :  { %v16366_v47 = vpop.f32.mrb[202].mxu0  ;;  %v16368_v34 = vpop.f32.mrb[206].mxu1 }
 0xb08   :  { %v16374_v30 = vpop.f32.mrb[203].mxu0  ;;  %v16376_v40 = vpop.f32.mrb[207].mxu1 }
 0xb0d   :  { %v16382_v35 = vpop.f32.mrb[204].mxu0  ;;  %v16384_v53 = vpop.f32.mrb[208].mxu1 }
 0xb0e   :  { %18543 = vst [vmem:[#allocation66_spill] sm:$0xff] %v16384_v53  ;;  %v16386_v22 = vpop.f32.mrb[205].mxu0  ;;  %v16388_v2 = vpop.f32.mrb[209].mxu1 }
 0xb0f   :  { %v16390_v63 = vpop.f32.mrb[206].mxu0  ;;  %v16392_v9 = vpop.f32.mrb[210].mxu1 }
 0xb10   :  { %18544 = vst [vmem:[#allocation38_spill] sm:$0xff] %v16392_v9  ;;  %v16398_v42 = vpop.f32.mrb[207].mxu0  ;;  %v16400_v16 = vpop.f32.mrb[211].mxu1 }
 0xb15   :  { %v16406_v43 = vpop.f32.mrb[208].mxu0  ;;  %v16408_v55 = vpop.f32.mrb[212].mxu1 }
 0xb16   :  { %18545 = vst [vmem:[#allocation36_spill] sm:$0xff] %v16408_v55  ;;  %v16410_v54 = vpop.f32.mrb[209].mxu0  ;;  %v16412_v3 = vpop.f32.mrb[213].mxu1 }
 0xb17   :  { %18546 = vst [vmem:[#allocation39_spill] sm:$0xff] %v16412_v3  ;;  %v16414_v37 = vpop.f32.mrb[210].mxu0  ;;  %v16416_v13 = vpop.f32.mrb[214].mxu1 }
 0xb18   :  { %18547 = vst [vmem:[#allocation42_spill] sm:$0xff] %v16416_v13  ;;  %v16422_v12 = vpop.f32.mrb[211].mxu0  ;;  %v16424_v6 = vpop.f32.mrb[215].mxu1 }
 0xb19   :  { %18548 = vst [vmem:[#allocation37_spill] sm:$0xff] %v16424_v6 }
 0xb1d   :  { %v16430_v18 = vpop.f32.mrb[212].mxu0  ;;  %v12007_v19 = vpop.f32.mrb[216].mxu1 }
 0xb1e   :  { %18549 = vst [vmem:[#allocation40_spill] sm:$0xff] %v16430_v18  ;;  %v16432_v41 = vpop.f32.mrb[213].mxu0  ;;  %v6081_v46 = vpop.f32.mrb[217].mxu1 }
 0xb1f   :  { %v16434_v5 = vpop.f32.mrb[214].mxu0  ;;  %v12008_v14 = vpop.f32.mrb[218].mxu1 }
 0xb20   :  { %v7169_v57 = vpack.c.bf16 %v12008_v14, %v12007_v19  ;;  %v16438_v52 = vpop.f32.mrb[215].mxu0  ;;  %v6084_v61 = vpop.f32.mrb[219].mxu1 }
 0xb21   :  { %v7168_v59 = vpack.c.bf16 %v6084_v61, %v6081_v46 }
 0xb22   :  { %v7216_v49 = vsel %vm359_vm5, %v7169_v57, 0 }
 0xb23   :  { %v7213_v24 = vsel %vm359_vm5, %v7168_v59, 0  ;;  %12524 = vmatprep.subr.msk.bf16.mxu1 %vm359_vm5, %v7168_v59 }
 0xb24   :  { %12194 = vmatpush3.bf16.xpose.msra.mxu1 %v7213_v24 }
 0xb25   :  { %v16444_v62 = vpop.f32.mrb[216].mxu0  ;;  %v12011_v27 = vpop.f32.mrb[220].mxu1  ;;  %12525 = vmatprep.subr.msk.bf16.mxu1 %vm359_vm5, %v7169_v57 }
 0xb26   :  { %18550 = vst [vmem:[#allocation43_spill] sm:$0xff] %v16444_v62  ;;  %v16447_v58 = vpop.f32.mrb[217].mxu0  ;;  %v6097_v14 = vpop.f32.mrb[221].mxu1 }
 0xb27   :  { %18551 = vst [vmem:[#allocation41_spill] sm:$0xff] %v16447_v58  ;;  %v16449_v19 = vpop.f32.mrb[218].mxu0  ;;  %v12012_v21 = vpop.f32.mrb[222].mxu1 }
 0xb28   :  { %18552 = vst [vmem:[#allocation46_spill] sm:$0xff] %v16449_v19  ;;  %v7171_v61 = vpack.c.bf16 %v12012_v21, %v12011_v27  ;;  %v16453_v46 = vpop.f32.mrb[219].mxu0  ;;  %v6100_v11 = vpop.f32.mrb[223].mxu1 }
 0xb29   :  { %18553 = vst [vmem:[#allocation47_spill] sm:$0xff] %v16453_v46  ;;  %v7170_v59 = vpack.c.bf16 %v6100_v11, %v6097_v14 }
 0xb2b   :  { %v7219_v14 = vsel %vm359_vm5, %v7170_v59, 0 }
 0xb2c   :  { %12196 = vmatpush3.bf16.xpose.msra.mxu1 %v7216_v49  ;;  %v7222_v49 = vsel %vm359_vm5, %v7171_v61, 0 }
 0xb2d   :  { %v16458_v0 = vpop.f32.mrb[220].mxu0  ;;  %v12031_v38 = vpop.f32.mrb[224].mxu1  ;;  %12526 = vmatprep.subr.msk.bf16.mxu1 %vm359_vm5, %v7170_v59 }
 0xb2e   :  { %18554 = vst [vmem:[#allocation44_spill] sm:$0xff] %v16458_v0  ;;  %v16461_v55 = vpop.f32.mrb[221].mxu0  ;;  %v6211_v13 = vpop.f32.mrb[225].mxu1 }
 0xb2f   :  { %18555 = vst [vmem:[#allocation50_spill] sm:$0xff] %v16461_v55  ;;  %v16463_v60 = vpop.f32.mrb[222].mxu0  ;;  %v12032_v27 = vpop.f32.mrb[226].mxu1 }
 0xb30   :  { %18556 = vst [vmem:[#allocation45_spill] sm:$0xff] %v16463_v60  ;;  %v7177_v62 = vpack.c.bf16 %v12032_v27, %v12031_v38  ;;  %v16467_v24 = vpop.f32.mrb[223].mxu0  ;;  %v6214_v11 = vpop.f32.mrb[227].mxu1 }
 0xb31   :  { %18557 = vst [vmem:[#allocation48_spill] sm:$0xff] %v16467_v24  ;;  %v7176_v57 = vpack.c.bf16 %v6214_v11, %v6211_v13 }
 0xb34   :  { %12198 = vmatpush3.bf16.xpose.msra.mxu1 %v7219_v14 }
 0xb35   :  { %v16472_v19 = vpop.f32.mrb[224].mxu0  ;;  %v12035_v3 = vpop.f32.mrb[228].mxu1  ;;  %12527 = vmatprep.subr.msk.bf16.mxu1 %vm359_vm5, %v7171_v61  ;;  %v18560_v61 = vpack.c.bf16 %v16302_v8, %v16296_v45 }
 0xb36   :  { %18558 = vst [vmem:[#allocation51_spill] sm:$0xff] %v16472_v19  ;;  %v16475_v6 = vpop.f32.mrb[225].mxu0  ;;  %v6227_v58 = vpop.f32.mrb[229].mxu1 }
 0xb37   :  { %v16477_v21 = vpop.f32.mrb[226].mxu0  ;;  %v12036_v38 = vpop.f32.mrb[230].mxu1 }
 0xb38   :  { %18559 = vst [vmem:[#allocation24_spill] sm:$0xff] %v16477_v21  ;;  %v16481_v0 = vpack.c.bf16 %v12036_v38, %v12035_v3  ;;  %v16483_v13 = vpop.f32.mrb[227].mxu0  ;;  %v6230_v59 = vpop.f32.mrb[231].mxu1 }
 0xb39   :  { %v7166_v11 = vpack.c.bf16 %v16483_v13, %v16475_v6  ;;  %v7178_v14 = vpack.c.bf16 %v6230_v59, %v6227_v58  ;;  %v18562_v59 = vpack.c.bf16 %v16323_v20, %v16315_v28  ;;  %v8027_v6 = vpop.permute.xlu0 %8026 }
 0xb3c   :  { %12200 = vmatpush3.bf16.xpose.msra.mxu1 %v7222_v49  ;;  %v7391_v49 = vsel %vm359_vm5, %v7176_v57, 0 }
 0xb3d   :  { %v12019_v60 = vpop.f32.mrb[228].mxu0  ;;  %v12055_v55 = vpop.f32.mrb[232].mxu1  ;;  %12532 = vmatprep.subr.msk.bf16.mxu1 %vm359_vm5, %v7176_v57 }
 0xb3e   :  { %v6146_v24 = vpop.f32.mrb[229].mxu0  ;;  %v6341_v46 = vpop.f32.mrb[233].mxu1 }
 0xb3f   :  { %v12020_v53 = vpop.f32.mrb[230].mxu0  ;;  %v12056_v27 = vpop.f32.mrb[234].mxu1 }
 0xb40   :  { %v7173_v3 = vpack.c.bf16 %v12020_v53, %v12019_v60  ;;  %v16489_v38 = vpack.c.bf16 %v12056_v27, %v12055_v55  ;;  %v6149_v19 = vpop.f32.mrb[231].mxu0  ;;  %v6344_v21 = vpop.f32.mrb[235].mxu1  ;;  %v18561_v60 = vpack.c.bf16 %v16331_v56, %v16319_v23 }
 0xb41   :  { %v7172_v9 = vpack.c.bf16 %v6149_v19, %v6146_v24  ;;  %v16491_v18 = vpack.c.bf16 %v6344_v21, %v6341_v46 }
 0xb42   :  { %v7305_v27 = vsel %vm359_vm5, %v7173_v3, 0 }
 0xb43   :  { %v7302_v58 = vsel %vm359_vm5, %v7172_v9, 0  ;;  %12202 = vmatmul.mubr.msk.bf16.vlgmr.msra.gmra.mrb[24].mxu1 %vm359_vm5, %v18560_v61  ;;  %12528 = vmatprep.subr.msk.bf16.mxu0 %vm359_vm5, %v7172_v9  ;;  %v18563_v61 = vpack.c.bf16 %v16310_v39, %v16300_v44 }
 0xb44   :  { %12205 = vmatprep.mubr.msk.bf16.mxu1 %vm359_vm5, %v18561_v60  ;;  %12210 = vmatpush3.bf16.xpose.msra.mxu0 %v7302_v58  ;;  %v7394_v58 = vsel %vm359_vm5, %v7177_v62, 0 }
 0xb45   :  { %12226 = vmatpush3.bf16.xpose.msra.mxu1 %v7391_v49  ;;  %v12023_v53 = vpop.f32.mrb[232].mxu0  ;;  %v12059_v55 = vpop.f32.mrb[236].mxu1  ;;  %12529 = vmatprep.subr.msk.bf16.mxu0 %vm359_vm5, %v7173_v3 }
 0xb46   :  { %12533 = vmatprep.subr.msk.bf16.mxu1 %vm359_vm5, %v7177_v62  ;;  %v6162_v45 = vpop.f32.mrb[233].mxu0  ;;  %v6357_v8 = vpop.f32.mrb[237].mxu1 }
 0xb47   :  { %v12024_v19 = vpop.f32.mrb[234].mxu0  ;;  %v12060_v46 = vpop.f32.mrb[238].mxu1 }
 0xb48   :  { %v7175_v9 = vpack.c.bf16 %v12024_v19, %v12023_v53  ;;  %v16506_v24 = vpack.c.bf16 %v12060_v46, %v12059_v55  ;;  %v6165_v21 = vpop.f32.mrb[235].mxu0  ;;  %v6360_v57 = vpop.f32.mrb[239].mxu1  ;;  %v7397_v46 = vsel %vm359_vm5, %v7178_v14, 0 }
 0xb49   :  { %v7174_v23 = vpack.c.bf16 %v6165_v21, %v6162_v45  ;;  %v16508_v56 = vpack.c.bf16 %v6360_v57, %v6357_v8 }
 0xb4b   :  { %12206 = vmatmul.mubr.msk.bf16.gmra.mrb[28].mxu1 %vm359_vm5, %v18562_v59  ;;  %v7308_v19 = vsel %vm359_vm5, %v7174_v23, 0 }
 0xb4c   :  { %12212 = vmatpush3.bf16.xpose.msra.mxu0 %v7305_v27  ;;  %12233 = vmatprep.mubr.msk.bf16.mxu1 %vm359_vm5, %v18563_v61 }
 0xb4d   :  { %12228 = vmatpush3.bf16.xpose.msra.mxu1 %v7394_v58  ;;  %v12043_v49 = vpop.f32.mrb[236].mxu0  ;;  %v12079_v60 = vpop.f32.mrb[240].mxu1  ;;  %12530 = vmatprep.subr.msk.bf16.mxu0 %vm359_vm5, %v7174_v23 }
 0xb4e   :  { %12534 = vmatprep.subr.msk.bf16.mxu1 %vm359_vm5, %v7178_v14  ;;  %v6276_v3 = vpop.f32.mrb[237].mxu0  ;;  %v6471_v53 = vpop.f32.mrb[241].mxu1 }
 0xb4f   :  { %v12044_v28 = vpop.f32.mrb[238].mxu0  ;;  %v12080_v20 = vpop.f32.mrb[242].mxu1 }
 0xb50   :  { %v16522_v55 = vpack.c.bf16 %v12044_v28, %v12043_v49  ;;  %v16524_v62 = vpack.c.bf16 %v12080_v20, %v12079_v60  ;;  %v6279_v45 = vpop.f32.mrb[239].mxu0  ;;  %v6474_v8 = vpop.f32.mrb[243].mxu1  ;;  %v7311_v28 = vsel %vm359_vm5, %v7175_v9, 0  ;;  %v7400_v20 = vsel %vm359_vm5, %v16481_v0, 0 }
 0xb51   :  { %v7180_v44 = vpack.c.bf16 %v6279_v45, %v6276_v3  ;;  %v16526_v39 = vpack.c.bf16 %v6474_v8, %v6471_v53 }
 0xb54   :  { %12214 = vmatpush3.bf16.xpose.msra.mxu0 %v7308_v19 }
 0xb55   :  { %12230 = vmatpush3.bf16.xpose.msra.mxu1 %v7397_v46  ;;  %v12047_v21 = vpop.f32.mrb[240].mxu0  ;;  %v12083_v57 = vpop.f32.mrb[244].mxu1  ;;  %12531 = vmatprep.subr.msk.bf16.mxu0 %vm359_vm5, %v7175_v9 }
 0xb56   :  { %12535 = vmatprep.subr.msk.bf16.mxu1 %vm359_vm5, %v16481_v0  ;;  %v6292_v27 = vpop.f32.mrb[241].mxu0  ;;  %v6487_v59 = vpop.f32.mrb[245].mxu1 }
 0xb57   :  { %v12048_v58 = vpop.f32.mrb[242].mxu0  ;;  %v12084_v61 = vpop.f32.mrb[246].mxu1 }
 0xb58   :  { %v16533_v49 = vpack.c.bf16 %v12048_v58, %v12047_v21  ;;  %v16535_v60 = vpack.c.bf16 %v12084_v61, %v12083_v57  ;;  %v6295_v23 = vpop.f32.mrb[243].mxu0  ;;  %v6490_v3 = vpop.f32.mrb[247].mxu1 }
 0xb59   :  { %v16537_v14 = vpack.c.bf16 %v6295_v23, %v6292_v27  ;;  %v16539_v53 = vpack.c.bf16 %v6490_v3, %v6487_v59  ;;  %v18564_v23 = vpack.c.bf16 %v16345_v32, %v16339_v25  ;;  %v7480_v3 = vsel %vm359_vm5, %v7180_v44, 0 }
 0xb5a   :  { %v18567_v25 = vpack.c.bf16 %v16333_v36, %v16321_v17 }
 0xb5c   :  { %12216 = vmatpush3.bf16.xpose.msra.mxu0 %v7311_v28  ;;  %v18565_v28 = vpack.c.bf16 %v16304_v15, %v16298_v1 }
 0xb5d   :  { %12232 = vmatpush3.bf16.xpose.msra.mxu1 %v7400_v20  ;;  %v12067_v45 = vpop.f32.mrb[244].mxu0  ;;  %v12103_v8 = vpop.f32.mrb[248].mxu1  ;;  %12536 = vmatprep.subr.msk.bf16.mxu0 %vm359_vm5, %v7180_v44  ;;  %v18566_v20 = vpack.c.bf16 %v16374_v30, %v16362_v50 }
 0xb5e   :  { %12540 = vmatprep.subr.msk.bf16.mxu1 %vm359_vm5, %v16491_v18  ;;  %v6406_v19 = vpop.f32.mrb[245].mxu0  ;;  %v6650_v46 = vpop.f32.mrb[249].mxu1 }
 0xb5f   :  { %v12068_v21 = vpop.f32.mrb[246].mxu0  ;;  %v12104_v57 = vpop.f32.mrb[250].mxu1 }
 0xb60   :  { %v16547_v27 = vpack.c.bf16 %v12068_v21, %v12067_v45  ;;  %v16549_v59 = vpack.c.bf16 %v12104_v57, %v12103_v8  ;;  %v6409_v9 = vpop.f32.mrb[247].mxu0  ;;  %v6653_v58 = vpop.f32.mrb[251].mxu1  ;;  %v7569_v45 = vsel %vm359_vm5, %v16491_v18, 0  ;;  %v18568_v21 = vpack.c.bf16 %v16366_v47, %v16358_v4 }
 0xb61   :  { %v16551_v0 = vpack.c.bf16 %v6409_v9, %v6406_v19  ;;  %v16553_v61 = vpack.c.bf16 %v6653_v58, %v6650_v46  ;;  %v7483_v57 = vsel %vm359_vm5, %v16522_v55, 0  ;;  %v18569_v9 = vpack.c.bf16 %v16325_v51, %v16317_v26 }
 0xb62   :  { %v18570_v58 = vpack.c.bf16 %v16398_v42, %v16386_v22  ;;  %v18571_v4 = vpack.c.bf16 %v16353_v7, %v16343_v10 }
 0xb63   :  { %12218 = vmatmul.mubr.msk.bf16.vlgmr.msra.gmra.mrb[36].mxu0 %vm359_vm5, %v18564_v23  ;;  %v7572_v23 = vsel %vm359_vm5, %v16489_v38, 0 }
 0xb64   :  { %12234 = vmatmul.mubr.msk.bf16.vlgmr.msra.gmra.mrb[32].mxu1 %vm359_vm5, %v18565_v28  ;;  %12221 = vmatprep.mubr.msk.bf16.mxu0 %vm359_vm5, %v18566_v20 }
 0xb65   :  { %12237 = vmatprep.mubr.msk.bf16.mxu1 %vm359_vm5, %v18567_v25  ;;  %12242 = vmatpush3.bf16.xpose.msra.mxu0 %v7480_v3  ;;  %v12071_v32 = vpop.f32.mrb[248].mxu0  ;;  %v12107_v44 = vpop.f32.mrb[252].mxu1  ;;  %v7575_v25 = vsel %vm359_vm5, %v16508_v56, 0 }
 0xb66   :  { %12258 = vmatpush3.bf16.xpose.msra.mxu1 %v7569_v45  ;;  %12537 = vmatprep.subr.msk.bf16.mxu0 %vm359_vm5, %v16522_v55  ;;  %v6422_v1 = vpop.f32.mrb[249].mxu0  ;;  %v6666_v15 = vpop.f32.mrb[253].mxu1  ;;  %v7486_v45 = vsel %vm359_vm5, %v16537_v14, 0 }
 0xb67   :  { %12541 = vmatprep.subr.msk.bf16.mxu1 %vm359_vm5, %v16489_v38  ;;  %v12072_v50 = vpop.f32.mrb[250].mxu0  ;;  %v12108_v30 = vpop.f32.mrb[254].mxu1 }
 0xb68   :  { %v16578_v18 = vpack.c.bf16 %v12072_v50, %v12071_v32  ;;  %v16580_v8 = vpack.c.bf16 %v12108_v30, %v12107_v44  ;;  %v6425_v17 = vpop.f32.mrb[251].mxu0  ;;  %v6669_v36 = vpop.f32.mrb[255].mxu1 }
 0xb69   :  { %v16582_v19 = vpack.c.bf16 %v6425_v17, %v6422_v1  ;;  %v16584_v46 = vpack.c.bf16 %v6669_v36, %v6666_v15 }
 0xb6b   :  { %12222 = vmatmul.mubr.msk.bf16.gmra.mrb[40].mxu0 %vm359_vm5, %v18568_v21 }
 0xb6c   :  { %12238 = vmatmul.mubr.msk.bf16.gmra.mrb[36].mxu1 %vm359_vm5, %v18569_v9  ;;  %12249 = vmatprep.mubr.msk.bf16.mxu0 %vm359_vm5, %v18570_v58  ;;  %v7489_v9 = vsel %vm359_vm5, %v16533_v49, 0  ;;  %v7578_v58 = vsel %vm359_vm5, %v16506_v24, 0 }
 0xb6d   :  { %12244 = vmatpush3.bf16.xpose.msra.mxu0 %v7483_v57  ;;  %12265 = vmatprep.mubr.msk.bf16.mxu1 %vm359_vm5, %v18571_v4  ;;  %v12091_v47 = vpop.f32.mrb[252].mxu0  ;;  %v12127_v55 = vpop.f32.mrb[0].mxu1 }
 0xb6e   :  { %12260 = vmatpush3.bf16.xpose.msra.mxu1 %v7572_v23  ;;  %12538 = vmatprep.subr.msk.bf16.mxu0 %vm359_vm5, %v16537_v14  ;;  %v6536_v26 = vpop.f32.mrb[253].mxu0  ;;  %v6780_v51 = vpop.f32.mrb[1].mxu1 }
 0xb6f   :  { %12542 = vmatprep.subr.msk.bf16.mxu1 %vm359_vm5, %v16508_v56  ;;  %v12092_v22 = vpop.f32.mrb[254].mxu0  ;;  %v12128_v42 = vpop.f32.mrb[2].mxu1 }
 0xb70   :  { %v16610_v38 = vpack.c.bf16 %v12092_v22, %v12091_v47  ;;  %v16612_v3 = vpack.c.bf16 %v12128_v42, %v12127_v55  ;;  %v6539_v10 = vpop.f32.mrb[255].mxu0  ;;  %v6783_v7 = vpop.f32.mrb[3].mxu1 }
 0xb71   :  { %v16614_v28 = vpack.c.bf16 %v6539_v10, %v6536_v26  ;;  %v16616_v20 = vpack.c.bf16 %v6783_v7, %v6780_v51 }
 0xb72   :  { %18572 = vst [vmem:[#allocation20_spill] sm:$0xff] %v16612_v3 }
 0xb73   :  { %18573 = vst [vmem:[#allocation49_spill] sm:$0xff] %v16616_v20 }
 0xb75   :  { %12246 = vmatpush3.bf16.xpose.msra.mxu0 %v7486_v45  ;;  %v12095_v32 = vpop.f32.mrb[0].mxu0  ;;  %v12131_v44 = vpop.f32.mrb[4].mxu1  ;;  %v18578_v45 = vpack.c.bf16 %v16390_v63, %v16382_v35  ;;  %v7747_v35 = vsel %vm359_vm5, %v16526_v39, 0  ;;  %v18581_v63 = vpack.c.bf16 %v16376_v40, %v16364_v48 }
 0xb76   :  { %12262 = vmatpush3.bf16.xpose.msra.mxu1 %v7575_v25  ;;  %12539 = vmatprep.subr.msk.bf16.mxu0 %vm359_vm5, %v16533_v49  ;;  %v6552_v1 = vpop.f32.mrb[1].mxu0  ;;  %v6796_v15 = vpop.f32.mrb[5].mxu1  ;;  %v7658_v25 = vsel %vm359_vm5, %v16551_v0, 0 }
 0xb77   :  { %12543 = vmatprep.subr.msk.bf16.mxu1 %vm359_vm5, %v16506_v24  ;;  %v12096_v50 = vpop.f32.mrb[2].mxu0  ;;  %v12132_v30 = vpop.f32.mrb[6].mxu1 }
 0xb78   :  { %v16626_v17 = vpack.c.bf16 %v12096_v50, %v12095_v32  ;;  %v16628_v14 = vpack.c.bf16 %v12132_v30, %v12131_v44  ;;  %v6555_v36 = vpop.f32.mrb[3].mxu0  ;;  %v6799_v56 = vpop.f32.mrb[7].mxu1  ;;  %v18579_v32 = vpack.c.bf16 %v16347_v29, %v16341_v33  ;;  %v18580_v44 = vpack.c.bf16 %v16422_v12, %v16410_v54 }
 0xb79   :  { %v16630_v21 = vpack.c.bf16 %v6555_v36, %v6552_v1  ;;  %v16632_v57 = vpack.c.bf16 %v6799_v56, %v6796_v15  ;;  %v18584_v36 = vpack.c.bf16 %v16414_v37, %v16406_v43  ;;  %v7661_v56 = vsel %vm359_vm5, %v16547_v27, 0 }
 0xb7a   :  { %18574 = vst [vmem:[#allocation26_spill] sm:$0xff] %v16628_v14  ;;  %v7750_v43 = vsel %vm359_vm5, %v16524_v62, 0  ;;  %v18587_v37 = vpack.c.bf16 %v16400_v16, %v16388_v2 }
 0xb7b   :  { %18575 = vst [vmem:[#allocation30_spill] sm:$0xff] %v16632_v57 }
 0xb7d   :  { %12248 = vmatpush3.bf16.xpose.msra.mxu0 %v7489_v9  ;;  %v12115_v23 = vpop.f32.mrb[4].mxu0  ;;  %v12151_v4 = vpop.f32.mrb[8].mxu1  ;;  %v18585_v9 = vpack.c.bf16 %v16368_v34, %v16360_v31 }
 0xb7e   :  { %12264 = vmatpush3.bf16.xpose.msra.mxu1 %v7578_v58  ;;  %12544 = vmatprep.subr.msk.bf16.mxu0 %vm359_vm5, %v16551_v0  ;;  %v6715_v47 = vpop.f32.mrb[5].mxu0  ;;  %v6910_v55 = vpop.f32.mrb[9].mxu1  ;;  %v18586_v58 = vpack.c.bf16 %v16438_v52, %v16432_v41 }
 0xb7f   :  { %12548 = vmatprep.subr.msk.bf16.mxu1 %vm359_vm5, %v16526_v39  ;;  %v12116_v26 = vpop.f32.mrb[6].mxu0  ;;  %v12152_v51 = vpop.f32.mrb[10].mxu1 }
 0xb80   :  { %v16642_v22 = vpack.c.bf16 %v12116_v26, %v12115_v23  ;;  %v16644_v49 = vpack.c.bf16 %v12152_v51, %v12151_v4  ;;  %v6718_v42 = vpop.f32.mrb[7].mxu0  ;;  %v6913_v24 = vpop.f32.mrb[11].mxu1  ;;  %v7664_v26 = vsel %vm359_vm5, %v16582_v19, 0 }
 0xb81   :  { %v16646_v10 = vpack.c.bf16 %v6718_v42, %v6715_v47  ;;  %v16648_v7 = vpack.c.bf16 %v6913_v24, %v6910_v55  ;;  %v7753_v24 = vsel %vm359_vm5, %v16539_v53, 0 }
 0xb82   :  { %18576 = vst [vmem:[#allocation31_spill] sm:$0xff] %v16644_v49 }
 0xb83   :  { %18577 = vst [vmem:[#allocation21_spill] sm:$0xff] %v16648_v7 }
 0xb84   :  { %12250 = vmatmul.mubr.msk.bf16.vlgmr.msra.gmra.mrb[44].mxu0 %vm359_vm5, %v18578_v45 }
 0xb85   :  { %12266 = vmatmul.mubr.msk.bf16.vlgmr.msra.gmra.mrb[40].mxu1 %vm359_vm5, %v18579_v32  ;;  %12253 = vmatprep.mubr.msk.bf16.mxu0 %vm359_vm5, %v18580_v44  ;;  %v12119_v1 = vpop.f32.mrb[8].mxu0  ;;  %v12155_v15 = vpop.f32.mrb[12].mxu1 }
 0xb86   :  { %12269 = vmatprep.mubr.msk.bf16.mxu1 %vm359_vm5, %v18581_v63  ;;  %12274 = vmatpush3.bf16.xpose.msra.mxu0 %v7658_v25  ;;  %v6731_v0 = vpop.f32.mrb[9].mxu0  ;;  %v6926_v33 = vpop.f32.mrb[13].mxu1 }
 0xb87   :  { %12290 = vmatpush3.bf16.xpose.msra.mxu1 %v7747_v35  ;;  %12545 = vmatprep.subr.msk.bf16.mxu0 %vm359_vm5, %v16547_v27  ;;  %v12120_v29 = vpop.f32.mrb[10].mxu0  ;;  %v12156_v12 = vpop.f32.mrb[14].mxu1 }
 0xb88   :  { %12549 = vmatprep.subr.msk.bf16.mxu1 %vm359_vm5, %v16524_v62  ;;  %v16674_v54 = vpack.c.bf16 %v12120_v29, %v12119_v1  ;;  %v16676_v39 = vpack.c.bf16 %v12156_v12, %v12155_v15  ;;  %v6734_v50 = vpop.f32.mrb[11].mxu0  ;;  %v6929_v48 = vpop.f32.mrb[15].mxu1  ;;  %v7756_v29 = vsel %vm359_vm5, %v16535_v60, 0 }
 0xb89   :  { %v16678_v40 = vpack.c.bf16 %v6734_v50, %v6731_v0  ;;  %v16680_v30 = vpack.c.bf16 %v6929_v48, %v6926_v33  ;;  %v7667_v0 = vsel %vm359_vm5, %v16578_v18, 0 }
 0xb8a   :  { %18582 = vst [vmem:[#allocation22_spill] sm:$0xff] %v16676_v39 }
 0xb8b   :  { %18583 = vst [vmem:[#allocation25_spill] sm:$0xff] %v16680_v30 }
 0xb8c   :  { %12254 = vmatmul.mubr.msk.bf16.gmra.mrb[48].mxu0 %vm359_vm5, %v18584_v36 }
 0xb8d   :  { %12270 = vmatmul.mubr.msk.bf16.gmra.mrb[44].mxu1 %vm359_vm5, %v18585_v9  ;;  %12281 = vmatprep.mubr.msk.bf16.mxu0 %vm359_vm5, %v18586_v58  ;;  %v12139_v23 = vpop.f32.mrb[12].mxu0  ;;  %v12175_v4 = vpop.f32.mrb[16].mxu1  ;;  %v7836_v58 = vsel %vm359_vm5, %v16614_v28, 0 }
 0xb8e   :  { %12276 = vmatpush3.bf16.xpose.msra.mxu0 %v7661_v56  ;;  %12297 = vmatprep.mubr.msk.bf16.mxu1 %vm359_vm5, %v18587_v37  ;;  %v6845_v27 = vpop.f32.mrb[13].mxu0  ;;  %v7040_v31 = vpop.f32.mrb[17].mxu1  ;;  %v18603_v37 = vld [vmem:[#allocation47_spill] sm:$0xff] }
 0xb8f   :  { %12292 = vmatpush3.bf16.xpose.msra.mxu1 %v7750_v43  ;;  %12546 = vmatprep.subr.msk.bf16.mxu0 %vm359_vm5, %v16582_v19  ;;  %v12140_v52 = vpop.f32.mrb[14].mxu0  ;;  %v12176_v41 = vpop.f32.mrb[18].mxu1 }
 0xb90   :  { %12550 = vmatprep.subr.msk.bf16.mxu1 %vm359_vm5, %v16539_v53  ;;  %v16706_v34 = vpack.c.bf16 %v12140_v52, %v12139_v23  ;;  %v16708_v62 = vpack.c.bf16 %v12176_v41, %v12175_v4  ;;  %v6848_v47 = vpop.f32.mrb[15].mxu0  ;;  %v7043_v55 = vpop.f32.mrb[19].mxu1  ;;  %v18600_v23 = vld [vmem:[#allocation38_spill] sm:$0xff]  ;;  %v18606_v41 = vld [vmem:[#allocation37_spill] sm:$0xff] }
 0xb91   :  { %v16710_v2 = vpack.c.bf16 %v6848_v47, %v6845_v27  ;;  %v16712_v16 = vpack.c.bf16 %v7043_v55, %v7040_v31  ;;  %v18601_v4 = vld [vmem:[#allocation66_spill] sm:$0xff]  ;;  %v18604_v27 = vld [vmem:[#allocation41_spill] sm:$0xff]  ;;  %v18607_v47 = vld [vmem:[#allocation39_spill] sm:$0xff] }
 0xb92   :  { %18588 = vst [vmem:[#allocation28_spill] sm:$0xff] %v16706_v34  ;;  %18589 = vst [vmem:[#allocation34_spill] sm:$0xff] %v16708_v62  ;;  %v18602_v43 = vpack.c.bf16 %v18600_v23, %v18601_v4  ;;  %v18605_v31 = vpack.c.bf16 %v18603_v37, %v18604_v27  ;;  %v18624_v4 = vld [vmem:[#allocation45_spill] sm:$0xff]  ;;  %v18628_v37 = vld [vmem:[#allocation51_spill] sm:$0xff] }
 0xb93   :  { %18590 = vst [vmem:[#allocation19_spill] sm:$0xff] %v16710_v2  ;;  %18591 = vst [vmem:[#allocation52_spill] sm:$0xff] %v16712_v16 }
 0xb95   :  { %v12143_v51 = vpop.f32.mrb[16].mxu0  ;;  %v12179_v42 = vpop.f32.mrb[20].mxu1 }
 0xb96   :  { %12278 = vmatpush3.bf16.xpose.msra.mxu0 %v7664_v26  ;;  %v6861_v45 = vpop.f32.mrb[17].mxu0  ;;  %v7056_v25 = vpop.f32.mrb[21].mxu1 }
 0xb97   :  { %12294 = vmatpush3.bf16.xpose.msra.mxu1 %v7753_v24  ;;  %12547 = vmatprep.subr.msk.bf16.mxu0 %vm359_vm5, %v16578_v18  ;;  %v12144_v32 = vpop.f32.mrb[18].mxu0  ;;  %v12180_v44 = vpop.f32.mrb[22].mxu1  ;;  %v18598_v18 = vld [vmem:[#allocation40_spill] sm:$0xff]  ;;  %v18612_v24 = vld [vmem:[#allocation43_spill] sm:$0xff] }
 0xb98   :  { %12551 = vmatprep.subr.msk.bf16.mxu1 %vm359_vm5, %v16535_v60  ;;  %v16722_v1 = vpack.c.bf16 %v12144_v32, %v12143_v51  ;;  %v16724_v19 = vpack.c.bf16 %v12180_v44, %v12179_v42  ;;  %v6864_v15 = vpop.f32.mrb[19].mxu0  ;;  %v7059_v35 = vpop.f32.mrb[23].mxu1  ;;  %v18599_v9 = vpack.c.bf16 %v16434_v5, %v18598_v18  ;;  %v18608_v5 = vpack.c.bf16 %v18606_v41, %v18607_v47  ;;  %v18611_v42 = vld [vmem:[#allocation46_spill] sm:$0xff]  ;;  %v18615_v44 = vld [vmem:[#allocation36_spill] sm:$0xff] }
 0xb99   :  { %v16726_v63 = vpack.c.bf16 %v6864_v15, %v6861_v45  ;;  %v16728_v53 = vpack.c.bf16 %v7059_v35, %v7056_v25  ;;  %v18613_v45 = vpack.c.bf16 %v18611_v42, %v18612_v24  ;;  %v7839_v25 = vsel %vm359_vm5, %v16610_v38, 0  ;;  %v18614_v32 = vld [vmem:[#allocation42_spill] sm:$0xff]  ;;  %v18617_v35 = vld [vmem:[#allocation48_spill] sm:$0xff]  ;;  %v16839_v42 = vld [vmem:[%s18071_s2 + $0x18] sm:$0xff] }
 0xb9a   :  { %18592 = vst [vmem:[#allocation18_spill] sm:$0xff] %v16722_v1  ;;  %18593 = vst [vmem:[#allocation27_spill] sm:$0xff] %v16724_v19  ;;  %v18616_v15 = vpack.c.bf16 %v18614_v32, %v18615_v44  ;;  %v7842_v18 = vsel %vm359_vm5, %v16630_v21, 0  ;;  %v8060_v24 = vmul.f32 %v16839_v42, %v8027_v6  ;;  %v16851_v32 = vld [vmem:[%s18072_s1 + $0x10] sm:$0xff] }
 0xb9b   :  { %18594 = vst [vmem:[#allocation53_spill] sm:$0xff] %v16726_v63  ;;  %18595 = vst [vmem:[#allocation23_spill] sm:$0xff] %v16728_v53 }
 0xb9d   :  { %v12163_v33 = vpop.f32.mrb[20].mxu0 }
 0xb9e   :  { %12280 = vmatpush3.bf16.xpose.msra.mxu0 %v7667_v0  ;;  %v6975_v12 = vpop.f32.mrb[21].mxu0  ;;  %v18618_v0 = vld [vmem:[#allocation50_spill] sm:$0xff] }
 0xb9f   :  { %12296 = vmatpush3.bf16.xpose.msra.mxu1 %v7756_v29  ;;  %12552 = vmatprep.subr.msk.bf16.mxu0 %vm359_vm5, %v16614_v28  ;;  %v12164_v50 = vpop.f32.mrb[22].mxu0 }
 0xba0   :  { %12321 = vmatprep.subr.bf16.mxu1 %v16553_v61  ;;  %v16737_v48 = vpack.c.bf16 %v12164_v50, %v12163_v33  ;;  %v6978_v36 = vpop.f32.mrb[23].mxu0  ;;  %v18619_v33 = vpack.c.bf16 %v18617_v35, %v18618_v0 }
 0xba1   :  { %v16739_v56 = vpack.c.bf16 %v6978_v36, %v6975_v12 }
 0xba2   :  { %18596 = vst [vmem:[#allocation35_spill] sm:$0xff] %v16737_v48 }
 0xba3   :  { %18597 = vst [vmem:[#allocation6_spill] sm:$0xff] %v16739_v56 }
 0xba5   :  { %12282 = vmatmul.mubr.msk.bf16.vlgmr.msra.gmra.mrb[52].mxu0 %vm359_vm5, %v18599_v9  ;;  %v12167_v60 = vpop.f32.mrb[24].mxu0 }
 0xba6   :  { %12298 = vmatmul.mubr.msk.bf16.vlgmr.msra.gmra.mrb[48].mxu1 %vm359_vm5, %v18602_v43  ;;  %12285 = vmatprep.mubr.msk.bf16.mxu0 %vm359_vm5, %v18605_v31  ;;  %v6991_v52 = vpop.f32.mrb[25].mxu0  ;;  %v18625_v43 = vld [vmem:[#allocation44_spill] sm:$0xff] }
 0xba7   :  { %12301 = vmatprep.mubr.msk.bf16.mxu1 %vm359_vm5, %v18608_v5  ;;  %12306 = vmatpush3.bf16.xpose.msra.mxu0 %v7836_v58  ;;  %v12168_v55 = vpop.f32.mrb[26].mxu0 }
 0xba8   :  { %12322 = vmatpush3.bf16.msra.mxu1 %v16553_v61  ;;  %12553 = vmatprep.subr.msk.bf16.mxu0 %vm359_vm5, %v16610_v38  ;;  %v16762_v28 = vpack.c.bf16 %v12168_v55, %v12167_v60  ;;  %v6994_v26 = vpop.f32.mrb[27].mxu0 }
 0xba9   :  { %12323 = vmatprep.subr.bf16.mxu1 %v16549_v59  ;;  %v16765_v51 = vpack.c.bf16 %v6994_v26, %v6991_v52 }
 0xbaa   :  { %18609 = vst [vmem:[#allocation54_spill] sm:$0xff] %v16762_v28 }
 0xbab   :  { %18610 = vst [vmem:[#allocation29_spill] sm:$0xff] %v16765_v51 }
 0xbac   :  { %12324 = vmatpush3.bf16.msra.mxu1 %v16549_v59 }
 0xbad   :  { %12325 = vmatprep.subr.bf16.mxu1 %v16584_v46  ;;  %12286 = vmatmul.mubr.msk.bf16.gmra.mrb[56].mxu0 %vm359_vm5, %v18613_v45  ;;  %v12187_v61 = vpop.f32.mrb[28].mxu0 }
 0xbae   :  { %12302 = vmatmul.mubr.msk.bf16.gmra.mrb[52].mxu1 %vm359_vm5, %v18616_v15  ;;  %12313 = vmatprep.mubr.msk.bf16.mxu0 %vm359_vm5, %v18619_v33  ;;  %v7105_v59 = vpop.f32.mrb[29].mxu0  ;;  %v16861_v33 = vld [vmem:[%s18072_s1] sm:$0xff] }
 0xbaf   :  { %12308 = vmatpush3.bf16.xpose.msra.mxu0 %v7839_v25  ;;  %v12188_v29 = vpop.f32.mrb[30].mxu0 }
 0xbb0   :  { %12326 = vmatpush3.bf16.msra.mxu1 %v16584_v46  ;;  %12554 = vmatprep.subr.msk.bf16.mxu0 %vm359_vm5, %v16630_v21  ;;  %v16786_v12 = vpack.c.bf16 %v12188_v29, %v12187_v61  ;;  %v7108_v38 = vpop.f32.mrb[31].mxu0  ;;  %v18626_v21 = vpack.c.bf16 %v18624_v4, %v18625_v43  ;;  %v16845_v61 = vld [vmem:[%s18071_s2 + $0x8] sm:$0xff]  ;;  %v16883_v4 = vld [vmem:[%s18071_s2 + $0x20] sm:$0xff] }
 0xbb1   :  { %12327 = vmatprep.subr.bf16.mxu1 %v16580_v8  ;;  %v16789_v50 = vpack.c.bf16 %v7108_v38, %v7105_v59  ;;  %v8058_v25 = vmul.f32 %v16845_v61, %v8027_v6  ;;  %v16869_v38 = vld [vmem:[%s18072_s1 + $0x8] sm:$0xff]  ;;  %v8061_v43 = vmul.f32 %v16883_v4, %v8027_v6 }
 0xbb2   :  { %18620 = vst [vmem:[#allocation33_spill] sm:$0xff] %v16786_v12 }
 0xbb3   :  { %18621 = vst [vmem:[#allocation56_spill] sm:$0xff] %v16789_v50 }
 0xbb4   :  { %12328 = vmatpush3.bf16.msra.mxu1 %v16580_v8  ;;  %v7845_v8 = vsel %vm359_vm5, %v16626_v17, 0 }
 0xbb5   :  { %12353 = vmatprep.subr.bf16.mxu1 %v16616_v20  ;;  %v12191_v36 = vpop.f32.mrb[32].mxu0 }
 0xbb6   :  { %v7121_v9 = vpop.f32.mrb[33].mxu0 }
 0xbb7   :  { %12310 = vmatpush3.bf16.xpose.msra.mxu0 %v7842_v18  ;;  %v12192_v46 = vpop.f32.mrb[34].mxu0 }
 0xbb8   :  { %12555 = vmatprep.subr.msk.bf16.mxu0 %vm359_vm5, %v16626_v17  ;;  %v16797_v60 = vpack.c.bf16 %v12192_v46, %v12191_v36  ;;  %v7124_v58 = vpop.f32.mrb[35].mxu0  ;;  %v18627_v17 = vld [vmem:[#allocation24_spill] sm:$0xff] }
 0xbb9   :  { %v16799_v23 = vpack.c.bf16 %v7124_v58, %v7121_v9  ;;  %v18629_v27 = vpack.c.bf16 %v18627_v17, %v18628_v37  ;;  %v16877_v9 = vld [vmem:[%s18071_s2 + $0x30] sm:$0xff]  ;;  %v16891_v37 = vld [vmem:[%s18072_s1 + $0x18] sm:$0xff] }
 0xbba   :  { %18622 = vst [vmem:[#allocation32_spill] sm:$0xff] %v16797_v60  ;;  %v8063_v46 = vmul.f32 %v16877_v9, %v8027_v6 }
 0xbbb   :  { %18623 = vst [vmem:[#allocation7_spill] sm:$0xff] %v16799_v23 }
 0xbbf   :  { %12312 = vmatpush3.bf16.xpose.msra.mxu0 %v7845_v8 }
 0xbc0   :  { %12337 = vmatprep.subr.bf16.mxu0 %v16646_v10 }
 0xbc6   :  { %12314 = vmatmul.mubr.msk.bf16.vlgmr.msra.gmra.mrb[60].mxu0 %vm359_vm5, %v18626_v21 }
 0xbc7   :  { %12317 = vmatprep.mubr.msk.bf16.mxu0 %vm359_vm5, %v7166_v11  ;;  %12338 = vmatpush3.bf16.msra.mxu0 %v16646_v10 }
 0xbc8   :  { %12339 = vmatprep.subr.bf16.mxu0 %v16642_v22 }
 0xbcb   :  { %12340 = vmatpush3.bf16.msra.mxu0 %v16642_v22  ;;  %v16827_v22 = vld [vmem:[%s18071_s2 + $0x10] sm:$0xff] }
 0xbcc   :  { %12341 = vmatprep.subr.bf16.mxu0 %v16678_v40  ;;  %v8059_v10 = vmul.f32 %v16827_v22, %v8027_v6 }
 0xbce   :  { %12318 = vmatmul.mubr.msk.bf16.gmra.mrb[64].mxu0 %vm359_vm5, %v18629_v27 }
 0xbcf   :  { %12342 = vmatpush3.bf16.msra.mxu0 %v16678_v40  ;;  %v16833_v40 = vld [vmem:[%s18071_s2] sm:$0xff] }
 0xbd0   :  { %12343 = vmatprep.subr.bf16.mxu0 %v16674_v54 }
 0xbd3   :  { %12344 = vmatpush3.bf16.msra.mxu0 %v16674_v54  ;;  %v8057_v54 = vmul.f32 %v16833_v40, %v8027_v6 }
 0xbd4   :  { %12369 = vmatprep.subr.bf16.mxu0 %v16710_v2 }
 0xc16   :  { %v12203_v13 = vpop.f32.mrb[24].mxu1 }
 0xc17   :  { %v7914_v11 = vmul.f32 0.5, %v12203_v13  ;;  %v7258_v31 = vpop.f32.mrb[25].mxu1 }
 0xc18   :  { %v7912_v52 = vmul.f32 0.5, %v7258_v31  ;;  %v12204_v41 = vpop.f32.mrb[26].mxu1 }
 0xc19   :  { %v8123_v47 = vadd.f32 %v8059_v10, %v7914_v11  ;;  %v7915_v5 = vmul.f32 0.5, %v12204_v41  ;;  %v7261_v55 = vpop.f32.mrb[27].mxu1  ;;  %v16899_v10 = vld [vmem:[%s18071_s2 + $0x38] sm:$0xff] }
 0xc1a   :  { %v8121_v26 = vadd.f32 %v8057_v54, %v7912_v52  ;;  %v7913_v45 = vmul.f32 0.5, %v7261_v55  ;;  %v8064_v31 = vmul.f32 %v16899_v10, %v8027_v6  ;;  %v16907_v55 = vld [vmem:[%s18071_s2 + $0x28] sm:$0xff] }
 0xc1b   :  { %v16854_v44 = vadd.f32 %v16851_v32, %v8123_v47  ;;  %v8124_v15 = vadd.f32 %v8060_v24, %v7915_v5  ;;  %v16913_v24 = vld [vmem:[%s18072_s1 + $0x30] sm:$0xff] }
 0xc1c   :  { %v8122_v35 = vadd.f32 %v8058_v25, %v7913_v45  ;;  %v16864_v59 = vadd.f32 %v16861_v33, %v8121_v26  ;;  %v8062_v26 = vmul.f32 %v16907_v55, %v8027_v6 }
 0xc1d   :  { %v8255_v0 = vsel %vm3289_vm6, %v16854_v44, -inf  ;;  %v16894_v27 = vadd.f32 %v16891_v37, %v8124_v15 }
 0xc1e   :  { %v12207_v29 = vpop.f32.mrb[28].mxu1  ;;  %8256 = vmax.xlane.f32.xlu0 %v8255_v0  ;;  %v16872_v36 = vadd.f32 %v16869_v38, %v8122_v35  ;;  %v8249_v54 = vsel %vm3289_vm6, %v16864_v59, -inf  ;;  %v16925_v0 = vld [vmem:[%s18072_s1 + $0x20] sm:$0xff] }
 0xc1f   :  { %v7918_v18 = vmul.f32 0.5, %v12207_v29  ;;  %v7274_v58 = vpop.f32.mrb[29].mxu1  ;;  %v8258_v25 = vsel %vm3289_vm6, %v16894_v27, -inf  ;;  %v16933_v29 = vld [vmem:[%s18072_s1 + $0x38] sm:$0xff] }
 0xc20   :  { %v7916_v8 = vmul.f32 0.5, %v7274_v58  ;;  %v12208_v21 = vpop.f32.mrb[30].mxu1  ;;  %v8252_v17 = vsel %vm3289_vm6, %v16872_v36, -inf }
 0xc21   :  { %v8127_v13 = vadd.f32 %v8063_v46, %v7918_v18  ;;  %v7919_v11 = vmul.f32 0.5, %v12208_v21  ;;  %v7277_v52 = vpop.f32.mrb[31].mxu1  ;;  %8253 = vmax.xlane.f32.xlu1 %v8252_v17  ;;  %v16952_v17 = vpop.permute.xlu1 %8030 }
 0xc22   :  { %v8125_v41 = vadd.f32 %v8061_v43, %v7916_v8  ;;  %v7917_v47 = vmul.f32 0.5, %v7277_v52  ;;  %8250 = vmax.xlane.f32.xlu0 %v8249_v54  ;;  %v16945_v8 = vld [vmem:[%s18072_s1 + $0x28] sm:$0xff]  ;;  %v8067_v52 = vmul.f32 %v16827_v22, %v16952_v17 }
 0xc23   :  { %v8128_v5 = vadd.f32 %v8064_v31, %v7919_v11  ;;  %v16916_v45 = vadd.f32 %v16913_v24, %v8127_v13  ;;  %v16954_v13 = vpop.permute.xlu0 %8034 }
 0xc24   :  { %v8126_v15 = vadd.f32 %v8062_v26, %v7917_v47  ;;  %v16928_v6 = vadd.f32 %v16925_v0, %v8125_v41  ;;  %v8076_v12 = vmul.f32 %v16839_v42, %v16954_v13 }
 0xc25   :  { %v8267_v35 = vsel %vm3289_vm6, %v16916_v45, -inf  ;;  %v16936_v18 = vadd.f32 %v16933_v29, %v8128_v5  ;;  %v8075_v5 = vmul.f32 %v16827_v22, %v16954_v13 }
 0xc26   :  { %8268 = vmax.xlane.f32.xlu1 %v8267_v35  ;;  %8259 = vmax.xlane.f32.xlu0 %v8258_v25  ;;  %v8261_v46 = vsel %vm3289_vm6, %v16928_v6, -inf  ;;  %v16948_v43 = vadd.f32 %v16945_v8, %v8126_v15 }
 0xc27   :  { %v8270_v58 = vsel %vm3289_vm6, %v16936_v18, -inf }
 0xc28   :  { %v8264_v21 = vsel %vm3289_vm6, %v16948_v43, -inf }
 0xc2a   :  { %8262 = vmax.xlane.f32.xlu1 %v8261_v46  ;;  %8271 = vmax.xlane.f32.xlu0 %v8270_v58  ;;  %v8068_v58 = vmul.f32 %v16839_v42, %v16952_v17 }
 0xc2e   :  { %8265 = vmax.xlane.f32.xlu0 %v8264_v21 }
 0xc36   :  { %v12219_v11 = vpop.f32.mrb[36].mxu0 }
 0xc37   :  { %v7922_v31 = vmul.f32 0.5, %v12219_v11  ;;  %v12235_v54 = vpop.f32.mrb[32].mxu1  ;;  %v7347_v41 = vpop.f32.mrb[37].mxu0 }
 0xc38   :  { %v7930_v47 = vmul.f32 0.5, %v12235_v54  ;;  %v7436_v26 = vpop.f32.mrb[33].mxu1  ;;  %v12220_v25 = vpop.f32.mrb[38].mxu0  ;;  %v7920_v35 = vmul.f32 0.5, %v7347_v41  ;;  %v8065_v54 = vmul.f32 %v16833_v40, %v16952_v17 }
 0xc39   :  { %v8131_v15 = vadd.f32 %v8067_v52, %v7922_v31  ;;  %v7923_v46 = vmul.f32 0.5, %v12220_v25  ;;  %v12236_v21 = vpop.f32.mrb[34].mxu1  ;;  %v7350_v60 = vpop.f32.mrb[39].mxu0  ;;  %v7928_v52 = vmul.f32 0.5, %v7436_v26  ;;  %v8066_v25 = vmul.f32 %v16845_v61, %v16952_v17 }
 0xc3a   :  { %v8139_v11 = vadd.f32 %v8075_v5, %v7930_v47  ;;  %v7931_v23 = vmul.f32 0.5, %v12236_v21  ;;  %v7439_v50 = vpop.f32.mrb[35].mxu1  ;;  %v7921_v53 = vmul.f32 0.5, %v7350_v60  ;;  %v8129_v28 = vadd.f32 %v8065_v54, %v7920_v35 }
 0xc3b   :  { %v8132_v19 = vadd.f32 %v8068_v58, %v7923_v46  ;;  %v16967_v31 = vadd.f32 %v16851_v32, %v8131_v15  ;;  %v8073_v60 = vmul.f32 %v16833_v40, %v16954_v13 }
 0xc3c   :  { %v8140_v41 = vadd.f32 %v8076_v12, %v7931_v23  ;;  %v16977_v21 = vadd.f32 %v16851_v32, %v8139_v11  ;;  %v8130_v26 = vadd.f32 %v8066_v25, %v7921_v53  ;;  %v7929_v12 = vmul.f32 0.5, %v7439_v50 }
 0xc3d   :  { %v8279_v47 = vsel %vm3289_vm6, %v16967_v31, -inf  ;;  %v16974_v5 = vadd.f32 %v16891_v37, %v8132_v19  ;;  %v8074_v19 = vmul.f32 %v16845_v61, %v16954_v13  ;;  %v8137_v62 = vadd.f32 %v8073_v60, %v7928_v52 }
 0xc3e   :  { %v12223_v15 = vpop.f32.mrb[40].mxu0  ;;  %8280 = vmax.xlane.f32.xlu1 %v8279_v47  ;;  %v16984_v58 = vadd.f32 %v16891_v37, %v8140_v41  ;;  %v8303_v53 = vsel %vm3289_vm6, %v16977_v21, -inf  ;;  %v16991_v50 = vadd.f32 %v16861_v33, %v8129_v28  ;;  %v8071_v41 = vmul.f32 %v16877_v9, %v16952_v17 }
 0xc3f   :  { %v12239_v23 = vpop.f32.mrb[36].mxu1  ;;  %v7363_v46 = vpop.f32.mrb[41].mxu0  ;;  %v8282_v35 = vsel %vm3289_vm6, %v16974_v5, -inf  ;;  %v7926_v51 = vmul.f32 0.5, %v12223_v15  ;;  %v8138_v16 = vadd.f32 %v8074_v19, %v7929_v12  ;;  %v16998_v52 = vadd.f32 %v16869_v38, %v8130_v26 }
 0xc40   :  { %v7452_v11 = vpop.f32.mrb[37].mxu1  ;;  %v12224_v54 = vpop.f32.mrb[42].mxu0  ;;  %8283 = vmax.xlane.f32.xlu0 %v8282_v35  ;;  %v8306_v35 = vsel %vm3289_vm6, %v16984_v58, -inf  ;;  %v8072_v60 = vmul.f32 %v16899_v10, %v16952_v17  ;;  %v7934_v28 = vmul.f32 0.5, %v12239_v23  ;;  %v8273_v39 = vsel %vm3289_vm6, %v16991_v50, -inf }
 0xc41   :  { %v12240_v48 = vpop.f32.mrb[38].mxu1  ;;  %v7366_v47 = vpop.f32.mrb[43].mxu0  ;;  %v7927_v56 = vmul.f32 0.5, %v12224_v54  ;;  %v8135_v15 = vadd.f32 %v8071_v41, %v7926_v51  ;;  %v17005_v30 = vadd.f32 %v16861_v33, %v8137_v62  ;;  %v8079_v12 = vmul.f32 %v16877_v9, %v16954_v13 }
 0xc42   :  { %v7455_v25 = vpop.f32.mrb[39].mxu1  ;;  %8304 = vmax.xlane.f32.xlu1 %v8303_v53  ;;  %v7935_v54 = vmul.f32 0.5, %v12240_v48  ;;  %v8276_v26 = vsel %vm3289_vm6, %v16998_v52, -inf  ;;  %v17012_v53 = vadd.f32 %v16869_v38, %v8138_v16  ;;  %v8080_v51 = vmul.f32 %v16899_v10, %v16954_v13 }
 0xc43   :  { %v8136_v19 = vadd.f32 %v8072_v60, %v7927_v56  ;;  %v8143_v23 = vadd.f32 %v8079_v12, %v7934_v28  ;;  %v7924_v41 = vmul.f32 0.5, %v7363_v46  ;;  %v8297_v62 = vsel %vm3289_vm6, %v17005_v30, -inf }
 0xc44   :  { %8307 = vmax.xlane.f32.xlu0 %v8306_v35  ;;  %v17019_v35 = vadd.f32 %v16913_v24, %v8135_v15  ;;  %v8144_v48 = vadd.f32 %v8080_v51, %v7935_v54  ;;  %v7925_v56 = vmul.f32 0.5, %v7366_v47  ;;  %v8300_v16 = vsel %vm3289_vm6, %v17012_v53, -inf }
 0xc45   :  { %v17026_v60 = vadd.f32 %v16933_v29, %v8136_v19  ;;  %v8070_v46 = vmul.f32 %v16907_v55, %v16952_v17  ;;  %v7932_v12 = vmul.f32 0.5, %v7452_v11  ;;  %v8077_v47 = vmul.f32 %v16883_v4, %v16954_v13 }
 0xc46   :  { %8274 = vmax.xlane.f32.xlu1 %v8273_v39  ;;  %v8069_v39 = vmul.f32 %v16883_v4, %v16952_v17  ;;  %v8291_v15 = vsel %vm3289_vm6, %v17019_v35, -inf  ;;  %v7933_v51 = vmul.f32 0.5, %v7455_v25  ;;  %v17040_v17 = vadd.f32 %v16933_v29, %v8144_v48  ;;  %v17054_v48 = vpop.permute.xlu1 %8038 }
 0xc47   :  { %v8134_v54 = vadd.f32 %v8070_v46, %v7925_v56  ;;  %v8294_v19 = vsel %vm3289_vm6, %v17026_v60, -inf  ;;  %v8141_v11 = vadd.f32 %v8077_v47, %v7932_v12  ;;  %v17061_v46 = vpop.permute.xlu0 %8042 }
 0xc48   :  { %8277 = vmax.xlane.f32.xlu0 %v8276_v26  ;;  %v8133_v28 = vadd.f32 %v8069_v39, %v7924_v41  ;;  %v17033_v26 = vadd.f32 %v16913_v24, %v8143_v23  ;;  %v8078_v41 = vmul.f32 %v16907_v55, %v16954_v13  ;;  %v8318_v25 = vsel %vm3289_vm6, %v17040_v17, -inf }
 0xc49   :  { %v17052_v56 = vadd.f32 %v16945_v8, %v8134_v54  ;;  %v8083_v54 = vmul.f32 %v16827_v22, %v17054_v48 }
 0xc4a   :  { %8298 = vmax.xlane.f32.xlu1 %v8297_v62  ;;  %v8315_v23 = vsel %vm3289_vm6, %v17033_v26, -inf  ;;  %v17047_v62 = vadd.f32 %v16925_v0, %v8133_v28  ;;  %v8142_v39 = vadd.f32 %v8078_v41, %v7933_v51 }
 0xc4b   :  { %18630 = vst [vmem:[#allocation58_spill] sm:$0xff] %v17052_v56  ;;  %v8288_v12 = vsel %vm3289_vm6, %v17052_v56, -inf }
 0xc4c   :  { %8301 = vmax.xlane.f32.xlu0 %v8300_v16  ;;  %v8285_v13 = vsel %vm3289_vm6, %v17047_v62, -inf  ;;  %v17059_v16 = vadd.f32 %v16925_v0, %v8141_v11  ;;  %v8091_v11 = vmul.f32 %v16827_v22, %v17061_v46 }
 0xc4e   :  { %8292 = vmax.xlane.f32.xlu1 %v8291_v15  ;;  %18631 = vst [vmem:[#allocation57_spill] sm:$0xff] %v17059_v16  ;;  %v17066_v15 = vadd.f32 %v16945_v8, %v8142_v39 }
 0xc50   :  { %8295 = vmax.xlane.f32.xlu0 %v8294_v19  ;;  %18632 = vst [vmem:[#allocation61_spill] sm:$0xff] %v17066_v15  ;;  %v8312_v14 = vsel %vm3289_vm6, %v17066_v15, -inf }
 0xc52   :  { %8316 = vmax.xlane.f32.xlu1 %v8315_v23 }
 0xc54   :  { %8319 = vmax.xlane.f32.xlu0 %v8318_v25 }
 0xc56   :  { %8286 = vmax.xlane.f32.xlu1 %v8285_v13  ;;  %v8309_v13 = vsel %vm3289_vm6, %v17059_v16, -inf }
 0xc57   :  { %v12251_v28 = vpop.f32.mrb[44].mxu0 }
 0xc58   :  { %v7938_v47 = vmul.f32 0.5, %v12251_v28  ;;  %v12267_v51 = vpop.f32.mrb[40].mxu1  ;;  %v7525_v19 = vpop.f32.mrb[45].mxu0  ;;  %8289 = vmax.xlane.f32.xlu0 %v8288_v12  ;;  %v8084_v28 = vmul.f32 %v16839_v42, %v17054_v48 }
 0xc59   :  { %v7946_v41 = vmul.f32 0.5, %v12267_v51  ;;  %v7614_v23 = vpop.f32.mrb[41].mxu1  ;;  %v12252_v25 = vpop.f32.mrb[46].mxu0  ;;  %v7936_v49 = vmul.f32 0.5, %v7525_v19  ;;  %v8092_v51 = vmul.f32 %v16839_v42, %v17061_v46 }
 0xc5a   :  { %v8147_v1 = vadd.f32 %v8083_v54, %v7938_v47  ;;  %v7939_v39 = vmul.f32 0.5, %v12252_v25  ;;  %v12268_v63 = vpop.f32.mrb[42].mxu1  ;;  %v7528_v34 = vpop.f32.mrb[47].mxu0  ;;  %8310 = vmax.xlane.f32.xlu1 %v8309_v13  ;;  %v8081_v47 = vmul.f32 %v16833_v40, %v17054_v48  ;;  %v7944_v57 = vmul.f32 0.5, %v7614_v23 }
 0xc5b   :  { %v8155_v2 = vadd.f32 %v8091_v11, %v7946_v41  ;;  %v7947_v12 = vmul.f32 0.5, %v12268_v63  ;;  %v7617_v7 = vpop.f32.mrb[43].mxu1  ;;  %v7937_v19 = vmul.f32 0.5, %v7528_v34  ;;  %v8082_v63 = vmul.f32 %v16845_v61, %v17054_v48 }
 0xc5c   :  { %v8148_v54 = vadd.f32 %v8084_v28, %v7939_v39  ;;  %8313 = vmax.xlane.f32.xlu0 %v8312_v14  ;;  %v17083_v25 = vadd.f32 %v16851_v32, %v8147_v1  ;;  %v8145_v41 = vadd.f32 %v8081_v47, %v7936_v49  ;;  %v8089_v14 = vmul.f32 %v16833_v40, %v17061_v46 }
 0xc5d   :  { %v8156_v13 = vadd.f32 %v8092_v51, %v7947_v12  ;;  %v17093_v20 = vadd.f32 %v16851_v32, %v8155_v2  ;;  %v8146_v1 = vadd.f32 %v8082_v63, %v7937_v19  ;;  %v7945_v23 = vmul.f32 0.5, %v7617_v7 }
 0xc5e   :  { %18633 = vst [vmem:[#allocation55_spill] sm:$0xff] %v17083_v25  ;;  %v8327_v11 = vsel %vm3289_vm6, %v17083_v25, -inf  ;;  %v17090_v3 = vadd.f32 %v16891_v37, %v8148_v54  ;;  %v8090_v51 = vmul.f32 %v16845_v61, %v17061_v46  ;;  %v8153_v54 = vadd.f32 %v8089_v14, %v7944_v57 }
 0xc5f   :  { %18635 = vst [vmem:[#allocation59_spill] sm:$0xff] %v17093_v20  ;;  %v12255_v34 = vpop.f32.mrb[48].mxu0  ;;  %8328 = vmax.xlane.f32.xlu1 %v8327_v11  ;;  %v17100_v12 = vadd.f32 %v16891_v37, %v8156_v13  ;;  %v8351_v7 = vsel %vm3289_vm6, %v17093_v20, -inf  ;;  %v17107_v19 = vadd.f32 %v16861_v33, %v8145_v41  ;;  %v8087_v13 = vmul.f32 %v16877_v9, %v17054_v48 }
 0xc60   :  { %18634 = vst [vmem:[#allocation12_spill] sm:$0xff] %v17090_v3  ;;  %v12271_v39 = vpop.f32.mrb[44].mxu1  ;;  %v7541_v28 = vpop.f32.mrb[49].mxu0  ;;  %v8330_v49 = vsel %vm3289_vm6, %v17090_v3, -inf  ;;  %v7942_v25 = vmul.f32 0.5, %v12255_v34  ;;  %v8154_v3 = vadd.f32 %v8090_v51, %v7945_v23  ;;  %v17114_v57 = vadd.f32 %v16869_v38, %v8146_v1 }
 0xc61   :  { %18636 = vst [vmem:[#allocation60_spill] sm:$0xff] %v17100_v12  ;;  %v7630_v2 = vpop.f32.mrb[45].mxu1  ;;  %v12256_v47 = vpop.f32.mrb[50].mxu0  ;;  %8331 = vmax.xlane.f32.xlu0 %v8330_v49  ;;  %18637 = vst [vmem:[#allocation13_spill] sm:$0xff] %v17107_v19  ;;  %v8354_v49 = vsel %vm3289_vm6, %v17100_v12, -inf  ;;  %v8088_v14 = vmul.f32 %v16899_v10, %v17054_v48  ;;  %v7950_v41 = vmul.f32 0.5, %v12271_v39  ;;  %v17121_v56 = vadd.f32 %v16861_v33, %v8153_v54 }
 0xc62   :  { %v12272_v15 = vpop.f32.mrb[46].mxu1  ;;  %v7544_v11 = vpop.f32.mrb[51].mxu0  ;;  %v7943_v16 = vmul.f32 0.5, %v12256_v47  ;;  %18638 = vst [vmem:[#allocation62_spill] sm:$0xff] %v17114_v57  ;;  %v8151_v34 = vadd.f32 %v8087_v13, %v7942_v25  ;;  %v8321_v20 = vsel %vm3289_vm6, %v17107_v19, -inf  ;;  %v8095_v23 = vmul.f32 %v16877_v9, %v17061_v46 }
 0xc63   :  { %v7633_v63 = vpop.f32.mrb[47].mxu1  ;;  %8352 = vmax.xlane.f32.xlu1 %v8351_v7  ;;  %18639 = vst [vmem:[#allocation64_spill] sm:$0xff] %v17121_v56  ;;  %v7951_v47 = vmul.f32 0.5, %v12272_v15  ;;  %v8324_v1 = vsel %vm3289_vm6, %v17114_v57, -inf  ;;  %v17128_v7 = vadd.f32 %v16869_v38, %v8154_v3  ;;  %v8096_v25 = vmul.f32 %v16899_v10, %v17061_v46 }
 0xc64   :  { %v8152_v51 = vadd.f32 %v8088_v14, %v7943_v16  ;;  %v8159_v39 = vadd.f32 %v8095_v23, %v7950_v41  ;;  %v7940_v13 = vmul.f32 0.5, %v7541_v28  ;;  %v8345_v54 = vsel %vm3289_vm6, %v17121_v56, -inf }
 0xc65   :  { %8355 = vmax.xlane.f32.xlu0 %v8354_v49  ;;  %18640 = vst [vmem:[#allocation15_spill] sm:$0xff] %v17128_v7  ;;  %v17135_v49 = vadd.f32 %v16913_v24, %v8151_v34  ;;  %v8160_v16 = vadd.f32 %v8096_v25, %v7951_v47  ;;  %v7941_v15 = vmul.f32 0.5, %v7544_v11  ;;  %v8348_v3 = vsel %vm3289_vm6, %v17128_v7, -inf }
 0xc66   :  { %v17142_v14 = vadd.f32 %v16933_v29, %v8152_v51  ;;  %v8086_v28 = vmul.f32 %v16907_v55, %v17054_v48  ;;  %v7948_v23 = vmul.f32 0.5, %v7630_v2  ;;  %v8093_v11 = vmul.f32 %v16883_v4, %v17061_v46 }
 0xc67   :  { %8322 = vmax.xlane.f32.xlu1 %v8321_v20  ;;  %18641 = vst [vmem:[#allocation14_spill] sm:$0xff] %v17135_v49  ;;  %v8085_v20 = vmul.f32 %v16883_v4, %v17054_v48  ;;  %v8339_v34 = vsel %vm3289_vm6, %v17135_v49, -inf  ;;  %v7949_v25 = vmul.f32 0.5, %v7633_v63  ;;  %v17156_v48 = vadd.f32 %v16933_v29, %v8160_v16  ;;  %v17170_v16 = vpop.permute.xlu1 %8046 }
 0xc68   :  { %18642 = vst [vmem:[#allocation17_spill] sm:$0xff] %v17142_v14  ;;  %v8150_v47 = vadd.f32 %v8086_v28, %v7941_v15  ;;  %v8342_v51 = vsel %vm3289_vm6, %v17142_v14, -inf  ;;  %v8157_v2 = vadd.f32 %v8093_v11, %v7948_v23  ;;  %v17177_v28 = vpop.permute.xlu0 %8050 }
 0xc69   :  { %8325 = vmax.xlane.f32.xlu0 %v8324_v1  ;;  %v8149_v41 = vadd.f32 %v8085_v20, %v7940_v13  ;;  %v17149_v1 = vadd.f32 %v16913_v24, %v8159_v39  ;;  %18644 = vst [vmem:[#allocation5_spill] sm:$0xff] %v17156_v48  ;;  %v8094_v13 = vmul.f32 %v16907_v55, %v17061_v46  ;;  %v8366_v63 = vsel %vm3289_vm6, %v17156_v48, -inf }
 0xc6a   :  { %v17168_v15 = vadd.f32 %v16945_v8, %v8150_v47  ;;  %v8099_v47 = vmul.f32 %v16827_v22, %v17170_v16 }
 0xc6b   :  { %8346 = vmax.xlane.f32.xlu1 %v8345_v54  ;;  %18643 = vst [vmem:[#allocation16_spill] sm:$0xff] %v17149_v1  ;;  %v8363_v39 = vsel %vm3289_vm6, %v17149_v1, -inf  ;;  %v17163_v54 = vadd.f32 %v16925_v0, %v8149_v41  ;;  %v8158_v20 = vadd.f32 %v8094_v13, %v7949_v25 }
 0xc6c   :  { %18646 = vst [vmem:[#allocation3_spill] sm:$0xff] %v17168_v15  ;;  %v8336_v23 = vsel %vm3289_vm6, %v17168_v15, -inf }
 0xc6d   :  { %8349 = vmax.xlane.f32.xlu0 %v8348_v3  ;;  %18645 = vst [vmem:[#allocation2_spill] sm:$0xff] %v17163_v54  ;;  %v8333_v46 = vsel %vm3289_vm6, %v17163_v54, -inf  ;;  %v17175_v3 = vadd.f32 %v16925_v0, %v8157_v2  ;;  %v8107_v2 = vmul.f32 %v16827_v22, %v17177_v28 }
 0xc6f   :  { %8340 = vmax.xlane.f32.xlu1 %v8339_v34  ;;  %18647 = vst [vmem:[#allocation4_spill] sm:$0xff] %v17175_v3  ;;  %v17182_v34 = vadd.f32 %v16945_v8, %v8158_v20 }
 0xc71   :  { %8343 = vmax.xlane.f32.xlu0 %v8342_v51  ;;  %18648 = vst [vmem:[#allocation11_spill] sm:$0xff] %v17182_v34  ;;  %v8360_v7 = vsel %vm3289_vm6, %v17182_v34, -inf }
 0xc73   :  { %8364 = vmax.xlane.f32.xlu1 %v8363_v39 }
 0xc75   :  { %8367 = vmax.xlane.f32.xlu0 %v8366_v63 }
 0xc77   :  { %8334 = vmax.xlane.f32.xlu1 %v8333_v46  ;;  %v8357_v46 = vsel %vm3289_vm6, %v17175_v3, -inf }
 0xc78   :  { %v12283_v41 = vpop.f32.mrb[52].mxu0 }
 0xc79   :  { %v7954_v11 = vmul.f32 0.5, %v12283_v41  ;;  %v12299_v25 = vpop.f32.mrb[48].mxu1  ;;  %v7703_v51 = vpop.f32.mrb[53].mxu0  ;;  %8337 = vmax.xlane.f32.xlu0 %v8336_v23  ;;  %v8100_v41 = vmul.f32 %v16839_v42, %v17170_v16 }
 0xc7a   :  { %v7962_v13 = vmul.f32 0.5, %v12299_v25  ;;  %v7792_v39 = vpop.f32.mrb[49].mxu1  ;;  %v12284_v63 = vpop.f32.mrb[54].mxu0  ;;  %v7952_v54 = vmul.f32 0.5, %v7703_v51  ;;  %v8108_v25 = vmul.f32 %v16839_v42, %v17177_v28 }
 0xc7b   :  { %v8163_v15 = vadd.f32 %v8099_v47, %v7954_v11  ;;  %v7955_v20 = vmul.f32 0.5, %v12284_v63  ;;  %v12300_v48 = vpop.f32.mrb[50].mxu1  ;;  %v7706_v1 = vpop.f32.mrb[55].mxu0  ;;  %8358 = vmax.xlane.f32.xlu1 %v8357_v46  ;;  %v8097_v11 = vmul.f32 %v16833_v40, %v17170_v16  ;;  %v7960_v3 = vmul.f32 0.5, %v7792_v39 }
 0xc7c   :  { %v8171_v14 = vadd.f32 %v8107_v2, %v7962_v13  ;;  %v7963_v23 = vmul.f32 0.5, %v12300_v48  ;;  %v7795_v49 = vpop.f32.mrb[51].mxu1  ;;  %v7953_v51 = vmul.f32 0.5, %v7706_v1  ;;  %v8098_v48 = vmul.f32 %v16845_v61, %v17170_v16 }
 0xc7d   :  { %v8164_v47 = vadd.f32 %v8100_v41, %v7955_v20  ;;  %8361 = vmax.xlane.f32.xlu0 %v8360_v7  ;;  %v17199_v63 = vadd.f32 %v16851_v32, %v8163_v15  ;;  %v8161_v13 = vadd.f32 %v8097_v11, %v7952_v54  ;;  %v8105_v7 = vmul.f32 %v16833_v40, %v17177_v28 }
 0xc7e   :  { %v8172_v46 = vadd.f32 %v8108_v25, %v7963_v23  ;;  %v17209_v56 = vadd.f32 %v16851_v32, %v8171_v14  ;;  %v8162_v15 = vadd.f32 %v8098_v48, %v7953_v51  ;;  %v7961_v39 = vmul.f32 0.5, %v7795_v49 }
 0xc7f   :  { %18649 = vst [vmem:[#allocation8_spill] sm:$0xff] %v17199_v63  ;;  %v8375_v2 = vsel %vm3289_vm6, %v17199_v63, -inf  ;;  %v17206_v34 = vadd.f32 %v16891_v37, %v8164_v47  ;;  %v8106_v25 = vmul.f32 %v16845_v61, %v17177_v28  ;;  %v8169_v47 = vadd.f32 %v8105_v7, %v7960_v3 }
 0xc80   :  { %18651 = vst [vmem:[#allocation10_spill] sm:$0xff] %v17209_v56  ;;  %v12287_v1 = vpop.f32.mrb[56].mxu0  ;;  %8376 = vmax.xlane.f32.xlu1 %v8375_v2  ;;  %v17216_v23 = vadd.f32 %v16891_v37, %v8172_v46  ;;  %v8399_v49 = vsel %vm3289_vm6, %v17209_v56, -inf  ;;  %v17223_v51 = vadd.f32 %v16861_v33, %v8161_v13  ;;  %v8103_v46 = vmul.f32 %v16877_v9, %v17170_v16 }
 0xc81   :  { %18650 = vst [vmem:[#allocation9_spill] sm:$0xff] %v17206_v34  ;;  %v12303_v20 = vpop.f32.mrb[52].mxu1  ;;  %v7719_v41 = vpop.f32.mrb[57].mxu0  ;;  %v8378_v54 = vsel %vm3289_vm6, %v17206_v34, -inf  ;;  %v7958_v63 = vmul.f32 0.5, %v12287_v1  ;;  %v8170_v34 = vadd.f32 %v8106_v25, %v7961_v39  ;;  %v17230_v3 = vadd.f32 %v16869_v38, %v8162_v15 }
 0xc82   :  { %v7808_v14 = vpop.f32.mrb[53].mxu1  ;;  %v12288_v11 = vpop.f32.mrb[58].mxu0  ;;  %8379 = vmax.xlane.f32.xlu0 %v8378_v54  ;;  %v8402_v54 = vsel %vm3289_vm6, %v17216_v23, -inf  ;;  %v8104_v7 = vmul.f32 %v16899_v10, %v17170_v16  ;;  %v7966_v13 = vmul.f32 0.5, %v12303_v20  ;;  %v8369_v56 = vsel %vm3289_vm6, %v17223_v51, -inf }
 0xc83   :  { %v12304_v57 = vpop.f32.mrb[54].mxu1  ;;  %v7722_v2 = vpop.f32.mrb[59].mxu0  ;;  %v7959_v19 = vmul.f32 0.5, %v12288_v11  ;;  %v8167_v1 = vadd.f32 %v8103_v46, %v7958_v63  ;;  %v17237_v12 = vadd.f32 %v16861_v33, %v8169_v47  ;;  %v8111_v39 = vmul.f32 %v16877_v9, %v17177_v28 }
 0xc84   :  { %v7811_v48 = vpop.f32.mrb[55].mxu1  ;;  %8400 = vmax.xlane.f32.xlu1 %v8399_v49  ;;  %v7967_v11 = vmul.f32 0.5, %v12304_v57  ;;  %v8372_v15 = vsel %vm3289_vm6, %v17230_v3, -inf  ;;  %v17244_v49 = vadd.f32 %v16869_v38, %v8170_v34  ;;  %v8112_v63 = vmul.f32 %v16899_v10, %v17177_v28 }
 0xc85   :  { %v8168_v25 = vadd.f32 %v8104_v7, %v7959_v19  ;;  %v8175_v20 = vadd.f32 %v8111_v39, %v7966_v13  ;;  %v7956_v46 = vmul.f32 0.5, %v7719_v41  ;;  %v8393_v47 = vsel %vm3289_vm6, %v17237_v12, -inf }
 0xc86   :  { %8403 = vmax.xlane.f32.xlu0 %v8402_v54  ;;  %v17251_v54 = vadd.f32 %v16913_v24, %v8167_v1  ;;  %v8176_v19 = vadd.f32 %v8112_v63, %v7967_v11  ;;  %v7957_v57 = vmul.f32 0.5, %v7722_v2  ;;  %v8396_v34 = vsel %vm3289_vm6, %v17244_v49, -inf }
 0xc87   :  { %v17258_v7 = vadd.f32 %v16933_v29, %v8168_v25  ;;  %v8102_v41 = vmul.f32 %v16907_v55, %v17170_v16  ;;  %v7964_v39 = vmul.f32 0.5, %v7808_v14  ;;  %v8109_v2 = vmul.f32 %v16883_v4, %v17177_v28 }
 0xc88   :  { %8370 = vmax.xlane.f32.xlu1 %v8369_v56  ;;  %v8101_v56 = vmul.f32 %v16883_v4, %v17170_v16  ;;  %v8387_v1 = vsel %vm3289_vm6, %v17251_v54, -inf  ;;  %v7965_v63 = vmul.f32 0.5, %v7811_v48  ;;  %v17272_v16 = vadd.f32 %v16933_v29, %v8176_v19  ;;  %v8055_v19 = vpop.permute.xlu1 %8054 }
 0xc89   :  { %v8166_v11 = vadd.f32 %v8102_v41, %v7957_v57  ;;  %v8390_v25 = vsel %vm3289_vm6, %v17258_v7, -inf  ;;  %v8173_v14 = vadd.f32 %v8109_v2, %v7964_v39  ;;  %v8115_v2 = vmul.f32 %v16827_v22, %v8055_v19 }
 0xc8a   :  { %8373 = vmax.xlane.f32.xlu0 %v8372_v15  ;;  %v8165_v13 = vadd.f32 %v8101_v56, %v7956_v46  ;;  %v17265_v15 = vadd.f32 %v16913_v24, %v8175_v20  ;;  %18653 = vst [vmem:[#allocation38_spill] sm:$0xff] %v17272_v16  ;;  %v8110_v46 = vmul.f32 %v16907_v55, %v17177_v28  ;;  %v8414_v48 = vsel %vm3289_vm6, %v17272_v16, -inf }
 0xc8b   :  { %v17284_v57 = vadd.f32 %v16945_v8, %v8166_v11  ;;  %v17289_v28 = vadd.f32 %v16925_v0, %v8173_v14 }
 0xc8c   :  { %8394 = vmax.xlane.f32.xlu1 %v8393_v47  ;;  %18652 = vst [vmem:[#allocation40_spill] sm:$0xff] %v17265_v15  ;;  %v8411_v20 = vsel %vm3289_vm6, %v17265_v15, -inf  ;;  %v17279_v47 = vadd.f32 %v16925_v0, %v8165_v13  ;;  %v8174_v56 = vadd.f32 %v8110_v46, %v7965_v63 }
 0xc8d   :  { %v8384_v13 = vsel %vm3289_vm6, %v17284_v57, -inf  ;;  %v8405_v14 = vsel %vm3289_vm6, %v17289_v28, -inf }
 0xc8e   :  { %8397 = vmax.xlane.f32.xlu0 %v8396_v34  ;;  %v8381_v34 = vsel %vm3289_vm6, %v17279_v47, -inf  ;;  %v17294_v39 = vadd.f32 %v16945_v8, %v8174_v56 }
 0xc90   :  { %8388 = vmax.xlane.f32.xlu1 %v8387_v1  ;;  %v8408_v22 = vsel %vm3289_vm6, %v17294_v39, -inf }
 0xc92   :  { %8391 = vmax.xlane.f32.xlu0 %v8390_v25  ;;  %v8113_v25 = vmul.f32 %v16833_v40, %v8055_v19 }
 0xc94   :  { %8412 = vmax.xlane.f32.xlu1 %v8411_v20 }
 0xc96   :  { %8415 = vmax.xlane.f32.xlu0 %v8414_v48 }
 0xc98   :  { %8382 = vmax.xlane.f32.xlu1 %v8381_v34  ;;  %v8116_v34 = vmul.f32 %v16839_v42, %v8055_v19 }
 0xc99   :  { %v12315_v41 = vpop.f32.mrb[60].mxu0 }
 0xc9a   :  { %v7970_v1 = vmul.f32 0.5, %v12315_v41  ;;  %v7881_v11 = vpop.f32.mrb[61].mxu0  ;;  %8385 = vmax.xlane.f32.xlu0 %v8384_v13  ;;  %v8114_v41 = vmul.f32 %v16845_v61, %v8055_v19 }
 0xc9b   :  { %v7968_v63 = vmul.f32 0.5, %v7881_v11  ;;  %v12316_v46 = vpop.f32.mrb[62].mxu0 }
 0xc9c   :  { %v8179_v20 = vadd.f32 %v8115_v2, %v7970_v1  ;;  %v7971_v48 = vmul.f32 0.5, %v12316_v46  ;;  %v7884_v16 = vpop.f32.mrb[63].mxu0  ;;  %8406 = vmax.xlane.f32.xlu1 %v8405_v14  ;;  %v8117_v14 = vmul.f32 %v16883_v4, %v8055_v19 }
 0xc9d   :  { %v8177_v56 = vadd.f32 %v8113_v25, %v7968_v63  ;;  %v7969_v15 = vmul.f32 0.5, %v7884_v16  ;;  %v8119_v63 = vmul.f32 %v16877_v9, %v8055_v19 }
 0xc9e   :  { %v8180_v13 = vadd.f32 %v8116_v34, %v7971_v48  ;;  %8409 = vmax.xlane.f32.xlu0 %v8408_v22  ;;  %v17305_v40 = vadd.f32 %v16851_v32, %v8179_v20  ;;  %v8120_v48 = vmul.f32 %v16899_v10, %v8055_v19  ;;  %v8118_v22 = vmul.f32 %v16907_v55, %v8055_v19 }
 0xc9f   :  { %v8178_v11 = vadd.f32 %v8114_v41, %v7969_v15  ;;  %v17313_v2 = vadd.f32 %v16861_v33, %v8177_v56 }
 0xca0   :  { %v8423_v1 = vsel %vm3289_vm6, %v17305_v40, -inf  ;;  %v17310_v42 = vadd.f32 %v16891_v37, %v8180_v13 }
 0xca1   :  { %v12319_v16 = vpop.f32.mrb[64].mxu0  ;;  %8424 = vmax.xlane.f32.xlu1 %v8423_v1  ;;  %v17319_v15 = vadd.f32 %v16869_v38, %v8178_v11  ;;  %v8417_v9 = vsel %vm3289_vm6, %v17313_v2, -inf }
 0xca2   :  { %v7974_v61 = vmul.f32 0.5, %v12319_v16  ;;  %v7897_v25 = vpop.f32.mrb[65].mxu0  ;;  %v8426_v32 = vsel %vm3289_vm6, %v17310_v42, -inf }
 0xca3   :  { %v7972_v46 = vmul.f32 0.5, %v7897_v25  ;;  %v12320_v37 = vpop.f32.mrb[66].mxu0  ;;  %8427 = vmax.xlane.f32.xlu0 %v8426_v32  ;;  %v8420_v13 = vsel %vm3289_vm6, %v17319_v15, -inf }
 0xca4   :  { %v8183_v20 = vadd.f32 %v8119_v63, %v7974_v61  ;;  %v7975_v33 = vmul.f32 0.5, %v12320_v37  ;;  %v7900_v34 = vpop.f32.mrb[67].mxu0 }
 0xca5   :  { %v8181_v56 = vadd.f32 %v8117_v14, %v7972_v46  ;;  %v7973_v41 = vmul.f32 0.5, %v7900_v34  ;;  %8418 = vmax.xlane.f32.xlu1 %v8417_v9 }
 0xca6   :  { %v8184_v38 = vadd.f32 %v8120_v48, %v7975_v33  ;;  %v17329_v4 = vadd.f32 %v16913_v24, %v8183_v20 }
 0xca7   :  { %v8182_v11 = vadd.f32 %v8118_v22, %v7973_v41  ;;  %8421 = vmax.xlane.f32.xlu0 %v8420_v13  ;;  %v17337_v16 = vadd.f32 %v16925_v0, %v8181_v56 }
 0xca8   :  { %v8435_v10 = vsel %vm3289_vm6, %v17329_v4, -inf  ;;  %v17334_v1 = vadd.f32 %v16933_v29, %v8184_v38 }
 0xca9   :  { %8436 = vmax.xlane.f32.xlu1 %v8435_v10  ;;  %v17342_v19 = vadd.f32 %v16945_v8, %v8182_v11  ;;  %v8429_v61 = vsel %vm3289_vm6, %v17337_v16, -inf }
 0xcaa   :  { %v8438_v55 = vsel %vm3289_vm6, %v17334_v1, -inf }
 0xcab   :  { %8439 = vmax.xlane.f32.xlu0 %v8438_v55  ;;  %v8257_v24 = vpop.xlane.xlu0 %8256  ;;  %v8432_v0 = vsel %vm3289_vm6, %v17342_v19, -inf }
 0xcac   :  { %v8443_v63 = vsub.f32 %v16854_v44, %v8257_v24 }
 0xcad   :  { %8430 = vmax.xlane.f32.xlu1 %v8429_v61 }
 0xcae   :  { %v8509_v29 = vmul.f32 1.442695, %v8443_v63  ;;  %v8254_v25 = vpop.xlane.xlu1 %8253 }
 0xcaf   :  { %8433 = vmax.xlane.f32.xlu0 %v8432_v0  ;;  %v8251_v32 = vpop.xlane.xlu0 %8250  ;;  %v8442_v14 = vsub.f32 %v16872_v36, %v8254_v25 }
 0xcb0   :  { %12828 = vpow2.f32 %v8509_v29  ;;  %v8441_v46 = vsub.f32 %v16864_v59, %v8251_v32 }
 0xcb1   :  { %v8507_v9 = vmul.f32 1.442695, %v8442_v14 }
 0xcb2   :  { %v8505_v8 = vmul.f32 1.442695, %v8441_v46 }
 0xcb3   :  { %v8269_v37 = vpop.xlane.xlu1 %8268  ;;  %v8260_v20 = vpop.xlane.xlu0 %8259 }
 0xcb4   :  { %12830 = vpow2.f32 %v8505_v8  ;;  %v8447_v33 = vsub.f32 %v16916_v45, %v8269_v37  ;;  %v8444_v44 = vsub.f32 %v16894_v27, %v8260_v20 }
 0xcb6   :  { %v8517_v48 = vmul.f32 1.442695, %v8447_v33  ;;  %v8511_v34 = vmul.f32 1.442695, %v8444_v44 }
 0xcb7   :  { %v8263_v56 = vpop.xlane.xlu1 %8262  ;;  %v8272_v41 = vpop.xlane.xlu0 %8271 }
 0xcb8   :  { %12832 = vpow2.f32 %v8517_v48  ;;  %v8445_v22 = vsub.f32 %v16928_v6, %v8263_v56  ;;  %v8448_v59 = vsub.f32 %v16936_v18, %v8272_v41 }
 0xcb9   :  { %12834 = vpow2.f32 %v8511_v34 }
 0xcba   :  { %v17355_v38 = vpop.eup %12828  ;;  %v8513_v36 = vmul.f32 1.442695, %v8445_v22  ;;  %12836 = vpow2.f32 %v8507_v9  ;;  %v8519_v13 = vmul.f32 1.442695, %v8448_v59 }
 0xcbb   :  { %v8266_v11 = vpop.xlane.xlu0 %8265  ;;  %v8639_v27 = vsel %vm3289_vm6, %v17355_v38, 0.0 }
 0xcbc   :  { %12838 = vpow2.f32 %v8513_v36  ;;  %v8446_v45 = vsub.f32 %v16948_v43, %v8266_v11  ;;  %8640 = vadd.xlane.f32.xlu1 %v8639_v27 }
 0xcbd   :  { %12840 = vpow2.f32 %v8519_v13 }
 0xcbe   :  { %v17360_v10 = vpop.eup %12830  ;;  %v8515_v6 = vmul.f32 1.442695, %v8446_v45 }
 0xcbf   :  { %v8633_v18 = vsel %vm3289_vm6, %v17360_v10, 0.0 }
 0xcc0   :  { %8634 = vadd.xlane.f32.xlu1 %v8633_v18  ;;  %12842 = vpow2.f32 %v8515_v6 }
 0xcc2   :  { %v17364_v55 = vpop.eup %12832 }
 0xcc3   :  { %v17366_v24 = vpop.eup %12834  ;;  %v8651_v61 = vsel %vm3289_vm6, %v17364_v55, 0.0 }
 0xcc4   :  { %8652 = vadd.xlane.f32.xlu1 %v8651_v61  ;;  %v8642_v43 = vsel %vm3289_vm6, %v17366_v24, 0.0  ;;  %v17372_v63 = vpop.eup %12836 }
 0xcc5   :  { %8643 = vadd.xlane.f32.xlu0 %v8642_v43  ;;  %v8636_v25 = vsel %vm3289_vm6, %v17372_v63, 0.0 }
 0xcc6   :  { %v17374_v29 = vpop.eup %12838 }
 0xcc7   :  { %v8645_v0 = vsel %vm3289_vm6, %v17374_v29, 0.0  ;;  %v17380_v32 = vpop.eup %12840 }
 0xcc8   :  { %8646 = vadd.xlane.f32.xlu1 %v8645_v0  ;;  %v8654_v14 = vsel %vm3289_vm6, %v17380_v32, 0.0 }
 0xcc9   :  { %8637 = vadd.xlane.f32.xlu0 %v8636_v25 }
 0xcca   :  { %v17385_v37 = vpop.eup %12842 }
 0xccb   :  { %v8281_v46 = vpop.xlane.xlu1 %8280  ;;  %v8648_v56 = vsel %vm3289_vm6, %v17385_v37, 0.0 }
 0xccc   :  { %v8451_v8 = vsub.f32 %v16967_v31, %v8281_v46 }
 0xccd   :  { %8655 = vadd.xlane.f32.xlu0 %v8654_v14  ;;  %v8284_v20 = vpop.xlane.xlu0 %8283 }
 0xcce   :  { %v8525_v33 = vmul.f32 1.442695, %v8451_v8  ;;  %v8452_v44 = vsub.f32 %v16974_v5, %v8284_v20 }
 0xccf   :  { %v8305_v48 = vpop.xlane.xlu1 %8304 }
 0xcd0   :  { %12844 = vpow2.f32 %v8525_v33  ;;  %v8527_v34 = vmul.f32 1.442695, %v8452_v44  ;;  %v8459_v9 = vsub.f32 %v16977_v21, %v8305_v48 }
 0xcd1   :  { %8649 = vadd.xlane.f32.xlu0 %v8648_v56  ;;  %v8308_v31 = vpop.xlane.xlu0 %8307 }
 0xcd2   :  { %12846 = vpow2.f32 %v8527_v34  ;;  %v8541_v41 = vmul.f32 1.442695, %v8459_v9  ;;  %v8460_v22 = vsub.f32 %v16984_v58, %v8308_v31 }
 0xcd3   :  { %v8275_v59 = vpop.xlane.xlu1 %8274 }
 0xcd4   :  { %12848 = vpow2.f32 %v8541_v41  ;;  %v8543_v36 = vmul.f32 1.442695, %v8460_v22  ;;  %v8449_v13 = vsub.f32 %v16991_v50, %v8275_v59 }
 0xcd5   :  { %v8278_v5 = vpop.xlane.xlu0 %8277 }
 0xcd6   :  { %12850 = vpow2.f32 %v8543_v36  ;;  %v8521_v11 = vmul.f32 1.442695, %v8449_v13  ;;  %v8450_v27 = vsub.f32 %v16998_v52, %v8278_v5 }
 0xcd7   :  { %v8299_v21 = vpop.xlane.xlu1 %8298 }
 0xcd8   :  { %12852 = vpow2.f32 %v8521_v11  ;;  %v8523_v45 = vmul.f32 1.442695, %v8450_v27  ;;  %v8457_v6 = vsub.f32 %v17005_v30, %v8299_v21  ;;  %v18654_v21 = vld [vmem:[#allocation58_spill] sm:$0xff] }
 0xcd9   :  { %v8302_v18 = vpop.xlane.xlu0 %8301 }
 0xcda   :  { %v17395_v61 = vpop.eup %12844  ;;  %12854 = vpow2.f32 %v8523_v45  ;;  %v8537_v58 = vmul.f32 1.442695, %v8457_v6  ;;  %v8458_v43 = vsub.f32 %v17012_v53, %v8302_v18 }
 0xcdb   :  { %v8293_v0 = vpop.xlane.xlu1 %8292  ;;  %v8663_v50 = vsel %vm3289_vm6, %v17395_v61, 0.0 }
 0xcdc   :  { %v17400_v25 = vpop.eup %12846  ;;  %12856 = vpow2.f32 %v8537_v58  ;;  %v8539_v52 = vmul.f32 1.442695, %v8458_v43  ;;  %v8455_v46 = vsub.f32 %v17019_v35, %v8293_v0  ;;  %8664 = vadd.xlane.f32.xlu1 %v8663_v50  ;;  %v18655_v43 = vld [vmem:[#allocation57_spill] sm:$0xff] }
 0xcdd   :  { %v8296_v8 = vpop.xlane.xlu0 %8295  ;;  %v8666_v30 = vsel %vm3289_vm6, %v17400_v25, 0.0 }
 0xcde   :  { %v17405_v14 = vpop.eup %12848  ;;  %12858 = vpow2.f32 %v8539_v52  ;;  %v8533_v20 = vmul.f32 1.442695, %v8455_v46  ;;  %v8456_v53 = vsub.f32 %v17026_v60, %v8296_v8  ;;  %8667 = vadd.xlane.f32.xlu0 %v8666_v30  ;;  %v18656_v30 = vld [vmem:[#allocation61_spill] sm:$0xff] }
 0xcdf   :  { %v8317_v33 = vpop.xlane.xlu1 %8316  ;;  %v8687_v44 = vsel %vm3289_vm6, %v17405_v14, 0.0 }
 0xce0   :  { %v17410_v48 = vpop.eup %12850  ;;  %12860 = vpow2.f32 %v8533_v20  ;;  %v8535_v35 = vmul.f32 1.442695, %v8456_v53  ;;  %v8463_v34 = vsub.f32 %v17033_v26, %v8317_v33  ;;  %8688 = vadd.xlane.f32.xlu1 %v8687_v44 }
 0xce1   :  { %v8320_v9 = vpop.xlane.xlu0 %8319  ;;  %v8690_v56 = vsel %vm3289_vm6, %v17410_v48, 0.0 }
 0xce2   :  { %v17415_v31 = vpop.eup %12852  ;;  %12862 = vpow2.f32 %v8535_v35  ;;  %v8549_v60 = vmul.f32 1.442695, %v8463_v34  ;;  %v8464_v41 = vsub.f32 %v17040_v17, %v8320_v9  ;;  %8691 = vadd.xlane.f32.xlu0 %v8690_v56  ;;  %v18657_v34 = vld [vmem:[#allocation55_spill] sm:$0xff] }
 0xce3   :  { %v8287_v22 = vpop.xlane.xlu1 %8286  ;;  %v8657_v59 = vsel %vm3289_vm6, %v17415_v31, 0.0 }
 0xce4   :  { %v17420_v36 = vpop.eup %12854  ;;  %12864 = vpow2.f32 %v8549_v60  ;;  %v8551_v26 = vmul.f32 1.442695, %v8464_v41  ;;  %v8453_v13 = vsub.f32 %v17047_v62, %v8287_v22  ;;  %8658 = vadd.xlane.f32.xlu1 %v8657_v59  ;;  %v18658_v59 = vld [vmem:[#allocation12_spill] sm:$0xff] }
 0xce5   :  { %v8290_v5 = vpop.xlane.xlu0 %8289  ;;  %v8660_v11 = vsel %vm3289_vm6, %v17420_v36, 0.0 }
 0xce6   :  { %v17425_v27 = vpop.eup %12856  ;;  %12866 = vpow2.f32 %v8551_v26  ;;  %v8529_v17 = vmul.f32 1.442695, %v8453_v13  ;;  %v8454_v45 = vsub.f32 %v18654_v21, %v8290_v5  ;;  %8661 = vadd.xlane.f32.xlu0 %v8660_v11  ;;  %v18659_v21 = vld [vmem:[#allocation59_spill] sm:$0xff] }
 0xce7   :  { %v8311_v6 = vpop.xlane.xlu1 %8310  ;;  %v8681_v18 = vsel %vm3289_vm6, %v17425_v27, 0.0 }
 0xce8   :  { %v17430_v58 = vpop.eup %12858  ;;  %12868 = vpow2.f32 %v8529_v17  ;;  %v8531_v62 = vmul.f32 1.442695, %v8454_v45  ;;  %v8461_v0 = vsub.f32 %v18655_v43, %v8311_v6  ;;  %8682 = vadd.xlane.f32.xlu1 %v8681_v18 }
 0xce9   :  { %v8314_v50 = vpop.xlane.xlu0 %8313  ;;  %v8684_v52 = vsel %vm3289_vm6, %v17430_v58, 0.0 }
 0xcea   :  { %v17435_v46 = vpop.eup %12860  ;;  %12870 = vpow2.f32 %v8531_v62  ;;  %v8545_v8 = vmul.f32 1.442695, %v8461_v0  ;;  %v8462_v20 = vsub.f32 %v18656_v30, %v8314_v50  ;;  %8685 = vadd.xlane.f32.xlu0 %v8684_v52  ;;  %v18660_v0 = vld [vmem:[#allocation60_spill] sm:$0xff] }
 0xceb   :  { %v8675_v53 = vsel %vm3289_vm6, %v17435_v46, 0.0 }
 0xcec   :  { %v17440_v33 = vpop.eup %12862  ;;  %12872 = vpow2.f32 %v8545_v8  ;;  %v8547_v44 = vmul.f32 1.442695, %v8462_v20  ;;  %v8329_v35 = vpop.xlane.xlu1 %8328  ;;  %8676 = vadd.xlane.f32.xlu1 %v8675_v53  ;;  %v18661_v53 = vld [vmem:[#allocation13_spill] sm:$0xff] }
 0xced   :  { %v8467_v9 = vsub.f32 %v18657_v34, %v8329_v35  ;;  %v8678_v56 = vsel %vm3289_vm6, %v17440_v33, 0.0 }
 0xcee   :  { %v17445_v60 = vpop.eup %12864  ;;  %12874 = vpow2.f32 %v8547_v44  ;;  %v8332_v41 = vpop.xlane.xlu0 %8331  ;;  %8679 = vadd.xlane.f32.xlu0 %v8678_v56 }
 0xcef   :  { %v8557_v22 = vmul.f32 1.442695, %v8467_v9  ;;  %v8468_v26 = vsub.f32 %v18658_v59, %v8332_v41  ;;  %v8699_v13 = vsel %vm3289_vm6, %v17445_v60, 0.0  ;;  %v18662_v41 = vld [vmem:[#allocation62_spill] sm:$0xff] }
 0xcf0   :  { %v17450_v5 = vpop.eup %12866  ;;  %v8353_v11 = vpop.xlane.xlu1 %8352  ;;  %8700 = vadd.xlane.f32.xlu1 %v8699_v13 }
 0xcf1   :  { %12876 = vpow2.f32 %v8557_v22  ;;  %v8559_v17 = vmul.f32 1.442695, %v8468_v26  ;;  %v8475_v45 = vsub.f32 %v18659_v21, %v8353_v11  ;;  %v8702_v6 = vsel %vm3289_vm6, %v17450_v5, 0.0 }
 0xcf2   :  { %v17455_v18 = vpop.eup %12868  ;;  %v8356_v62 = vpop.xlane.xlu0 %8355  ;;  %8703 = vadd.xlane.f32.xlu0 %v8702_v6 }
 0xcf3   :  { %12878 = vpow2.f32 %v8559_v17  ;;  %v8573_v43 = vmul.f32 1.442695, %v8475_v45  ;;  %v8476_v50 = vsub.f32 %v18660_v0, %v8356_v62  ;;  %v8669_v52 = vsel %vm3289_vm6, %v17455_v18, 0.0  ;;  %v18663_v17 = vld [vmem:[#allocation64_spill] sm:$0xff]  ;;  %v18664_v0 = vld [vmem:[#allocation15_spill] sm:$0xff] }
 0xcf4   :  { %v17460_v8 = vpop.eup %12870  ;;  %v8323_v30 = vpop.xlane.xlu1 %8322  ;;  %8670 = vadd.xlane.f32.xlu1 %v8669_v52 }
 0xcf5   :  { %12880 = vpow2.f32 %v8573_v43  ;;  %v8575_v20 = vmul.f32 1.442695, %v8476_v50  ;;  %v8465_v44 = vsub.f32 %v18661_v53, %v8323_v30  ;;  %v8672_v35 = vsel %vm3289_vm6, %v17460_v8, 0.0 }
 0xcf6   :  { %v17465_v34 = vpop.eup %12872  ;;  %v8326_v9 = vpop.xlane.xlu0 %8325  ;;  %8673 = vadd.xlane.f32.xlu0 %v8672_v35 }
 0xcf7   :  { %12882 = vpow2.f32 %v8575_v20  ;;  %v8553_v56 = vmul.f32 1.442695, %v8465_v44  ;;  %v8466_v22 = vsub.f32 %v18662_v41, %v8326_v9  ;;  %v8693_v59 = vsel %vm3289_vm6, %v17465_v34, 0.0  ;;  %v18665_v44 = vld [vmem:[#allocation14_spill] sm:$0xff] }
 0xcf8   :  { %v17470_v26 = vpop.eup %12874  ;;  %v8347_v13 = vpop.xlane.xlu1 %8346  ;;  %8694 = vadd.xlane.f32.xlu1 %v8693_v59  ;;  %v18667_v59 = vld [vmem:[#allocation17_spill] sm:$0xff] }
 0xcf9   :  { %12884 = vpow2.f32 %v8553_v56  ;;  %v8555_v11 = vmul.f32 1.442695, %v8466_v22  ;;  %v8473_v21 = vsub.f32 %v18663_v17, %v8347_v13  ;;  %v8696_v45 = vsel %vm3289_vm6, %v17470_v26, 0.0 }
 0xcfa   :  { %v8350_v6 = vpop.xlane.xlu0 %8349  ;;  %8697 = vadd.xlane.f32.xlu0 %v8696_v45 }
 0xcfb   :  { %v17475_v62 = vpop.eup %12876  ;;  %12886 = vpow2.f32 %v8555_v11  ;;  %v8569_v43 = vmul.f32 1.442695, %v8473_v21  ;;  %v8474_v50 = vsub.f32 %v18664_v0, %v8350_v6  ;;  %v18668_v6 = vld [vmem:[#allocation16_spill] sm:$0xff] }
 0xcfc   :  { %v8341_v52 = vpop.xlane.xlu1 %8340  ;;  %v8711_v30 = vsel %vm3289_vm6, %v17475_v62, 0.0 }
 0xcfd   :  { %v17480_v20 = vpop.eup %12878  ;;  %12888 = vpow2.f32 %v8569_v43  ;;  %v8571_v53 = vmul.f32 1.442695, %v8474_v50  ;;  %v8471_v35 = vsub.f32 %v18665_v44, %v8341_v52  ;;  %8712 = vadd.xlane.f32.xlu1 %v8711_v30 }
 0xcfe   :  { %v8344_v9 = vpop.xlane.xlu0 %8343  ;;  %v8714_v56 = vsel %vm3289_vm6, %v17480_v20, 0.0 }
 0xcff   :  { %v17485_v41 = vpop.eup %12880  ;;  %12890 = vpow2.f32 %v8571_v53  ;;  %v8565_v22 = vmul.f32 1.442695, %v8471_v35  ;;  %v8472_v13 = vsub.f32 %v18667_v59, %v8344_v9  ;;  %8715 = vadd.xlane.f32.xlu0 %v8714_v56  ;;  %v18669_v53 = vld [vmem:[#allocation5_spill] sm:$0xff]  ;;  %v18670_v59 = vld [vmem:[#allocation2_spill] sm:$0xff] }
 0xd00   :  { %18666 = vst [vmem:[#allocation66_spill] sm:$0xff] %v17485_v41  ;;  %v8365_v11 = vpop.xlane.xlu1 %8364  ;;  %v8735_v17 = vsel %vm3289_vm6, %v17485_v41, 0.0 }
 0xd01   :  { %v17490_v21 = vpop.eup %12882  ;;  %12892 = vpow2.f32 %v8565_v22  ;;  %v8567_v45 = vmul.f32 1.442695, %v8472_v13  ;;  %v8479_v43 = vsub.f32 %v18668_v6, %v8365_v11  ;;  %8736 = vadd.xlane.f32.xlu1 %v8735_v17 }
 0xd02   :  { %v8368_v0 = vpop.xlane.xlu0 %8367  ;;  %v8738_v50 = vsel %vm3289_vm6, %v17490_v21, 0.0 }
 0xd03   :  { %v17495_v52 = vpop.eup %12884  ;;  %12894 = vpow2.f32 %v8567_v45  ;;  %v8581_v30 = vmul.f32 1.442695, %v8479_v43  ;;  %v8480_v44 = vsub.f32 %v18669_v53, %v8368_v0  ;;  %8739 = vadd.xlane.f32.xlu0 %v8738_v50  ;;  %v18672_v43 = vld [vmem:[#allocation3_spill] sm:$0xff] }
 0xd04   :  { %v8335_v35 = vpop.xlane.xlu1 %8334  ;;  %v8705_v9 = vsel %vm3289_vm6, %v17495_v52, 0.0 }
 0xd05   :  { %v17500_v56 = vpop.eup %12886  ;;  %12896 = vpow2.f32 %v8581_v30  ;;  %v8583_v22 = vmul.f32 1.442695, %v8480_v44  ;;  %v8469_v13 = vsub.f32 %v18670_v59, %v8335_v35  ;;  %8706 = vadd.xlane.f32.xlu1 %v8705_v9  ;;  %v18674_v35 = vld [vmem:[#allocation4_spill] sm:$0xff] }
 0xd06   :  { %v8338_v11 = vpop.xlane.xlu0 %8337  ;;  %v8708_v17 = vsel %vm3289_vm6, %v17500_v56, 0.0 }
 0xd07   :  { %v17505_v45 = vpop.eup %12888  ;;  %12898 = vpow2.f32 %v8583_v22  ;;  %v8561_v6 = vmul.f32 1.442695, %v8469_v13  ;;  %v8470_v0 = vsub.f32 %v18672_v43, %v8338_v11  ;;  %8709 = vadd.xlane.f32.xlu0 %v8708_v17  ;;  %v18676_v11 = vld [vmem:[#allocation11_spill] sm:$0xff] }
 0xd08   :  { %18671 = vst [vmem:[#allocation47_spill] sm:$0xff] %v17505_v45  ;;  %v8359_v50 = vpop.xlane.xlu1 %8358  ;;  %v8729_v53 = vsel %vm3289_vm6, %v17505_v45, 0.0 }
 0xd09   :  { %v17510_v30 = vpop.eup %12890  ;;  %12900 = vpow2.f32 %v8561_v6  ;;  %v8563_v44 = vmul.f32 1.442695, %v8470_v0  ;;  %v8477_v9 = vsub.f32 %v18674_v35, %v8359_v50  ;;  %8730 = vadd.xlane.f32.xlu1 %v8729_v53  ;;  %v18677_v50 = vld [vmem:[#allocation8_spill] sm:$0xff] }
 0xd0a   :  { %18673 = vst [vmem:[#allocation41_spill] sm:$0xff] %v17510_v30  ;;  %v8362_v59 = vpop.xlane.xlu0 %8361  ;;  %v8732_v41 = vsel %vm3289_vm6, %v17510_v30, 0.0 }
 0xd0b   :  { %v17515_v22 = vpop.eup %12892  ;;  %12902 = vpow2.f32 %v8563_v44  ;;  %v8577_v13 = vmul.f32 1.442695, %v8477_v9  ;;  %v8478_v17 = vsub.f32 %v18676_v11, %v8362_v59  ;;  %8733 = vadd.xlane.f32.xlu0 %v8732_v41  ;;  %v18679_v9 = vld [vmem:[#allocation9_spill] sm:$0xff] }
 0xd0c   :  { %18675 = vst [vmem:[#allocation37_spill] sm:$0xff] %v17515_v22  ;;  %v8723_v43 = vsel %vm3289_vm6, %v17515_v22, 0.0 }
 0xd0d   :  { %v17520_v45 = vpop.eup %12894  ;;  %12904 = vpow2.f32 %v8577_v13  ;;  %v8579_v6 = vmul.f32 1.442695, %v8478_v17  ;;  %v8377_v0 = vpop.xlane.xlu1 %8376  ;;  %8724 = vadd.xlane.f32.xlu1 %v8723_v43 }
 0xd0e   :  { %v8483_v53 = vsub.f32 %v18677_v50, %v8377_v0  ;;  %v8726_v35 = vsel %vm3289_vm6, %v17520_v45, 0.0  ;;  %v18680_v0 = vld [vmem:[#allocation10_spill] sm:$0xff] }
 0xd0f   :  { %v17525_v30 = vpop.eup %12896  ;;  %12906 = vpow2.f32 %v8579_v6  ;;  %v8380_v44 = vpop.xlane.xlu0 %8379  ;;  %8727 = vadd.xlane.f32.xlu0 %v8726_v35 }
 0xd10   :  { %18678 = vst [vmem:[#allocation39_spill] sm:$0xff] %v17525_v30  ;;  %v8589_v41 = vmul.f32 1.442695, %v8483_v53  ;;  %v8484_v59 = vsub.f32 %v18679_v9, %v8380_v44  ;;  %v8747_v11 = vsel %vm3289_vm6, %v17525_v30, 0.0 }
 0xd11   :  { %v17530_v13 = vpop.eup %12898  ;;  %v8401_v17 = vpop.xlane.xlu1 %8400  ;;  %8748 = vadd.xlane.f32.xlu1 %v8747_v11 }
 0xd12   :  { %12908 = vpow2.f32 %v8589_v41  ;;  %v8591_v43 = vmul.f32 1.442695, %v8484_v59  ;;  %v8491_v50 = vsub.f32 %v18680_v0, %v8401_v17  ;;  %v8750_v22 = vsel %vm3289_vm6, %v17530_v13, 0.0 }
 0xd13   :  { %v17535_v6 = vpop.eup %12900  ;;  %v8404_v35 = vpop.xlane.xlu0 %8403  ;;  %8751 = vadd.xlane.f32.xlu0 %v8750_v22 }
 0xd14   :  { %12910 = vpow2.f32 %v8591_v43  ;;  %v8605_v53 = vmul.f32 1.442695, %v8491_v50  ;;  %v8492_v44 = vsub.f32 %v17216_v23, %v8404_v35  ;;  %v8717_v9 = vsel %vm3289_vm6, %v17535_v6, 0.0 }
 0xd15   :  { %v17540_v30 = vpop.eup %12902  ;;  %v8371_v41 = vpop.xlane.xlu1 %8370  ;;  %8718 = vadd.xlane.f32.xlu1 %v8717_v9 }
 0xd16   :  { %12912 = vpow2.f32 %v8605_v53  ;;  %v8607_v59 = vmul.f32 1.442695, %v8492_v44  ;;  %v8481_v11 = vsub.f32 %v17223_v51, %v8371_v41  ;;  %v8720_v17 = vsel %vm3289_vm6, %v17540_v30, 0.0 }
 0xd17   :  { %v17545_v0 = vpop.eup %12904  ;;  %v8374_v22 = vpop.xlane.xlu0 %8373  ;;  %8721 = vadd.xlane.f32.xlu0 %v8720_v17 }
 0xd18   :  { %12914 = vpow2.f32 %v8607_v59  ;;  %v8585_v23 = vmul.f32 1.442695, %v8481_v11  ;;  %v8482_v43 = vsub.f32 %v17230_v3, %v8374_v22  ;;  %v8741_v50 = vsel %vm3289_vm6, %v17545_v0, 0.0 }
 0xd19   :  { %v17550_v35 = vpop.eup %12906  ;;  %v8395_v53 = vpop.xlane.xlu1 %8394  ;;  %8742 = vadd.xlane.f32.xlu1 %v8741_v50 }
 0xd1a   :  { %12916 = vpow2.f32 %v8585_v23  ;;  %v8587_v51 = vmul.f32 1.442695, %v8482_v43  ;;  %v8489_v44 = vsub.f32 %v17237_v12, %v8395_v53  ;;  %v8744_v9 = vsel %vm3289_vm6, %v17550_v35, 0.0 }
 0xd1b   :  { %v8398_v41 = vpop.xlane.xlu0 %8397  ;;  %8745 = vadd.xlane.f32.xlu0 %v8744_v9 }
 0xd1c   :  { %v17555_v59 = vpop.eup %12908  ;;  %12918 = vpow2.f32 %v8587_v51  ;;  %v8601_v3 = vmul.f32 1.442695, %v8489_v44  ;;  %v8490_v11 = vsub.f32 %v17244_v49, %v8398_v41 }
 0xd1d   :  { %18681 = vst [vmem:[#allocation46_spill] sm:$0xff] %v17555_v59  ;;  %v8389_v17 = vpop.xlane.xlu1 %8388  ;;  %v8759_v22 = vsel %vm3289_vm6, %v17555_v59, 0.0 }
 0xd1e   :  { %v17560_v50 = vpop.eup %12910  ;;  %12920 = vpow2.f32 %v8601_v3  ;;  %v8603_v23 = vmul.f32 1.442695, %v8490_v11  ;;  %v8487_v12 = vsub.f32 %v17251_v54, %v8389_v17  ;;  %8760 = vadd.xlane.f32.xlu1 %v8759_v22 }
 0xd1f   :  { %v8392_v43 = vpop.xlane.xlu0 %8391  ;;  %v8762_v53 = vsel %vm3289_vm6, %v17560_v50, 0.0 }
 0xd20   :  { %v17565_v9 = vpop.eup %12912  ;;  %12922 = vpow2.f32 %v8603_v23  ;;  %v8597_v51 = vmul.f32 1.442695, %v8487_v12  ;;  %v8488_v49 = vsub.f32 %v17258_v7, %v8392_v43  ;;  %8763 = vadd.xlane.f32.xlu0 %v8762_v53 }
 0xd21   :  { %18682 = vst [vmem:[#allocation43_spill] sm:$0xff] %v17565_v9  ;;  %v8413_v44 = vpop.xlane.xlu1 %8412  ;;  %v8783_v41 = vsel %vm3289_vm6, %v17565_v9, 0.0 }
 0xd22   :  { %v17570_v3 = vpop.eup %12914  ;;  %12924 = vpow2.f32 %v8597_v51  ;;  %v8599_v54 = vmul.f32 1.442695, %v8488_v49  ;;  %8784 = vadd.xlane.f32.xlu1 %v8783_v41 }
 0xd23   :  { %18683 = vst [vmem:[#allocation42_spill] sm:$0xff] %v17570_v3  ;;  %v8416_v11 = vpop.xlane.xlu0 %8415  ;;  %v8786_v17 = vsel %vm3289_vm6, %v17570_v3, 0.0 }
 0xd24   :  { %v17574_v22 = vpop.eup %12916  ;;  %12926 = vpow2.f32 %v8599_v54  ;;  %8787 = vadd.xlane.f32.xlu0 %v8786_v17 }
 0xd25   :  { %v8383_v23 = vpop.xlane.xlu1 %8382  ;;  %v8753_v7 = vsel %vm3289_vm6, %v17574_v22, 0.0 }
 0xd26   :  { %v17578_v12 = vpop.eup %12918  ;;  %v8485_v43 = vsub.f32 %v17279_v47, %v8383_v23  ;;  %8754 = vadd.xlane.f32.xlu1 %v8753_v7 }
 0xd27   :  { %18684 = vst [vmem:[#allocation36_spill] sm:$0xff] %v17578_v12  ;;  %v8386_v53 = vpop.xlane.xlu0 %8385  ;;  %v8756_v51 = vsel %vm3289_vm6, %v17578_v12, 0.0 }
 0xd28   :  { %v17583_v49 = vpop.eup %12920  ;;  %v8593_v41 = vmul.f32 1.442695, %v8485_v43  ;;  %v8486_v9 = vsub.f32 %v17284_v57, %v8386_v53  ;;  %8757 = vadd.xlane.f32.xlu0 %v8756_v51 }
 0xd29   :  { %v8407_v54 = vpop.xlane.xlu1 %8406  ;;  %v8777_v17 = vsel %vm3289_vm6, %v17583_v49, 0.0 }
 0xd2a   :  { %v17588_v3 = vpop.eup %12922  ;;  %12928 = vpow2.f32 %v8593_v41  ;;  %v8595_v59 = vmul.f32 1.442695, %v8486_v9  ;;  %v8493_v47 = vsub.f32 %v17289_v28, %v8407_v54  ;;  %8778 = vadd.xlane.f32.xlu1 %v8777_v17  ;;  %v18688_v17 = vld [vmem:[#allocation40_spill] sm:$0xff] }
 0xd2b   :  { %18685 = vst [vmem:[#allocation48_spill] sm:$0xff] %v17588_v3  ;;  %v8410_v23 = vpop.xlane.xlu0 %8409  ;;  %v8780_v7 = vsel %vm3289_vm6, %v17588_v3, 0.0 }
 0xd2c   :  { %v17593_v12 = vpop.eup %12924  ;;  %12930 = vpow2.f32 %v8595_v59  ;;  %v8609_v57 = vmul.f32 1.442695, %v8493_v47  ;;  %v8494_v43 = vsub.f32 %v17294_v39, %v8410_v23  ;;  %8781 = vadd.xlane.f32.xlu0 %v8780_v7  ;;  %v8495_v59 = vsub.f32 %v18688_v17, %v8413_v44 }
 0xd2d   :  { %18686 = vst [vmem:[#allocation50_spill] sm:$0xff] %v17593_v12  ;;  %v8771_v53 = vsel %vm3289_vm6, %v17593_v12, 0.0  ;;  %v18689_v12 = vld [vmem:[#allocation38_spill] sm:$0xff] }
 0xd2e   :  { %v17598_v51 = vpop.eup %12926  ;;  %12932 = vpow2.f32 %v8609_v57  ;;  %v8611_v9 = vmul.f32 1.442695, %v8494_v43  ;;  %v8425_v28 = vpop.xlane.xlu1 %8424  ;;  %8772 = vadd.xlane.f32.xlu1 %v8771_v53  ;;  %v8496_v3 = vsub.f32 %v18689_v12, %v8416_v11 }
 0xd2f   :  { %18687 = vst [vmem:[#allocation45_spill] sm:$0xff] %v17598_v51  ;;  %v8499_v41 = vsub.f32 %v17305_v40, %v8425_v28  ;;  %v8774_v54 = vsel %vm3289_vm6, %v17598_v51, 0.0  ;;  %v8613_v40 = vmul.f32 1.442695, %v8495_v59 }
 0xd30   :  { %12934 = vpow2.f32 %v8611_v9  ;;  %v8428_v47 = vpop.xlane.xlu0 %8427  ;;  %8775 = vadd.xlane.f32.xlu0 %v8774_v54  ;;  %v8615_v11 = vmul.f32 1.442695, %v8496_v3 }
 0xd31   :  { %v8621_v39 = vmul.f32 1.442695, %v8499_v41  ;;  %v8500_v23 = vsub.f32 %v17310_v42, %v8428_v47 }
 0xd32   :  { %v8419_v7 = vpop.xlane.xlu1 %8418 }
 0xd33   :  { %12936 = vpow2.f32 %v8621_v39  ;;  %v8623_v57 = vmul.f32 1.442695, %v8500_v23  ;;  %v8497_v43 = vsub.f32 %v17313_v2, %v8419_v7 }
 0xd34   :  { %v17607_v53 = vpop.eup %12928  ;;  %v8422_v28 = vpop.xlane.xlu0 %8421 }
 0xd35   :  { %12938 = vpow2.f32 %v8623_v57  ;;  %v8617_v51 = vmul.f32 1.442695, %v8497_v43  ;;  %v8498_v44 = vsub.f32 %v17319_v15, %v8422_v28  ;;  %v8765_v9 = vsel %vm3289_vm6, %v17607_v53, 0.0 }
 0xd36   :  { %v17612_v41 = vpop.eup %12930  ;;  %v8437_v42 = vpop.xlane.xlu1 %8436  ;;  %8766 = vadd.xlane.f32.xlu1 %v8765_v9 }
 0xd37   :  { %12940 = vpow2.f32 %v8617_v51  ;;  %v8619_v12 = vmul.f32 1.442695, %v8498_v44  ;;  %v8768_v2 = vsel %vm3289_vm6, %v17612_v41, 0.0  ;;  %v8503_v17 = vsub.f32 %v17329_v4, %v8437_v42 }
 0xd38   :  { %v17616_v54 = vpop.eup %12932  ;;  %12942 = vpow2.f32 %v8613_v40  ;;  %v8440_v59 = vpop.xlane.xlu0 %8439  ;;  %8769 = vadd.xlane.f32.xlu0 %v8768_v2 }
 0xd39   :  { %12944 = vpow2.f32 %v8619_v12  ;;  %v8789_v15 = vsel %vm3289_vm6, %v17616_v54, 0.0  ;;  %v8504_v3 = vsub.f32 %v17334_v1, %v8440_v59  ;;  %v8629_v7 = vmul.f32 1.442695, %v8503_v17 }
 0xd3a   :  { %v17621_v47 = vpop.eup %12934  ;;  %v8431_v39 = vpop.xlane.xlu1 %8430  ;;  %8790 = vadd.xlane.f32.xlu1 %v8789_v15  ;;  %12946 = vpow2.f32 %v8615_v11 }
 0xd3b   :  { %v8501_v51 = vsub.f32 %v17337_v16, %v8431_v39  ;;  %v8792_v23 = vsel %vm3289_vm6, %v17621_v47, 0.0  ;;  %v8631_v9 = vmul.f32 1.442695, %v8504_v3 }
 0xd3c   :  { %v8434_v4 = vpop.xlane.xlu0 %8433  ;;  %8793 = vadd.xlane.f32.xlu0 %v8792_v23 }
 0xd3d   :  { %v17627_v57 = vpop.eup %12936  ;;  %v8625_v43 = vmul.f32 1.442695, %v8501_v51  ;;  %v8502_v40 = vsub.f32 %v17342_v19, %v8434_v4 }
 0xd3e   :  { %v8807_v28 = vsel %vm3289_vm6, %v17627_v57, 0.0 }
 0xd3f   :  { %v17632_v44 = vpop.eup %12938  ;;  %12948 = vpow2.f32 %v8625_v43  ;;  %v8627_v1 = vmul.f32 1.442695, %v8502_v40  ;;  %8808 = vadd.xlane.f32.xlu1 %v8807_v28 }
 0xd40   :  { %12950 = vpow2.f32 %v8629_v7  ;;  %v8810_v16 = vsel %vm3289_vm6, %v17632_v44, 0.0 }
 0xd41   :  { %v17636_v42 = vpop.eup %12940  ;;  %12952 = vpow2.f32 %v8627_v1  ;;  %8811 = vadd.xlane.f32.xlu0 %v8810_v16 }
 0xd42   :  { %v17638_v11 = vpop.eup %12942  ;;  %v8801_v19 = vsel %vm3289_vm6, %v17636_v42, 0.0  ;;  %12954 = vpow2.f32 %v8631_v9 }
 0xd43   :  { %v17642_v12 = vpop.eup %12944  ;;  %8802 = vadd.xlane.f32.xlu1 %v8801_v19  ;;  %v8795_v59 = vsel %vm3289_vm6, %v17638_v11, 0.0 }
 0xd44   :  { %v8804_v2 = vsel %vm3289_vm6, %v17642_v12, 0.0  ;;  %v17646_v17 = vpop.eup %12946 }
 0xd45   :  { %8805 = vadd.xlane.f32.xlu0 %v8804_v2  ;;  %v8798_v15 = vsel %vm3289_vm6, %v17646_v17, 0.0 }
 0xd47   :  { %8796 = vadd.xlane.f32.xlu1 %v8795_v59 }
 0xd49   :  { %v17652_v39 = vpop.eup %12948  ;;  %8799 = vadd.xlane.f32.xlu0 %v8798_v15  ;;  %v8641_v3 = vpop.xlane.xlu1 %8640 }
 0xd4a   :  { %v17654_v51 = vpop.eup %12950  ;;  %v8813_v23 = vsel %vm3289_vm6, %v17652_v39, 0.0 }
 0xd4b   :  { %18690 = vst [vmem:[#allocation44_spill] sm:$0xff] %v17654_v51  ;;  %v17658_v7 = vpop.eup %12952  ;;  %8814 = vadd.xlane.f32.xlu1 %v8813_v23  ;;  %v8819_v40 = vsel %vm3289_vm6, %v17654_v51, 0.0 }
 0xd4c   :  { %18691 = vst [vmem:[#allocation24_spill] sm:$0xff] %v17658_v7  ;;  %v8816_v4 = vsel %vm3289_vm6, %v17658_v7, 0.0  ;;  %v17662_v43 = vpop.eup %12954 }
 0xd4d   :  { %18692 = vst [vmem:[#allocation51_spill] sm:$0xff] %v17662_v43  ;;  %8817 = vadd.xlane.f32.xlu0 %v8816_v4  ;;  %v8635_v28 = vpop.xlane.xlu1 %8634  ;;  %v8822_v9 = vsel %vm3289_vm6, %v17662_v43, 0.0 }
 0xd4f   :  { %8820 = vadd.xlane.f32.xlu1 %v8819_v40 }
 0xd51   :  { %8823 = vadd.xlane.f32.xlu0 %v8822_v9  ;;  %v8653_v16 = vpop.xlane.xlu1 %8652 }
 0xd52   :  { %v8644_v1 = vpop.xlane.xlu0 %8643 }
 0xd53   :  { %12956 = vrcp.f32 %v8644_v1 }
 0xd54   :  { %12958 = vrcp.f32 %v8635_v28 }
 0xd55   :  { %12960 = vrcp.f32 %v8641_v3  ;;  %v8647_v2 = vpop.xlane.xlu1 %8646 }
 0xd56   :  { %v8638_v19 = vpop.xlane.xlu0 %8637 }
 0xd57   :  { %12962 = vrcp.f32 %v8638_v19 }
 0xd5a   :  { %v8656_v59 = vpop.xlane.xlu0 %8655 }
 0xd5b   :  { %12964 = vrcp.f32 %v8656_v59  ;;  %v18693_v59 = vld [vmem:[#allocation49_spill] sm:$0xff] }
 0xd5c   :  { %12966 = vrcp.f32 %v8647_v2 }
 0xd5d   :  { %v12957_v15 = vpop.eup %12956  ;;  %12968 = vrcp.f32 %v8653_v16 }
 0xd5e   :  { %v8650_v23 = vpop.xlane.xlu0 %8649  ;;  %v12959_v4 = vpop.eup %12958  ;;  %v8892_v9 = vmul.f32 %v12957_v15, %v17366_v24  ;;  %v18694_v15 = vld [vmem:[#allocation20_spill] sm:$0xff] }
 0xd5f   :  { %12970 = vrcp.f32 %v8650_v23  ;;  %v12961_v40 = vpop.eup %12960  ;;  %v8889_v43 = vmul.f32 %v12959_v4, %v17360_v10 }
 0xd60   :  { %v8891_v3 = vmul.f32 %v12961_v40, %v17355_v38 }
 0xd61   :  { %v12963_v51 = vpop.eup %12962 }
 0xd62   :  { %v8890_v28 = vmul.f32 %v12963_v51, %v17372_v63  ;;  %v8954_v19 = vpack.c.bf16 %v8892_v9, %v8891_v3  ;;  %v18695_v9 = vld [vmem:[#allocation30_spill] sm:$0xff] }
 0xd64   :  { %v8953_v1 = vpack.c.bf16 %v8890_v28, %v8889_v43 }
 0xd65   :  { %v12965_v7 = vpop.eup %12964 }
 0xd66   :  { %12329 = vmatprep.mubr.msk.bf16.mxu1 %vm3289_vm6, %v8953_v1  ;;  %v12967_v2 = vpop.eup %12966  ;;  %v8896_v24 = vmul.f32 %v12965_v7, %v17380_v32  ;;  %v18697_v7 = vld [vmem:[#allocation21_spill] sm:$0xff] }
 0xd67   :  { %12330 = vmatmul.mubr.msk.bf16.vlgmr.msra.gmra.mrb[56].mxu1 %vm3289_vm6, %v8954_v19  ;;  %v12969_v16 = vpop.eup %12968  ;;  %v8893_v63 = vmul.f32 %v12967_v2, %v17374_v29  ;;  %v18696_v29 = vld [vmem:[#allocation26_spill] sm:$0xff] }
 0xd68   :  { %12354 = vmatpush3.bf16.msra.mxu1 %v18693_v59  ;;  %v8895_v51 = vmul.f32 %v12969_v16, %v17364_v55 }
 0xd69   :  { %v12971_v23 = vpop.eup %12970  ;;  %12355 = vmatprep.subr.bf16.mxu1 %v18694_v15  ;;  %v8665_v10 = vpop.xlane.xlu1 %8664 }
 0xd6a   :  { %v8894_v38 = vmul.f32 %v12971_v23, %v17385_v37  ;;  %v8956_v40 = vpack.c.bf16 %v8896_v24, %v8895_v51 }
 0xd6b   :  { %v8668_v43 = vpop.xlane.xlu0 %8667 }
 0xd6c   :  { %12356 = vmatpush3.bf16.msra.mxu1 %v18694_v15  ;;  %v8955_v4 = vpack.c.bf16 %v8894_v38, %v8893_v63  ;;  %12972 = vrcp.f32 %v8668_v43 }
 0xd6d   :  { %12357 = vmatprep.subr.bf16.mxu1 %v18695_v9  ;;  %v8689_v28 = vpop.xlane.xlu1 %8688 }
 0xd6e   :  { %12333 = vmatprep.mubr.msk.bf16.mxu1 %vm3289_vm6, %v8955_v4 }
 0xd6f   :  { %12334 = vmatmul.mubr.msk.bf16.gmra.mrb[60].mxu1 %vm3289_vm6, %v8956_v40  ;;  %v8692_v32 = vpop.xlane.xlu0 %8691 }
 0xd70   :  { %12358 = vmatpush3.bf16.msra.mxu1 %v18695_v9 }
 0xd71   :  { %12359 = vmatprep.subr.bf16.mxu1 %v18696_v29  ;;  %v8659_v37 = vpop.xlane.xlu1 %8658 }
 0xd72   :  { %12974 = vrcp.f32 %v8659_v37 }
 0xd73   :  { %12976 = vrcp.f32 %v8665_v10  ;;  %v8662_v55 = vpop.xlane.xlu0 %8661 }
 0xd74   :  { %12360 = vmatpush3.bf16.msra.mxu1 %v18696_v29  ;;  %12978 = vrcp.f32 %v8662_v55 }
 0xd75   :  { %12980 = vrcp.f32 %v8692_v32  ;;  %12385 = vmatprep.subr.bf16.mxu1 %v18697_v7  ;;  %v8683_v3 = vpop.xlane.xlu1 %8682 }
 0xd76   :  { %12982 = vrcp.f32 %v8683_v3  ;;  %v12973_v2 = vpop.eup %12972 }
 0xd77   :  { %12984 = vrcp.f32 %v8689_v28  ;;  %v8686_v1 = vpop.xlane.xlu0 %8685  ;;  %v8900_v10 = vmul.f32 %v12973_v2, %v17400_v25 }
 0xd78   :  { %12986 = vrcp.f32 %v8686_v1 }
 0xd79   :  { %v8677_v19 = vpop.xlane.xlu1 %8676 }
 0xd7b   :  { %v8680_v16 = vpop.xlane.xlu0 %8679 }
 0xd7c   :  { %v12975_v59 = vpop.eup %12974  ;;  %12988 = vrcp.f32 %v8680_v16  ;;  %v18701_v16 = vld [vmem:[#allocation31_spill] sm:$0xff] }
 0xd7d   :  { %v12977_v23 = vpop.eup %12976  ;;  %v8701_v24 = vpop.xlane.xlu1 %8700  ;;  %v8897_v51 = vmul.f32 %v12975_v59, %v17415_v31 }
 0xd7e   :  { %v12979_v15 = vpop.eup %12978  ;;  %v8899_v40 = vmul.f32 %v12977_v23, %v17395_v61  ;;  %v18698_v61 = vld [vmem:[#allocation19_spill] sm:$0xff] }
 0xd7f   :  { %v12981_v63 = vpop.eup %12980  ;;  %v8704_v38 = vpop.xlane.xlu0 %8703  ;;  %v8898_v43 = vmul.f32 %v12979_v15, %v17420_v36 }
 0xd80   :  { %v12983_v4 = vpop.eup %12982  ;;  %v8958_v37 = vpack.c.bf16 %v8900_v10, %v8899_v40  ;;  %v8908_v55 = vmul.f32 %v12981_v63, %v17410_v48 }
 0xd81   :  { %v12985_v9 = vpop.eup %12984  ;;  %v8671_v28 = vpop.xlane.xlu1 %8670  ;;  %v8957_v32 = vpack.c.bf16 %v8898_v43, %v8897_v51  ;;  %v8905_v31 = vmul.f32 %v12983_v4, %v17425_v27  ;;  %v18702_v51 = vld [vmem:[#allocation18_spill] sm:$0xff] }
 0xd82   :  { %v12987_v29 = vpop.eup %12986  ;;  %12990 = vrcp.f32 %v8671_v28  ;;  %v8907_v3 = vmul.f32 %v12985_v9, %v17405_v14 }
 0xd83   :  { %12992 = vrcp.f32 %v8677_v19  ;;  %12345 = vmatprep.mubr.msk.bf16.mxu0 %vm3289_vm6, %v8957_v32  ;;  %v8674_v25 = vpop.xlane.xlu0 %8673  ;;  %v8906_v36 = vmul.f32 %v12987_v29, %v17430_v58  ;;  %v18699_v19 = vld [vmem:[#allocation28_spill] sm:$0xff]  ;;  %v18700_v58 = vld [vmem:[#allocation53_spill] sm:$0xff] }
 0xd84   :  { %12994 = vrcp.f32 %v8674_v25  ;;  %12346 = vmatmul.mubr.msk.bf16.vlgmr.msra.gmra.mrb[68].mxu0 %vm3289_vm6, %v8958_v37  ;;  %v8962_v48 = vpack.c.bf16 %v8908_v55, %v8907_v3 }
 0xd85   :  { %12996 = vrcp.f32 %v8704_v38  ;;  %12370 = vmatpush3.bf16.msra.mxu0 %v18698_v61  ;;  %v8695_v1 = vpop.xlane.xlu1 %8694  ;;  %v8961_v2 = vpack.c.bf16 %v8906_v36, %v8905_v31  ;;  %v18704_v36 = vld [vmem:[#allocation22_spill] sm:$0xff] }
 0xd86   :  { %12998 = vrcp.f32 %v8695_v1  ;;  %12371 = vmatprep.subr.bf16.mxu0 %v18699_v19  ;;  %v12989_v59 = vpop.eup %12988 }
 0xd87   :  { %13000 = vrcp.f32 %v8701_v24  ;;  %12361 = vmatprep.mubr.msk.bf16.mxu1 %vm3289_vm6, %v8961_v2  ;;  %v8698_v27 = vpop.xlane.xlu0 %8697  ;;  %v8904_v63 = vmul.f32 %v12989_v59, %v17440_v33 }
 0xd88   :  { %13002 = vrcp.f32 %v8698_v27  ;;  %12362 = vmatmul.mubr.msk.bf16.vlgmr.msra.gmra.mrb[64].mxu1 %vm3289_vm6, %v8962_v48  ;;  %v18706_v48 = vld [vmem:[#allocation52_spill] sm:$0xff] }
 0xd89   :  { %12372 = vmatpush3.bf16.msra.mxu0 %v18699_v19  ;;  %12386 = vmatpush3.bf16.msra.mxu1 %v18697_v7  ;;  %v18703_v7 = vld [vmem:[#allocation25_spill] sm:$0xff] }
 0xd8a   :  { %v8713_v14 = vpop.xlane.xlu1 %8712  ;;  %12373 = vmatprep.subr.bf16.mxu0 %v18700_v58  ;;  %12387 = vmatprep.subr.bf16.mxu1 %v18701_v16 }
 0xd8c   :  { %v12991_v23 = vpop.eup %12990  ;;  %v8716_v15 = vpop.xlane.xlu0 %8715 }
 0xd8d   :  { %v12993_v10 = vpop.eup %12992  ;;  %12374 = vmatpush3.bf16.msra.mxu0 %v18700_v58  ;;  %12388 = vmatpush3.bf16.msra.mxu1 %v18701_v16  ;;  %v8901_v4 = vmul.f32 %v12991_v23, %v17455_v18  ;;  %13004 = vrcp.f32 %v8716_v15  ;;  %v18705_v18 = vld [vmem:[#allocation6_spill] sm:$0xff] }
 0xd8e   :  { %v12995_v24 = vpop.eup %12994  ;;  %v8737_v38 = vpop.xlane.xlu1 %8736  ;;  %12375 = vmatprep.subr.bf16.mxu0 %v18702_v51  ;;  %12389 = vmatprep.subr.bf16.mxu1 %v18703_v7  ;;  %v8903_v28 = vmul.f32 %v12993_v10, %v17435_v46 }
 0xd8f   :  { %v12997_v43 = vpop.eup %12996  ;;  %v8902_v40 = vmul.f32 %v12995_v24, %v17460_v8 }
 0xd90   :  { %v12999_v9 = vpop.eup %12998  ;;  %v8740_v32 = vpop.xlane.xlu0 %8739  ;;  %v8960_v55 = vpack.c.bf16 %v8904_v63, %v8903_v28  ;;  %v8912_v25 = vmul.f32 %v12997_v43, %v17450_v5  ;;  %v18707_v28 = vld [vmem:[#allocation47_spill] sm:$0xff] }
 0xd91   :  { %v13001_v29 = vpop.eup %13000  ;;  %12376 = vmatpush3.bf16.msra.mxu0 %v18702_v51  ;;  %12390 = vmatpush3.bf16.msra.mxu1 %v18703_v7  ;;  %v8959_v33 = vpack.c.bf16 %v8902_v40, %v8901_v4  ;;  %v8909_v46 = vmul.f32 %v12999_v9, %v17465_v34 }
 0xd92   :  { %v13003_v37 = vpop.eup %13002  ;;  %v8707_v31 = vpop.xlane.xlu1 %8706  ;;  %12391 = vmatprep.subr.bf16.mxu1 %v18704_v36  ;;  %12401 = vmatprep.subr.bf16.mxu0 %v18705_v18  ;;  %v8911_v3 = vmul.f32 %v13001_v29, %v17445_v60  ;;  %v18709_v29 = vld [vmem:[#allocation66_spill] sm:$0xff] }
 0xd93   :  { %13006 = vrcp.f32 %v8707_v31  ;;  %12349 = vmatprep.mubr.msk.bf16.mxu0 %vm3289_vm6, %v8959_v33  ;;  %v8910_v8 = vmul.f32 %v13003_v37, %v17470_v26 }
 0xd94   :  { %13008 = vrcp.f32 %v8713_v14  ;;  %v8710_v61 = vpop.xlane.xlu0 %8709  ;;  %12350 = vmatmul.mubr.msk.bf16.gmra.mrb[72].mxu0 %vm3289_vm6, %v8960_v55  ;;  %v8964_v1 = vpack.c.bf16 %v8912_v25, %v8911_v3  ;;  %v18710_v55 = vld [vmem:[#allocation35_spill] sm:$0xff] }
 0xd95   :  { %13010 = vrcp.f32 %v8710_v61  ;;  %12392 = vmatpush3.bf16.msra.mxu1 %v18704_v36  ;;  %v8963_v5 = vpack.c.bf16 %v8910_v8, %v8909_v46  ;;  %v18711_v36 = vld [vmem:[#allocation29_spill] sm:$0xff] }
 0xd96   :  { %13012 = vrcp.f32 %v8740_v32  ;;  %v8731_v2 = vpop.xlane.xlu1 %8730  ;;  %12417 = vmatprep.subr.bf16.mxu1 %v18706_v48  ;;  %v18708_v32 = vld [vmem:[#allocation41_spill] sm:$0xff] }
 0xd97   :  { %13014 = vrcp.f32 %v8731_v2  ;;  %12365 = vmatprep.mubr.msk.bf16.mxu1 %vm3289_vm6, %v8963_v5  ;;  %v13005_v26 = vpop.eup %13004 }
 0xd98   :  { %13016 = vrcp.f32 %v8737_v38  ;;  %v8734_v34 = vpop.xlane.xlu0 %8733  ;;  %12366 = vmatmul.mubr.msk.bf16.gmra.mrb[68].mxu1 %vm3289_vm6, %v8964_v1  ;;  %v8916_v59 = vmul.f32 %v13005_v26, %v17480_v20 }
 0xd99   :  { %13018 = vrcp.f32 %v8734_v34  ;;  %v18713_v34 = vld [vmem:[#allocation54_spill] sm:$0xff] }
 0xd9a   :  { %v8725_v60 = vpop.xlane.xlu1 %8724 }
 0xd9c   :  { %v8728_v19 = vpop.xlane.xlu0 %8727 }
 0xd9d   :  { %v13007_v27 = vpop.eup %13006  ;;  %13020 = vrcp.f32 %v8728_v19 }
 0xd9e   :  { %v13009_v14 = vpop.eup %13008  ;;  %v8749_v58 = vpop.xlane.xlu1 %8748  ;;  %v8913_v10 = vmul.f32 %v13007_v27, %v17495_v52 }
 0xd9f   :  { %v13011_v16 = vpop.eup %13010  ;;  %v8915_v38 = vmul.f32 %v13009_v14, %v17475_v62  ;;  %v18715_v14 = vld [vmem:[#allocation37_spill] sm:$0xff] }
 0xda0   :  { %v13013_v23 = vpop.eup %13012  ;;  %v8752_v15 = vpop.xlane.xlu0 %8751  ;;  %v8914_v24 = vmul.f32 %v13011_v16, %v17500_v56 }
 0xda1   :  { %v13015_v63 = vpop.eup %13014  ;;  %v8966_v40 = vpack.c.bf16 %v8916_v59, %v8915_v38  ;;  %v8924_v9 = vmul.f32 %v13013_v23, %v17490_v21 }
 0xda2   :  { %v13017_v51 = vpop.eup %13016  ;;  %v8719_v7 = vpop.xlane.xlu1 %8718  ;;  %v8965_v43 = vpack.c.bf16 %v8914_v24, %v8913_v10  ;;  %v8921_v52 = vmul.f32 %v13015_v63, %v18707_v28  ;;  %v18716_v63 = vld [vmem:[#allocation27_spill] sm:$0xff] }
 0xda3   :  { %v13019_v4 = vpop.eup %13018  ;;  %13022 = vrcp.f32 %v8719_v7  ;;  %v8923_v33 = vmul.f32 %v13017_v51, %v18709_v29  ;;  %v18718_v51 = vld [vmem:[#allocation39_spill] sm:$0xff] }
 0xda4   :  { %13024 = vrcp.f32 %v8725_v60  ;;  %12377 = vmatprep.mubr.msk.bf16.mxu0 %vm3289_vm6, %v8965_v43  ;;  %v8722_v20 = vpop.xlane.xlu0 %8721  ;;  %v8922_v56 = vmul.f32 %v13019_v4, %v18708_v32 }
 0xda5   :  { %13026 = vrcp.f32 %v8722_v20  ;;  %12378 = vmatmul.mubr.msk.bf16.vlgmr.msra.gmra.mrb[76].mxu0 %vm3289_vm6, %v8966_v40  ;;  %v8970_v21 = vpack.c.bf16 %v8924_v9, %v8923_v33 }
 0xda6   :  { %13028 = vrcp.f32 %v8752_v15  ;;  %12402 = vmatpush3.bf16.msra.mxu0 %v18705_v18  ;;  %v8743_v62 = vpop.xlane.xlu1 %8742  ;;  %v8969_v37 = vpack.c.bf16 %v8922_v56, %v8921_v52  ;;  %v18712_v18 = vld [vmem:[#allocation34_spill] sm:$0xff] }
 0xda7   :  { %13030 = vrcp.f32 %v8743_v62  ;;  %12403 = vmatprep.subr.bf16.mxu0 %v18710_v55  ;;  %v13021_v46 = vpop.eup %13020  ;;  %v18719_v62 = vld [vmem:[#allocation36_spill] sm:$0xff] }
 0xda8   :  { %13032 = vrcp.f32 %v8749_v58  ;;  %12393 = vmatprep.mubr.msk.bf16.mxu1 %vm3289_vm6, %v8969_v37  ;;  %v8746_v25 = vpop.xlane.xlu0 %8745  ;;  %v8920_v1 = vmul.f32 %v13021_v46, %v17520_v45 }
 0xda9   :  { %13034 = vrcp.f32 %v8746_v25  ;;  %12394 = vmatmul.mubr.msk.bf16.vlgmr.msra.gmra.mrb[72].mxu1 %vm3289_vm6, %v8970_v21 }
 0xdaa   :  { %12404 = vmatpush3.bf16.msra.mxu0 %v18710_v55  ;;  %12418 = vmatpush3.bf16.msra.mxu1 %v18706_v48  ;;  %v18714_v48 = vld [vmem:[#allocation23_spill] sm:$0xff]  ;;  %v18720_v55 = vld [vmem:[#allocation46_spill] sm:$0xff] }
 0xdab   :  { %v8761_v31 = vpop.xlane.xlu1 %8760  ;;  %12405 = vmatprep.subr.bf16.mxu0 %v18711_v36  ;;  %12419 = vmatprep.subr.bf16.mxu1 %v18712_v18 }
 0xdad   :  { %v13023_v8 = vpop.eup %13022  ;;  %v8764_v3 = vpop.xlane.xlu0 %8763 }
 0xdae   :  { %v13025_v61 = vpop.eup %13024  ;;  %12406 = vmatpush3.bf16.msra.mxu0 %v18711_v36  ;;  %12420 = vmatpush3.bf16.msra.mxu1 %v18712_v18  ;;  %v8917_v26 = vmul.f32 %v13023_v8, %v17535_v6  ;;  %13036 = vrcp.f32 %v8764_v3  ;;  %v18717_v6 = vld [vmem:[#allocation56_spill] sm:$0xff]  ;;  %v18721_v3 = vld [vmem:[#allocation42_spill] sm:$0xff] }
 0xdaf   :  { %v13027_v5 = vpop.eup %13026  ;;  %v8785_v2 = vpop.xlane.xlu1 %8784  ;;  %12407 = vmatprep.subr.bf16.mxu0 %v18713_v34  ;;  %12421 = vmatprep.subr.bf16.mxu1 %v18714_v48  ;;  %v8919_v58 = vmul.f32 %v13025_v61, %v18715_v14  ;;  %v18725_v14 = vld [vmem:[#allocation7_spill] sm:$0xff] }
 0xdb0   :  { %v13029_v60 = vpop.eup %13028  ;;  %v8918_v19 = vmul.f32 %v13027_v5, %v17540_v30  ;;  %v18722_v5 = vld [vmem:[#allocation48_spill] sm:$0xff] }
 0xdb1   :  { %v13031_v27 = vpop.eup %13030  ;;  %v8788_v16 = vpop.xlane.xlu0 %8787  ;;  %v8968_v15 = vpack.c.bf16 %v8920_v1, %v8919_v58  ;;  %v8928_v10 = vmul.f32 %v13029_v60, %v17530_v13 }
 0xdb2   :  { %v13033_v59 = vpop.eup %13032  ;;  %12408 = vmatpush3.bf16.msra.mxu0 %v18713_v34  ;;  %12422 = vmatpush3.bf16.msra.mxu1 %v18714_v48  ;;  %v8967_v45 = vpack.c.bf16 %v8918_v19, %v8917_v26  ;;  %v8925_v30 = vmul.f32 %v13031_v27, %v17545_v0  ;;  %v18724_v19 = vld [vmem:[#allocation33_spill] sm:$0xff] }
 0xdb3   :  { %v13035_v23 = vpop.eup %13034  ;;  %v8755_v24 = vpop.xlane.xlu1 %8754  ;;  %12423 = vmatprep.subr.bf16.mxu1 %v18716_v63  ;;  %12433 = vmatprep.subr.bf16.mxu0 %v18717_v6  ;;  %v8927_v7 = vmul.f32 %v13033_v59, %v18718_v51  ;;  %v18728_v51 = vld [vmem:[#allocation50_spill] sm:$0xff] }
 0xdb4   :  { %13038 = vrcp.f32 %v8755_v24  ;;  %12381 = vmatprep.mubr.msk.bf16.mxu0 %vm3289_vm6, %v8967_v45  ;;  %v8926_v38 = vmul.f32 %v13035_v23, %v17550_v35 }
 0xdb5   :  { %13040 = vrcp.f32 %v8761_v31  ;;  %v8758_v43 = vpop.xlane.xlu0 %8757  ;;  %12382 = vmatmul.mubr.msk.bf16.gmra.mrb[80].mxu0 %vm3289_vm6, %v8968_v15  ;;  %v8972_v4 = vpack.c.bf16 %v8928_v10, %v8927_v7  ;;  %v18726_v15 = vld [vmem:[#allocation45_spill] sm:$0xff] }
 0xdb6   :  { %13042 = vrcp.f32 %v8758_v43  ;;  %12424 = vmatpush3.bf16.msra.mxu1 %v18716_v63  ;;  %v8971_v13 = vpack.c.bf16 %v8926_v38, %v8925_v30  ;;  %v18727_v63 = vld [vmem:[#allocation32_spill] sm:$0xff] }
 0xdb7   :  { %13044 = vrcp.f32 %v8788_v16  ;;  %v8779_v40 = vpop.xlane.xlu1 %8778 }
 0xdb8   :  { %13046 = vrcp.f32 %v8779_v40  ;;  %12397 = vmatprep.mubr.msk.bf16.mxu1 %vm3289_vm6, %v8971_v13  ;;  %v13037_v35 = vpop.eup %13036 }
 0xdb9   :  { %13048 = vrcp.f32 %v8785_v2  ;;  %v8782_v0 = vpop.xlane.xlu0 %8781  ;;  %12398 = vmatmul.mubr.msk.bf16.gmra.mrb[76].mxu1 %vm3289_vm6, %v8972_v4  ;;  %v8932_v32 = vmul.f32 %v13037_v35, %v17560_v50  ;;  %v18723_v2 = vld [vmem:[#allocation43_spill] sm:$0xff]  ;;  %v18729_v35 = vmov 0.0  }
 0xdba   :  { %13050 = vrcp.f32 %v8782_v0 }
 0xdbb   :  { %v8773_v28 = vpop.xlane.xlu1 %8772 }
 0xdbd   :  { %v8776_v56 = vpop.xlane.xlu0 %8775 }
 0xdbe   :  { %v13039_v9 = vpop.eup %13038  ;;  %13052 = vrcp.f32 %v8776_v56 }
 0xdbf   :  { %v13041_v20 = vpop.eup %13040  ;;  %v8929_v33 = vmul.f32 %v13039_v9, %v17574_v22 }
 0xdc0   :  { %v13043_v52 = vpop.eup %13042  ;;  %v8931_v25 = vmul.f32 %v13041_v20, %v18720_v55 }
 0xdc1   :  { %v13045_v29 = vpop.eup %13044  ;;  %v8930_v37 = vmul.f32 %v13043_v52, %v18719_v62 }
 0xdc2   :  { %v13047_v21 = vpop.eup %13046  ;;  %v8974_v8 = vpack.c.bf16 %v8932_v32, %v8931_v25  ;;  %v8940_v61 = vmul.f32 %v13045_v29, %v18721_v3 }
 0xdc3   :  { %v13049_v31 = vpop.eup %13048  ;;  %v8767_v36 = vpop.xlane.xlu1 %8766  ;;  %v8973_v18 = vpack.c.bf16 %v8930_v37, %v8929_v33  ;;  %v8937_v22 = vmul.f32 %v13047_v21, %v17583_v49 }
 0xdc4   :  { %v13051_v46 = vpop.eup %13050  ;;  %13054 = vrcp.f32 %v8767_v36  ;;  %v8939_v34 = vmul.f32 %v13049_v31, %v18723_v2  ;;  %v18732_v2 = vld [vmem:[#allocation51_spill] sm:$0xff] }
 0xdc5   :  { %13056 = vrcp.f32 %v8773_v28  ;;  %12409 = vmatprep.mubr.msk.bf16.mxu0 %vm3289_vm6, %v8973_v18  ;;  %v8770_v50 = vpop.xlane.xlu0 %8769  ;;  %v8938_v1 = vmul.f32 %v13051_v46, %v18722_v5 }
 0xdc6   :  { %13058 = vrcp.f32 %v8770_v50  ;;  %12410 = vmatmul.mubr.msk.bf16.vlgmr.msra.gmra.mrb[84].mxu0 %vm3289_vm6, %v8974_v8  ;;  %v8978_v26 = vpack.c.bf16 %v8940_v61, %v8939_v34 }
 0xdc7   :  { %12434 = vmatpush3.bf16.msra.mxu0 %v18717_v6  ;;  %v8791_v48 = vpop.xlane.xlu1 %8790  ;;  %v8977_v60 = vpack.c.bf16 %v8938_v1, %v8937_v22  ;;  %v18731_v1 = vld [vmem:[#allocation44_spill] sm:$0xff] }
 0xdc8   :  { %13060 = vrcp.f32 %v8791_v48  ;;  %12435 = vmatprep.subr.bf16.mxu0 %v18724_v19  ;;  %v13053_v58 = vpop.eup %13052 }
 0xdc9   :  { %12425 = vmatprep.mubr.msk.bf16.mxu1 %vm3289_vm6, %v8977_v60  ;;  %v8794_v27 = vpop.xlane.xlu0 %8793  ;;  %v8936_v10 = vmul.f32 %v13053_v58, %v18726_v15 }
 0xdca   :  { %13062 = vrcp.f32 %v8794_v27  ;;  %12426 = vmatmul.mubr.msk.bf16.vlgmr.msra.gmra.mrb[80].mxu1 %vm3289_vm6, %v8978_v26 }
 0xdcb   :  { %12436 = vmatpush3.bf16.msra.mxu0 %v18724_v19 }
 0xdcc   :  { %v8809_v49 = vpop.xlane.xlu1 %8808  ;;  %12437 = vmatprep.subr.bf16.mxu0 %v18725_v14 }
 0xdce   :  { %v13055_v16 = vpop.eup %13054  ;;  %v8812_v59 = vpop.xlane.xlu0 %8811 }
 0xdcf   :  { %v13057_v45 = vpop.eup %13056  ;;  %12438 = vmatpush3.bf16.msra.mxu0 %v18725_v14  ;;  %13064 = vrcp.f32 %v8812_v59  ;;  %v8933_v6 = vmul.f32 %v13055_v16, %v17607_v53 }
 0xdd0   :  { %v13059_v23 = vpop.eup %13058  ;;  %v8803_v24 = vpop.xlane.xlu1 %8802  ;;  %12439 = vmatprep.subr.bf16.mxu0 %v18727_v63  ;;  %v8935_v7 = vmul.f32 %v13057_v45, %v18728_v51 }
 0xdd1   :  { %13066 = vrcp.f32 %v8803_v24  ;;  %v8934_v30 = vmul.f32 %v13059_v23, %v17612_v41 }
 0xdd2   :  { %v13061_v38 = vpop.eup %13060  ;;  %13068 = vrcp.f32 %v8809_v49  ;;  %v8806_v43 = vpop.xlane.xlu0 %8805  ;;  %v8976_v40 = vpack.c.bf16 %v8936_v10, %v8935_v7 }
 0xdd3   :  { %13070 = vrcp.f32 %v8806_v43  ;;  %12440 = vmatpush3.bf16.msra.mxu0 %v18727_v63  ;;  %v8975_v13 = vpack.c.bf16 %v8934_v30, %v8933_v6  ;;  %v8941_v53 = vmul.f32 %v13061_v38, %v17616_v54 }
 0xdd4   :  { %v13063_v4 = vpop.eup %13062  ;;  %v8797_v0 = vpop.xlane.xlu1 %8796  ;;  %12461 = vmatprep.subr.bf16.mxu0 %v18729_v35 }
 0xdd5   :  { %13072 = vrcp.f32 %v8797_v0  ;;  %12413 = vmatprep.mubr.msk.bf16.mxu0 %vm3289_vm6, %v8975_v13  ;;  %v8942_v41 = vmul.f32 %v13063_v4, %v17621_v47 }
 0xdd6   :  { %v8800_v9 = vpop.xlane.xlu0 %8799  ;;  %12414 = vmatmul.mubr.msk.bf16.gmra.mrb[88].mxu0 %vm3289_vm6, %v8976_v40 }
 0xdd7   :  { %13074 = vrcp.f32 %v8800_v9  ;;  %v8979_v20 = vpack.c.bf16 %v8942_v41, %v8941_v53 }
 0xdd8   :  { %v8815_v28 = vpop.xlane.xlu1 %8814 }
 0xdd9   :  { %13076 = vrcp.f32 %v8815_v28  ;;  %12429 = vmatprep.mubr.msk.bf16.mxu1 %vm3289_vm6, %v8979_v20  ;;  %v13065_v52 = vpop.eup %13064 }
 0xdda   :  { %v8818_v32 = vpop.xlane.xlu0 %8817  ;;  %v8948_v54 = vmul.f32 %v13065_v52, %v17632_v44 }
 0xddb   :  { %v13067_v56 = vpop.eup %13066  ;;  %13078 = vrcp.f32 %v8818_v32 }
 0xddc   :  { %v13069_v29 = vpop.eup %13068  ;;  %v8821_v33 = vpop.xlane.xlu1 %8820  ;;  %v8945_v37 = vmul.f32 %v13067_v56, %v17636_v42 }
 0xddd   :  { %v13071_v62 = vpop.eup %13070  ;;  %13080 = vrcp.f32 %v8821_v33  ;;  %v8947_v25 = vmul.f32 %v13069_v29, %v17627_v57  ;;  %v18730_v57 = vld [vmem:[#allocation24_spill] sm:$0xff] }
 0xdde   :  { %v8824_v47 = vpop.xlane.xlu0 %8823  ;;  %v8946_v21 = vmul.f32 %v13071_v62, %v17642_v12 }
 0xddf   :  { %v13073_v55 = vpop.eup %13072  ;;  %13082 = vrcp.f32 %v8824_v47  ;;  %v8982_v18 = vpack.c.bf16 %v8948_v54, %v8947_v25 }
 0xde0   :  { %v8981_v31 = vpack.c.bf16 %v8946_v21, %v8945_v37  ;;  %v8943_v46 = vmul.f32 %v13073_v55, %v17638_v11 }
 0xde1   :  { %v13075_v36 = vpop.eup %13074 }
 0xde2   :  { %v8944_v8 = vmul.f32 %v13075_v36, %v17646_v17  ;;  %12441 = vmatprep.mubr.msk.bf16.mxu0 %vm3289_vm6, %v8981_v31 }
 0xde3   :  { %v13077_v44 = vpop.eup %13076  ;;  %12442 = vmatmul.mubr.msk.bf16.vlgmr.msra.gmra.mrb[92].mxu0 %vm3289_vm6, %v8982_v18 }
 0xde4   :  { %v8980_v3 = vpack.c.bf16 %v8944_v8, %v8943_v46  ;;  %v8949_v12 = vmul.f32 %v13077_v44, %v17652_v39 }
 0xde5   :  { %v13079_v42 = vpop.eup %13078 }
 0xde6   :  { %12430 = vmatmul.mubr.msk.bf16.gmra.mrb[84].mxu1 %vm3289_vm6, %v8980_v3  ;;  %v8950_v61 = vmul.f32 %v13079_v42, %v18730_v57  ;;  %v10635_v57 = vld [vmem:[%s18073_s15 + $0x28] sm:$0xff] }
 0xde7   :  { %v13081_v50 = vpop.eup %13080 }
 0xde8   :  { %v8983_v22 = vpack.c.bf16 %v8950_v61, %v8949_v12  ;;  %v8951_v11 = vmul.f32 %v13081_v50, %v18731_v1  ;;  %v10634_v12 = vld [vmem:[%s18073_s15 + $0x20] sm:$0xff] }
 0xde9   :  { %v13083_v5 = vpop.eup %13082  ;;  %v9938_v61 = vpack.c.bf16 %v10635_v57, %v10634_v12 }
 0xdea   :  { %v8952_v17 = vmul.f32 %v13083_v5, %v18732_v2  ;;  %12445 = vmatprep.mubr.msk.bf16.mxu0 %vm3289_vm6, %v8983_v22 }
 0xdeb   :  { %12449 = vmatprep.subr.bf16.mxu1 %v9938_v61 }
 0xdec   :  { %v8984_v34 = vpack.c.bf16 %v8952_v17, %v8951_v11  ;;  %12450 = vmatpush3.bf16.msra.mxu1 %v9938_v61 }
 0xdee   :  { %12446 = vmatmul.mubr.msk.bf16.gmra.mrb[96].mxu0 %vm3289_vm6, %v8984_v34  ;;  %v10636_v34 = vld [vmem:[%s18073_s15 + $0x30] sm:$0xff] }
 0xdef   :  { %12465 = vmatprep.mubr.msk.bf16.mxu0 %vm13101_vm1, %v18729_v35 }
 0xe3a   :  { %v17813_v48 = vpop.f32.mrb[56].mxu1 }
 0xe3b   :  { %v17815_v39 = vpop.f32.mrb[57].mxu1 }
 0xe3c   :  { %v17817_v60 = vpop.f32.mrb[58].mxu1 }
 0xe3d   :  { %v17819_v26 = vpop.f32.mrb[59].mxu1 }
 0xe42   :  { %v17821_v19 = vpop.f32.mrb[60].mxu1 }
 0xe43   :  { %v17823_v27 = vpop.f32.mrb[61].mxu1 }
 0xe44   :  { %v17825_v49 = vpop.f32.mrb[62].mxu1 }
 0xe45   :  { %v17827_v14 = vpop.f32.mrb[63].mxu1 }
 0xe57   :  { %v12347_v58 = vpop.f32.mrb[68].mxu0 }
 0xe58   :  { %9645 = vrot.lane.b32.xlu1 %v12347_v58, %s13103_s5  ;;  %v9140_v16 = vpop.f32.mrb[69].mxu0  ;;  %v10637_v58 = vld [vmem:[%s18073_s15 + $0x38] sm:$0xff] }
 0xe59   :  { %v12348_v59 = vpop.f32.mrb[70].mxu0 }
 0xe5a   :  { %v9143_v45 = vpop.f32.mrb[71].mxu0 }
 0xe5b   :  { %v12363_v23 = vpop.f32.mrb[64].mxu1 }
 0xe5c   :  { %9641 = vrot.lane.b32.xlu1 %v9140_v16, %s13103_s5  ;;  %9677 = vrot.lane.b32.xlu0 %v12363_v23, %s13104_s26  ;;  %v9217_v15 = vpop.f32.mrb[65].mxu1 }
 0xe5d   :  { %v12364_v10 = vpop.f32.mrb[66].mxu1 }
 0xe5e   :  { %v9220_v24 = vpop.f32.mrb[67].mxu1 }
 0xe60   :  { %9647 = vrot.lane.b32.xlu1 %v12348_v59, %s13103_s5  ;;  %9673 = vrot.lane.b32.xlu0 %v9217_v15, %s13104_s26  ;;  %v9939_v59 = vpack.c.bf16 %v10637_v58, %v10636_v34 }
 0xe62   :  { %12451 = vmatprep.subr.bf16.mxu1 %v9939_v59 }
 0xe63   :  { %12452 = vmatpush3.bf16.msra.mxu1 %v9939_v59 }
 0xe64   :  { %9643 = vrot.lane.b32.xlu0 %v9143_v45, %s13103_s5  ;;  %9679 = vrot.lane.b32.xlu1 %v12364_v10, %s13104_s26 }
 0xe65   :  { %12469 = vmatprep.subr.bf16.mxu1 %v18729_v35 }
 0xe67   :  { %v12351_v63 = vpop.f32.mrb[72].mxu0 }
 0xe68   :  { %9675 = vrot.lane.b32.xlu1 %v9220_v24, %s13104_s26  ;;  %9653 = vrot.lane.b32.xlu0 %v12351_v63, %s13103_s5  ;;  %v9156_v6 = vpop.f32.mrb[73].mxu0 }
 0xe69   :  { %v12352_v30 = vpop.f32.mrb[74].mxu0 }
 0xe6a   :  { %v9159_v38 = vpop.f32.mrb[75].mxu0 }
 0xe6b   :  { %v12367_v51 = vpop.f32.mrb[68].mxu1 }
 0xe6c   :  { %9655 = vrot.lane.b32.xlu1 %v12352_v30, %s13103_s5  ;;  %9685 = vrot.lane.b32.xlu0 %v12367_v51, %s13104_s26  ;;  %v9233_v7 = vpop.f32.mrb[69].mxu1 }
 0xe6d   :  { %v12368_v43 = vpop.f32.mrb[70].mxu1 }
 0xe6e   :  { %v9236_v13 = vpop.f32.mrb[71].mxu1 }
 0xe70   :  { %9649 = vrot.lane.b32.xlu0 %v9156_v6, %s13103_s5  ;;  %9687 = vrot.lane.b32.xlu1 %v12368_v43, %s13104_s26 }
 0xe74   :  { %9681 = vrot.lane.b32.xlu0 %v9233_v7, %s13104_s26  ;;  %9651 = vrot.lane.b32.xlu1 %v9159_v38, %s13103_s5 }
 0xe78   :  { %v12379_v4 = vpop.f32.mrb[76].mxu0  ;;  %9683 = vrot.lane.b32.xlu1 %v9236_v13, %s13104_s26 }
 0xe79   :  { %9709 = vrot.lane.b32.xlu0 %v12379_v4, %s13105_s28  ;;  %v9294_v40 = vpop.f32.mrb[77].mxu0 }
 0xe7a   :  { %v12380_v0 = vpop.f32.mrb[78].mxu0 }
 0xe7b   :  { %v9297_v53 = vpop.f32.mrb[79].mxu0 }
 0xe7c   :  { %v12395_v41 = vpop.f32.mrb[72].mxu1  ;;  %9711 = vrot.lane.b32.xlu1 %v12380_v0, %s13105_s28 }
 0xe7d   :  { %9741 = vrot.lane.b32.xlu0 %v12395_v41, %s13106_s9  ;;  %v9371_v9 = vpop.f32.mrb[73].mxu1 }
 0xe7e   :  { %v12396_v20 = vpop.f32.mrb[74].mxu1 }
 0xe7f   :  { %v9374_v28 = vpop.f32.mrb[75].mxu1 }
 0xe80   :  { %9743 = vrot.lane.b32.xlu1 %v12396_v20, %s13106_s9 }
 0xe81   :  { %9705 = vrot.lane.b32.xlu0 %v9294_v40, %s13105_s28 }
 0xe84   :  { %9707 = vrot.lane.b32.xlu1 %v9297_v53, %s13105_s28 }
 0xe85   :  { %9737 = vrot.lane.b32.xlu0 %v9371_v9, %s13106_s9 }
 0xe88   :  { %v12383_v52 = vpop.f32.mrb[80].mxu0  ;;  %9739 = vrot.lane.b32.xlu1 %v9374_v28, %s13106_s9 }
 0xe89   :  { %9717 = vrot.lane.b32.xlu0 %v12383_v52, %s13105_s28  ;;  %v9310_v32 = vpop.f32.mrb[81].mxu0 }
 0xe8a   :  { %v12384_v56 = vpop.f32.mrb[82].mxu0 }
 0xe8b   :  { %v9313_v29 = vpop.f32.mrb[83].mxu0 }
 0xe8c   :  { %v12399_v33 = vpop.f32.mrb[76].mxu1  ;;  %9719 = vrot.lane.b32.xlu1 %v12384_v56, %s13105_s28 }
 0xe8d   :  { %9749 = vrot.lane.b32.xlu0 %v12399_v33, %s13106_s9  ;;  %v9387_v62 = vpop.f32.mrb[77].mxu1 }
 0xe8e   :  { %v12400_v54 = vpop.f32.mrb[78].mxu1 }
 0xe8f   :  { %v9390_v47 = vpop.f32.mrb[79].mxu1 }
 0xe90   :  { %9751 = vrot.lane.b32.xlu1 %v12400_v54, %s13106_s9 }
 0xe91   :  { %9713 = vrot.lane.b32.xlu0 %v9310_v32, %s13105_s28 }
 0xe94   :  { %9715 = vrot.lane.b32.xlu1 %v9313_v29, %s13105_s28 }
 0xe95   :  { %9745 = vrot.lane.b32.xlu0 %v9387_v62, %s13106_s9 }
 0xe98   :  { %9747 = vrot.lane.b32.xlu1 %v9390_v47, %s13106_s9 }
 0xe99   :  { %v12411_v37 = vpop.f32.mrb[84].mxu0 }
 0xe9a   :  { %9773 = vrot.lane.b32.xlu0 %v12411_v37, %s13107_s3  ;;  %v9448_v21 = vpop.f32.mrb[85].mxu0 }
 0xe9b   :  { %v12412_v55 = vpop.f32.mrb[86].mxu0 }
 0xe9c   :  { %v9451_v25 = vpop.f32.mrb[87].mxu0  ;;  %9775 = vrot.lane.b32.xlu1 %v12412_v55, %s13107_s3 }
 0xe9d   :  { %v12427_v31 = vpop.f32.mrb[80].mxu1 }
 0xe9e   :  { %9805 = vrot.lane.b32.xlu0 %v12427_v31, %s13108_s29  ;;  %v9525_v36 = vpop.f32.mrb[81].mxu1 }
 0xe9f   :  { %v12428_v18 = vpop.f32.mrb[82].mxu1 }
 0xea0   :  { %v9528_v46 = vpop.f32.mrb[83].mxu1  ;;  %9807 = vrot.lane.b32.xlu1 %v12428_v18, %s13108_s29 }
 0xea2   :  { %9769 = vrot.lane.b32.xlu0 %v9448_v21, %s13107_s3 }
 0xea4   :  { %9771 = vrot.lane.b32.xlu1 %v9451_v25, %s13107_s3 }
 0xea6   :  { %9801 = vrot.lane.b32.xlu0 %v9525_v36, %s13108_s29 }
 0xea8   :  { %9803 = vrot.lane.b32.xlu1 %v9528_v46, %s13108_s29 }
 0xea9   :  { %v12415_v8 = vpop.f32.mrb[88].mxu0 }
 0xeaa   :  { %9781 = vrot.lane.b32.xlu0 %v12415_v8, %s13107_s3  ;;  %v9464_v44 = vpop.f32.mrb[89].mxu0 }
 0xeab   :  { %v12416_v3 = vpop.f32.mrb[90].mxu0 }
 0xeac   :  { %v9467_v42 = vpop.f32.mrb[91].mxu0  ;;  %9783 = vrot.lane.b32.xlu1 %v12416_v3, %s13107_s3 }
 0xeae   :  { %9777 = vrot.lane.b32.xlu0 %v9464_v44, %s13107_s3 }
 0xeb0   :  { %9779 = vrot.lane.b32.xlu1 %v9467_v42, %s13107_s3 }
 0xeb6   :  { %v12443_v50 = vpop.f32.mrb[92].mxu0 }
 0xeb7   :  { %v9602_v22 = vpop.f32.mrb[93].mxu0 }
 0xeb8   :  { %v12444_v5 = vpop.f32.mrb[94].mxu0 }
 0xeb9   :  { %v12431_v1 = vpop.f32.mrb[84].mxu1  ;;  %v9605_v11 = vpop.f32.mrb[95].mxu0 }
 0xeba   :  { %v9541_v2 = vpop.f32.mrb[85].mxu1 }
 0xebb   :  { %9809 = vrot.lane.b32.xlu0 %v9541_v2, %s13108_s29  ;;  %v12432_v17 = vpop.f32.mrb[86].mxu1 }
 0xebc   :  { %v9544_v16 = vpop.f32.mrb[87].mxu1 }
 0xebd   :  { %9811 = vrot.lane.b32.xlu1 %v9544_v16, %s13108_s29 }
 0xebf   :  { %9837 = vrot.lane.b32.xlu0 %v12443_v50, %s18733_s17 }
 0xec1   :  { %9839 = vrot.lane.b32.xlu1 %v12444_v5, %s18733_s17  ;;  %v12447_v45 = vpop.f32.mrb[96].mxu0 }
 0xec2   :  { %v9618_v23 = vpop.f32.mrb[97].mxu0 }
 0xec3   :  { %9833 = vrot.lane.b32.xlu0 %v9602_v22, %s18733_s17  ;;  %v12448_v15 = vpop.f32.mrb[98].mxu0 }
 0xec4   :  { %v9621_v10 = vpop.f32.mrb[99].mxu0 }
 0xec5   :  { %9835 = vrot.lane.b32.xlu1 %v9605_v11, %s18733_s17 }
 0xec7   :  { %9813 = vrot.lane.b32.xlu0 %v12431_v1, %s13108_s29 }
 0xec9   :  { %9815 = vrot.lane.b32.xlu1 %v12432_v17, %s13108_s29 }
 0xeca   :  { %v9646_v24 = vpop.permute.xlu1 %9645 }
 0xecb   :  { %9841 = vrot.lane.b32.xlu0 %v9618_v23, %s18733_s17  ;;  %v9859_v63 = vsel %vm359_vm5, %v17813_v48, %v9646_v24 }
 0xecd   :  { %9843 = vrot.lane.b32.xlu1 %v9621_v10, %s18733_s17 }
 0xece   :  { %v9642_v6 = vpop.permute.xlu1 %9641  ;;  %v9678_v30 = vpop.permute.xlu0 %9677 }
 0xecf   :  { %9845 = vrot.lane.b32.xlu0 %v12447_v45, %s18733_s17  ;;  %v9857_v38 = vsel %vm359_vm5, %v17815_v39, %v9642_v6  ;;  %v9867_v51 = vsel %vm130_vm2, %v9859_v63, %v9678_v30 }
 0xed1   :  { %9847 = vrot.lane.b32.xlu1 %v12448_v15, %s18733_s17 }
 0xed2   :  { %v9648_v7 = vpop.permute.xlu1 %9647  ;;  %v9674_v43 = vpop.permute.xlu0 %9673 }
 0xed3   :  { %v9860_v13 = vsel %vm359_vm5, %v17817_v60, %v9648_v7  ;;  %v9865_v48 = vsel %vm130_vm2, %v9857_v38, %v9674_v43 }
 0xed6   :  { %v9680_v4 = vpop.permute.xlu1 %9679  ;;  %v9644_v40 = vpop.permute.xlu0 %9643 }
 0xed7   :  { %v9868_v0 = vsel %vm130_vm2, %v9860_v13, %v9680_v4  ;;  %v9858_v53 = vsel %vm359_vm5, %v17819_v26, %v9644_v40 }
 0xeda   :  { %v9676_v41 = vpop.permute.xlu1 %9675  ;;  %v9654_v39 = vpop.permute.xlu0 %9653 }
 0xedb   :  { %v9866_v9 = vsel %vm130_vm2, %v9858_v53, %v9676_v41  ;;  %v9863_v20 = vsel %vm359_vm5, %v17821_v19, %v9654_v39 }
 0xede   :  { %v9656_v28 = vpop.permute.xlu1 %9655  ;;  %v9686_v52 = vpop.permute.xlu0 %9685 }
 0xedf   :  { %v9864_v60 = vsel %vm359_vm5, %v17825_v49, %v9656_v28  ;;  %v17915_v32 = vsel %vm130_vm2, %v9863_v20, %v9686_v52 }
 0xee2   :  { %v9688_v56 = vpop.permute.xlu1 %9687  ;;  %v9650_v29 = vpop.permute.xlu0 %9649 }
 0xee3   :  { %v17918_v33 = vsel %vm130_vm2, %v9864_v60, %v9688_v56  ;;  %v9861_v26 = vsel %vm359_vm5, %v17823_v27, %v9650_v29 }
 0xee6   :  { %v9652_v62 = vpop.permute.xlu1 %9651  ;;  %v9682_v54 = vpop.permute.xlu0 %9681 }
 0xee7   :  { %v9862_v19 = vsel %vm359_vm5, %v17827_v14, %v9652_v62  ;;  %v17925_v47 = vsel %vm130_vm2, %v9861_v26, %v9682_v54 }
 0xeea   :  { %v9684_v49 = vpop.permute.xlu1 %9683 }
 0xeeb   :  { %v17928_v37 = vsel %vm130_vm2, %v9862_v19, %v9684_v49  ;;  %v9710_v21 = vpop.permute.xlu0 %9709 }
 0xeec   :  { %v9875_v15 = vsel %vm4914_vm7, %v9867_v51, %v9710_v21  ;;  %v10633_v51 = vld [vmem:[%s18074_s13 + $0x1] ss:$0 sm:$0xff] }
 0xeee   :  { %v9712_v55 = vpop.permute.xlu1 %9711 }
 0xeef   :  { %v9742_v25 = vpop.permute.xlu0 %9741  ;;  %v9876_v63 = vsel %vm4914_vm7, %v9868_v0, %v9712_v55 }
 0xef0   :  { %v9883_v10 = vsel %vm4923_vm8, %v9875_v15, %v9742_v25 }
 0xef2   :  { %v9744_v31 = vpop.permute.xlu1 %9743 }
 0xef3   :  { %v9706_v36 = vpop.permute.xlu0 %9705  ;;  %v9884_v30 = vsel %vm4923_vm8, %v9876_v63, %v9744_v31 }
 0xef4   :  { %v9873_v43 = vsel %vm4914_vm7, %v9865_v48, %v9706_v36 }
 0xef6   :  { %v9708_v18 = vpop.permute.xlu1 %9707 }
 0xef7   :  { %v9738_v46 = vpop.permute.xlu0 %9737  ;;  %v9874_v41 = vsel %vm4914_vm7, %v9866_v9, %v9708_v18 }
 0xef8   :  { %v9881_v40 = vsel %vm4923_vm8, %v9873_v43, %v9738_v46  ;;  %v10086_v43 = vld [vmem:[%s18079_s22 + $0x8] sm:$0xff] }
 0xefa   :  { %v9740_v27 = vpop.permute.xlu1 %9739 }
 0xefb   :  { %v17930_v8 = vpop.permute.xlu0 %9717  ;;  %v9882_v48 = vsel %vm4923_vm8, %v9874_v41, %v9740_v27 }
 0xefe   :  { %v17932_v44 = vpop.permute.xlu1 %9719 }
 0xeff   :  { %v17934_v14 = vpop.permute.xlu0 %9749 }
 0xf02   :  { %v17936_v3 = vpop.permute.xlu1 %9751 }
 0xf03   :  { %v9714_v42 = vpop.permute.xlu0 %9713 }
 0xf04   :  { %v9877_v25 = vsel %vm4914_vm7, %v17925_v47, %v9714_v42  ;;  %v9879_v47 = vsel %vm4914_vm7, %v17915_v32, %v17930_v8 }
 0xf06   :  { %v9716_v12 = vpop.permute.xlu1 %9715 }
 0xf07   :  { %v9746_v57 = vpop.permute.xlu0 %9745  ;;  %v9878_v46 = vsel %vm4914_vm7, %v17928_v37, %v9716_v12  ;;  %v9887_v37 = vsel %vm4923_vm8, %v9879_v47, %v17934_v14 }
 0xf08   :  { %v9885_v31 = vsel %vm4923_vm8, %v9877_v25, %v9746_v57 }
 0xf0a   :  { %v9748_v61 = vpop.permute.xlu1 %9747 }
 0xf0c   :  { %v9774_v50 = vpop.permute.xlu0 %9773 }
 0xf0d   :  { %v9891_v6 = vsel %vm4932_vm9, %v9883_v10, %v9774_v50  ;;  %v9886_v50 = vsel %vm4923_vm8, %v9878_v46, %v9748_v61 }
 0xf0e   :  { %v9776_v22 = vpop.permute.xlu1 %9775 }
 0xf0f   :  { %v9892_v13 = vsel %vm4932_vm9, %v9884_v30, %v9776_v22  ;;  %v10028_v30 = vld [vmem:[%s18078_s20 + $0x18] sm:$0xff] }
 0xf10   :  { %v9806_v5 = vpop.permute.xlu0 %9805 }
 0xf11   :  { %v9899_v38 = vsel %vm4941_vm10, %v9891_v6, %v9806_v5  ;;  %v10027_v6 = vld [vmem:[%s18078_s20 + $0x10] sm:$0xff] }
 0xf12   :  { %v9808_v1 = vpop.permute.xlu1 %9807 }
 0xf13   :  { %v9900_v0 = vsel %vm4941_vm10, %v9892_v13, %v9808_v1  ;;  %v9880_v1 = vsel %vm4914_vm7, %v17918_v33, %v17932_v44  ;;  %v10087_v13 = vld [vmem:[%s18079_s22 + $0x10] sm:$0xff] }
 0xf14   :  { %v9770_v11 = vpop.permute.xlu0 %9769  ;;  %v9888_v8 = vsel %vm4923_vm8, %v9880_v1, %v17936_v3 }
 0xf15   :  { %v9889_v39 = vsel %vm4932_vm9, %v9881_v40, %v9770_v11 }
 0xf16   :  { %v9772_v2 = vpop.permute.xlu1 %9771 }
 0xf17   :  { %v9890_v29 = vsel %vm4932_vm9, %v9882_v48, %v9772_v2  ;;  %v18734_v48 = vld [vmem:[#allocation63_spill] sm:$0xff] }
 0xf18   :  { %v9802_v17 = vpop.permute.xlu0 %9801 }
 0xf19   :  { %v9897_v28 = vsel %vm4941_vm10, %v9889_v39, %v9802_v17 }
 0xf1a   :  { %v9804_v34 = vpop.permute.xlu1 %9803 }
 0xf1b   :  { %v9898_v62 = vsel %vm4941_vm10, %v9890_v29, %v9804_v34 }
 0xf1c   :  { %v9782_v58 = vpop.permute.xlu0 %9781 }
 0xf1d   :  { %v9895_v11 = vsel %vm4932_vm9, %v9887_v37, %v9782_v58 }
 0xf1e   :  { %v9784_v16 = vpop.permute.xlu1 %9783 }
 0xf1f   :  { %v9896_v14 = vsel %vm4932_vm9, %v9888_v8, %v9784_v16  ;;  %v10025_v16 = vld [vmem:[%s18078_s20] sm:$0xff] }
 0xf20   :  { %v9778_v59 = vpop.permute.xlu0 %9777 }
 0xf21   :  { %v9893_v27 = vsel %vm4932_vm9, %v9885_v31, %v9778_v59 }
 0xf22   :  { %v9780_v45 = vpop.permute.xlu1 %9779 }
 0xf23   :  { %v9894_v42 = vsel %vm4932_vm9, %v9886_v50, %v9780_v45  ;;  %v10092_v50 = vld [vmem:[%s18079_s22 + $0x38] sm:$0xff] }
 0xf2d   :  { %v9810_v23 = vpop.permute.xlu0 %9809 }
 0xf2e   :  { %v9901_v22 = vsel %vm4941_vm10, %v9893_v27, %v9810_v23  ;;  %v10091_v27 = vld [vmem:[%s18079_s22 + $0x30] sm:$0xff] }
 0xf2f   :  { %v9812_v24 = vpop.permute.xlu1 %9811 }
 0xf30   :  { %v9902_v12 = vsel %vm4941_vm10, %v9894_v42, %v9812_v24  ;;  %v10026_v24 = vld [vmem:[%s18078_s20 + $0x8] sm:$0xff] }
 0xf31   :  { %v9838_v7 = vpop.permute.xlu0 %9837  ;;  %v10030_v63 = vpack.c.bf16 %v10026_v24, %v10025_v16 }
 0xf32   :  { %v9907_v4 = vsel %vm4950_vm11, %v9899_v38, %v9838_v7  ;;  %v10031_v38 = vpack.c.bf16 %v10028_v30, %v10027_v6  ;;  %v10085_v7 = vld [vmem:[%s18079_s22] sm:$0xff] }
 0xf33   :  { %v9840_v53 = vpop.permute.xlu1 %9839  ;;  %v9923_v52 = vadd.f32 %v10633_v51, %v9907_v4  ;;  %12462 = vmatpush3.bf16.msra.mxu0 %v10030_v63  ;;  %v10088_v4 = vld [vmem:[%s18079_s22 + $0x18] sm:$0xff] }
 0xf34   :  { %v9908_v20 = vsel %vm4950_vm11, %v9900_v0, %v9840_v53  ;;  %12463 = vmatprep.subr.bf16.mxu0 %v18729_v35  ;;  %v10095_v40 = vpack.c.bf16 %v10088_v4, %v10087_v13 }
 0xf35   :  { %v9924_v60 = vadd.f32 %v10633_v51, %v9908_v20  ;;  %v9834_v56 = vpop.permute.xlu0 %9833  ;;  %v10338_v20 = vld [vmem:[%s18080_s16] ss:$0 sm:$0xff] }
 0xf36   :  { %v9905_v26 = vsel %vm4950_vm11, %v9897_v28, %v9834_v56  ;;  %v5056_v28 = vadd.f32 %v18734_v48, %v10338_v20  ;;  %v18735_v56 = vld [vmem:[#allocation65_spill] sm:$0xff] }
 0xf37   :  { %v9935_v54 = vpack.c.bf16 %v9924_v60, %v9923_v52  ;;  %v9836_v19 = vpop.permute.xlu1 %9835  ;;  %v9921_v49 = vadd.f32 %v10633_v51, %v9905_v26  ;;  %12464 = vmatpush3.bf16.msra.mxu0 %v10031_v38  ;;  %v10643_v60 = vld [vmem:[%s18080_s16 + $0x1] ss:$0 sm:$0xff]  ;;  %v5059_v29 = vadd.f32 %v18735_v56, %v10338_v20 }
 0xf38   :  { %v9906_v9 = vsel %vm4950_vm11, %v9898_v62, %v9836_v19 }
 0xf39   :  { %v9922_v21 = vadd.f32 %v10633_v51, %v9906_v9  ;;  %v9814_v55 = vpop.permute.xlu0 %9813 }
 0xf3a   :  { %v9903_v2 = vsel %vm4941_vm10, %v9895_v11, %v9814_v55 }
 0xf3b   :  { %v9934_v36 = vpack.c.bf16 %v9922_v21, %v9921_v49  ;;  %v9816_v18 = vpop.permute.xlu1 %9815 }
 0xf3c   :  { %v9904_v23 = vsel %vm4941_vm10, %v9896_v14, %v9816_v18  ;;  %v10090_v18 = vld [vmem:[%s18079_s22 + $0x28] sm:$0xff] }
 0xf3d   :  { %12453 = vmatprep.mubr.msk.bf16.mxu1 %vm82_vm0, %v9934_v36  ;;  %v9842_v5 = vpop.permute.xlu0 %9841  ;;  %v10089_v36 = vld [vmem:[%s18079_s22 + $0x20] sm:$0xff] }
 0xf3e   :  { %v9909_v57 = vsel %vm4950_vm11, %v9901_v22, %v9842_v5  ;;  %12454 = vmatmul.mubr.msk.bf16.vlgmr.msra.gmra.mrb[88].mxu1 %vm82_vm0, %v9935_v54  ;;  %v10096_v46 = vpack.c.bf16 %v10090_v18, %v10089_v36  ;;  %v10097_v22 = vpack.c.bf16 %v10092_v50, %v10091_v27  ;;  %v10644_v5 = vld [vmem:[%s18081_s21] ss:$0 sm:$0xff] }
 0xf3f   :  { %v9844_v61 = vpop.permute.xlu1 %9843  ;;  %v9925_v17 = vadd.f32 %v10633_v51, %v9909_v57 }
 0xf40   :  { %v9910_v32 = vsel %vm4950_vm11, %v9902_v12, %v9844_v61 }
 0xf41   :  { %v9926_v34 = vadd.f32 %v10633_v51, %v9910_v32  ;;  %v9846_v59 = vpop.permute.xlu0 %9845  ;;  %v10646_v32 = vld [vmem:[%s18082_s23] ss:$0 sm:$0xff] }
 0xf42   :  { %v9911_v45 = vsel %vm4950_vm11, %v9903_v2, %v9846_v59 }
 0xf43   :  { %v9936_v15 = vpack.c.bf16 %v9926_v34, %v9925_v17  ;;  %v9848_v33 = vpop.permute.xlu1 %9847  ;;  %v9927_v58 = vadd.f32 %v10633_v51, %v9911_v45 }
 0xf44   :  { %v9912_v44 = vsel %vm4950_vm11, %v9904_v23, %v9848_v33 }
 0xf45   :  { %v9928_v10 = vadd.f32 %v10633_v51, %v9912_v44  ;;  %12457 = vmatprep.mubr.msk.bf16.mxu1 %vm82_vm0, %v9936_v15  ;;  %v10094_v51 = vpack.c.bf16 %v10086_v43, %v10085_v7 }
 0xf47   :  { %v9937_v3 = vpack.c.bf16 %v9928_v10, %v9927_v58  ;;  %12470 = vmatpush3.bf16.msra.mxu1 %v10094_v51 }
 0xf48   :  { %12471 = vmatprep.subr.bf16.mxu1 %v18729_v35 }
 0xf49   :  { %12458 = vmatmul.mubr.msk.bf16.gmra.mrb[92].mxu1 %vm82_vm0, %v9937_v3 }
 0xf4a   :  { %12477 = vmatprep.mubr.msk.bf16.mxu1 %vm13101_vm1, %v18729_v35 }
 0xf4b   :  { %12472 = vmatpush3.bf16.msra.mxu1 %v10095_v40 }
 0xf4c   :  { %12473 = vmatprep.subr.bf16.mxu1 %v18729_v35 }
 0xf4f   :  { %12474 = vmatpush3.bf16.msra.mxu1 %v10096_v46 }
 0xf50   :  { %12475 = vmatprep.subr.bf16.mxu1 %v18729_v35 }
 0xf53   :  { %12476 = vmatpush3.bf16.msra.mxu1 %v10097_v22 }
0x1011   :  { %v12455_v0 = vpop.f32.mrb[88].mxu1 }
0x1012   :  { %v9986_v53 = vpop.f32.mrb[89].mxu1 }
0x1013   :  { %v12456_v41 = vpop.f32.mrb[90].mxu1 }
0x1014   :  { %v9988_v39 = vpop.f32.mrb[91].mxu1 }
0x101c   :  { %v12459_v52 = vpop.f32.mrb[92].mxu1 }
0x101d   :  { %v10011_v26 = vadd.f32 %v12459_v52, %v5056_v28  ;;  %v9998_v62 = vpop.f32.mrb[93].mxu1 }
0x101e   :  { %v12460_v54 = vpop.f32.mrb[94].mxu1 }
0x101f   :  { %v10021_v19 = vadd.f32 %v10643_v60, %v10011_v26  ;;  %v10012_v9 = vadd.f32 %v12460_v54, %v5059_v29  ;;  %v10000_v49 = vpop.f32.mrb[95].mxu1 }
0x1021   :  { %v10022_v21 = vadd.f32 %v10643_v60, %v10012_v9  ;;  %v10023_v55 = vmax.f32 %v10021_v19, 0.0 }
0x1023   :  { %v10024_v25 = vmax.f32 %v10022_v21, 0.0 }
0x1025   :  { %v10029_v31 = vpack.c.bf16 %v10024_v25, %v10023_v55 }
0x1027   :  { %12466 = vmatmul.mubr.msk.bf16.vlgmr.msra.gmra.mrb[100].mxu0 %vm82_vm0, %v10029_v31 }
0x10fa   :  { %v10076_v47 = vpop.f32.mrb[100].mxu0 }
0x10fb   :  { %v10077_v42 = vadd.f32 %v10644_v5, %v10076_v47  ;;  %v12467_v57 = vpop.f32.mrb[101].mxu0 }
0x10fc   :  { %v10079_v37 = vpop.f32.mrb[102].mxu0 }
0x10fd   :  { %v10080_v12 = vadd.f32 %v10644_v5, %v10079_v37  ;;  %v12468_v35 = vpop.f32.mrb[103].mxu0  ;;  %v10083_v61 = vmax.f32 %v10077_v42, 0.0 }
0x10ff   :  { %v10084_v1 = vmax.f32 %v10080_v12, 0.0 }
0x1101   :  { %v10093_v11 = vpack.c.bf16 %v10084_v1, %v10083_v61 }
0x1103   :  { %12478 = vmatmul.mubr.msk.bf16.vlgmr.msra.gmra.mrb[96].mxu1 %vm3289_vm6, %v10093_v11 }
0x11d6   :  { %v10142_v8 = vpop.f32.mrb[96].mxu1 }
0x11d7   :  { %v10143_v2 = vadd.f32 %v10646_v32, %v10142_v8  ;;  %v12479_v17 = vpop.f32.mrb[97].mxu1 }
0x11d8   :  { %v10145_v34 = vpop.f32.mrb[98].mxu1 }
0x11d9   :  { %10149 = vst.msk [vmem:[%s18083_s24] sm:$0xff] %vm4914_vm7, %v10143_v2  ;;  %v10146_v59 = vadd.f32 %v10646_v32, %v10145_v34  ;;  %v12480_v14 = vpop.f32.mrb[99].mxu1 }
0x11db   :  { %10150 = vst.msk [vmem:[%s18083_s24 + $0x8] sm:$0xff] %vm4914_vm7, %v10146_v59 }

</bundles_post_ra>
